<compile_context>
chip_gen: v7x
topology: tpu7x:2x2x1
jax: 0.10.0
libtpu: 0.0.40
codegen_flags: <defaults>
</compile_context>

<pallas_src>
import numpy as np
import jax
import jax.numpy as jnp
from jax import lax
from jax.experimental import pallas as pl
from jax.experimental.pallas import tpu as pltpu

# ---------------- configuration (small shapes consistent with the module) ----
N_TRAJ      = 32                # batch of trajectories (raised per perf review)
TRAJ_BLOCK  = 16                # trajectories per grid step ("parallel" axis)
N_TP        = 8                 # number of time points (sequence length)
N_DATA      = 8                 # observed data dims
N_DIMS      = 2 * N_DATA        # data || mask (GRU_unit assumes 2nd half = mask)
LATENT_DIM  = 32
N_GRU_UNITS = 100
TZ_UNITS    = 100
Z0_DIM      = LATENT_DIM
ODE_HIDDEN  = 64                # synthetic ode_func hidden width

GRU_PAD = 128                   # lane-padded hidden widths
TZ_PAD  = 128
ODE_PAD = 128


def _dot(a, b):
    # bf16 x bf16 MXU matmul, f32 accumulation.  Weights (b) are stored bf16;
    # casting the tiny (B, K) activation to bf16 matches the default MXU
    # truncation behaviour.
    return jnp.dot(a.astype(jnp.bfloat16), b, preferred_element_type=jnp.float32)


def _dot_hp(a, b):
    # High-precision dot for the plain-JAX reference only.
    return jnp.dot(a, b, precision=lax.Precision.HIGHEST,
                   preferred_element_type=jnp.float32)


# ------------------------------ Pallas kernel --------------------------------
def _make_encoder_kernel(nsubs, dts):
    """Build the kernel with the Euler schedule baked in as static constants."""
    nsubs = [int(n) for n in np.asarray(nsubs)]
    dts = [float(d) for d in np.asarray(dts)]
    n_tp = len(nsubs)

    def kernel(data_ref, mask_ref,
               gwy_ref, gws_ref, gwx_ref, gb1_ref, gw2_ref, gb2_ref,
               nwy_ref, nws_ref, nwx_ref, nb1_ref, nw2_ref, nb2_ref,
               twy_ref, tws_ref, tb1_ref, tw2_ref, tb2_ref,
               ow1_ref, ob1_ref, ow2_ref, ob2_ref,
               mean_ref, std_ref):
        tb = data_ref.shape[1]         # trajectories in this block
        L = LATENT_DIM

        y = jnp.zeros((tb, L), jnp.float32)
        y_std = jnp.zeros((tb, L), jnp.float32)

        # Fully unrolled time recurrence (n_tp and the Euler sub-step counts
        # are static).  All weights / biases are read from VMEM at the point
        # of use so live ranges stay short (no register spills).
        for t in range(n_tp):
            dt = dts[t]
            n_euler = nsubs[t]

            # ---- ODE evolution of prev_y between observation times ----
            if n_euler > 0:
                ow1 = ow1_ref[...]               # small, used n_euler times
                ow2 = ow2_ref[...]
                ob1 = ob1_ref[...]
                ob2_dt = ob2_ref[...] * dt       # fold dt once per timestep
                for _ in range(n_euler):
                    h = jnp.tanh(_dot(y, ow1) + ob1)
                    y = y + _dot(h, ow2) * dt + ob2_dt

            x = data_ref[t]                      # (tb, n_dims)
            m = mask_ref[t]                      # (tb, 1) precomputed mask

            # ---- GRU_unit.forward(y, y_std, x, masked_update=True) ----
            # fused update||reset first layer, split-K (concat-free) dots
            gh = jnp.tanh(_dot(y, gwy_ref[...]) + _dot(y_std, gws_ref[...])
                          + _dot(x, gwx_ref[...]) + gb1_ref[...])
            # block-diagonal fused second layer: one dot, slice at lane L
            gr = jax.nn.sigmoid(_dot(gh, gw2_ref[...]) + gb2_ref[...])
            u = gr[:, :L]                        # update gate
            r = gr[:, L:]                        # reset gate

            nh = jnp.tanh(_dot(y * r, nwy_ref[...]) + _dot(y_std * r, nws_ref[...])
                          + _dot(x, nwx_ref[...]) + nb1_ref[...])
            ns = _dot(nh, nw2_ref[...]) + nb2_ref[...]   # (tb, 2L) fused head
            new_state = ns[:, :L]
            new_state_std = jnp.abs(ns[:, L:])

            new_y = (1.0 - u) * new_state + u * y
            new_y_std = (1.0 - u) * new_state_std + u * y_std

            y = m * new_y + (1.0 - m) * y
            y_std = jnp.abs(m * new_y_std + (1.0 - m) * y_std)

        # ---- transform_z0 — runs exactly once, after the recurrence ----
        th = jnp.tanh(_dot(y, twy_ref[...]) + _dot(y_std, tws_ref[...])
                      + tb1_ref[...])
        tz = _dot(th, tw2_ref[...]) + tb2_ref[...]       # (tb, 2*Z0_DIM)
        mean_ref[0] = tz[:, :Z0_DIM]
        std_ref[0] = jnp.abs(tz[:, Z0_DIM:])

    return kernel


# --------------------------- host-side helpers --------------------------------
def build_schedule(time_steps_np, run_backwards=True):
    """Mirror run_odernn's step-size logic (Euler sub-step count & dt per step)."""
    ts = np.asarray(time_steps_np, dtype=np.float32)
    n_tp = ts.shape[0]
    prev_t = np.float32(ts[-1] + 0.01)
    t_i = np.float32(ts[-1])
    interval = np.float32(ts[-1] - ts[0])
    min_step = np.float32(interval / 50.0)
    order = list(reversed(range(n_tp))) if run_backwards else list(range(n_tp))
    idxs, nsubs, dts = [], [], []
    for i in order:
        if prev_t - t_i < min_step:
            n_euler = 1
            dt = np.float32(t_i - prev_t)
        else:
            n_int = max(2, int((prev_t - t_i) / min_step))
            n_euler = n_int - 1
            dt = np.float32((t_i - prev_t) / n_euler)
        idxs.append(i)
        nsubs.append(n_euler)
        dts.append(dt)
        prev_t, t_i = ts[i], ts[i - 1]
    return (np.array(idxs, np.int32), np.array(nsubs, np.int32),
            np.array(dts, np.float32))


def init_params(key):
    """Deterministic synthetic weights: N(0, 0.1) weights, zero biases
    (matches utils.init_network_weights). Original (unpadded) module layout."""
    def linear(k, fan_in, fan_out):
        w = 0.1 * jax.random.normal(k, (fan_in, fan_out), jnp.float32)
        b = jnp.zeros((1, fan_out), jnp.float32)
        return w, b

    keys = jax.random.split(key, 10)
    cin = 2 * LATENT_DIM + N_DIMS
    ug_w1, ug_b1 = linear(keys[0], cin, N_GRU_UNITS)
    ug_w2, ug_b2 = linear(keys[1], N_GRU_UNITS, LATENT_DIM)
    rg_w1, rg_b1 = linear(keys[2], cin, N_GRU_UNITS)
    rg_w2, rg_b2 = linear(keys[3], N_GRU_UNITS, LATENT_DIM)
    ns_w1, ns_b1 = linear(keys[4], cin, N_GRU_UNITS)
    ns_w2, ns_b2 = linear(keys[5], N_GRU_UNITS, 2 * LATENT_DIM)
    tz_w1, tz_b1 = linear(keys[6], 2 * LATENT_DIM, TZ_UNITS)
    tz_w2, tz_b2 = linear(keys[7], TZ_UNITS, 2 * Z0_DIM)
    o_w1, o_b1 = linear(keys[8], LATENT_DIM, ODE_HIDDEN)
    o_w2, o_b2 = linear(keys[9], ODE_HIDDEN, LATENT_DIM)
    return [ug_w1, ug_b1, ug_w2, ug_b2,
            rg_w1, rg_b1, rg_w2, rg_b2,
            ns_w1, ns_b1, ns_w2, ns_b2,
            tz_w1, tz_b1, tz_w2, tz_b2,
            o_w1, o_b1, o_w2, o_b2]


def prepare_kernel_params(params):
    """Convert module weights into the kernel layout:
       * lane-padded hidden widths (zero padding is a mathematical no-op),
       * fused update||reset first layer split into split-K row blocks,
       * block-diagonal fused update/reset second layer (one dot per step),
       * fused (state || state_std) and (mean || std) second-layer heads,
       * weights cast to bfloat16; biases kept f32."""
    (ug_w1, ug_b1, ug_w2, ug_b2,
     rg_w1, rg_b1, rg_w2, rg_b2,
     ns_w1, ns_b1, ns_w2, ns_b2,
     tz_w1, tz_b1, tz_w2, tz_b2,
     o_w1, o_b1, o_w2, o_b2) = params
    L = LATENT_DIM

    def pad_out(w, n):   # pad output-feature (lane) axis with zeros
        return jnp.pad(w, ((0, 0), (0, n - w.shape[1])))

    def pad_in(w, n):    # pad input-feature axis with zeros
        return jnp.pad(w, ((0, n - w.shape[0]), (0, 0)))

    def bf16(w):
        return w.astype(jnp.bfloat16)

    # fused update||reset gate first layer: (2L + D, 2 * GRU_PAD)
    g_w1 = jnp.concatenate([pad_out(ug_w1, GRU_PAD), pad_out(rg_w1, GRU_PAD)], 1)
    gb1 = jnp.concatenate([pad_out(ug_b1, GRU_PAD), pad_out(rg_b1, GRU_PAD)], 1)
    gwy, gws, gwx = g_w1[:L], g_w1[L:2 * L], g_w1[2 * L:]

    # block-diagonal fused update/reset second layer: (2*GRU_PAD, 2L)
    ugw2p = pad_in(ug_w2, GRU_PAD)
    rgw2p = pad_in(rg_w2, GRU_PAD)
    zblk = jnp.zeros((GRU_PAD, L), jnp.float32)
    gw2 = jnp.concatenate([jnp.concatenate([ugw2p, zblk], 1),
                           jnp.concatenate([zblk, rgw2p], 1)], 0)
    gb2 = jnp.concatenate([ug_b2, rg_b2], 1)                 # (1, 2L)

    # new_state net: split-K first layer, fused (state || std) second layer
    n_w1 = pad_out(ns_w1, GRU_PAD)
    nb1 = pad_out(ns_b1, GRU_PAD)
    nwy, nws, nwx = n_w1[:L], n_w1[L:2 * L], n_w1[2 * L:]
    nw2 = pad_in(ns_w2, GRU_PAD)                             # (GRU_PAD, 2L)
    nb2 = ns_b2                                              # (1, 2L)

    # transform_z0: split-K first layer, fused (mean || std) second layer
    t_w1 = pad_out(tz_w1, TZ_PAD)
    tb1 = pad_out(tz_b1, TZ_PAD)
    twy, tws = t_w1[:L], t_w1[L:]
    tw2 = pad_in(tz_w2, TZ_PAD)                              # (TZ_PAD, 2*Z0_DIM)
    tb2 = tz_b2

    # synthetic ODE func (Linear-Tanh-Linear)
    ow1 = pad_out(o_w1, ODE_PAD)
    ob1 = pad_out(o_b1, ODE_PAD)
    ow2 = pad_in(o_w2, ODE_PAD)
    ob2 = o_b2

    return [bf16(gwy), bf16(gws), bf16(gwx), gb1, bf16(gw2), gb2,
            bf16(nwy), bf16(nws), bf16(nwx), nb1, bf16(nw2), nb2,
            bf16(twy), bf16(tws), tb1, bf16(tw2), tb2,
            bf16(ow1), ob1, bf16(ow2), ob2]


def _replicated_spec(shape):
    """Whole-array block, same block for every grid step (copied only once)."""
    n = len(shape)
    return pl.BlockSpec(shape, lambda i: (0,) * n)


def encoder_z0_ode_rnn_forward(data, time_steps, params, run_backwards=True,
                               traj_block=TRAJ_BLOCK):
    n_traj, n_tp, n_dims = data.shape
    idxs, nsubs, dts = build_schedule(np.asarray(time_steps), run_backwards)

    # layout: time-major, pre-ordered into processing order.
    data_tm = jnp.transpose(data, (1, 0, 2))[jnp.asarray(idxs)]
    # observation mask precomputed on host (depends only on the data).
    mask_tm = (jnp.sum(data_tm[:, :, n_dims // 2:], axis=-1, keepdims=True) > 0
               ).astype(jnp.float32)                       # (n_tp, n_traj, 1)

    kparams = prepare_kernel_params(params)
    kernel = _make_encoder_kernel(nsubs, dts)

    # trajectory-block grid: "parallel" so v7x's 2nd TensorCore takes half the
    # batch; harmless elsewhere (weights have constant block indices).
    tb = traj_block if (n_traj % traj_block == 0) else n_traj
    grid = (n_traj // tb,)

    in_specs = ([pl.BlockSpec((n_tp, tb, n_dims), lambda i: (0, i, 0)),
                 pl.BlockSpec((n_tp, tb, 1), lambda i: (0, i, 0))]
                + [_replicated_spec(p.shape) for p in kparams])
    out_specs = (pl.BlockSpec((1, tb, Z0_DIM), lambda i: (0, i, 0)),
                 pl.BlockSpec((1, tb, Z0_DIM), lambda i: (0, i, 0)))

    mean_z0, std_z0 = pl.pallas_call(
        kernel,
        out_shape=(jax.ShapeDtypeStruct((1, n_traj, Z0_DIM), jnp.float32),
                   jax.ShapeDtypeStruct((1, n_traj, Z0_DIM), jnp.float32)),
        grid=grid,
        in_specs=in_specs,
        out_specs=out_specs,
        compiler_params=pltpu.CompilerParams(
            dimension_semantics=("parallel",)),
    )(data_tm, mask_tm, *kparams)
    return mean_z0, std_z0


# ----------------------- plain-JAX reference (for checking) -------------------
def reference_forward(data, time_steps, params, run_backwards=True):
    (ug_w1, ug_b1, ug_w2, ug_b2,
     rg_w1, rg_b1, rg_w2, rg_b2,
     ns_w1, ns_b1, ns_w2, ns_b2,
     tz_w1, tz_b1, tz_w2, tz_b2,
     o_w1, o_b1, o_w2, o_b2) = params
    n_traj, n_tp, n_dims = data.shape
    idxs, nsubs, dts = build_schedule(np.asarray(time_steps), run_backwards)

    def mlp(x, w1, b1, w2, b2):
        return _dot_hp(jnp.tanh(_dot_hp(x, w1) + b1), w2) + b2

    y = jnp.zeros((n_traj, LATENT_DIM), jnp.float32)
    y_std = jnp.zeros((n_traj, LATENT_DIM), jnp.float32)
    for idx, n_e, dt in zip(idxs, nsubs, dts):
        for _ in range(int(n_e)):
            y = y + mlp(y, o_w1, o_b1, o_w2, o_b2) * jnp.float32(dt)
        x = data[:, int(idx), :]
        y_concat = jnp.concatenate([y, y_std, x], axis=-1)
        u = jax.nn.sigmoid(mlp(y_concat, ug_w1, ug_b1, ug_w2, ug_b2))
        r = jax.nn.sigmoid(mlp(y_concat, rg_w1, rg_b1, rg_w2, rg_b2))
        c2 = jnp.concatenate([y * r, y_std * r, x], axis=-1)
        ns = mlp(c2, ns_w1, ns_b1, ns_w2, ns_b2)
        new_state, new_state_std = ns[:, :LATENT_DIM], jnp.abs(ns[:, LATENT_DIM:])
        new_y = (1.0 - u) * new_state + u * y
        new_y_std = (1.0 - u) * new_state_std + u * y_std
        mask = (jnp.sum(x[:, n_dims // 2:], -1, keepdims=True) > 0
                ).astype(jnp.float32)
        new_y = mask * new_y + (1.0 - mask) * y
        new_y_std = jnp.abs(mask * new_y_std + (1.0 - mask) * y_std)
        y, y_std = new_y, new_y_std
    tz = mlp(jnp.concatenate([y, y_std], axis=-1), tz_w1, tz_b1, tz_w2, tz_b2)
    mean = tz[:, :Z0_DIM].reshape(1, n_traj, Z0_DIM)
    std = jnp.abs(tz[:, Z0_DIM:]).reshape(1, n_traj, Z0_DIM)
    return mean, std


# ------------------------------------ main ------------------------------------
if __name__ == "__main__":
    key = jax.random.PRNGKey(0)
    kp, kd, km = jax.random.split(key, 3)
    params = init_params(kp)

    values = jax.random.normal(kd, (N_TRAJ, N_TP, N_DATA), jnp.float32)
    mask = (jax.random.uniform(km, (N_TRAJ, N_TP, N_DATA)) < 0.7
            ).astype(jnp.float32)
    mask = mask.at[0, 3, :].set(0.0)   # exercise the "no observation" mask path
    data = jnp.concatenate([values * mask, mask], axis=-1)   # (n_traj, n_tp, 2*N_DATA)
    time_steps = jnp.linspace(0.0, 1.0, N_TP, dtype=jnp.float32)

    mean_z0, std_z0 = encoder_z0_ode_rnn_forward(data, time_steps, params)
    jax.block_until_ready((mean_z0, std_z0))

    ref_mean, ref_std = reference_forward(data, time_steps, params)
    assert mean_z0.shape == (1, N_TRAJ, Z0_DIM)
    assert std_z0.shape == (1, N_TRAJ, Z0_DIM)
    # Kernel uses bf16 weights + default single-pass MXU precision inside an
    # 8-step gated recurrence; the reference uses f32 HIGHEST precision, hence
    # the relaxed tolerance.
    np.testing.assert_allclose(np.asarray(mean_z0), np.asarray(ref_mean),
                               atol=2e-2, rtol=2e-2)
    np.testing.assert_allclose(np.asarray(std_z0), np.asarray(ref_std),
                               atol=2e-2, rtol=2e-2)
    print("KERNEL_OK")
</pallas_src>

<mosaic_0001>
module attributes {stable_mosaic.version = 11 : i64} {
  func.func @kernel(%arg0: i32, %arg1: memref<8x16x16xf32, #tpu.memory_space<vmem>>, %arg2: memref<8x16x1xf32, #tpu.memory_space<vmem>>, %arg3: memref<32x256xbf16, #tpu.memory_space<vmem>>, %arg4: memref<32x256xbf16, #tpu.memory_space<vmem>>, %arg5: memref<16x256xbf16, #tpu.memory_space<vmem>>, %arg6: memref<1x256xf32, #tpu.memory_space<vmem>>, %arg7: memref<256x64xbf16, #tpu.memory_space<vmem>>, %arg8: memref<1x64xf32, #tpu.memory_space<vmem>>, %arg9: memref<32x128xbf16, #tpu.memory_space<vmem>>, %arg10: memref<32x128xbf16, #tpu.memory_space<vmem>>, %arg11: memref<16x128xbf16, #tpu.memory_space<vmem>>, %arg12: memref<1x128xf32, #tpu.memory_space<vmem>>, %arg13: memref<128x64xbf16, #tpu.memory_space<vmem>>, %arg14: memref<1x64xf32, #tpu.memory_space<vmem>>, %arg15: memref<32x128xbf16, #tpu.memory_space<vmem>>, %arg16: memref<32x128xbf16, #tpu.memory_space<vmem>>, %arg17: memref<1x128xf32, #tpu.memory_space<vmem>>, %arg18: memref<128x64xbf16, #tpu.memory_space<vmem>>, %arg19: memref<1x64xf32, #tpu.memory_space<vmem>>, %arg20: memref<32x128xbf16, #tpu.memory_space<vmem>>, %arg21: memref<1x128xf32, #tpu.memory_space<vmem>>, %arg22: memref<128x32xbf16, #tpu.memory_space<vmem>>, %arg23: memref<1x32xf32, #tpu.memory_space<vmem>>, %arg24: memref<1x16x32xf32, #tpu.memory_space<vmem>>, %arg25: memref<1x16x32xf32, #tpu.memory_space<vmem>>) attributes {dimension_semantics = [#tpu.dimension_semantics<parallel>], iteration_bounds = array<i64: 2>, scalar_prefetch = 0 : i64, scratch_operands = 0 : i64, tpu.core_type = #tpu.core_type<tc>, window_params = [{transform_indices = @transform_0, window_bounds = array<i64: 8, 16, 16>}, {transform_indices = @transform_1, window_bounds = array<i64: 8, 16, 1>}, {pipeline_mode = #tpu.pipeline_mode<synchronous>, transform_indices = @transform_2, window_bounds = array<i64: 32, 256>}, {pipeline_mode = #tpu.pipeline_mode<synchronous>, transform_indices = @transform_3, window_bounds = array<i64: 32, 256>}, {pipeline_mode = #tpu.pipeline_mode<synchronous>, transform_indices = @transform_4, window_bounds = array<i64: 16, 256>}, {pipeline_mode = #tpu.pipeline_mode<synchronous>, transform_indices = @transform_5, window_bounds = array<i64: 1, 256>}, {pipeline_mode = #tpu.pipeline_mode<synchronous>, transform_indices = @transform_6, window_bounds = array<i64: 256, 64>}, {pipeline_mode = #tpu.pipeline_mode<synchronous>, transform_indices = @transform_7, window_bounds = array<i64: 1, 64>}, {pipeline_mode = #tpu.pipeline_mode<synchronous>, transform_indices = @transform_8, window_bounds = array<i64: 32, 128>}, {pipeline_mode = #tpu.pipeline_mode<synchronous>, transform_indices = @transform_9, window_bounds = array<i64: 32, 128>}, {pipeline_mode = #tpu.pipeline_mode<synchronous>, transform_indices = @transform_10, window_bounds = array<i64: 16, 128>}, {pipeline_mode = #tpu.pipeline_mode<synchronous>, transform_indices = @transform_11, window_bounds = array<i64: 1, 128>}, {pipeline_mode = #tpu.pipeline_mode<synchronous>, transform_indices = @transform_12, window_bounds = array<i64: 128, 64>}, {pipeline_mode = #tpu.pipeline_mode<synchronous>, transform_indices = @transform_13, window_bounds = array<i64: 1, 64>}, {pipeline_mode = #tpu.pipeline_mode<synchronous>, transform_indices = @transform_14, window_bounds = array<i64: 32, 128>}, {pipeline_mode = #tpu.pipeline_mode<synchronous>, transform_indices = @transform_15, window_bounds = array<i64: 32, 128>}, {pipeline_mode = #tpu.pipeline_mode<synchronous>, transform_indices = @transform_16, window_bounds = array<i64: 1, 128>}, {pipeline_mode = #tpu.pipeline_mode<synchronous>, transform_indices = @transform_17, window_bounds = array<i64: 128, 64>}, {pipeline_mode = #tpu.pipeline_mode<synchronous>, transform_indices = @transform_18, window_bounds = array<i64: 1, 64>}, {pipeline_mode = #tpu.pipeline_mode<synchronous>, transform_indices = @transform_19, window_bounds = array<i64: 32, 128>}, {pipeline_mode = #tpu.pipeline_mode<synchronous>, transform_indices = @transform_20, window_bounds = array<i64: 1, 128>}, {pipeline_mode = #tpu.pipeline_mode<synchronous>, transform_indices = @transform_21, window_bounds = array<i64: 128, 32>}, {pipeline_mode = #tpu.pipeline_mode<synchronous>, transform_indices = @transform_22, window_bounds = array<i64: 1, 32>}, {transform_indices = @transform_23, window_bounds = array<i64: 1, 16, 32>}, {transform_indices = @transform_24, window_bounds = array<i64: 1, 16, 32>}]} {
    %cst = arith.constant 0.000000e+00 : f32
    %0 = vector.broadcast %cst : f32 to vector<16x32xf32>
    %cst_0 = arith.constant 0.000000e+00 : f32
    %1 = vector.broadcast %cst_0 : f32 to vector<16x32xf32>
    %c0 = arith.constant 0 : index
    %c0_1 = arith.constant 0 : index
    %2 = vector.load %arg20[%c0, %c0_1] : memref<32x128xbf16, #tpu.memory_space<vmem>>, vector<32x128xbf16>
    %c0_2 = arith.constant 0 : index
    %c0_3 = arith.constant 0 : index
    %3 = vector.load %arg22[%c0_2, %c0_3] : memref<128x32xbf16, #tpu.memory_space<vmem>>, vector<128x32xbf16>
    %c0_4 = arith.constant 0 : index
    %c0_5 = arith.constant 0 : index
    %4 = vector.load %arg21[%c0_4, %c0_5] : memref<1x128xf32, #tpu.memory_space<vmem>>, vector<1x128xf32>
    %c0_6 = arith.constant 0 : index
    %c0_7 = arith.constant 0 : index
    %5 = vector.load %arg23[%c0_6, %c0_7] : memref<1x32xf32, #tpu.memory_space<vmem>>, vector<1x32xf32>
    %cst_8 = arith.constant -9.999990e-03 : f32
    %6 = vector.broadcast %cst_8 : f32 to vector<1x32xf32>
    %7 = arith.mulf %5, %6 : vector<1x32xf32>
    %8 = arith.truncf %0 : vector<16x32xf32> to vector<16x32xbf16>
    %cst_9 = arith.constant dense<0.000000e+00> : vector<16x128xf32>
    %9 = tpu.matmul %8, %2, %cst_9 {dimension_numbers = #tpu.dot_dimension_numbers<[1], [0], [0], [1], [0, 0, 1, 1], [], []>} : vector<16x32xbf16>, vector<32x128xbf16>, vector<16x128xf32> -> vector<16x128xf32>
    %10 = vector.broadcast %4 : vector<1x128xf32> to vector<16x128xf32>
    %11 = arith.addf %9, %10 : vector<16x128xf32>
    %12 = math.tanh %11 : vector<16x128xf32>
    %13 = arith.truncf %12 : vector<16x128xf32> to vector<16x128xbf16>
    %cst_10 = arith.constant dense<0.000000e+00> : vector<16x32xf32>
    %14 = tpu.matmul %13, %3, %cst_10 {dimension_numbers = #tpu.dot_dimension_numbers<[1], [0], [0], [1], [0, 0, 1, 1], [], []>} : vector<16x128xbf16>, vector<128x32xbf16>, vector<16x32xf32> -> vector<16x32xf32>
    %cst_11 = arith.constant -9.999990e-03 : f32
    %15 = vector.broadcast %cst_11 : f32 to vector<16x32xf32>
    %16 = arith.mulf %14, %15 : vector<16x32xf32>
    %17 = arith.addf %0, %16 : vector<16x32xf32>
    %18 = vector.broadcast %7 : vector<1x32xf32> to vector<16x32xf32>
    %19 = arith.addf %17, %18 : vector<16x32xf32>
    %c0_12 = arith.constant 0 : index
    %c0_13 = arith.constant 0 : index
    %c0_14 = arith.constant 0 : index
    %20 = vector.load %arg1[%c0_12, %c0_13, %c0_14] : memref<8x16x16xf32, #tpu.memory_space<vmem>>, vector<1x16x16xf32>
    %21 = vector.shape_cast %20 : vector<1x16x16xf32> to vector<16x16xf32>
    %c0_15 = arith.constant 0 : index
    %c0_16 = arith.constant 0 : index
    %c0_17 = arith.constant 0 : index
    %22 = vector.load %arg2[%c0_15, %c0_16, %c0_17] : memref<8x16x1xf32, #tpu.memory_space<vmem>>, vector<1x16x1xf32>
    %23 = vector.shape_cast %22 : vector<1x16x1xf32> to vector<16x1xf32>
    %c0_18 = arith.constant 0 : index
    %c0_19 = arith.constant 0 : index
    %24 = vector.load %arg3[%c0_18, %c0_19] : memref<32x256xbf16, #tpu.memory_space<vmem>>, vector<32x256xbf16>
    %25 = arith.truncf %19 : vector<16x32xf32> to vector<16x32xbf16>
    %cst_20 = arith.constant dense<0.000000e+00> : vector<16x256xf32>
    %26 = tpu.matmul %25, %24, %cst_20 {dimension_numbers = #tpu.dot_dimension_numbers<[1], [0], [0], [1], [0, 0, 1, 1], [], []>} : vector<16x32xbf16>, vector<32x256xbf16>, vector<16x256xf32> -> vector<16x256xf32>
    %c0_21 = arith.constant 0 : index
    %c0_22 = arith.constant 0 : index
    %27 = vector.load %arg4[%c0_21, %c0_22] : memref<32x256xbf16, #tpu.memory_space<vmem>>, vector<32x256xbf16>
    %28 = arith.truncf %1 : vector<16x32xf32> to vector<16x32xbf16>
    %cst_23 = arith.constant dense<0.000000e+00> : vector<16x256xf32>
    %29 = tpu.matmul %28, %27, %cst_23 {dimension_numbers = #tpu.dot_dimension_numbers<[1], [0], [0], [1], [0, 0, 1, 1], [], []>} : vector<16x32xbf16>, vector<32x256xbf16>, vector<16x256xf32> -> vector<16x256xf32>
    %30 = arith.addf %26, %29 : vector<16x256xf32>
    %c0_24 = arith.constant 0 : index
    %c0_25 = arith.constant 0 : index
    %31 = vector.load %arg5[%c0_24, %c0_25] : memref<16x256xbf16, #tpu.memory_space<vmem>>, vector<16x256xbf16>
    %32 = arith.truncf %21 : vector<16x16xf32> to vector<16x16xbf16>
    %cst_26 = arith.constant dense<0.000000e+00> : vector<16x256xf32>
    %33 = tpu.matmul %32, %31, %cst_26 {dimension_numbers = #tpu.dot_dimension_numbers<[1], [0], [0], [1], [0, 0, 1, 1], [], []>} : vector<16x16xbf16>, vector<16x256xbf16>, vector<16x256xf32> -> vector<16x256xf32>
    %34 = arith.addf %30, %33 : vector<16x256xf32>
    %c0_27 = arith.constant 0 : index
    %c0_28 = arith.constant 0 : index
    %35 = vector.load %arg6[%c0_27, %c0_28] : memref<1x256xf32, #tpu.memory_space<vmem>>, vector<1x256xf32>
    %36 = vector.broadcast %35 : vector<1x256xf32> to vector<16x256xf32>
    %37 = arith.addf %34, %36 : vector<16x256xf32>
    %38 = math.tanh %37 : vector<16x256xf32>
    %c0_29 = arith.constant 0 : index
    %c0_30 = arith.constant 0 : index
    %39 = vector.load %arg7[%c0_29, %c0_30] : memref<256x64xbf16, #tpu.memory_space<vmem>>, vector<256x64xbf16>
    %40 = arith.truncf %38 : vector<16x256xf32> to vector<16x256xbf16>
    %cst_31 = arith.constant dense<0.000000e+00> : vector<16x64xf32>
    %41 = tpu.matmul %40, %39, %cst_31 {dimension_numbers = #tpu.dot_dimension_numbers<[1], [0], [0], [1], [0, 0, 1, 1], [], []>} : vector<16x256xbf16>, vector<256x64xbf16>, vector<16x64xf32> -> vector<16x64xf32>
    %c0_32 = arith.constant 0 : index
    %c0_33 = arith.constant 0 : index
    %42 = vector.load %arg8[%c0_32, %c0_33] : memref<1x64xf32, #tpu.memory_space<vmem>>, vector<1x64xf32>
    %43 = vector.broadcast %42 : vector<1x64xf32> to vector<16x64xf32>
    %44 = arith.addf %41, %43 : vector<16x64xf32>
    %45 = arith.negf %44 : vector<16x64xf32>
    %46 = math.exp %45 : vector<16x64xf32>
    %cst_34 = arith.constant 1.000000e+00 : f32
    %47 = vector.broadcast %cst_34 : f32 to vector<16x64xf32>
    %48 = arith.addf %47, %46 : vector<16x64xf32>
    %49 = arith.divf %47, %48 : vector<16x64xf32>
    %50 = vector.extract_strided_slice %49 {offsets = [0, 0], sizes = [16, 32], strides = [1, 1]} : vector<16x64xf32> to vector<16x32xf32>
    %51 = vector.extract_strided_slice %49 {offsets = [0, 32], sizes = [16, 32], strides = [1, 1]} : vector<16x64xf32> to vector<16x32xf32>
    %52 = arith.mulf %19, %51 : vector<16x32xf32>
    %c0_35 = arith.constant 0 : index
    %c0_36 = arith.constant 0 : index
    %53 = vector.load %arg9[%c0_35, %c0_36] : memref<32x128xbf16, #tpu.memory_space<vmem>>, vector<32x128xbf16>
    %54 = arith.truncf %52 : vector<16x32xf32> to vector<16x32xbf16>
    %cst_37 = arith.constant dense<0.000000e+00> : vector<16x128xf32>
    %55 = tpu.matmul %54, %53, %cst_37 {dimension_numbers = #tpu.dot_dimension_numbers<[1], [0], [0], [1], [0, 0, 1, 1], [], []>} : vector<16x32xbf16>, vector<32x128xbf16>, vector<16x128xf32> -> vector<16x128xf32>
    %56 = arith.mulf %1, %51 : vector<16x32xf32>
    %c0_38 = arith.constant 0 : index
    %c0_39 = arith.constant 0 : index
    %57 = vector.load %arg10[%c0_38, %c0_39] : memref<32x128xbf16, #tpu.memory_space<vmem>>, vector<32x128xbf16>
    %58 = arith.truncf %56 : vector<16x32xf32> to vector<16x32xbf16>
    %cst_40 = arith.constant dense<0.000000e+00> : vector<16x128xf32>
    %59 = tpu.matmul %58, %57, %cst_40 {dimension_numbers = #tpu.dot_dimension_numbers<[1], [0], [0], [1], [0, 0, 1, 1], [], []>} : vector<16x32xbf16>, vector<32x128xbf16>, vector<16x128xf32> -> vector<16x128xf32>
    %60 = arith.addf %55, %59 : vector<16x128xf32>
    %c0_41 = arith.constant 0 : index
    %c0_42 = arith.constant 0 : index
    %61 = vector.load %arg11[%c0_41, %c0_42] : memref<16x128xbf16, #tpu.memory_space<vmem>>, vector<16x128xbf16>
    %62 = arith.truncf %21 : vector<16x16xf32> to vector<16x16xbf16>
    %cst_43 = arith.constant dense<0.000000e+00> : vector<16x128xf32>
    %63 = tpu.matmul %62, %61, %cst_43 {dimension_numbers = #tpu.dot_dimension_numbers<[1], [0], [0], [1], [0, 0, 1, 1], [], []>} : vector<16x16xbf16>, vector<16x128xbf16>, vector<16x128xf32> -> vector<16x128xf32>
    %64 = arith.addf %60, %63 : vector<16x128xf32>
    %c0_44 = arith.constant 0 : index
    %c0_45 = arith.constant 0 : index
    %65 = vector.load %arg12[%c0_44, %c0_45] : memref<1x128xf32, #tpu.memory_space<vmem>>, vector<1x128xf32>
    %66 = vector.broadcast %65 : vector<1x128xf32> to vector<16x128xf32>
    %67 = arith.addf %64, %66 : vector<16x128xf32>
    %68 = math.tanh %67 : vector<16x128xf32>
    %c0_46 = arith.constant 0 : index
    %c0_47 = arith.constant 0 : index
    %69 = vector.load %arg13[%c0_46, %c0_47] : memref<128x64xbf16, #tpu.memory_space<vmem>>, vector<128x64xbf16>
    %70 = arith.truncf %68 : vector<16x128xf32> to vector<16x128xbf16>
    %cst_48 = arith.constant dense<0.000000e+00> : vector<16x64xf32>
    %71 = tpu.matmul %70, %69, %cst_48 {dimension_numbers = #tpu.dot_dimension_numbers<[1], [0], [0], [1], [0, 0, 1, 1], [], []>} : vector<16x128xbf16>, vector<128x64xbf16>, vector<16x64xf32> -> vector<16x64xf32>
    %c0_49 = arith.constant 0 : index
    %c0_50 = arith.constant 0 : index
    %72 = vector.load %arg14[%c0_49, %c0_50] : memref<1x64xf32, #tpu.memory_space<vmem>>, vector<1x64xf32>
    %73 = vector.broadcast %72 : vector<1x64xf32> to vector<16x64xf32>
    %74 = arith.addf %71, %73 : vector<16x64xf32>
    %75 = vector.extract_strided_slice %74 {offsets = [0, 0], sizes = [16, 32], strides = [1, 1]} : vector<16x64xf32> to vector<16x32xf32>
    %76 = vector.extract_strided_slice %74 {offsets = [0, 32], sizes = [16, 32], strides = [1, 1]} : vector<16x64xf32> to vector<16x32xf32>
    %77 = math.absf %76 : vector<16x32xf32>
    %cst_51 = arith.constant 1.000000e+00 : f32
    %78 = vector.broadcast %cst_51 : f32 to vector<16x32xf32>
    %79 = arith.subf %78, %50 : vector<16x32xf32>
    %80 = arith.mulf %79, %75 : vector<16x32xf32>
    %81 = arith.mulf %50, %19 : vector<16x32xf32>
    %82 = arith.addf %80, %81 : vector<16x32xf32>
    %cst_52 = arith.constant 1.000000e+00 : f32
    %83 = vector.broadcast %cst_52 : f32 to vector<16x32xf32>
    %84 = arith.subf %83, %50 : vector<16x32xf32>
    %85 = arith.mulf %84, %77 : vector<16x32xf32>
    %86 = arith.mulf %50, %1 : vector<16x32xf32>
    %87 = arith.addf %85, %86 : vector<16x32xf32>
    %88 = vector.broadcast %23 : vector<16x1xf32> to vector<16x32xf32>
    %89 = arith.mulf %88, %82 : vector<16x32xf32>
    %cst_53 = arith.constant 1.000000e+00 : f32
    %90 = vector.broadcast %cst_53 : f32 to vector<16x1xf32>
    %91 = arith.subf %90, %23 : vector<16x1xf32>
    %92 = vector.broadcast %91 : vector<16x1xf32> to vector<16x32xf32>
    %93 = arith.mulf %92, %19 : vector<16x32xf32>
    %94 = arith.addf %89, %93 : vector<16x32xf32>
    %95 = vector.broadcast %23 : vector<16x1xf32> to vector<16x32xf32>
    %96 = arith.mulf %95, %87 : vector<16x32xf32>
    %cst_54 = arith.constant 1.000000e+00 : f32
    %97 = vector.broadcast %cst_54 : f32 to vector<16x1xf32>
    %98 = arith.subf %97, %23 : vector<16x1xf32>
    %99 = vector.broadcast %98 : vector<16x1xf32> to vector<16x32xf32>
    %100 = arith.mulf %99, %1 : vector<16x32xf32>
    %101 = arith.addf %96, %100 : vector<16x32xf32>
    %102 = math.absf %101 : vector<16x32xf32>
    %c0_55 = arith.constant 0 : index
    %c0_56 = arith.constant 0 : index
    %103 = vector.load %arg20[%c0_55, %c0_56] : memref<32x128xbf16, #tpu.memory_space<vmem>>, vector<32x128xbf16>
    %c0_57 = arith.constant 0 : index
    %c0_58 = arith.constant 0 : index
    %104 = vector.load %arg22[%c0_57, %c0_58] : memref<128x32xbf16, #tpu.memory_space<vmem>>, vector<128x32xbf16>
    %c0_59 = arith.constant 0 : index
    %c0_60 = arith.constant 0 : index
    %105 = vector.load %arg21[%c0_59, %c0_60] : memref<1x128xf32, #tpu.memory_space<vmem>>, vector<1x128xf32>
    %c0_61 = arith.constant 0 : index
    %c0_62 = arith.constant 0 : index
    %106 = vector.load %arg23[%c0_61, %c0_62] : memref<1x32xf32, #tpu.memory_space<vmem>>, vector<1x32xf32>
    %cst_63 = arith.constant -0.0238095131 : f32
    %107 = vector.broadcast %cst_63 : f32 to vector<1x32xf32>
    %108 = arith.mulf %106, %107 : vector<1x32xf32>
    %109 = arith.truncf %94 : vector<16x32xf32> to vector<16x32xbf16>
    %cst_64 = arith.constant dense<0.000000e+00> : vector<16x128xf32>
    %110 = tpu.matmul %109, %103, %cst_64 {dimension_numbers = #tpu.dot_dimension_numbers<[1], [0], [0], [1], [0, 0, 1, 1], [], []>} : vector<16x32xbf16>, vector<32x128xbf16>, vector<16x128xf32> -> vector<16x128xf32>
    %111 = vector.broadcast %105 : vector<1x128xf32> to vector<16x128xf32>
    %112 = arith.addf %110, %111 : vector<16x128xf32>
    %113 = math.tanh %112 : vector<16x128xf32>
    %114 = arith.truncf %113 : vector<16x128xf32> to vector<16x128xbf16>
    %cst_65 = arith.constant dense<0.000000e+00> : vector<16x32xf32>
    %115 = tpu.matmul %114, %104, %cst_65 {dimension_numbers = #tpu.dot_dimension_numbers<[1], [0], [0], [1], [0, 0, 1, 1], [], []>} : vector<16x128xbf16>, vector<128x32xbf16>, vector<16x32xf32> -> vector<16x32xf32>
    %cst_66 = arith.constant -0.0238095131 : f32
    %116 = vector.broadcast %cst_66 : f32 to vector<16x32xf32>
    %117 = arith.mulf %115, %116 : vector<16x32xf32>
    %118 = arith.addf %94, %117 : vector<16x32xf32>
    %119 = vector.broadcast %108 : vector<1x32xf32> to vector<16x32xf32>
    %120 = arith.addf %118, %119 : vector<16x32xf32>
    %121 = arith.truncf %120 : vector<16x32xf32> to vector<16x32xbf16>
    %cst_67 = arith.constant dense<0.000000e+00> : vector<16x128xf32>
    %122 = tpu.matmul %121, %103, %cst_67 {dimension_numbers = #tpu.dot_dimension_numbers<[1], [0], [0], [1], [0, 0, 1, 1], [], []>} : vector<16x32xbf16>, vector<32x128xbf16>, vector<16x128xf32> -> vector<16x128xf32>
    %123 = vector.broadcast %105 : vector<1x128xf32> to vector<16x128xf32>
    %124 = arith.addf %122, %123 : vector<16x128xf32>
    %125 = math.tanh %124 : vector<16x128xf32>
    %126 = arith.truncf %125 : vector<16x128xf32> to vector<16x128xbf16>
    %cst_68 = arith.constant dense<0.000000e+00> : vector<16x32xf32>
    %127 = tpu.matmul %126, %104, %cst_68 {dimension_numbers = #tpu.dot_dimension_numbers<[1], [0], [0], [1], [0, 0, 1, 1], [], []>} : vector<16x128xbf16>, vector<128x32xbf16>, vector<16x32xf32> -> vector<16x32xf32>
    %cst_69 = arith.constant -0.0238095131 : f32
    %128 = vector.broadcast %cst_69 : f32 to vector<16x32xf32>
    %129 = arith.mulf %127, %128 : vector<16x32xf32>
    %130 = arith.addf %120, %129 : vector<16x32xf32>
    %131 = vector.broadcast %108 : vector<1x32xf32> to vector<16x32xf32>
    %132 = arith.addf %130, %131 : vector<16x32xf32>
    %133 = arith.truncf %132 : vector<16x32xf32> to vector<16x32xbf16>
    %cst_70 = arith.constant dense<0.000000e+00> : vector<16x128xf32>
    %134 = tpu.matmul %133, %103, %cst_70 {dimension_numbers = #tpu.dot_dimension_numbers<[1], [0], [0], [1], [0, 0, 1, 1], [], []>} : vector<16x32xbf16>, vector<32x128xbf16>, vector<16x128xf32> -> vector<16x128xf32>
    %135 = vector.broadcast %105 : vector<1x128xf32> to vector<16x128xf32>
    %136 = arith.addf %134, %135 : vector<16x128xf32>
    %137 = math.tanh %136 : vector<16x128xf32>
    %138 = arith.truncf %137 : vector<16x128xf32> to vector<16x128xbf16>
    %cst_71 = arith.constant dense<0.000000e+00> : vector<16x32xf32>
    %139 = tpu.matmul %138, %104, %cst_71 {dimension_numbers = #tpu.dot_dimension_numbers<[1], [0], [0], [1], [0, 0, 1, 1], [], []>} : vector<16x128xbf16>, vector<128x32xbf16>, vector<16x32xf32> -> vector<16x32xf32>
    %cst_72 = arith.constant -0.0238095131 : f32
    %140 = vector.broadcast %cst_72 : f32 to vector<16x32xf32>
    %141 = arith.mulf %139, %140 : vector<16x32xf32>
    %142 = arith.addf %132, %141 : vector<16x32xf32>
    %143 = vector.broadcast %108 : vector<1x32xf32> to vector<16x32xf32>
    %144 = arith.addf %142, %143 : vector<16x32xf32>
    %145 = arith.truncf %144 : vector<16x32xf32> to vector<16x32xbf16>
    %cst_73 = arith.constant dense<0.000000e+00> : vector<16x128xf32>
    %146 = tpu.matmul %145, %103, %cst_73 {dimension_numbers = #tpu.dot_dimension_numbers<[1], [0], [0], [1], [0, 0, 1, 1], [], []>} : vector<16x32xbf16>, vector<32x128xbf16>, vector<16x128xf32> -> vector<16x128xf32>
    %147 = vector.broadcast %105 : vector<1x128xf32> to vector<16x128xf32>
    %148 = arith.addf %146, %147 : vector<16x128xf32>
    %149 = math.tanh %148 : vector<16x128xf32>
    %150 = arith.truncf %149 : vector<16x128xf32> to vector<16x128xbf16>
    %cst_74 = arith.constant dense<0.000000e+00> : vector<16x32xf32>
    %151 = tpu.matmul %150, %104, %cst_74 {dimension_numbers = #tpu.dot_dimension_numbers<[1], [0], [0], [1], [0, 0, 1, 1], [], []>} : vector<16x128xbf16>, vector<128x32xbf16>, vector<16x32xf32> -> vector<16x32xf32>
    %cst_75 = arith.constant -0.0238095131 : f32
    %152 = vector.broadcast %cst_75 : f32 to vector<16x32xf32>
    %153 = arith.mulf %151, %152 : vector<16x32xf32>
    %154 = arith.addf %144, %153 : vector<16x32xf32>
    %155 = vector.broadcast %108 : vector<1x32xf32> to vector<16x32xf32>
    %156 = arith.addf %154, %155 : vector<16x32xf32>
    %157 = arith.truncf %156 : vector<16x32xf32> to vector<16x32xbf16>
    %cst_76 = arith.constant dense<0.000000e+00> : vector<16x128xf32>
    %158 = tpu.matmul %157, %103, %cst_76 {dimension_numbers = #tpu.dot_dimension_numbers<[1], [0], [0], [1], [0, 0, 1, 1], [], []>} : vector<16x32xbf16>, vector<32x128xbf16>, vector<16x128xf32> -> vector<16x128xf32>
    %159 = vector.broadcast %105 : vector<1x128xf32> to vector<16x128xf32>
    %160 = arith.addf %158, %159 : vector<16x128xf32>
    %161 = math.tanh %160 : vector<16x128xf32>
    %162 = arith.truncf %161 : vector<16x128xf32> to vector<16x128xbf16>
    %cst_77 = arith.constant dense<0.000000e+00> : vector<16x32xf32>
    %163 = tpu.matmul %162, %104, %cst_77 {dimension_numbers = #tpu.dot_dimension_numbers<[1], [0], [0], [1], [0, 0, 1, 1], [], []>} : vector<16x128xbf16>, vector<128x32xbf16>, vector<16x32xf32> -> vector<16x32xf32>
    %cst_78 = arith.constant -0.0238095131 : f32
    %164 = vector.broadcast %cst_78 : f32 to vector<16x32xf32>
    %165 = arith.mulf %163, %164 : vector<16x32xf32>
    %166 = arith.addf %156, %165 : vector<16x32xf32>
    %167 = vector.broadcast %108 : vector<1x32xf32> to vector<16x32xf32>
    %168 = arith.addf %166, %167 : vector<16x32xf32>
    %169 = arith.truncf %168 : vector<16x32xf32> to vector<16x32xbf16>
    %cst_79 = arith.constant dense<0.000000e+00> : vector<16x128xf32>
    %170 = tpu.matmul %169, %103, %cst_79 {dimension_numbers = #tpu.dot_dimension_numbers<[1], [0], [0], [1], [0, 0, 1, 1], [], []>} : vector<16x32xbf16>, vector<32x128xbf16>, vector<16x128xf32> -> vector<16x128xf32>
    %171 = vector.broadcast %105 : vector<1x128xf32> to vector<16x128xf32>
    %172 = arith.addf %170, %171 : vector<16x128xf32>
    %173 = math.tanh %172 : vector<16x128xf32>
    %174 = arith.truncf %173 : vector<16x128xf32> to vector<16x128xbf16>
    %cst_80 = arith.constant dense<0.000000e+00> : vector<16x32xf32>
    %175 = tpu.matmul %174, %104, %cst_80 {dimension_numbers = #tpu.dot_dimension_numbers<[1], [0], [0], [1], [0, 0, 1, 1], [], []>} : vector<16x128xbf16>, vector<128x32xbf16>, vector<16x32xf32> -> vector<16x32xf32>
    %cst_81 = arith.constant -0.0238095131 : f32
    %176 = vector.broadcast %cst_81 : f32 to vector<16x32xf32>
    %177 = arith.mulf %175, %176 : vector<16x32xf32>
    %178 = arith.addf %168, %177 : vector<16x32xf32>
    %179 = vector.broadcast %108 : vector<1x32xf32> to vector<16x32xf32>
    %180 = arith.addf %178, %179 : vector<16x32xf32>
    %c1 = arith.constant 1 : index
    %c0_82 = arith.constant 0 : index
    %c0_83 = arith.constant 0 : index
    %181 = vector.load %arg1[%c1, %c0_82, %c0_83] : memref<8x16x16xf32, #tpu.memory_space<vmem>>, vector<1x16x16xf32>
    %182 = vector.shape_cast %181 : vector<1x16x16xf32> to vector<16x16xf32>
    %c1_84 = arith.constant 1 : index
    %c0_85 = arith.constant 0 : index
    %c0_86 = arith.constant 0 : index
    %183 = vector.load %arg2[%c1_84, %c0_85, %c0_86] : memref<8x16x1xf32, #tpu.memory_space<vmem>>, vector<1x16x1xf32>
    %184 = vector.shape_cast %183 : vector<1x16x1xf32> to vector<16x1xf32>
    %c0_87 = arith.constant 0 : index
    %c0_88 = arith.constant 0 : index
    %185 = vector.load %arg3[%c0_87, %c0_88] : memref<32x256xbf16, #tpu.memory_space<vmem>>, vector<32x256xbf16>
    %186 = arith.truncf %180 : vector<16x32xf32> to vector<16x32xbf16>
    %cst_89 = arith.constant dense<0.000000e+00> : vector<16x256xf32>
    %187 = tpu.matmul %186, %185, %cst_89 {dimension_numbers = #tpu.dot_dimension_numbers<[1], [0], [0], [1], [0, 0, 1, 1], [], []>} : vector<16x32xbf16>, vector<32x256xbf16>, vector<16x256xf32> -> vector<16x256xf32>
    %c0_90 = arith.constant 0 : index
    %c0_91 = arith.constant 0 : index
    %188 = vector.load %arg4[%c0_90, %c0_91] : memref<32x256xbf16, #tpu.memory_space<vmem>>, vector<32x256xbf16>
    %189 = arith.truncf %102 : vector<16x32xf32> to vector<16x32xbf16>
    %cst_92 = arith.constant dense<0.000000e+00> : vector<16x256xf32>
    %190 = tpu.matmul %189, %188, %cst_92 {dimension_numbers = #tpu.dot_dimension_numbers<[1], [0], [0], [1], [0, 0, 1, 1], [], []>} : vector<16x32xbf16>, vector<32x256xbf16>, vector<16x256xf32> -> vector<16x256xf32>
    %191 = arith.addf %187, %190 : vector<16x256xf32>
    %c0_93 = arith.constant 0 : index
    %c0_94 = arith.constant 0 : index
    %192 = vector.load %arg5[%c0_93, %c0_94] : memref<16x256xbf16, #tpu.memory_space<vmem>>, vector<16x256xbf16>
    %193 = arith.truncf %182 : vector<16x16xf32> to vector<16x16xbf16>
    %cst_95 = arith.constant dense<0.000000e+00> : vector<16x256xf32>
    %194 = tpu.matmul %193, %192, %cst_95 {dimension_numbers = #tpu.dot_dimension_numbers<[1], [0], [0], [1], [0, 0, 1, 1], [], []>} : vector<16x16xbf16>, vector<16x256xbf16>, vector<16x256xf32> -> vector<16x256xf32>
    %195 = arith.addf %191, %194 : vector<16x256xf32>
    %c0_96 = arith.constant 0 : index
    %c0_97 = arith.constant 0 : index
    %196 = vector.load %arg6[%c0_96, %c0_97] : memref<1x256xf32, #tpu.memory_space<vmem>>, vector<1x256xf32>
    %197 = vector.broadcast %196 : vector<1x256xf32> to vector<16x256xf32>
    %198 = arith.addf %195, %197 : vector<16x256xf32>
    %199 = math.tanh %198 : vector<16x256xf32>
    %c0_98 = arith.constant 0 : index
    %c0_99 = arith.constant 0 : index
    %200 = vector.load %arg7[%c0_98, %c0_99] : memref<256x64xbf16, #tpu.memory_space<vmem>>, vector<256x64xbf16>
    %201 = arith.truncf %199 : vector<16x256xf32> to vector<16x256xbf16>
    %cst_100 = arith.constant dense<0.000000e+00> : vector<16x64xf32>
    %202 = tpu.matmul %201, %200, %cst_100 {dimension_numbers = #tpu.dot_dimension_numbers<[1], [0], [0], [1], [0, 0, 1, 1], [], []>} : vector<16x256xbf16>, vector<256x64xbf16>, vector<16x64xf32> -> vector<16x64xf32>
    %c0_101 = arith.constant 0 : index
    %c0_102 = arith.constant 0 : index
    %203 = vector.load %arg8[%c0_101, %c0_102] : memref<1x64xf32, #tpu.memory_space<vmem>>, vector<1x64xf32>
    %204 = vector.broadcast %203 : vector<1x64xf32> to vector<16x64xf32>
    %205 = arith.addf %202, %204 : vector<16x64xf32>
    %206 = arith.negf %205 : vector<16x64xf32>
    %207 = math.exp %206 : vector<16x64xf32>
    %cst_103 = arith.constant 1.000000e+00 : f32
    %208 = vector.broadcast %cst_103 : f32 to vector<16x64xf32>
    %209 = arith.addf %208, %207 : vector<16x64xf32>
    %210 = arith.divf %208, %209 : vector<16x64xf32>
    %211 = vector.extract_strided_slice %210 {offsets = [0, 0], sizes = [16, 32], strides = [1, 1]} : vector<16x64xf32> to vector<16x32xf32>
    %212 = vector.extract_strided_slice %210 {offsets = [0, 32], sizes = [16, 32], strides = [1, 1]} : vector<16x64xf32> to vector<16x32xf32>
    %213 = arith.mulf %180, %212 : vector<16x32xf32>
    %c0_104 = arith.constant 0 : index
    %c0_105 = arith.constant 0 : index
    %214 = vector.load %arg9[%c0_104, %c0_105] : memref<32x128xbf16, #tpu.memory_space<vmem>>, vector<32x128xbf16>
    %215 = arith.truncf %213 : vector<16x32xf32> to vector<16x32xbf16>
    %cst_106 = arith.constant dense<0.000000e+00> : vector<16x128xf32>
    %216 = tpu.matmul %215, %214, %cst_106 {dimension_numbers = #tpu.dot_dimension_numbers<[1], [0], [0], [1], [0, 0, 1, 1], [], []>} : vector<16x32xbf16>, vector<32x128xbf16>, vector<16x128xf32> -> vector<16x128xf32>
    %217 = arith.mulf %102, %212 : vector<16x32xf32>
    %c0_107 = arith.constant 0 : index
    %c0_108 = arith.constant 0 : index
    %218 = vector.load %arg10[%c0_107, %c0_108] : memref<32x128xbf16, #tpu.memory_space<vmem>>, vector<32x128xbf16>
    %219 = arith.truncf %217 : vector<16x32xf32> to vector<16x32xbf16>
    %cst_109 = arith.constant dense<0.000000e+00> : vector<16x128xf32>
    %220 = tpu.matmul %219, %218, %cst_109 {dimension_numbers = #tpu.dot_dimension_numbers<[1], [0], [0], [1], [0, 0, 1, 1], [], []>} : vector<16x32xbf16>, vector<32x128xbf16>, vector<16x128xf32> -> vector<16x128xf32>
    %221 = arith.addf %216, %220 : vector<16x128xf32>
    %c0_110 = arith.constant 0 : index
    %c0_111 = arith.constant 0 : index
    %222 = vector.load %arg11[%c0_110, %c0_111] : memref<16x128xbf16, #tpu.memory_space<vmem>>, vector<16x128xbf16>
    %223 = arith.truncf %182 : vector<16x16xf32> to vector<16x16xbf16>
    %cst_112 = arith.constant dense<0.000000e+00> : vector<16x128xf32>
    %224 = tpu.matmul %223, %222, %cst_112 {dimension_numbers = #tpu.dot_dimension_numbers<[1], [0], [0], [1], [0, 0, 1, 1], [], []>} : vector<16x16xbf16>, vector<16x128xbf16>, vector<16x128xf32> -> vector<16x128xf32>
    %225 = arith.addf %221, %224 : vector<16x128xf32>
    %c0_113 = arith.constant 0 : index
    %c0_114 = arith.constant 0 : index
    %226 = vector.load %arg12[%c0_113, %c0_114] : memref<1x128xf32, #tpu.memory_space<vmem>>, vector<1x128xf32>
    %227 = vector.broadcast %226 : vector<1x128xf32> to vector<16x128xf32>
    %228 = arith.addf %225, %227 : vector<16x128xf32>
    %229 = math.tanh %228 : vector<16x128xf32>
    %c0_115 = arith.constant 0 : index
    %c0_116 = arith.constant 0 : index
    %230 = vector.load %arg13[%c0_115, %c0_116] : memref<128x64xbf16, #tpu.memory_space<vmem>>, vector<128x64xbf16>
    %231 = arith.truncf %229 : vector<16x128xf32> to vector<16x128xbf16>
    %cst_117 = arith.constant dense<0.000000e+00> : vector<16x64xf32>
    %232 = tpu.matmul %231, %230, %cst_117 {dimension_numbers = #tpu.dot_dimension_numbers<[1], [0], [0], [1], [0, 0, 1, 1], [], []>} : vector<16x128xbf16>, vector<128x64xbf16>, vector<16x64xf32> -> vector<16x64xf32>
    %c0_118 = arith.constant 0 : index
    %c0_119 = arith.constant 0 : index
    %233 = vector.load %arg14[%c0_118, %c0_119] : memref<1x64xf32, #tpu.memory_space<vmem>>, vector<1x64xf32>
    %234 = vector.broadcast %233 : vector<1x64xf32> to vector<16x64xf32>
    %235 = arith.addf %232, %234 : vector<16x64xf32>
    %236 = vector.extract_strided_slice %235 {offsets = [0, 0], sizes = [16, 32], strides = [1, 1]} : vector<16x64xf32> to vector<16x32xf32>
    %237 = vector.extract_strided_slice %235 {offsets = [0, 32], sizes = [16, 32], strides = [1, 1]} : vector<16x64xf32> to vector<16x32xf32>
    %238 = math.absf %237 : vector<16x32xf32>
    %cst_120 = arith.constant 1.000000e+00 : f32
    %239 = vector.broadcast %cst_120 : f32 to vector<16x32xf32>
    %240 = arith.subf %239, %211 : vector<16x32xf32>
    %241 = arith.mulf %240, %236 : vector<16x32xf32>
    %242 = arith.mulf %211, %180 : vector<16x32xf32>
    %243 = arith.addf %241, %242 : vector<16x32xf32>
    %cst_121 = arith.constant 1.000000e+00 : f32
    %244 = vector.broadcast %cst_121 : f32 to vector<16x32xf32>
    %245 = arith.subf %244, %211 : vector<16x32xf32>
    %246 = arith.mulf %245, %238 : vector<16x32xf32>
    %247 = arith.mulf %211, %102 : vector<16x32xf32>
    %248 = arith.addf %246, %247 : vector<16x32xf32>
    %249 = vector.broadcast %184 : vector<16x1xf32> to vector<16x32xf32>
    %250 = arith.mulf %249, %243 : vector<16x32xf32>
    %cst_122 = arith.constant 1.000000e+00 : f32
    %251 = vector.broadcast %cst_122 : f32 to vector<16x1xf32>
    %252 = arith.subf %251, %184 : vector<16x1xf32>
    %253 = vector.broadcast %252 : vector<16x1xf32> to vector<16x32xf32>
    %254 = arith.mulf %253, %180 : vector<16x32xf32>
    %255 = arith.addf %250, %254 : vector<16x32xf32>
    %256 = vector.broadcast %184 : vector<16x1xf32> to vector<16x32xf32>
    %257 = arith.mulf %256, %248 : vector<16x32xf32>
    %cst_123 = arith.constant 1.000000e+00 : f32
    %258 = vector.broadcast %cst_123 : f32 to vector<16x1xf32>
    %259 = arith.subf %258, %184 : vector<16x1xf32>
    %260 = vector.broadcast %259 : vector<16x1xf32> to vector<16x32xf32>
    %261 = arith.mulf %260, %102 : vector<16x32xf32>
    %262 = arith.addf %257, %261 : vector<16x32xf32>
    %263 = math.absf %262 : vector<16x32xf32>
    %c0_124 = arith.constant 0 : index
    %c0_125 = arith.constant 0 : index
    %264 = vector.load %arg20[%c0_124, %c0_125] : memref<32x128xbf16, #tpu.memory_space<vmem>>, vector<32x128xbf16>
    %c0_126 = arith.constant 0 : index
    %c0_127 = arith.constant 0 : index
    %265 = vector.load %arg22[%c0_126, %c0_127] : memref<128x32xbf16, #tpu.memory_space<vmem>>, vector<128x32xbf16>
    %c0_128 = arith.constant 0 : index
    %c0_129 = arith.constant 0 : index
    %266 = vector.load %arg21[%c0_128, %c0_129] : memref<1x128xf32, #tpu.memory_space<vmem>>, vector<1x128xf32>
    %c0_130 = arith.constant 0 : index
    %c0_131 = arith.constant 0 : index
    %267 = vector.load %arg23[%c0_130, %c0_131] : memref<1x32xf32, #tpu.memory_space<vmem>>, vector<1x32xf32>
    %cst_132 = arith.constant -0.0238095317 : f32
    %268 = vector.broadcast %cst_132 : f32 to vector<1x32xf32>
    %269 = arith.mulf %267, %268 : vector<1x32xf32>
    %270 = arith.truncf %255 : vector<16x32xf32> to vector<16x32xbf16>
    %cst_133 = arith.constant dense<0.000000e+00> : vector<16x128xf32>
    %271 = tpu.matmul %270, %264, %cst_133 {dimension_numbers = #tpu.dot_dimension_numbers<[1], [0], [0], [1], [0, 0, 1, 1], [], []>} : vector<16x32xbf16>, vector<32x128xbf16>, vector<16x128xf32> -> vector<16x128xf32>
    %272 = vector.broadcast %266 : vector<1x128xf32> to vector<16x128xf32>
    %273 = arith.addf %271, %272 : vector<16x128xf32>
    %274 = math.tanh %273 : vector<16x128xf32>
    %275 = arith.truncf %274 : vector<16x128xf32> to vector<16x128xbf16>
    %cst_134 = arith.constant dense<0.000000e+00> : vector<16x32xf32>
    %276 = tpu.matmul %275, %265, %cst_134 {dimension_numbers = #tpu.dot_dimension_numbers<[1], [0], [0], [1], [0, 0, 1, 1], [], []>} : vector<16x128xbf16>, vector<128x32xbf16>, vector<16x32xf32> -> vector<16x32xf32>
    %cst_135 = arith.constant -0.0238095317 : f32
    %277 = vector.broadcast %cst_135 : f32 to vector<16x32xf32>
    %278 = arith.mulf %276, %277 : vector<16x32xf32>
    %279 = arith.addf %255, %278 : vector<16x32xf32>
    %280 = vector.broadcast %269 : vector<1x32xf32> to vector<16x32xf32>
    %281 = arith.addf %279, %280 : vector<16x32xf32>
    %282 = arith.truncf %281 : vector<16x32xf32> to vector<16x32xbf16>
    %cst_136 = arith.constant dense<0.000000e+00> : vector<16x128xf32>
    %283 = tpu.matmul %282, %264, %cst_136 {dimension_numbers = #tpu.dot_dimension_numbers<[1], [0], [0], [1], [0, 0, 1, 1], [], []>} : vector<16x32xbf16>, vector<32x128xbf16>, vector<16x128xf32> -> vector<16x128xf32>
    %284 = vector.broadcast %266 : vector<1x128xf32> to vector<16x128xf32>
    %285 = arith.addf %283, %284 : vector<16x128xf32>
    %286 = math.tanh %285 : vector<16x128xf32>
    %287 = arith.truncf %286 : vector<16x128xf32> to vector<16x128xbf16>
    %cst_137 = arith.constant dense<0.000000e+00> : vector<16x32xf32>
    %288 = tpu.matmul %287, %265, %cst_137 {dimension_numbers = #tpu.dot_dimension_numbers<[1], [0], [0], [1], [0, 0, 1, 1], [], []>} : vector<16x128xbf16>, vector<128x32xbf16>, vector<16x32xf32> -> vector<16x32xf32>
    %cst_138 = arith.constant -0.0238095317 : f32
    %289 = vector.broadcast %cst_138 : f32 to vector<16x32xf32>
    %290 = arith.mulf %288, %289 : vector<16x32xf32>
    %291 = arith.addf %281, %290 : vector<16x32xf32>
    %292 = vector.broadcast %269 : vector<1x32xf32> to vector<16x32xf32>
    %293 = arith.addf %291, %292 : vector<16x32xf32>
    %294 = arith.truncf %293 : vector<16x32xf32> to vector<16x32xbf16>
    %cst_139 = arith.constant dense<0.000000e+00> : vector<16x128xf32>
    %295 = tpu.matmul %294, %264, %cst_139 {dimension_numbers = #tpu.dot_dimension_numbers<[1], [0], [0], [1], [0, 0, 1, 1], [], []>} : vector<16x32xbf16>, vector<32x128xbf16>, vector<16x128xf32> -> vector<16x128xf32>
    %296 = vector.broadcast %266 : vector<1x128xf32> to vector<16x128xf32>
    %297 = arith.addf %295, %296 : vector<16x128xf32>
    %298 = math.tanh %297 : vector<16x128xf32>
    %299 = arith.truncf %298 : vector<16x128xf32> to vector<16x128xbf16>
    %cst_140 = arith.constant dense<0.000000e+00> : vector<16x32xf32>
    %300 = tpu.matmul %299, %265, %cst_140 {dimension_numbers = #tpu.dot_dimension_numbers<[1], [0], [0], [1], [0, 0, 1, 1], [], []>} : vector<16x128xbf16>, vector<128x32xbf16>, vector<16x32xf32> -> vector<16x32xf32>
    %cst_141 = arith.constant -0.0238095317 : f32
    %301 = vector.broadcast %cst_141 : f32 to vector<16x32xf32>
    %302 = arith.mulf %300, %301 : vector<16x32xf32>
    %303 = arith.addf %293, %302 : vector<16x32xf32>
    %304 = vector.broadcast %269 : vector<1x32xf32> to vector<16x32xf32>
    %305 = arith.addf %303, %304 : vector<16x32xf32>
    %306 = arith.truncf %305 : vector<16x32xf32> to vector<16x32xbf16>
    %cst_142 = arith.constant dense<0.000000e+00> : vector<16x128xf32>
    %307 = tpu.matmul %306, %264, %cst_142 {dimension_numbers = #tpu.dot_dimension_numbers<[1], [0], [0], [1], [0, 0, 1, 1], [], []>} : vector<16x32xbf16>, vector<32x128xbf16>, vector<16x128xf32> -> vector<16x128xf32>
    %308 = vector.broadcast %266 : vector<1x128xf32> to vector<16x128xf32>
    %309 = arith.addf %307, %308 : vector<16x128xf32>
    %310 = math.tanh %309 : vector<16x128xf32>
    %311 = arith.truncf %310 : vector<16x128xf32> to vector<16x128xbf16>
    %cst_143 = arith.constant dense<0.000000e+00> : vector<16x32xf32>
    %312 = tpu.matmul %311, %265, %cst_143 {dimension_numbers = #tpu.dot_dimension_numbers<[1], [0], [0], [1], [0, 0, 1, 1], [], []>} : vector<16x128xbf16>, vector<128x32xbf16>, vector<16x32xf32> -> vector<16x32xf32>
    %cst_144 = arith.constant -0.0238095317 : f32
    %313 = vector.broadcast %cst_144 : f32 to vector<16x32xf32>
    %314 = arith.mulf %312, %313 : vector<16x32xf32>
    %315 = arith.addf %305, %314 : vector<16x32xf32>
    %316 = vector.broadcast %269 : vector<1x32xf32> to vector<16x32xf32>
    %317 = arith.addf %315, %316 : vector<16x32xf32>
    %318 = arith.truncf %317 : vector<16x32xf32> to vector<16x32xbf16>
    %cst_145 = arith.constant dense<0.000000e+00> : vector<16x128xf32>
    %319 = tpu.matmul %318, %264, %cst_145 {dimension_numbers = #tpu.dot_dimension_numbers<[1], [0], [0], [1], [0, 0, 1, 1], [], []>} : vector<16x32xbf16>, vector<32x128xbf16>, vector<16x128xf32> -> vector<16x128xf32>
    %320 = vector.broadcast %266 : vector<1x128xf32> to vector<16x128xf32>
    %321 = arith.addf %319, %320 : vector<16x128xf32>
    %322 = math.tanh %321 : vector<16x128xf32>
    %323 = arith.truncf %322 : vector<16x128xf32> to vector<16x128xbf16>
    %cst_146 = arith.constant dense<0.000000e+00> : vector<16x32xf32>
    %324 = tpu.matmul %323, %265, %cst_146 {dimension_numbers = #tpu.dot_dimension_numbers<[1], [0], [0], [1], [0, 0, 1, 1], [], []>} : vector<16x128xbf16>, vector<128x32xbf16>, vector<16x32xf32> -> vector<16x32xf32>
    %cst_147 = arith.constant -0.0238095317 : f32
    %325 = vector.broadcast %cst_147 : f32 to vector<16x32xf32>
    %326 = arith.mulf %324, %325 : vector<16x32xf32>
    %327 = arith.addf %317, %326 : vector<16x32xf32>
    %328 = vector.broadcast %269 : vector<1x32xf32> to vector<16x32xf32>
    %329 = arith.addf %327, %328 : vector<16x32xf32>
    %330 = arith.truncf %329 : vector<16x32xf32> to vector<16x32xbf16>
    %cst_148 = arith.constant dense<0.000000e+00> : vector<16x128xf32>
    %331 = tpu.matmul %330, %264, %cst_148 {dimension_numbers = #tpu.dot_dimension_numbers<[1], [0], [0], [1], [0, 0, 1, 1], [], []>} : vector<16x32xbf16>, vector<32x128xbf16>, vector<16x128xf32> -> vector<16x128xf32>
    %332 = vector.broadcast %266 : vector<1x128xf32> to vector<16x128xf32>
    %333 = arith.addf %331, %332 : vector<16x128xf32>
    %334 = math.tanh %333 : vector<16x128xf32>
    %335 = arith.truncf %334 : vector<16x128xf32> to vector<16x128xbf16>
    %cst_149 = arith.constant dense<0.000000e+00> : vector<16x32xf32>
    %336 = tpu.matmul %335, %265, %cst_149 {dimension_numbers = #tpu.dot_dimension_numbers<[1], [0], [0], [1], [0, 0, 1, 1], [], []>} : vector<16x128xbf16>, vector<128x32xbf16>, vector<16x32xf32> -> vector<16x32xf32>
    %cst_150 = arith.constant -0.0238095317 : f32
    %337 = vector.broadcast %cst_150 : f32 to vector<16x32xf32>
    %338 = arith.mulf %336, %337 : vector<16x32xf32>
    %339 = arith.addf %329, %338 : vector<16x32xf32>
    %340 = vector.broadcast %269 : vector<1x32xf32> to vector<16x32xf32>
    %341 = arith.addf %339, %340 : vector<16x32xf32>
    %c2 = arith.constant 2 : index
    %c0_151 = arith.constant 0 : index
    %c0_152 = arith.constant 0 : index
    %342 = vector.load %arg1[%c2, %c0_151, %c0_152] : memref<8x16x16xf32, #tpu.memory_space<vmem>>, vector<1x16x16xf32>
    %343 = vector.shape_cast %342 : vector<1x16x16xf32> to vector<16x16xf32>
    %c2_153 = arith.constant 2 : index
    %c0_154 = arith.constant 0 : index
    %c0_155 = arith.constant 0 : index
    %344 = vector.load %arg2[%c2_153, %c0_154, %c0_155] : memref<8x16x1xf32, #tpu.memory_space<vmem>>, vector<1x16x1xf32>
    %345 = vector.shape_cast %344 : vector<1x16x1xf32> to vector<16x1xf32>
    %c0_156 = arith.constant 0 : index
    %c0_157 = arith.constant 0 : index
    %346 = vector.load %arg3[%c0_156, %c0_157] : memref<32x256xbf16, #tpu.memory_space<vmem>>, vector<32x256xbf16>
    %347 = arith.truncf %341 : vector<16x32xf32> to vector<16x32xbf16>
    %cst_158 = arith.constant dense<0.000000e+00> : vector<16x256xf32>
    %348 = tpu.matmul %347, %346, %cst_158 {dimension_numbers = #tpu.dot_dimension_numbers<[1], [0], [0], [1], [0, 0, 1, 1], [], []>} : vector<16x32xbf16>, vector<32x256xbf16>, vector<16x256xf32> -> vector<16x256xf32>
    %c0_159 = arith.constant 0 : index
    %c0_160 = arith.constant 0 : index
    %349 = vector.load %arg4[%c0_159, %c0_160] : memref<32x256xbf16, #tpu.memory_space<vmem>>, vector<32x256xbf16>
    %350 = arith.truncf %263 : vector<16x32xf32> to vector<16x32xbf16>
    %cst_161 = arith.constant dense<0.000000e+00> : vector<16x256xf32>
    %351 = tpu.matmul %350, %349, %cst_161 {dimension_numbers = #tpu.dot_dimension_numbers<[1], [0], [0], [1], [0, 0, 1, 1], [], []>} : vector<16x32xbf16>, vector<32x256xbf16>, vector<16x256xf32> -> vector<16x256xf32>
    %352 = arith.addf %348, %351 : vector<16x256xf32>
    %c0_162 = arith.constant 0 : index
    %c0_163 = arith.constant 0 : index
    %353 = vector.load %arg5[%c0_162, %c0_163] : memref<16x256xbf16, #tpu.memory_space<vmem>>, vector<16x256xbf16>
    %354 = arith.truncf %343 : vector<16x16xf32> to vector<16x16xbf16>
    %cst_164 = arith.constant dense<0.000000e+00> : vector<16x256xf32>
    %355 = tpu.matmul %354, %353, %cst_164 {dimension_numbers = #tpu.dot_dimension_numbers<[1], [0], [0], [1], [0, 0, 1, 1], [], []>} : vector<16x16xbf16>, vector<16x256xbf16>, vector<16x256xf32> -> vector<16x256xf32>
    %356 = arith.addf %352, %355 : vector<16x256xf32>
    %c0_165 = arith.constant 0 : index
    %c0_166 = arith.constant 0 : index
    %357 = vector.load %arg6[%c0_165, %c0_166] : memref<1x256xf32, #tpu.memory_space<vmem>>, vector<1x256xf32>
    %358 = vector.broadcast %357 : vector<1x256xf32> to vector<16x256xf32>
    %359 = arith.addf %356, %358 : vector<16x256xf32>
    %360 = math.tanh %359 : vector<16x256xf32>
    %c0_167 = arith.constant 0 : index
    %c0_168 = arith.constant 0 : index
    %361 = vector.load %arg7[%c0_167, %c0_168] : memref<256x64xbf16, #tpu.memory_space<vmem>>, vector<256x64xbf16>
    %362 = arith.truncf %360 : vector<16x256xf32> to vector<16x256xbf16>
    %cst_169 = arith.constant dense<0.000000e+00> : vector<16x64xf32>
    %363 = tpu.matmul %362, %361, %cst_169 {dimension_numbers = #tpu.dot_dimension_numbers<[1], [0], [0], [1], [0, 0, 1, 1], [], []>} : vector<16x256xbf16>, vector<256x64xbf16>, vector<16x64xf32> -> vector<16x64xf32>
    %c0_170 = arith.constant 0 : index
    %c0_171 = arith.constant 0 : index
    %364 = vector.load %arg8[%c0_170, %c0_171] : memref<1x64xf32, #tpu.memory_space<vmem>>, vector<1x64xf32>
    %365 = vector.broadcast %364 : vector<1x64xf32> to vector<16x64xf32>
    %366 = arith.addf %363, %365 : vector<16x64xf32>
    %367 = arith.negf %366 : vector<16x64xf32>
    %368 = math.exp %367 : vector<16x64xf32>
    %cst_172 = arith.constant 1.000000e+00 : f32
    %369 = vector.broadcast %cst_172 : f32 to vector<16x64xf32>
    %370 = arith.addf %369, %368 : vector<16x64xf32>
    %371 = arith.divf %369, %370 : vector<16x64xf32>
    %372 = vector.extract_strided_slice %371 {offsets = [0, 0], sizes = [16, 32], strides = [1, 1]} : vector<16x64xf32> to vector<16x32xf32>
    %373 = vector.extract_strided_slice %371 {offsets = [0, 32], sizes = [16, 32], strides = [1, 1]} : vector<16x64xf32> to vector<16x32xf32>
    %374 = arith.mulf %341, %373 : vector<16x32xf32>
    %c0_173 = arith.constant 0 : index
    %c0_174 = arith.constant 0 : index
    %375 = vector.load %arg9[%c0_173, %c0_174] : memref<32x128xbf16, #tpu.memory_space<vmem>>, vector<32x128xbf16>
    %376 = arith.truncf %374 : vector<16x32xf32> to vector<16x32xbf16>
    %cst_175 = arith.constant dense<0.000000e+00> : vector<16x128xf32>
    %377 = tpu.matmul %376, %375, %cst_175 {dimension_numbers = #tpu.dot_dimension_numbers<[1], [0], [0], [1], [0, 0, 1, 1], [], []>} : vector<16x32xbf16>, vector<32x128xbf16>, vector<16x128xf32> -> vector<16x128xf32>
    %378 = arith.mulf %263, %373 : vector<16x32xf32>
    %c0_176 = arith.constant 0 : index
    %c0_177 = arith.constant 0 : index
    %379 = vector.load %arg10[%c0_176, %c0_177] : memref<32x128xbf16, #tpu.memory_space<vmem>>, vector<32x128xbf16>
    %380 = arith.truncf %378 : vector<16x32xf32> to vector<16x32xbf16>
    %cst_178 = arith.constant dense<0.000000e+00> : vector<16x128xf32>
    %381 = tpu.matmul %380, %379, %cst_178 {dimension_numbers = #tpu.dot_dimension_numbers<[1], [0], [0], [1], [0, 0, 1, 1], [], []>} : vector<16x32xbf16>, vector<32x128xbf16>, vector<16x128xf32> -> vector<16x128xf32>
    %382 = arith.addf %377, %381 : vector<16x128xf32>
    %c0_179 = arith.constant 0 : index
    %c0_180 = arith.constant 0 : index
    %383 = vector.load %arg11[%c0_179, %c0_180] : memref<16x128xbf16, #tpu.memory_space<vmem>>, vector<16x128xbf16>
    %384 = arith.truncf %343 : vector<16x16xf32> to vector<16x16xbf16>
    %cst_181 = arith.constant dense<0.000000e+00> : vector<16x128xf32>
    %385 = tpu.matmul %384, %383, %cst_181 {dimension_numbers = #tpu.dot_dimension_numbers<[1], [0], [0], [1], [0, 0, 1, 1], [], []>} : vector<16x16xbf16>, vector<16x128xbf16>, vector<16x128xf32> -> vector<16x128xf32>
    %386 = arith.addf %382, %385 : vector<16x128xf32>
    %c0_182 = arith.constant 0 : index
    %c0_183 = arith.constant 0 : index
    %387 = vector.load %arg12[%c0_182, %c0_183] : memref<1x128xf32, #tpu.memory_space<vmem>>, vector<1x128xf32>
    %388 = vector.broadcast %387 : vector<1x128xf32> to vector<16x128xf32>
    %389 = arith.addf %386, %388 : vector<16x128xf32>
    %390 = math.tanh %389 : vector<16x128xf32>
    %c0_184 = arith.constant 0 : index
    %c0_185 = arith.constant 0 : index
    %391 = vector.load %arg13[%c0_184, %c0_185] : memref<128x64xbf16, #tpu.memory_space<vmem>>, vector<128x64xbf16>
    %392 = arith.truncf %390 : vector<16x128xf32> to vector<16x128xbf16>
    %cst_186 = arith.constant dense<0.000000e+00> : vector<16x64xf32>
    %393 = tpu.matmul %392, %391, %cst_186 {dimension_numbers = #tpu.dot_dimension_numbers<[1], [0], [0], [1], [0, 0, 1, 1], [], []>} : vector<16x128xbf16>, vector<128x64xbf16>, vector<16x64xf32> -> vector<16x64xf32>
    %c0_187 = arith.constant 0 : index
    %c0_188 = arith.constant 0 : index
    %394 = vector.load %arg14[%c0_187, %c0_188] : memref<1x64xf32, #tpu.memory_space<vmem>>, vector<1x64xf32>
    %395 = vector.broadcast %394 : vector<1x64xf32> to vector<16x64xf32>
    %396 = arith.addf %393, %395 : vector<16x64xf32>
    %397 = vector.extract_strided_slice %396 {offsets = [0, 0], sizes = [16, 32], strides = [1, 1]} : vector<16x64xf32> to vector<16x32xf32>
    %398 = vector.extract_strided_slice %396 {offsets = [0, 32], sizes = [16, 32], strides = [1, 1]} : vector<16x64xf32> to vector<16x32xf32>
    %399 = math.absf %398 : vector<16x32xf32>
    %cst_189 = arith.constant 1.000000e+00 : f32
    %400 = vector.broadcast %cst_189 : f32 to vector<16x32xf32>
    %401 = arith.subf %400, %372 : vector<16x32xf32>
    %402 = arith.mulf %401, %397 : vector<16x32xf32>
    %403 = arith.mulf %372, %341 : vector<16x32xf32>
    %404 = arith.addf %402, %403 : vector<16x32xf32>
    %cst_190 = arith.constant 1.000000e+00 : f32
    %405 = vector.broadcast %cst_190 : f32 to vector<16x32xf32>
    %406 = arith.subf %405, %372 : vector<16x32xf32>
    %407 = arith.mulf %406, %399 : vector<16x32xf32>
    %408 = arith.mulf %372, %263 : vector<16x32xf32>
    %409 = arith.addf %407, %408 : vector<16x32xf32>
    %410 = vector.broadcast %345 : vector<16x1xf32> to vector<16x32xf32>
    %411 = arith.mulf %410, %404 : vector<16x32xf32>
    %cst_191 = arith.constant 1.000000e+00 : f32
    %412 = vector.broadcast %cst_191 : f32 to vector<16x1xf32>
    %413 = arith.subf %412, %345 : vector<16x1xf32>
    %414 = vector.broadcast %413 : vector<16x1xf32> to vector<16x32xf32>
    %415 = arith.mulf %414, %341 : vector<16x32xf32>
    %416 = arith.addf %411, %415 : vector<16x32xf32>
    %417 = vector.broadcast %345 : vector<16x1xf32> to vector<16x32xf32>
    %418 = arith.mulf %417, %409 : vector<16x32xf32>
    %cst_192 = arith.constant 1.000000e+00 : f32
    %419 = vector.broadcast %cst_192 : f32 to vector<16x1xf32>
    %420 = arith.subf %419, %345 : vector<16x1xf32>
    %421 = vector.broadcast %420 : vector<16x1xf32> to vector<16x32xf32>
    %422 = arith.mulf %421, %263 : vector<16x32xf32>
    %423 = arith.addf %418, %422 : vector<16x32xf32>
    %424 = math.absf %423 : vector<16x32xf32>
    %c0_193 = arith.constant 0 : index
    %c0_194 = arith.constant 0 : index
    %425 = vector.load %arg20[%c0_193, %c0_194] : memref<32x128xbf16, #tpu.memory_space<vmem>>, vector<32x128xbf16>
    %c0_195 = arith.constant 0 : index
    %c0_196 = arith.constant 0 : index
    %426 = vector.load %arg22[%c0_195, %c0_196] : memref<128x32xbf16, #tpu.memory_space<vmem>>, vector<128x32xbf16>
    %c0_197 = arith.constant 0 : index
    %c0_198 = arith.constant 0 : index
    %427 = vector.load %arg21[%c0_197, %c0_198] : memref<1x128xf32, #tpu.memory_space<vmem>>, vector<1x128xf32>
    %c0_199 = arith.constant 0 : index
    %c0_200 = arith.constant 0 : index
    %428 = vector.load %arg23[%c0_199, %c0_200] : memref<1x32xf32, #tpu.memory_space<vmem>>, vector<1x32xf32>
    %cst_201 = arith.constant -0.0238095224 : f32
    %429 = vector.broadcast %cst_201 : f32 to vector<1x32xf32>
    %430 = arith.mulf %428, %429 : vector<1x32xf32>
    %431 = arith.truncf %416 : vector<16x32xf32> to vector<16x32xbf16>
    %cst_202 = arith.constant dense<0.000000e+00> : vector<16x128xf32>
    %432 = tpu.matmul %431, %425, %cst_202 {dimension_numbers = #tpu.dot_dimension_numbers<[1], [0], [0], [1], [0, 0, 1, 1], [], []>} : vector<16x32xbf16>, vector<32x128xbf16>, vector<16x128xf32> -> vector<16x128xf32>
    %433 = vector.broadcast %427 : vector<1x128xf32> to vector<16x128xf32>
    %434 = arith.addf %432, %433 : vector<16x128xf32>
    %435 = math.tanh %434 : vector<16x128xf32>
    %436 = arith.truncf %435 : vector<16x128xf32> to vector<16x128xbf16>
    %cst_203 = arith.constant dense<0.000000e+00> : vector<16x32xf32>
    %437 = tpu.matmul %436, %426, %cst_203 {dimension_numbers = #tpu.dot_dimension_numbers<[1], [0], [0], [1], [0, 0, 1, 1], [], []>} : vector<16x128xbf16>, vector<128x32xbf16>, vector<16x32xf32> -> vector<16x32xf32>
    %cst_204 = arith.constant -0.0238095224 : f32
    %438 = vector.broadcast %cst_204 : f32 to vector<16x32xf32>
    %439 = arith.mulf %437, %438 : vector<16x32xf32>
    %440 = arith.addf %416, %439 : vector<16x32xf32>
    %441 = vector.broadcast %430 : vector<1x32xf32> to vector<16x32xf32>
    %442 = arith.addf %440, %441 : vector<16x32xf32>
    %443 = arith.truncf %442 : vector<16x32xf32> to vector<16x32xbf16>
    %cst_205 = arith.constant dense<0.000000e+00> : vector<16x128xf32>
    %444 = tpu.matmul %443, %425, %cst_205 {dimension_numbers = #tpu.dot_dimension_numbers<[1], [0], [0], [1], [0, 0, 1, 1], [], []>} : vector<16x32xbf16>, vector<32x128xbf16>, vector<16x128xf32> -> vector<16x128xf32>
    %445 = vector.broadcast %427 : vector<1x128xf32> to vector<16x128xf32>
    %446 = arith.addf %444, %445 : vector<16x128xf32>
    %447 = math.tanh %446 : vector<16x128xf32>
    %448 = arith.truncf %447 : vector<16x128xf32> to vector<16x128xbf16>
    %cst_206 = arith.constant dense<0.000000e+00> : vector<16x32xf32>
    %449 = tpu.matmul %448, %426, %cst_206 {dimension_numbers = #tpu.dot_dimension_numbers<[1], [0], [0], [1], [0, 0, 1, 1], [], []>} : vector<16x128xbf16>, vector<128x32xbf16>, vector<16x32xf32> -> vector<16x32xf32>
    %cst_207 = arith.constant -0.0238095224 : f32
    %450 = vector.broadcast %cst_207 : f32 to vector<16x32xf32>
    %451 = arith.mulf %449, %450 : vector<16x32xf32>
    %452 = arith.addf %442, %451 : vector<16x32xf32>
    %453 = vector.broadcast %430 : vector<1x32xf32> to vector<16x32xf32>
    %454 = arith.addf %452, %453 : vector<16x32xf32>
    %455 = arith.truncf %454 : vector<16x32xf32> to vector<16x32xbf16>
    %cst_208 = arith.constant dense<0.000000e+00> : vector<16x128xf32>
    %456 = tpu.matmul %455, %425, %cst_208 {dimension_numbers = #tpu.dot_dimension_numbers<[1], [0], [0], [1], [0, 0, 1, 1], [], []>} : vector<16x32xbf16>, vector<32x128xbf16>, vector<16x128xf32> -> vector<16x128xf32>
    %457 = vector.broadcast %427 : vector<1x128xf32> to vector<16x128xf32>
    %458 = arith.addf %456, %457 : vector<16x128xf32>
    %459 = math.tanh %458 : vector<16x128xf32>
    %460 = arith.truncf %459 : vector<16x128xf32> to vector<16x128xbf16>
    %cst_209 = arith.constant dense<0.000000e+00> : vector<16x32xf32>
    %461 = tpu.matmul %460, %426, %cst_209 {dimension_numbers = #tpu.dot_dimension_numbers<[1], [0], [0], [1], [0, 0, 1, 1], [], []>} : vector<16x128xbf16>, vector<128x32xbf16>, vector<16x32xf32> -> vector<16x32xf32>
    %cst_210 = arith.constant -0.0238095224 : f32
    %462 = vector.broadcast %cst_210 : f32 to vector<16x32xf32>
    %463 = arith.mulf %461, %462 : vector<16x32xf32>
    %464 = arith.addf %454, %463 : vector<16x32xf32>
    %465 = vector.broadcast %430 : vector<1x32xf32> to vector<16x32xf32>
    %466 = arith.addf %464, %465 : vector<16x32xf32>
    %467 = arith.truncf %466 : vector<16x32xf32> to vector<16x32xbf16>
    %cst_211 = arith.constant dense<0.000000e+00> : vector<16x128xf32>
    %468 = tpu.matmul %467, %425, %cst_211 {dimension_numbers = #tpu.dot_dimension_numbers<[1], [0], [0], [1], [0, 0, 1, 1], [], []>} : vector<16x32xbf16>, vector<32x128xbf16>, vector<16x128xf32> -> vector<16x128xf32>
    %469 = vector.broadcast %427 : vector<1x128xf32> to vector<16x128xf32>
    %470 = arith.addf %468, %469 : vector<16x128xf32>
    %471 = math.tanh %470 : vector<16x128xf32>
    %472 = arith.truncf %471 : vector<16x128xf32> to vector<16x128xbf16>
    %cst_212 = arith.constant dense<0.000000e+00> : vector<16x32xf32>
    %473 = tpu.matmul %472, %426, %cst_212 {dimension_numbers = #tpu.dot_dimension_numbers<[1], [0], [0], [1], [0, 0, 1, 1], [], []>} : vector<16x128xbf16>, vector<128x32xbf16>, vector<16x32xf32> -> vector<16x32xf32>
    %cst_213 = arith.constant -0.0238095224 : f32
    %474 = vector.broadcast %cst_213 : f32 to vector<16x32xf32>
    %475 = arith.mulf %473, %474 : vector<16x32xf32>
    %476 = arith.addf %466, %475 : vector<16x32xf32>
    %477 = vector.broadcast %430 : vector<1x32xf32> to vector<16x32xf32>
    %478 = arith.addf %476, %477 : vector<16x32xf32>
    %479 = arith.truncf %478 : vector<16x32xf32> to vector<16x32xbf16>
    %cst_214 = arith.constant dense<0.000000e+00> : vector<16x128xf32>
    %480 = tpu.matmul %479, %425, %cst_214 {dimension_numbers = #tpu.dot_dimension_numbers<[1], [0], [0], [1], [0, 0, 1, 1], [], []>} : vector<16x32xbf16>, vector<32x128xbf16>, vector<16x128xf32> -> vector<16x128xf32>
    %481 = vector.broadcast %427 : vector<1x128xf32> to vector<16x128xf32>
    %482 = arith.addf %480, %481 : vector<16x128xf32>
    %483 = math.tanh %482 : vector<16x128xf32>
    %484 = arith.truncf %483 : vector<16x128xf32> to vector<16x128xbf16>
    %cst_215 = arith.constant dense<0.000000e+00> : vector<16x32xf32>
    %485 = tpu.matmul %484, %426, %cst_215 {dimension_numbers = #tpu.dot_dimension_numbers<[1], [0], [0], [1], [0, 0, 1, 1], [], []>} : vector<16x128xbf16>, vector<128x32xbf16>, vector<16x32xf32> -> vector<16x32xf32>
    %cst_216 = arith.constant -0.0238095224 : f32
    %486 = vector.broadcast %cst_216 : f32 to vector<16x32xf32>
    %487 = arith.mulf %485, %486 : vector<16x32xf32>
    %488 = arith.addf %478, %487 : vector<16x32xf32>
    %489 = vector.broadcast %430 : vector<1x32xf32> to vector<16x32xf32>
    %490 = arith.addf %488, %489 : vector<16x32xf32>
    %491 = arith.truncf %490 : vector<16x32xf32> to vector<16x32xbf16>
    %cst_217 = arith.constant dense<0.000000e+00> : vector<16x128xf32>
    %492 = tpu.matmul %491, %425, %cst_217 {dimension_numbers = #tpu.dot_dimension_numbers<[1], [0], [0], [1], [0, 0, 1, 1], [], []>} : vector<16x32xbf16>, vector<32x128xbf16>, vector<16x128xf32> -> vector<16x128xf32>
    %493 = vector.broadcast %427 : vector<1x128xf32> to vector<16x128xf32>
    %494 = arith.addf %492, %493 : vector<16x128xf32>
    %495 = math.tanh %494 : vector<16x128xf32>
    %496 = arith.truncf %495 : vector<16x128xf32> to vector<16x128xbf16>
    %cst_218 = arith.constant dense<0.000000e+00> : vector<16x32xf32>
    %497 = tpu.matmul %496, %426, %cst_218 {dimension_numbers = #tpu.dot_dimension_numbers<[1], [0], [0], [1], [0, 0, 1, 1], [], []>} : vector<16x128xbf16>, vector<128x32xbf16>, vector<16x32xf32> -> vector<16x32xf32>
    %cst_219 = arith.constant -0.0238095224 : f32
    %498 = vector.broadcast %cst_219 : f32 to vector<16x32xf32>
    %499 = arith.mulf %497, %498 : vector<16x32xf32>
    %500 = arith.addf %490, %499 : vector<16x32xf32>
    %501 = vector.broadcast %430 : vector<1x32xf32> to vector<16x32xf32>
    %502 = arith.addf %500, %501 : vector<16x32xf32>
    %c3 = arith.constant 3 : index
    %c0_220 = arith.constant 0 : index
    %c0_221 = arith.constant 0 : index
    %503 = vector.load %arg1[%c3, %c0_220, %c0_221] : memref<8x16x16xf32, #tpu.memory_space<vmem>>, vector<1x16x16xf32>
    %504 = vector.shape_cast %503 : vector<1x16x16xf32> to vector<16x16xf32>
    %c3_222 = arith.constant 3 : index
    %c0_223 = arith.constant 0 : index
    %c0_224 = arith.constant 0 : index
    %505 = vector.load %arg2[%c3_222, %c0_223, %c0_224] : memref<8x16x1xf32, #tpu.memory_space<vmem>>, vector<1x16x1xf32>
    %506 = vector.shape_cast %505 : vector<1x16x1xf32> to vector<16x1xf32>
    %c0_225 = arith.constant 0 : index
    %c0_226 = arith.constant 0 : index
    %507 = vector.load %arg3[%c0_225, %c0_226] : memref<32x256xbf16, #tpu.memory_space<vmem>>, vector<32x256xbf16>
    %508 = arith.truncf %502 : vector<16x32xf32> to vector<16x32xbf16>
    %cst_227 = arith.constant dense<0.000000e+00> : vector<16x256xf32>
    %509 = tpu.matmul %508, %507, %cst_227 {dimension_numbers = #tpu.dot_dimension_numbers<[1], [0], [0], [1], [0, 0, 1, 1], [], []>} : vector<16x32xbf16>, vector<32x256xbf16>, vector<16x256xf32> -> vector<16x256xf32>
    %c0_228 = arith.constant 0 : index
    %c0_229 = arith.constant 0 : index
    %510 = vector.load %arg4[%c0_228, %c0_229] : memref<32x256xbf16, #tpu.memory_space<vmem>>, vector<32x256xbf16>
    %511 = arith.truncf %424 : vector<16x32xf32> to vector<16x32xbf16>
    %cst_230 = arith.constant dense<0.000000e+00> : vector<16x256xf32>
    %512 = tpu.matmul %511, %510, %cst_230 {dimension_numbers = #tpu.dot_dimension_numbers<[1], [0], [0], [1], [0, 0, 1, 1], [], []>} : vector<16x32xbf16>, vector<32x256xbf16>, vector<16x256xf32> -> vector<16x256xf32>
    %513 = arith.addf %509, %512 : vector<16x256xf32>
    %c0_231 = arith.constant 0 : index
    %c0_232 = arith.constant 0 : index
    %514 = vector.load %arg5[%c0_231, %c0_232] : memref<16x256xbf16, #tpu.memory_space<vmem>>, vector<16x256xbf16>
    %515 = arith.truncf %504 : vector<16x16xf32> to vector<16x16xbf16>
    %cst_233 = arith.constant dense<0.000000e+00> : vector<16x256xf32>
    %516 = tpu.matmul %515, %514, %cst_233 {dimension_numbers = #tpu.dot_dimension_numbers<[1], [0], [0], [1], [0, 0, 1, 1], [], []>} : vector<16x16xbf16>, vector<16x256xbf16>, vector<16x256xf32> -> vector<16x256xf32>
    %517 = arith.addf %513, %516 : vector<16x256xf32>
    %c0_234 = arith.constant 0 : index
    %c0_235 = arith.constant 0 : index
    %518 = vector.load %arg6[%c0_234, %c0_235] : memref<1x256xf32, #tpu.memory_space<vmem>>, vector<1x256xf32>
    %519 = vector.broadcast %518 : vector<1x256xf32> to vector<16x256xf32>
    %520 = arith.addf %517, %519 : vector<16x256xf32>
    %521 = math.tanh %520 : vector<16x256xf32>
    %c0_236 = arith.constant 0 : index
    %c0_237 = arith.constant 0 : index
    %522 = vector.load %arg7[%c0_236, %c0_237] : memref<256x64xbf16, #tpu.memory_space<vmem>>, vector<256x64xbf16>
    %523 = arith.truncf %521 : vector<16x256xf32> to vector<16x256xbf16>
    %cst_238 = arith.constant dense<0.000000e+00> : vector<16x64xf32>
    %524 = tpu.matmul %523, %522, %cst_238 {dimension_numbers = #tpu.dot_dimension_numbers<[1], [0], [0], [1], [0, 0, 1, 1], [], []>} : vector<16x256xbf16>, vector<256x64xbf16>, vector<16x64xf32> -> vector<16x64xf32>
    %c0_239 = arith.constant 0 : index
    %c0_240 = arith.constant 0 : index
    %525 = vector.load %arg8[%c0_239, %c0_240] : memref<1x64xf32, #tpu.memory_space<vmem>>, vector<1x64xf32>
    %526 = vector.broadcast %525 : vector<1x64xf32> to vector<16x64xf32>
    %527 = arith.addf %524, %526 : vector<16x64xf32>
    %528 = arith.negf %527 : vector<16x64xf32>
    %529 = math.exp %528 : vector<16x64xf32>
    %cst_241 = arith.constant 1.000000e+00 : f32
    %530 = vector.broadcast %cst_241 : f32 to vector<16x64xf32>
    %531 = arith.addf %530, %529 : vector<16x64xf32>
    %532 = arith.divf %530, %531 : vector<16x64xf32>
    %533 = vector.extract_strided_slice %532 {offsets = [0, 0], sizes = [16, 32], strides = [1, 1]} : vector<16x64xf32> to vector<16x32xf32>
    %534 = vector.extract_strided_slice %532 {offsets = [0, 32], sizes = [16, 32], strides = [1, 1]} : vector<16x64xf32> to vector<16x32xf32>
    %535 = arith.mulf %502, %534 : vector<16x32xf32>
    %c0_242 = arith.constant 0 : index
    %c0_243 = arith.constant 0 : index
    %536 = vector.load %arg9[%c0_242, %c0_243] : memref<32x128xbf16, #tpu.memory_space<vmem>>, vector<32x128xbf16>
    %537 = arith.truncf %535 : vector<16x32xf32> to vector<16x32xbf16>
    %cst_244 = arith.constant dense<0.000000e+00> : vector<16x128xf32>
    %538 = tpu.matmul %537, %536, %cst_244 {dimension_numbers = #tpu.dot_dimension_numbers<[1], [0], [0], [1], [0, 0, 1, 1], [], []>} : vector<16x32xbf16>, vector<32x128xbf16>, vector<16x128xf32> -> vector<16x128xf32>
    %539 = arith.mulf %424, %534 : vector<16x32xf32>
    %c0_245 = arith.constant 0 : index
    %c0_246 = arith.constant 0 : index
    %540 = vector.load %arg10[%c0_245, %c0_246] : memref<32x128xbf16, #tpu.memory_space<vmem>>, vector<32x128xbf16>
    %541 = arith.truncf %539 : vector<16x32xf32> to vector<16x32xbf16>
    %cst_247 = arith.constant dense<0.000000e+00> : vector<16x128xf32>
    %542 = tpu.matmul %541, %540, %cst_247 {dimension_numbers = #tpu.dot_dimension_numbers<[1], [0], [0], [1], [0, 0, 1, 1], [], []>} : vector<16x32xbf16>, vector<32x128xbf16>, vector<16x128xf32> -> vector<16x128xf32>
    %543 = arith.addf %538, %542 : vector<16x128xf32>
    %c0_248 = arith.constant 0 : index
    %c0_249 = arith.constant 0 : index
    %544 = vector.load %arg11[%c0_248, %c0_249] : memref<16x128xbf16, #tpu.memory_space<vmem>>, vector<16x128xbf16>
    %545 = arith.truncf %504 : vector<16x16xf32> to vector<16x16xbf16>
    %cst_250 = arith.constant dense<0.000000e+00> : vector<16x128xf32>
    %546 = tpu.matmul %545, %544, %cst_250 {dimension_numbers = #tpu.dot_dimension_numbers<[1], [0], [0], [1], [0, 0, 1, 1], [], []>} : vector<16x16xbf16>, vector<16x128xbf16>, vector<16x128xf32> -> vector<16x128xf32>
    %547 = arith.addf %543, %546 : vector<16x128xf32>
    %c0_251 = arith.constant 0 : index
    %c0_252 = arith.constant 0 : index
    %548 = vector.load %arg12[%c0_251, %c0_252] : memref<1x128xf32, #tpu.memory_space<vmem>>, vector<1x128xf32>
    %549 = vector.broadcast %548 : vector<1x128xf32> to vector<16x128xf32>
    %550 = arith.addf %547, %549 : vector<16x128xf32>
    %551 = math.tanh %550 : vector<16x128xf32>
    %c0_253 = arith.constant 0 : index
    %c0_254 = arith.constant 0 : index
    %552 = vector.load %arg13[%c0_253, %c0_254] : memref<128x64xbf16, #tpu.memory_space<vmem>>, vector<128x64xbf16>
    %553 = arith.truncf %551 : vector<16x128xf32> to vector<16x128xbf16>
    %cst_255 = arith.constant dense<0.000000e+00> : vector<16x64xf32>
    %554 = tpu.matmul %553, %552, %cst_255 {dimension_numbers = #tpu.dot_dimension_numbers<[1], [0], [0], [1], [0, 0, 1, 1], [], []>} : vector<16x128xbf16>, vector<128x64xbf16>, vector<16x64xf32> -> vector<16x64xf32>
    %c0_256 = arith.constant 0 : index
    %c0_257 = arith.constant 0 : index
    %555 = vector.load %arg14[%c0_256, %c0_257] : memref<1x64xf32, #tpu.memory_space<vmem>>, vector<1x64xf32>
    %556 = vector.broadcast %555 : vector<1x64xf32> to vector<16x64xf32>
    %557 = arith.addf %554, %556 : vector<16x64xf32>
    %558 = vector.extract_strided_slice %557 {offsets = [0, 0], sizes = [16, 32], strides = [1, 1]} : vector<16x64xf32> to vector<16x32xf32>
    %559 = vector.extract_strided_slice %557 {offsets = [0, 32], sizes = [16, 32], strides = [1, 1]} : vector<16x64xf32> to vector<16x32xf32>
    %560 = math.absf %559 : vector<16x32xf32>
    %cst_258 = arith.constant 1.000000e+00 : f32
    %561 = vector.broadcast %cst_258 : f32 to vector<16x32xf32>
    %562 = arith.subf %561, %533 : vector<16x32xf32>
    %563 = arith.mulf %562, %558 : vector<16x32xf32>
    %564 = arith.mulf %533, %502 : vector<16x32xf32>
    %565 = arith.addf %563, %564 : vector<16x32xf32>
    %cst_259 = arith.constant 1.000000e+00 : f32
    %566 = vector.broadcast %cst_259 : f32 to vector<16x32xf32>
    %567 = arith.subf %566, %533 : vector<16x32xf32>
    %568 = arith.mulf %567, %560 : vector<16x32xf32>
    %569 = arith.mulf %533, %424 : vector<16x32xf32>
    %570 = arith.addf %568, %569 : vector<16x32xf32>
    %571 = vector.broadcast %506 : vector<16x1xf32> to vector<16x32xf32>
    %572 = arith.mulf %571, %565 : vector<16x32xf32>
    %cst_260 = arith.constant 1.000000e+00 : f32
    %573 = vector.broadcast %cst_260 : f32 to vector<16x1xf32>
    %574 = arith.subf %573, %506 : vector<16x1xf32>
    %575 = vector.broadcast %574 : vector<16x1xf32> to vector<16x32xf32>
    %576 = arith.mulf %575, %502 : vector<16x32xf32>
    %577 = arith.addf %572, %576 : vector<16x32xf32>
    %578 = vector.broadcast %506 : vector<16x1xf32> to vector<16x32xf32>
    %579 = arith.mulf %578, %570 : vector<16x32xf32>
    %cst_261 = arith.constant 1.000000e+00 : f32
    %580 = vector.broadcast %cst_261 : f32 to vector<16x1xf32>
    %581 = arith.subf %580, %506 : vector<16x1xf32>
    %582 = vector.broadcast %581 : vector<16x1xf32> to vector<16x32xf32>
    %583 = arith.mulf %582, %424 : vector<16x32xf32>
    %584 = arith.addf %579, %583 : vector<16x32xf32>
    %585 = math.absf %584 : vector<16x32xf32>
    %c0_262 = arith.constant 0 : index
    %c0_263 = arith.constant 0 : index
    %586 = vector.load %arg20[%c0_262, %c0_263] : memref<32x128xbf16, #tpu.memory_space<vmem>>, vector<32x128xbf16>
    %c0_264 = arith.constant 0 : index
    %c0_265 = arith.constant 0 : index
    %587 = vector.load %arg22[%c0_264, %c0_265] : memref<128x32xbf16, #tpu.memory_space<vmem>>, vector<128x32xbf16>
    %c0_266 = arith.constant 0 : index
    %c0_267 = arith.constant 0 : index
    %588 = vector.load %arg21[%c0_266, %c0_267] : memref<1x128xf32, #tpu.memory_space<vmem>>, vector<1x128xf32>
    %c0_268 = arith.constant 0 : index
    %c0_269 = arith.constant 0 : index
    %589 = vector.load %arg23[%c0_268, %c0_269] : memref<1x32xf32, #tpu.memory_space<vmem>>, vector<1x32xf32>
    %cst_270 = arith.constant -0.0238095224 : f32
    %590 = vector.broadcast %cst_270 : f32 to vector<1x32xf32>
    %591 = arith.mulf %589, %590 : vector<1x32xf32>
    %592 = arith.truncf %577 : vector<16x32xf32> to vector<16x32xbf16>
    %cst_271 = arith.constant dense<0.000000e+00> : vector<16x128xf32>
    %593 = tpu.matmul %592, %586, %cst_271 {dimension_numbers = #tpu.dot_dimension_numbers<[1], [0], [0], [1], [0, 0, 1, 1], [], []>} : vector<16x32xbf16>, vector<32x128xbf16>, vector<16x128xf32> -> vector<16x128xf32>
    %594 = vector.broadcast %588 : vector<1x128xf32> to vector<16x128xf32>
    %595 = arith.addf %593, %594 : vector<16x128xf32>
    %596 = math.tanh %595 : vector<16x128xf32>
    %597 = arith.truncf %596 : vector<16x128xf32> to vector<16x128xbf16>
    %cst_272 = arith.constant dense<0.000000e+00> : vector<16x32xf32>
    %598 = tpu.matmul %597, %587, %cst_272 {dimension_numbers = #tpu.dot_dimension_numbers<[1], [0], [0], [1], [0, 0, 1, 1], [], []>} : vector<16x128xbf16>, vector<128x32xbf16>, vector<16x32xf32> -> vector<16x32xf32>
    %cst_273 = arith.constant -0.0238095224 : f32
    %599 = vector.broadcast %cst_273 : f32 to vector<16x32xf32>
    %600 = arith.mulf %598, %599 : vector<16x32xf32>
    %601 = arith.addf %577, %600 : vector<16x32xf32>
    %602 = vector.broadcast %591 : vector<1x32xf32> to vector<16x32xf32>
    %603 = arith.addf %601, %602 : vector<16x32xf32>
    %604 = arith.truncf %603 : vector<16x32xf32> to vector<16x32xbf16>
    %cst_274 = arith.constant dense<0.000000e+00> : vector<16x128xf32>
    %605 = tpu.matmul %604, %586, %cst_274 {dimension_numbers = #tpu.dot_dimension_numbers<[1], [0], [0], [1], [0, 0, 1, 1], [], []>} : vector<16x32xbf16>, vector<32x128xbf16>, vector<16x128xf32> -> vector<16x128xf32>
    %606 = vector.broadcast %588 : vector<1x128xf32> to vector<16x128xf32>
    %607 = arith.addf %605, %606 : vector<16x128xf32>
    %608 = math.tanh %607 : vector<16x128xf32>
    %609 = arith.truncf %608 : vector<16x128xf32> to vector<16x128xbf16>
    %cst_275 = arith.constant dense<0.000000e+00> : vector<16x32xf32>
    %610 = tpu.matmul %609, %587, %cst_275 {dimension_numbers = #tpu.dot_dimension_numbers<[1], [0], [0], [1], [0, 0, 1, 1], [], []>} : vector<16x128xbf16>, vector<128x32xbf16>, vector<16x32xf32> -> vector<16x32xf32>
    %cst_276 = arith.constant -0.0238095224 : f32
    %611 = vector.broadcast %cst_276 : f32 to vector<16x32xf32>
    %612 = arith.mulf %610, %611 : vector<16x32xf32>
    %613 = arith.addf %603, %612 : vector<16x32xf32>
    %614 = vector.broadcast %591 : vector<1x32xf32> to vector<16x32xf32>
    %615 = arith.addf %613, %614 : vector<16x32xf32>
    %616 = arith.truncf %615 : vector<16x32xf32> to vector<16x32xbf16>
    %cst_277 = arith.constant dense<0.000000e+00> : vector<16x128xf32>
    %617 = tpu.matmul %616, %586, %cst_277 {dimension_numbers = #tpu.dot_dimension_numbers<[1], [0], [0], [1], [0, 0, 1, 1], [], []>} : vector<16x32xbf16>, vector<32x128xbf16>, vector<16x128xf32> -> vector<16x128xf32>
    %618 = vector.broadcast %588 : vector<1x128xf32> to vector<16x128xf32>
    %619 = arith.addf %617, %618 : vector<16x128xf32>
    %620 = math.tanh %619 : vector<16x128xf32>
    %621 = arith.truncf %620 : vector<16x128xf32> to vector<16x128xbf16>
    %cst_278 = arith.constant dense<0.000000e+00> : vector<16x32xf32>
    %622 = tpu.matmul %621, %587, %cst_278 {dimension_numbers = #tpu.dot_dimension_numbers<[1], [0], [0], [1], [0, 0, 1, 1], [], []>} : vector<16x128xbf16>, vector<128x32xbf16>, vector<16x32xf32> -> vector<16x32xf32>
    %cst_279 = arith.constant -0.0238095224 : f32
    %623 = vector.broadcast %cst_279 : f32 to vector<16x32xf32>
    %624 = arith.mulf %622, %623 : vector<16x32xf32>
    %625 = arith.addf %615, %624 : vector<16x32xf32>
    %626 = vector.broadcast %591 : vector<1x32xf32> to vector<16x32xf32>
    %627 = arith.addf %625, %626 : vector<16x32xf32>
    %628 = arith.truncf %627 : vector<16x32xf32> to vector<16x32xbf16>
    %cst_280 = arith.constant dense<0.000000e+00> : vector<16x128xf32>
    %629 = tpu.matmul %628, %586, %cst_280 {dimension_numbers = #tpu.dot_dimension_numbers<[1], [0], [0], [1], [0, 0, 1, 1], [], []>} : vector<16x32xbf16>, vector<32x128xbf16>, vector<16x128xf32> -> vector<16x128xf32>
    %630 = vector.broadcast %588 : vector<1x128xf32> to vector<16x128xf32>
    %631 = arith.addf %629, %630 : vector<16x128xf32>
    %632 = math.tanh %631 : vector<16x128xf32>
    %633 = arith.truncf %632 : vector<16x128xf32> to vector<16x128xbf16>
    %cst_281 = arith.constant dense<0.000000e+00> : vector<16x32xf32>
    %634 = tpu.matmul %633, %587, %cst_281 {dimension_numbers = #tpu.dot_dimension_numbers<[1], [0], [0], [1], [0, 0, 1, 1], [], []>} : vector<16x128xbf16>, vector<128x32xbf16>, vector<16x32xf32> -> vector<16x32xf32>
    %cst_282 = arith.constant -0.0238095224 : f32
    %635 = vector.broadcast %cst_282 : f32 to vector<16x32xf32>
    %636 = arith.mulf %634, %635 : vector<16x32xf32>
    %637 = arith.addf %627, %636 : vector<16x32xf32>
    %638 = vector.broadcast %591 : vector<1x32xf32> to vector<16x32xf32>
    %639 = arith.addf %637, %638 : vector<16x32xf32>
    %640 = arith.truncf %639 : vector<16x32xf32> to vector<16x32xbf16>
    %cst_283 = arith.constant dense<0.000000e+00> : vector<16x128xf32>
    %641 = tpu.matmul %640, %586, %cst_283 {dimension_numbers = #tpu.dot_dimension_numbers<[1], [0], [0], [1], [0, 0, 1, 1], [], []>} : vector<16x32xbf16>, vector<32x128xbf16>, vector<16x128xf32> -> vector<16x128xf32>
    %642 = vector.broadcast %588 : vector<1x128xf32> to vector<16x128xf32>
    %643 = arith.addf %641, %642 : vector<16x128xf32>
    %644 = math.tanh %643 : vector<16x128xf32>
    %645 = arith.truncf %644 : vector<16x128xf32> to vector<16x128xbf16>
    %cst_284 = arith.constant dense<0.000000e+00> : vector<16x32xf32>
    %646 = tpu.matmul %645, %587, %cst_284 {dimension_numbers = #tpu.dot_dimension_numbers<[1], [0], [0], [1], [0, 0, 1, 1], [], []>} : vector<16x128xbf16>, vector<128x32xbf16>, vector<16x32xf32> -> vector<16x32xf32>
    %cst_285 = arith.constant -0.0238095224 : f32
    %647 = vector.broadcast %cst_285 : f32 to vector<16x32xf32>
    %648 = arith.mulf %646, %647 : vector<16x32xf32>
    %649 = arith.addf %639, %648 : vector<16x32xf32>
    %650 = vector.broadcast %591 : vector<1x32xf32> to vector<16x32xf32>
    %651 = arith.addf %649, %650 : vector<16x32xf32>
    %652 = arith.truncf %651 : vector<16x32xf32> to vector<16x32xbf16>
    %cst_286 = arith.constant dense<0.000000e+00> : vector<16x128xf32>
    %653 = tpu.matmul %652, %586, %cst_286 {dimension_numbers = #tpu.dot_dimension_numbers<[1], [0], [0], [1], [0, 0, 1, 1], [], []>} : vector<16x32xbf16>, vector<32x128xbf16>, vector<16x128xf32> -> vector<16x128xf32>
    %654 = vector.broadcast %588 : vector<1x128xf32> to vector<16x128xf32>
    %655 = arith.addf %653, %654 : vector<16x128xf32>
    %656 = math.tanh %655 : vector<16x128xf32>
    %657 = arith.truncf %656 : vector<16x128xf32> to vector<16x128xbf16>
    %cst_287 = arith.constant dense<0.000000e+00> : vector<16x32xf32>
    %658 = tpu.matmul %657, %587, %cst_287 {dimension_numbers = #tpu.dot_dimension_numbers<[1], [0], [0], [1], [0, 0, 1, 1], [], []>} : vector<16x128xbf16>, vector<128x32xbf16>, vector<16x32xf32> -> vector<16x32xf32>
    %cst_288 = arith.constant -0.0238095224 : f32
    %659 = vector.broadcast %cst_288 : f32 to vector<16x32xf32>
    %660 = arith.mulf %658, %659 : vector<16x32xf32>
    %661 = arith.addf %651, %660 : vector<16x32xf32>
    %662 = vector.broadcast %591 : vector<1x32xf32> to vector<16x32xf32>
    %663 = arith.addf %661, %662 : vector<16x32xf32>
    %c4 = arith.constant 4 : index
    %c0_289 = arith.constant 0 : index
    %c0_290 = arith.constant 0 : index
    %664 = vector.load %arg1[%c4, %c0_289, %c0_290] : memref<8x16x16xf32, #tpu.memory_space<vmem>>, vector<1x16x16xf32>
    %665 = vector.shape_cast %664 : vector<1x16x16xf32> to vector<16x16xf32>
    %c4_291 = arith.constant 4 : index
    %c0_292 = arith.constant 0 : index
    %c0_293 = arith.constant 0 : index
    %666 = vector.load %arg2[%c4_291, %c0_292, %c0_293] : memref<8x16x1xf32, #tpu.memory_space<vmem>>, vector<1x16x1xf32>
    %667 = vector.shape_cast %666 : vector<1x16x1xf32> to vector<16x1xf32>
    %c0_294 = arith.constant 0 : index
    %c0_295 = arith.constant 0 : index
    %668 = vector.load %arg3[%c0_294, %c0_295] : memref<32x256xbf16, #tpu.memory_space<vmem>>, vector<32x256xbf16>
    %669 = arith.truncf %663 : vector<16x32xf32> to vector<16x32xbf16>
    %cst_296 = arith.constant dense<0.000000e+00> : vector<16x256xf32>
    %670 = tpu.matmul %669, %668, %cst_296 {dimension_numbers = #tpu.dot_dimension_numbers<[1], [0], [0], [1], [0, 0, 1, 1], [], []>} : vector<16x32xbf16>, vector<32x256xbf16>, vector<16x256xf32> -> vector<16x256xf32>
    %c0_297 = arith.constant 0 : index
    %c0_298 = arith.constant 0 : index
    %671 = vector.load %arg4[%c0_297, %c0_298] : memref<32x256xbf16, #tpu.memory_space<vmem>>, vector<32x256xbf16>
    %672 = arith.truncf %585 : vector<16x32xf32> to vector<16x32xbf16>
    %cst_299 = arith.constant dense<0.000000e+00> : vector<16x256xf32>
    %673 = tpu.matmul %672, %671, %cst_299 {dimension_numbers = #tpu.dot_dimension_numbers<[1], [0], [0], [1], [0, 0, 1, 1], [], []>} : vector<16x32xbf16>, vector<32x256xbf16>, vector<16x256xf32> -> vector<16x256xf32>
    %674 = arith.addf %670, %673 : vector<16x256xf32>
    %c0_300 = arith.constant 0 : index
    %c0_301 = arith.constant 0 : index
    %675 = vector.load %arg5[%c0_300, %c0_301] : memref<16x256xbf16, #tpu.memory_space<vmem>>, vector<16x256xbf16>
    %676 = arith.truncf %665 : vector<16x16xf32> to vector<16x16xbf16>
    %cst_302 = arith.constant dense<0.000000e+00> : vector<16x256xf32>
    %677 = tpu.matmul %676, %675, %cst_302 {dimension_numbers = #tpu.dot_dimension_numbers<[1], [0], [0], [1], [0, 0, 1, 1], [], []>} : vector<16x16xbf16>, vector<16x256xbf16>, vector<16x256xf32> -> vector<16x256xf32>
    %678 = arith.addf %674, %677 : vector<16x256xf32>
    %c0_303 = arith.constant 0 : index
    %c0_304 = arith.constant 0 : index
    %679 = vector.load %arg6[%c0_303, %c0_304] : memref<1x256xf32, #tpu.memory_space<vmem>>, vector<1x256xf32>
    %680 = vector.broadcast %679 : vector<1x256xf32> to vector<16x256xf32>
    %681 = arith.addf %678, %680 : vector<16x256xf32>
    %682 = math.tanh %681 : vector<16x256xf32>
    %c0_305 = arith.constant 0 : index
    %c0_306 = arith.constant 0 : index
    %683 = vector.load %arg7[%c0_305, %c0_306] : memref<256x64xbf16, #tpu.memory_space<vmem>>, vector<256x64xbf16>
    %684 = arith.truncf %682 : vector<16x256xf32> to vector<16x256xbf16>
    %cst_307 = arith.constant dense<0.000000e+00> : vector<16x64xf32>
    %685 = tpu.matmul %684, %683, %cst_307 {dimension_numbers = #tpu.dot_dimension_numbers<[1], [0], [0], [1], [0, 0, 1, 1], [], []>} : vector<16x256xbf16>, vector<256x64xbf16>, vector<16x64xf32> -> vector<16x64xf32>
    %c0_308 = arith.constant 0 : index
    %c0_309 = arith.constant 0 : index
    %686 = vector.load %arg8[%c0_308, %c0_309] : memref<1x64xf32, #tpu.memory_space<vmem>>, vector<1x64xf32>
    %687 = vector.broadcast %686 : vector<1x64xf32> to vector<16x64xf32>
    %688 = arith.addf %685, %687 : vector<16x64xf32>
    %689 = arith.negf %688 : vector<16x64xf32>
    %690 = math.exp %689 : vector<16x64xf32>
    %cst_310 = arith.constant 1.000000e+00 : f32
    %691 = vector.broadcast %cst_310 : f32 to vector<16x64xf32>
    %692 = arith.addf %691, %690 : vector<16x64xf32>
    %693 = arith.divf %691, %692 : vector<16x64xf32>
    %694 = vector.extract_strided_slice %693 {offsets = [0, 0], sizes = [16, 32], strides = [1, 1]} : vector<16x64xf32> to vector<16x32xf32>
    %695 = vector.extract_strided_slice %693 {offsets = [0, 32], sizes = [16, 32], strides = [1, 1]} : vector<16x64xf32> to vector<16x32xf32>
    %696 = arith.mulf %663, %695 : vector<16x32xf32>
    %c0_311 = arith.constant 0 : index
    %c0_312 = arith.constant 0 : index
    %697 = vector.load %arg9[%c0_311, %c0_312] : memref<32x128xbf16, #tpu.memory_space<vmem>>, vector<32x128xbf16>
    %698 = arith.truncf %696 : vector<16x32xf32> to vector<16x32xbf16>
    %cst_313 = arith.constant dense<0.000000e+00> : vector<16x128xf32>
    %699 = tpu.matmul %698, %697, %cst_313 {dimension_numbers = #tpu.dot_dimension_numbers<[1], [0], [0], [1], [0, 0, 1, 1], [], []>} : vector<16x32xbf16>, vector<32x128xbf16>, vector<16x128xf32> -> vector<16x128xf32>
    %700 = arith.mulf %585, %695 : vector<16x32xf32>
    %c0_314 = arith.constant 0 : index
    %c0_315 = arith.constant 0 : index
    %701 = vector.load %arg10[%c0_314, %c0_315] : memref<32x128xbf16, #tpu.memory_space<vmem>>, vector<32x128xbf16>
    %702 = arith.truncf %700 : vector<16x32xf32> to vector<16x32xbf16>
    %cst_316 = arith.constant dense<0.000000e+00> : vector<16x128xf32>
    %703 = tpu.matmul %702, %701, %cst_316 {dimension_numbers = #tpu.dot_dimension_numbers<[1], [0], [0], [1], [0, 0, 1, 1], [], []>} : vector<16x32xbf16>, vector<32x128xbf16>, vector<16x128xf32> -> vector<16x128xf32>
    %704 = arith.addf %699, %703 : vector<16x128xf32>
    %c0_317 = arith.constant 0 : index
    %c0_318 = arith.constant 0 : index
    %705 = vector.load %arg11[%c0_317, %c0_318] : memref<16x128xbf16, #tpu.memory_space<vmem>>, vector<16x128xbf16>
    %706 = arith.truncf %665 : vector<16x16xf32> to vector<16x16xbf16>
    %cst_319 = arith.constant dense<0.000000e+00> : vector<16x128xf32>
    %707 = tpu.matmul %706, %705, %cst_319 {dimension_numbers = #tpu.dot_dimension_numbers<[1], [0], [0], [1], [0, 0, 1, 1], [], []>} : vector<16x16xbf16>, vector<16x128xbf16>, vector<16x128xf32> -> vector<16x128xf32>
    %708 = arith.addf %704, %707 : vector<16x128xf32>
    %c0_320 = arith.constant 0 : index
    %c0_321 = arith.constant 0 : index
    %709 = vector.load %arg12[%c0_320, %c0_321] : memref<1x128xf32, #tpu.memory_space<vmem>>, vector<1x128xf32>
    %710 = vector.broadcast %709 : vector<1x128xf32> to vector<16x128xf32>
    %711 = arith.addf %708, %710 : vector<16x128xf32>
    %712 = math.tanh %711 : vector<16x128xf32>
    %c0_322 = arith.constant 0 : index
    %c0_323 = arith.constant 0 : index
    %713 = vector.load %arg13[%c0_322, %c0_323] : memref<128x64xbf16, #tpu.memory_space<vmem>>, vector<128x64xbf16>
    %714 = arith.truncf %712 : vector<16x128xf32> to vector<16x128xbf16>
    %cst_324 = arith.constant dense<0.000000e+00> : vector<16x64xf32>
    %715 = tpu.matmul %714, %713, %cst_324 {dimension_numbers = #tpu.dot_dimension_numbers<[1], [0], [0], [1], [0, 0, 1, 1], [], []>} : vector<16x128xbf16>, vector<128x64xbf16>, vector<16x64xf32> -> vector<16x64xf32>
    %c0_325 = arith.constant 0 : index
    %c0_326 = arith.constant 0 : index
    %716 = vector.load %arg14[%c0_325, %c0_326] : memref<1x64xf32, #tpu.memory_space<vmem>>, vector<1x64xf32>
    %717 = vector.broadcast %716 : vector<1x64xf32> to vector<16x64xf32>
    %718 = arith.addf %715, %717 : vector<16x64xf32>
    %719 = vector.extract_strided_slice %718 {offsets = [0, 0], sizes = [16, 32], strides = [1, 1]} : vector<16x64xf32> to vector<16x32xf32>
    %720 = vector.extract_strided_slice %718 {offsets = [0, 32], sizes = [16, 32], strides = [1, 1]} : vector<16x64xf32> to vector<16x32xf32>
    %721 = math.absf %720 : vector<16x32xf32>
    %cst_327 = arith.constant 1.000000e+00 : f32
    %722 = vector.broadcast %cst_327 : f32 to vector<16x32xf32>
    %723 = arith.subf %722, %694 : vector<16x32xf32>
    %724 = arith.mulf %723, %719 : vector<16x32xf32>
    %725 = arith.mulf %694, %663 : vector<16x32xf32>
    %726 = arith.addf %724, %725 : vector<16x32xf32>
    %cst_328 = arith.constant 1.000000e+00 : f32
    %727 = vector.broadcast %cst_328 : f32 to vector<16x32xf32>
    %728 = arith.subf %727, %694 : vector<16x32xf32>
    %729 = arith.mulf %728, %721 : vector<16x32xf32>
    %730 = arith.mulf %694, %585 : vector<16x32xf32>
    %731 = arith.addf %729, %730 : vector<16x32xf32>
    %732 = vector.broadcast %667 : vector<16x1xf32> to vector<16x32xf32>
    %733 = arith.mulf %732, %726 : vector<16x32xf32>
    %cst_329 = arith.constant 1.000000e+00 : f32
    %734 = vector.broadcast %cst_329 : f32 to vector<16x1xf32>
    %735 = arith.subf %734, %667 : vector<16x1xf32>
    %736 = vector.broadcast %735 : vector<16x1xf32> to vector<16x32xf32>
    %737 = arith.mulf %736, %663 : vector<16x32xf32>
    %738 = arith.addf %733, %737 : vector<16x32xf32>
    %739 = vector.broadcast %667 : vector<16x1xf32> to vector<16x32xf32>
    %740 = arith.mulf %739, %731 : vector<16x32xf32>
    %cst_330 = arith.constant 1.000000e+00 : f32
    %741 = vector.broadcast %cst_330 : f32 to vector<16x1xf32>
    %742 = arith.subf %741, %667 : vector<16x1xf32>
    %743 = vector.broadcast %742 : vector<16x1xf32> to vector<16x32xf32>
    %744 = arith.mulf %743, %585 : vector<16x32xf32>
    %745 = arith.addf %740, %744 : vector<16x32xf32>
    %746 = math.absf %745 : vector<16x32xf32>
    %c0_331 = arith.constant 0 : index
    %c0_332 = arith.constant 0 : index
    %747 = vector.load %arg20[%c0_331, %c0_332] : memref<32x128xbf16, #tpu.memory_space<vmem>>, vector<32x128xbf16>
    %c0_333 = arith.constant 0 : index
    %c0_334 = arith.constant 0 : index
    %748 = vector.load %arg22[%c0_333, %c0_334] : memref<128x32xbf16, #tpu.memory_space<vmem>>, vector<128x32xbf16>
    %c0_335 = arith.constant 0 : index
    %c0_336 = arith.constant 0 : index
    %749 = vector.load %arg21[%c0_335, %c0_336] : memref<1x128xf32, #tpu.memory_space<vmem>>, vector<1x128xf32>
    %c0_337 = arith.constant 0 : index
    %c0_338 = arith.constant 0 : index
    %750 = vector.load %arg23[%c0_337, %c0_338] : memref<1x32xf32, #tpu.memory_space<vmem>>, vector<1x32xf32>
    %cst_339 = arith.constant -0.023809528 : f32
    %751 = vector.broadcast %cst_339 : f32 to vector<1x32xf32>
    %752 = arith.mulf %750, %751 : vector<1x32xf32>
    %753 = arith.truncf %738 : vector<16x32xf32> to vector<16x32xbf16>
    %cst_340 = arith.constant dense<0.000000e+00> : vector<16x128xf32>
    %754 = tpu.matmul %753, %747, %cst_340 {dimension_numbers = #tpu.dot_dimension_numbers<[1], [0], [0], [1], [0, 0, 1, 1], [], []>} : vector<16x32xbf16>, vector<32x128xbf16>, vector<16x128xf32> -> vector<16x128xf32>
    %755 = vector.broadcast %749 : vector<1x128xf32> to vector<16x128xf32>
    %756 = arith.addf %754, %755 : vector<16x128xf32>
    %757 = math.tanh %756 : vector<16x128xf32>
    %758 = arith.truncf %757 : vector<16x128xf32> to vector<16x128xbf16>
    %cst_341 = arith.constant dense<0.000000e+00> : vector<16x32xf32>
    %759 = tpu.matmul %758, %748, %cst_341 {dimension_numbers = #tpu.dot_dimension_numbers<[1], [0], [0], [1], [0, 0, 1, 1], [], []>} : vector<16x128xbf16>, vector<128x32xbf16>, vector<16x32xf32> -> vector<16x32xf32>
    %cst_342 = arith.constant -0.023809528 : f32
    %760 = vector.broadcast %cst_342 : f32 to vector<16x32xf32>
    %761 = arith.mulf %759, %760 : vector<16x32xf32>
    %762 = arith.addf %738, %761 : vector<16x32xf32>
    %763 = vector.broadcast %752 : vector<1x32xf32> to vector<16x32xf32>
    %764 = arith.addf %762, %763 : vector<16x32xf32>
    %765 = arith.truncf %764 : vector<16x32xf32> to vector<16x32xbf16>
    %cst_343 = arith.constant dense<0.000000e+00> : vector<16x128xf32>
    %766 = tpu.matmul %765, %747, %cst_343 {dimension_numbers = #tpu.dot_dimension_numbers<[1], [0], [0], [1], [0, 0, 1, 1], [], []>} : vector<16x32xbf16>, vector<32x128xbf16>, vector<16x128xf32> -> vector<16x128xf32>
    %767 = vector.broadcast %749 : vector<1x128xf32> to vector<16x128xf32>
    %768 = arith.addf %766, %767 : vector<16x128xf32>
    %769 = math.tanh %768 : vector<16x128xf32>
    %770 = arith.truncf %769 : vector<16x128xf32> to vector<16x128xbf16>
    %cst_344 = arith.constant dense<0.000000e+00> : vector<16x32xf32>
    %771 = tpu.matmul %770, %748, %cst_344 {dimension_numbers = #tpu.dot_dimension_numbers<[1], [0], [0], [1], [0, 0, 1, 1], [], []>} : vector<16x128xbf16>, vector<128x32xbf16>, vector<16x32xf32> -> vector<16x32xf32>
    %cst_345 = arith.constant -0.023809528 : f32
    %772 = vector.broadcast %cst_345 : f32 to vector<16x32xf32>
    %773 = arith.mulf %771, %772 : vector<16x32xf32>
    %774 = arith.addf %764, %773 : vector<16x32xf32>
    %775 = vector.broadcast %752 : vector<1x32xf32> to vector<16x32xf32>
    %776 = arith.addf %774, %775 : vector<16x32xf32>
    %777 = arith.truncf %776 : vector<16x32xf32> to vector<16x32xbf16>
    %cst_346 = arith.constant dense<0.000000e+00> : vector<16x128xf32>
    %778 = tpu.matmul %777, %747, %cst_346 {dimension_numbers = #tpu.dot_dimension_numbers<[1], [0], [0], [1], [0, 0, 1, 1], [], []>} : vector<16x32xbf16>, vector<32x128xbf16>, vector<16x128xf32> -> vector<16x128xf32>
    %779 = vector.broadcast %749 : vector<1x128xf32> to vector<16x128xf32>
    %780 = arith.addf %778, %779 : vector<16x128xf32>
    %781 = math.tanh %780 : vector<16x128xf32>
    %782 = arith.truncf %781 : vector<16x128xf32> to vector<16x128xbf16>
    %cst_347 = arith.constant dense<0.000000e+00> : vector<16x32xf32>
    %783 = tpu.matmul %782, %748, %cst_347 {dimension_numbers = #tpu.dot_dimension_numbers<[1], [0], [0], [1], [0, 0, 1, 1], [], []>} : vector<16x128xbf16>, vector<128x32xbf16>, vector<16x32xf32> -> vector<16x32xf32>
    %cst_348 = arith.constant -0.023809528 : f32
    %784 = vector.broadcast %cst_348 : f32 to vector<16x32xf32>
    %785 = arith.mulf %783, %784 : vector<16x32xf32>
    %786 = arith.addf %776, %785 : vector<16x32xf32>
    %787 = vector.broadcast %752 : vector<1x32xf32> to vector<16x32xf32>
    %788 = arith.addf %786, %787 : vector<16x32xf32>
    %789 = arith.truncf %788 : vector<16x32xf32> to vector<16x32xbf16>
    %cst_349 = arith.constant dense<0.000000e+00> : vector<16x128xf32>
    %790 = tpu.matmul %789, %747, %cst_349 {dimension_numbers = #tpu.dot_dimension_numbers<[1], [0], [0], [1], [0, 0, 1, 1], [], []>} : vector<16x32xbf16>, vector<32x128xbf16>, vector<16x128xf32> -> vector<16x128xf32>
    %791 = vector.broadcast %749 : vector<1x128xf32> to vector<16x128xf32>
    %792 = arith.addf %790, %791 : vector<16x128xf32>
    %793 = math.tanh %792 : vector<16x128xf32>
    %794 = arith.truncf %793 : vector<16x128xf32> to vector<16x128xbf16>
    %cst_350 = arith.constant dense<0.000000e+00> : vector<16x32xf32>
    %795 = tpu.matmul %794, %748, %cst_350 {dimension_numbers = #tpu.dot_dimension_numbers<[1], [0], [0], [1], [0, 0, 1, 1], [], []>} : vector<16x128xbf16>, vector<128x32xbf16>, vector<16x32xf32> -> vector<16x32xf32>
    %cst_351 = arith.constant -0.023809528 : f32
    %796 = vector.broadcast %cst_351 : f32 to vector<16x32xf32>
    %797 = arith.mulf %795, %796 : vector<16x32xf32>
    %798 = arith.addf %788, %797 : vector<16x32xf32>
    %799 = vector.broadcast %752 : vector<1x32xf32> to vector<16x32xf32>
    %800 = arith.addf %798, %799 : vector<16x32xf32>
    %801 = arith.truncf %800 : vector<16x32xf32> to vector<16x32xbf16>
    %cst_352 = arith.constant dense<0.000000e+00> : vector<16x128xf32>
    %802 = tpu.matmul %801, %747, %cst_352 {dimension_numbers = #tpu.dot_dimension_numbers<[1], [0], [0], [1], [0, 0, 1, 1], [], []>} : vector<16x32xbf16>, vector<32x128xbf16>, vector<16x128xf32> -> vector<16x128xf32>
    %803 = vector.broadcast %749 : vector<1x128xf32> to vector<16x128xf32>
    %804 = arith.addf %802, %803 : vector<16x128xf32>
    %805 = math.tanh %804 : vector<16x128xf32>
    %806 = arith.truncf %805 : vector<16x128xf32> to vector<16x128xbf16>
    %cst_353 = arith.constant dense<0.000000e+00> : vector<16x32xf32>
    %807 = tpu.matmul %806, %748, %cst_353 {dimension_numbers = #tpu.dot_dimension_numbers<[1], [0], [0], [1], [0, 0, 1, 1], [], []>} : vector<16x128xbf16>, vector<128x32xbf16>, vector<16x32xf32> -> vector<16x32xf32>
    %cst_354 = arith.constant -0.023809528 : f32
    %808 = vector.broadcast %cst_354 : f32 to vector<16x32xf32>
    %809 = arith.mulf %807, %808 : vector<16x32xf32>
    %810 = arith.addf %800, %809 : vector<16x32xf32>
    %811 = vector.broadcast %752 : vector<1x32xf32> to vector<16x32xf32>
    %812 = arith.addf %810, %811 : vector<16x32xf32>
    %813 = arith.truncf %812 : vector<16x32xf32> to vector<16x32xbf16>
    %cst_355 = arith.constant dense<0.000000e+00> : vector<16x128xf32>
    %814 = tpu.matmul %813, %747, %cst_355 {dimension_numbers = #tpu.dot_dimension_numbers<[1], [0], [0], [1], [0, 0, 1, 1], [], []>} : vector<16x32xbf16>, vector<32x128xbf16>, vector<16x128xf32> -> vector<16x128xf32>
    %815 = vector.broadcast %749 : vector<1x128xf32> to vector<16x128xf32>
    %816 = arith.addf %814, %815 : vector<16x128xf32>
    %817 = math.tanh %816 : vector<16x128xf32>
    %818 = arith.truncf %817 : vector<16x128xf32> to vector<16x128xbf16>
    %cst_356 = arith.constant dense<0.000000e+00> : vector<16x32xf32>
    %819 = tpu.matmul %818, %748, %cst_356 {dimension_numbers = #tpu.dot_dimension_numbers<[1], [0], [0], [1], [0, 0, 1, 1], [], []>} : vector<16x128xbf16>, vector<128x32xbf16>, vector<16x32xf32> -> vector<16x32xf32>
    %cst_357 = arith.constant -0.023809528 : f32
    %820 = vector.broadcast %cst_357 : f32 to vector<16x32xf32>
    %821 = arith.mulf %819, %820 : vector<16x32xf32>
    %822 = arith.addf %812, %821 : vector<16x32xf32>
    %823 = vector.broadcast %752 : vector<1x32xf32> to vector<16x32xf32>
    %824 = arith.addf %822, %823 : vector<16x32xf32>
    %c5 = arith.constant 5 : index
    %c0_358 = arith.constant 0 : index
    %c0_359 = arith.constant 0 : index
    %825 = vector.load %arg1[%c5, %c0_358, %c0_359] : memref<8x16x16xf32, #tpu.memory_space<vmem>>, vector<1x16x16xf32>
    %826 = vector.shape_cast %825 : vector<1x16x16xf32> to vector<16x16xf32>
    %c5_360 = arith.constant 5 : index
    %c0_361 = arith.constant 0 : index
    %c0_362 = arith.constant 0 : index
    %827 = vector.load %arg2[%c5_360, %c0_361, %c0_362] : memref<8x16x1xf32, #tpu.memory_space<vmem>>, vector<1x16x1xf32>
    %828 = vector.shape_cast %827 : vector<1x16x1xf32> to vector<16x1xf32>
    %c0_363 = arith.constant 0 : index
    %c0_364 = arith.constant 0 : index
    %829 = vector.load %arg3[%c0_363, %c0_364] : memref<32x256xbf16, #tpu.memory_space<vmem>>, vector<32x256xbf16>
    %830 = arith.truncf %824 : vector<16x32xf32> to vector<16x32xbf16>
    %cst_365 = arith.constant dense<0.000000e+00> : vector<16x256xf32>
    %831 = tpu.matmul %830, %829, %cst_365 {dimension_numbers = #tpu.dot_dimension_numbers<[1], [0], [0], [1], [0, 0, 1, 1], [], []>} : vector<16x32xbf16>, vector<32x256xbf16>, vector<16x256xf32> -> vector<16x256xf32>
    %c0_366 = arith.constant 0 : index
    %c0_367 = arith.constant 0 : index
    %832 = vector.load %arg4[%c0_366, %c0_367] : memref<32x256xbf16, #tpu.memory_space<vmem>>, vector<32x256xbf16>
    %833 = arith.truncf %746 : vector<16x32xf32> to vector<16x32xbf16>
    %cst_368 = arith.constant dense<0.000000e+00> : vector<16x256xf32>
    %834 = tpu.matmul %833, %832, %cst_368 {dimension_numbers = #tpu.dot_dimension_numbers<[1], [0], [0], [1], [0, 0, 1, 1], [], []>} : vector<16x32xbf16>, vector<32x256xbf16>, vector<16x256xf32> -> vector<16x256xf32>
    %835 = arith.addf %831, %834 : vector<16x256xf32>
    %c0_369 = arith.constant 0 : index
    %c0_370 = arith.constant 0 : index
    %836 = vector.load %arg5[%c0_369, %c0_370] : memref<16x256xbf16, #tpu.memory_space<vmem>>, vector<16x256xbf16>
    %837 = arith.truncf %826 : vector<16x16xf32> to vector<16x16xbf16>
    %cst_371 = arith.constant dense<0.000000e+00> : vector<16x256xf32>
    %838 = tpu.matmul %837, %836, %cst_371 {dimension_numbers = #tpu.dot_dimension_numbers<[1], [0], [0], [1], [0, 0, 1, 1], [], []>} : vector<16x16xbf16>, vector<16x256xbf16>, vector<16x256xf32> -> vector<16x256xf32>
    %839 = arith.addf %835, %838 : vector<16x256xf32>
    %c0_372 = arith.constant 0 : index
    %c0_373 = arith.constant 0 : index
    %840 = vector.load %arg6[%c0_372, %c0_373] : memref<1x256xf32, #tpu.memory_space<vmem>>, vector<1x256xf32>
    %841 = vector.broadcast %840 : vector<1x256xf32> to vector<16x256xf32>
    %842 = arith.addf %839, %841 : vector<16x256xf32>
    %843 = math.tanh %842 : vector<16x256xf32>
    %c0_374 = arith.constant 0 : index
    %c0_375 = arith.constant 0 : index
    %844 = vector.load %arg7[%c0_374, %c0_375] : memref<256x64xbf16, #tpu.memory_space<vmem>>, vector<256x64xbf16>
    %845 = arith.truncf %843 : vector<16x256xf32> to vector<16x256xbf16>
    %cst_376 = arith.constant dense<0.000000e+00> : vector<16x64xf32>
    %846 = tpu.matmul %845, %844, %cst_376 {dimension_numbers = #tpu.dot_dimension_numbers<[1], [0], [0], [1], [0, 0, 1, 1], [], []>} : vector<16x256xbf16>, vector<256x64xbf16>, vector<16x64xf32> -> vector<16x64xf32>
    %c0_377 = arith.constant 0 : index
    %c0_378 = arith.constant 0 : index
    %847 = vector.load %arg8[%c0_377, %c0_378] : memref<1x64xf32, #tpu.memory_space<vmem>>, vector<1x64xf32>
    %848 = vector.broadcast %847 : vector<1x64xf32> to vector<16x64xf32>
    %849 = arith.addf %846, %848 : vector<16x64xf32>
    %850 = arith.negf %849 : vector<16x64xf32>
    %851 = math.exp %850 : vector<16x64xf32>
    %cst_379 = arith.constant 1.000000e+00 : f32
    %852 = vector.broadcast %cst_379 : f32 to vector<16x64xf32>
    %853 = arith.addf %852, %851 : vector<16x64xf32>
    %854 = arith.divf %852, %853 : vector<16x64xf32>
    %855 = vector.extract_strided_slice %854 {offsets = [0, 0], sizes = [16, 32], strides = [1, 1]} : vector<16x64xf32> to vector<16x32xf32>
    %856 = vector.extract_strided_slice %854 {offsets = [0, 32], sizes = [16, 32], strides = [1, 1]} : vector<16x64xf32> to vector<16x32xf32>
    %857 = arith.mulf %824, %856 : vector<16x32xf32>
    %c0_380 = arith.constant 0 : index
    %c0_381 = arith.constant 0 : index
    %858 = vector.load %arg9[%c0_380, %c0_381] : memref<32x128xbf16, #tpu.memory_space<vmem>>, vector<32x128xbf16>
    %859 = arith.truncf %857 : vector<16x32xf32> to vector<16x32xbf16>
    %cst_382 = arith.constant dense<0.000000e+00> : vector<16x128xf32>
    %860 = tpu.matmul %859, %858, %cst_382 {dimension_numbers = #tpu.dot_dimension_numbers<[1], [0], [0], [1], [0, 0, 1, 1], [], []>} : vector<16x32xbf16>, vector<32x128xbf16>, vector<16x128xf32> -> vector<16x128xf32>
    %861 = arith.mulf %746, %856 : vector<16x32xf32>
    %c0_383 = arith.constant 0 : index
    %c0_384 = arith.constant 0 : index
    %862 = vector.load %arg10[%c0_383, %c0_384] : memref<32x128xbf16, #tpu.memory_space<vmem>>, vector<32x128xbf16>
    %863 = arith.truncf %861 : vector<16x32xf32> to vector<16x32xbf16>
    %cst_385 = arith.constant dense<0.000000e+00> : vector<16x128xf32>
    %864 = tpu.matmul %863, %862, %cst_385 {dimension_numbers = #tpu.dot_dimension_numbers<[1], [0], [0], [1], [0, 0, 1, 1], [], []>} : vector<16x32xbf16>, vector<32x128xbf16>, vector<16x128xf32> -> vector<16x128xf32>
    %865 = arith.addf %860, %864 : vector<16x128xf32>
    %c0_386 = arith.constant 0 : index
    %c0_387 = arith.constant 0 : index
    %866 = vector.load %arg11[%c0_386, %c0_387] : memref<16x128xbf16, #tpu.memory_space<vmem>>, vector<16x128xbf16>
    %867 = arith.truncf %826 : vector<16x16xf32> to vector<16x16xbf16>
    %cst_388 = arith.constant dense<0.000000e+00> : vector<16x128xf32>
    %868 = tpu.matmul %867, %866, %cst_388 {dimension_numbers = #tpu.dot_dimension_numbers<[1], [0], [0], [1], [0, 0, 1, 1], [], []>} : vector<16x16xbf16>, vector<16x128xbf16>, vector<16x128xf32> -> vector<16x128xf32>
    %869 = arith.addf %865, %868 : vector<16x128xf32>
    %c0_389 = arith.constant 0 : index
    %c0_390 = arith.constant 0 : index
    %870 = vector.load %arg12[%c0_389, %c0_390] : memref<1x128xf32, #tpu.memory_space<vmem>>, vector<1x128xf32>
    %871 = vector.broadcast %870 : vector<1x128xf32> to vector<16x128xf32>
    %872 = arith.addf %869, %871 : vector<16x128xf32>
    %873 = math.tanh %872 : vector<16x128xf32>
    %c0_391 = arith.constant 0 : index
    %c0_392 = arith.constant 0 : index
    %874 = vector.load %arg13[%c0_391, %c0_392] : memref<128x64xbf16, #tpu.memory_space<vmem>>, vector<128x64xbf16>
    %875 = arith.truncf %873 : vector<16x128xf32> to vector<16x128xbf16>
    %cst_393 = arith.constant dense<0.000000e+00> : vector<16x64xf32>
    %876 = tpu.matmul %875, %874, %cst_393 {dimension_numbers = #tpu.dot_dimension_numbers<[1], [0], [0], [1], [0, 0, 1, 1], [], []>} : vector<16x128xbf16>, vector<128x64xbf16>, vector<16x64xf32> -> vector<16x64xf32>
    %c0_394 = arith.constant 0 : index
    %c0_395 = arith.constant 0 : index
    %877 = vector.load %arg14[%c0_394, %c0_395] : memref<1x64xf32, #tpu.memory_space<vmem>>, vector<1x64xf32>
    %878 = vector.broadcast %877 : vector<1x64xf32> to vector<16x64xf32>
    %879 = arith.addf %876, %878 : vector<16x64xf32>
    %880 = vector.extract_strided_slice %879 {offsets = [0, 0], sizes = [16, 32], strides = [1, 1]} : vector<16x64xf32> to vector<16x32xf32>
    %881 = vector.extract_strided_slice %879 {offsets = [0, 32], sizes = [16, 32], strides = [1, 1]} : vector<16x64xf32> to vector<16x32xf32>
    %882 = math.absf %881 : vector<16x32xf32>
    %cst_396 = arith.constant 1.000000e+00 : f32
    %883 = vector.broadcast %cst_396 : f32 to vector<16x32xf32>
    %884 = arith.subf %883, %855 : vector<16x32xf32>
    %885 = arith.mulf %884, %880 : vector<16x32xf32>
    %886 = arith.mulf %855, %824 : vector<16x32xf32>
    %887 = arith.addf %885, %886 : vector<16x32xf32>
    %cst_397 = arith.constant 1.000000e+00 : f32
    %888 = vector.broadcast %cst_397 : f32 to vector<16x32xf32>
    %889 = arith.subf %888, %855 : vector<16x32xf32>
    %890 = arith.mulf %889, %882 : vector<16x32xf32>
    %891 = arith.mulf %855, %746 : vector<16x32xf32>
    %892 = arith.addf %890, %891 : vector<16x32xf32>
    %893 = vector.broadcast %828 : vector<16x1xf32> to vector<16x32xf32>
    %894 = arith.mulf %893, %887 : vector<16x32xf32>
    %cst_398 = arith.constant 1.000000e+00 : f32
    %895 = vector.broadcast %cst_398 : f32 to vector<16x1xf32>
    %896 = arith.subf %895, %828 : vector<16x1xf32>
    %897 = vector.broadcast %896 : vector<16x1xf32> to vector<16x32xf32>
    %898 = arith.mulf %897, %824 : vector<16x32xf32>
    %899 = arith.addf %894, %898 : vector<16x32xf32>
    %900 = vector.broadcast %828 : vector<16x1xf32> to vector<16x32xf32>
    %901 = arith.mulf %900, %892 : vector<16x32xf32>
    %cst_399 = arith.constant 1.000000e+00 : f32
    %902 = vector.broadcast %cst_399 : f32 to vector<16x1xf32>
    %903 = arith.subf %902, %828 : vector<16x1xf32>
    %904 = vector.broadcast %903 : vector<16x1xf32> to vector<16x32xf32>
    %905 = arith.mulf %904, %746 : vector<16x32xf32>
    %906 = arith.addf %901, %905 : vector<16x32xf32>
    %907 = math.absf %906 : vector<16x32xf32>
    %c0_400 = arith.constant 0 : index
    %c0_401 = arith.constant 0 : index
    %908 = vector.load %arg20[%c0_400, %c0_401] : memref<32x128xbf16, #tpu.memory_space<vmem>>, vector<32x128xbf16>
    %c0_402 = arith.constant 0 : index
    %c0_403 = arith.constant 0 : index
    %909 = vector.load %arg22[%c0_402, %c0_403] : memref<128x32xbf16, #tpu.memory_space<vmem>>, vector<128x32xbf16>
    %c0_404 = arith.constant 0 : index
    %c0_405 = arith.constant 0 : index
    %910 = vector.load %arg21[%c0_404, %c0_405] : memref<1x128xf32, #tpu.memory_space<vmem>>, vector<1x128xf32>
    %c0_406 = arith.constant 0 : index
    %c0_407 = arith.constant 0 : index
    %911 = vector.load %arg23[%c0_406, %c0_407] : memref<1x32xf32, #tpu.memory_space<vmem>>, vector<1x32xf32>
    %cst_408 = arith.constant -0.0238095243 : f32
    %912 = vector.broadcast %cst_408 : f32 to vector<1x32xf32>
    %913 = arith.mulf %911, %912 : vector<1x32xf32>
    %914 = arith.truncf %899 : vector<16x32xf32> to vector<16x32xbf16>
    %cst_409 = arith.constant dense<0.000000e+00> : vector<16x128xf32>
    %915 = tpu.matmul %914, %908, %cst_409 {dimension_numbers = #tpu.dot_dimension_numbers<[1], [0], [0], [1], [0, 0, 1, 1], [], []>} : vector<16x32xbf16>, vector<32x128xbf16>, vector<16x128xf32> -> vector<16x128xf32>
    %916 = vector.broadcast %910 : vector<1x128xf32> to vector<16x128xf32>
    %917 = arith.addf %915, %916 : vector<16x128xf32>
    %918 = math.tanh %917 : vector<16x128xf32>
    %919 = arith.truncf %918 : vector<16x128xf32> to vector<16x128xbf16>
    %cst_410 = arith.constant dense<0.000000e+00> : vector<16x32xf32>
    %920 = tpu.matmul %919, %909, %cst_410 {dimension_numbers = #tpu.dot_dimension_numbers<[1], [0], [0], [1], [0, 0, 1, 1], [], []>} : vector<16x128xbf16>, vector<128x32xbf16>, vector<16x32xf32> -> vector<16x32xf32>
    %cst_411 = arith.constant -0.0238095243 : f32
    %921 = vector.broadcast %cst_411 : f32 to vector<16x32xf32>
    %922 = arith.mulf %920, %921 : vector<16x32xf32>
    %923 = arith.addf %899, %922 : vector<16x32xf32>
    %924 = vector.broadcast %913 : vector<1x32xf32> to vector<16x32xf32>
    %925 = arith.addf %923, %924 : vector<16x32xf32>
    %926 = arith.truncf %925 : vector<16x32xf32> to vector<16x32xbf16>
    %cst_412 = arith.constant dense<0.000000e+00> : vector<16x128xf32>
    %927 = tpu.matmul %926, %908, %cst_412 {dimension_numbers = #tpu.dot_dimension_numbers<[1], [0], [0], [1], [0, 0, 1, 1], [], []>} : vector<16x32xbf16>, vector<32x128xbf16>, vector<16x128xf32> -> vector<16x128xf32>
    %928 = vector.broadcast %910 : vector<1x128xf32> to vector<16x128xf32>
    %929 = arith.addf %927, %928 : vector<16x128xf32>
    %930 = math.tanh %929 : vector<16x128xf32>
    %931 = arith.truncf %930 : vector<16x128xf32> to vector<16x128xbf16>
    %cst_413 = arith.constant dense<0.000000e+00> : vector<16x32xf32>
    %932 = tpu.matmul %931, %909, %cst_413 {dimension_numbers = #tpu.dot_dimension_numbers<[1], [0], [0], [1], [0, 0, 1, 1], [], []>} : vector<16x128xbf16>, vector<128x32xbf16>, vector<16x32xf32> -> vector<16x32xf32>
    %cst_414 = arith.constant -0.0238095243 : f32
    %933 = vector.broadcast %cst_414 : f32 to vector<16x32xf32>
    %934 = arith.mulf %932, %933 : vector<16x32xf32>
    %935 = arith.addf %925, %934 : vector<16x32xf32>
    %936 = vector.broadcast %913 : vector<1x32xf32> to vector<16x32xf32>
    %937 = arith.addf %935, %936 : vector<16x32xf32>
    %938 = arith.truncf %937 : vector<16x32xf32> to vector<16x32xbf16>
    %cst_415 = arith.constant dense<0.000000e+00> : vector<16x128xf32>
    %939 = tpu.matmul %938, %908, %cst_415 {dimension_numbers = #tpu.dot_dimension_numbers<[1], [0], [0], [1], [0, 0, 1, 1], [], []>} : vector<16x32xbf16>, vector<32x128xbf16>, vector<16x128xf32> -> vector<16x128xf32>
    %940 = vector.broadcast %910 : vector<1x128xf32> to vector<16x128xf32>
    %941 = arith.addf %939, %940 : vector<16x128xf32>
    %942 = math.tanh %941 : vector<16x128xf32>
    %943 = arith.truncf %942 : vector<16x128xf32> to vector<16x128xbf16>
    %cst_416 = arith.constant dense<0.000000e+00> : vector<16x32xf32>
    %944 = tpu.matmul %943, %909, %cst_416 {dimension_numbers = #tpu.dot_dimension_numbers<[1], [0], [0], [1], [0, 0, 1, 1], [], []>} : vector<16x128xbf16>, vector<128x32xbf16>, vector<16x32xf32> -> vector<16x32xf32>
    %cst_417 = arith.constant -0.0238095243 : f32
    %945 = vector.broadcast %cst_417 : f32 to vector<16x32xf32>
    %946 = arith.mulf %944, %945 : vector<16x32xf32>
    %947 = arith.addf %937, %946 : vector<16x32xf32>
    %948 = vector.broadcast %913 : vector<1x32xf32> to vector<16x32xf32>
    %949 = arith.addf %947, %948 : vector<16x32xf32>
    %950 = arith.truncf %949 : vector<16x32xf32> to vector<16x32xbf16>
    %cst_418 = arith.constant dense<0.000000e+00> : vector<16x128xf32>
    %951 = tpu.matmul %950, %908, %cst_418 {dimension_numbers = #tpu.dot_dimension_numbers<[1], [0], [0], [1], [0, 0, 1, 1], [], []>} : vector<16x32xbf16>, vector<32x128xbf16>, vector<16x128xf32> -> vector<16x128xf32>
    %952 = vector.broadcast %910 : vector<1x128xf32> to vector<16x128xf32>
    %953 = arith.addf %951, %952 : vector<16x128xf32>
    %954 = math.tanh %953 : vector<16x128xf32>
    %955 = arith.truncf %954 : vector<16x128xf32> to vector<16x128xbf16>
    %cst_419 = arith.constant dense<0.000000e+00> : vector<16x32xf32>
    %956 = tpu.matmul %955, %909, %cst_419 {dimension_numbers = #tpu.dot_dimension_numbers<[1], [0], [0], [1], [0, 0, 1, 1], [], []>} : vector<16x128xbf16>, vector<128x32xbf16>, vector<16x32xf32> -> vector<16x32xf32>
    %cst_420 = arith.constant -0.0238095243 : f32
    %957 = vector.broadcast %cst_420 : f32 to vector<16x32xf32>
    %958 = arith.mulf %956, %957 : vector<16x32xf32>
    %959 = arith.addf %949, %958 : vector<16x32xf32>
    %960 = vector.broadcast %913 : vector<1x32xf32> to vector<16x32xf32>
    %961 = arith.addf %959, %960 : vector<16x32xf32>
    %962 = arith.truncf %961 : vector<16x32xf32> to vector<16x32xbf16>
    %cst_421 = arith.constant dense<0.000000e+00> : vector<16x128xf32>
    %963 = tpu.matmul %962, %908, %cst_421 {dimension_numbers = #tpu.dot_dimension_numbers<[1], [0], [0], [1], [0, 0, 1, 1], [], []>} : vector<16x32xbf16>, vector<32x128xbf16>, vector<16x128xf32> -> vector<16x128xf32>
    %964 = vector.broadcast %910 : vector<1x128xf32> to vector<16x128xf32>
    %965 = arith.addf %963, %964 : vector<16x128xf32>
    %966 = math.tanh %965 : vector<16x128xf32>
    %967 = arith.truncf %966 : vector<16x128xf32> to vector<16x128xbf16>
    %cst_422 = arith.constant dense<0.000000e+00> : vector<16x32xf32>
    %968 = tpu.matmul %967, %909, %cst_422 {dimension_numbers = #tpu.dot_dimension_numbers<[1], [0], [0], [1], [0, 0, 1, 1], [], []>} : vector<16x128xbf16>, vector<128x32xbf16>, vector<16x32xf32> -> vector<16x32xf32>
    %cst_423 = arith.constant -0.0238095243 : f32
    %969 = vector.broadcast %cst_423 : f32 to vector<16x32xf32>
    %970 = arith.mulf %968, %969 : vector<16x32xf32>
    %971 = arith.addf %961, %970 : vector<16x32xf32>
    %972 = vector.broadcast %913 : vector<1x32xf32> to vector<16x32xf32>
    %973 = arith.addf %971, %972 : vector<16x32xf32>
    %974 = arith.truncf %973 : vector<16x32xf32> to vector<16x32xbf16>
    %cst_424 = arith.constant dense<0.000000e+00> : vector<16x128xf32>
    %975 = tpu.matmul %974, %908, %cst_424 {dimension_numbers = #tpu.dot_dimension_numbers<[1], [0], [0], [1], [0, 0, 1, 1], [], []>} : vector<16x32xbf16>, vector<32x128xbf16>, vector<16x128xf32> -> vector<16x128xf32>
    %976 = vector.broadcast %910 : vector<1x128xf32> to vector<16x128xf32>
    %977 = arith.addf %975, %976 : vector<16x128xf32>
    %978 = math.tanh %977 : vector<16x128xf32>
    %979 = arith.truncf %978 : vector<16x128xf32> to vector<16x128xbf16>
    %cst_425 = arith.constant dense<0.000000e+00> : vector<16x32xf32>
    %980 = tpu.matmul %979, %909, %cst_425 {dimension_numbers = #tpu.dot_dimension_numbers<[1], [0], [0], [1], [0, 0, 1, 1], [], []>} : vector<16x128xbf16>, vector<128x32xbf16>, vector<16x32xf32> -> vector<16x32xf32>
    %cst_426 = arith.constant -0.0238095243 : f32
    %981 = vector.broadcast %cst_426 : f32 to vector<16x32xf32>
    %982 = arith.mulf %980, %981 : vector<16x32xf32>
    %983 = arith.addf %973, %982 : vector<16x32xf32>
    %984 = vector.broadcast %913 : vector<1x32xf32> to vector<16x32xf32>
    %985 = arith.addf %983, %984 : vector<16x32xf32>
    %c6 = arith.constant 6 : index
    %c0_427 = arith.constant 0 : index
    %c0_428 = arith.constant 0 : index
    %986 = vector.load %arg1[%c6, %c0_427, %c0_428] : memref<8x16x16xf32, #tpu.memory_space<vmem>>, vector<1x16x16xf32>
    %987 = vector.shape_cast %986 : vector<1x16x16xf32> to vector<16x16xf32>
    %c6_429 = arith.constant 6 : index
    %c0_430 = arith.constant 0 : index
    %c0_431 = arith.constant 0 : index
    %988 = vector.load %arg2[%c6_429, %c0_430, %c0_431] : memref<8x16x1xf32, #tpu.memory_space<vmem>>, vector<1x16x1xf32>
    %989 = vector.shape_cast %988 : vector<1x16x1xf32> to vector<16x1xf32>
    %c0_432 = arith.constant 0 : index
    %c0_433 = arith.constant 0 : index
    %990 = vector.load %arg3[%c0_432, %c0_433] : memref<32x256xbf16, #tpu.memory_space<vmem>>, vector<32x256xbf16>
    %991 = arith.truncf %985 : vector<16x32xf32> to vector<16x32xbf16>
    %cst_434 = arith.constant dense<0.000000e+00> : vector<16x256xf32>
    %992 = tpu.matmul %991, %990, %cst_434 {dimension_numbers = #tpu.dot_dimension_numbers<[1], [0], [0], [1], [0, 0, 1, 1], [], []>} : vector<16x32xbf16>, vector<32x256xbf16>, vector<16x256xf32> -> vector<16x256xf32>
    %c0_435 = arith.constant 0 : index
    %c0_436 = arith.constant 0 : index
    %993 = vector.load %arg4[%c0_435, %c0_436] : memref<32x256xbf16, #tpu.memory_space<vmem>>, vector<32x256xbf16>
    %994 = arith.truncf %907 : vector<16x32xf32> to vector<16x32xbf16>
    %cst_437 = arith.constant dense<0.000000e+00> : vector<16x256xf32>
    %995 = tpu.matmul %994, %993, %cst_437 {dimension_numbers = #tpu.dot_dimension_numbers<[1], [0], [0], [1], [0, 0, 1, 1], [], []>} : vector<16x32xbf16>, vector<32x256xbf16>, vector<16x256xf32> -> vector<16x256xf32>
    %996 = arith.addf %992, %995 : vector<16x256xf32>
    %c0_438 = arith.constant 0 : index
    %c0_439 = arith.constant 0 : index
    %997 = vector.load %arg5[%c0_438, %c0_439] : memref<16x256xbf16, #tpu.memory_space<vmem>>, vector<16x256xbf16>
    %998 = arith.truncf %987 : vector<16x16xf32> to vector<16x16xbf16>
    %cst_440 = arith.constant dense<0.000000e+00> : vector<16x256xf32>
    %999 = tpu.matmul %998, %997, %cst_440 {dimension_numbers = #tpu.dot_dimension_numbers<[1], [0], [0], [1], [0, 0, 1, 1], [], []>} : vector<16x16xbf16>, vector<16x256xbf16>, vector<16x256xf32> -> vector<16x256xf32>
    %1000 = arith.addf %996, %999 : vector<16x256xf32>
    %c0_441 = arith.constant 0 : index
    %c0_442 = arith.constant 0 : index
    %1001 = vector.load %arg6[%c0_441, %c0_442] : memref<1x256xf32, #tpu.memory_space<vmem>>, vector<1x256xf32>
    %1002 = vector.broadcast %1001 : vector<1x256xf32> to vector<16x256xf32>
    %1003 = arith.addf %1000, %1002 : vector<16x256xf32>
    %1004 = math.tanh %1003 : vector<16x256xf32>
    %c0_443 = arith.constant 0 : index
    %c0_444 = arith.constant 0 : index
    %1005 = vector.load %arg7[%c0_443, %c0_444] : memref<256x64xbf16, #tpu.memory_space<vmem>>, vector<256x64xbf16>
    %1006 = arith.truncf %1004 : vector<16x256xf32> to vector<16x256xbf16>
    %cst_445 = arith.constant dense<0.000000e+00> : vector<16x64xf32>
    %1007 = tpu.matmul %1006, %1005, %cst_445 {dimension_numbers = #tpu.dot_dimension_numbers<[1], [0], [0], [1], [0, 0, 1, 1], [], []>} : vector<16x256xbf16>, vector<256x64xbf16>, vector<16x64xf32> -> vector<16x64xf32>
    %c0_446 = arith.constant 0 : index
    %c0_447 = arith.constant 0 : index
    %1008 = vector.load %arg8[%c0_446, %c0_447] : memref<1x64xf32, #tpu.memory_space<vmem>>, vector<1x64xf32>
    %1009 = vector.broadcast %1008 : vector<1x64xf32> to vector<16x64xf32>
    %1010 = arith.addf %1007, %1009 : vector<16x64xf32>
    %1011 = arith.negf %1010 : vector<16x64xf32>
    %1012 = math.exp %1011 : vector<16x64xf32>
    %cst_448 = arith.constant 1.000000e+00 : f32
    %1013 = vector.broadcast %cst_448 : f32 to vector<16x64xf32>
    %1014 = arith.addf %1013, %1012 : vector<16x64xf32>
    %1015 = arith.divf %1013, %1014 : vector<16x64xf32>
    %1016 = vector.extract_strided_slice %1015 {offsets = [0, 0], sizes = [16, 32], strides = [1, 1]} : vector<16x64xf32> to vector<16x32xf32>
    %1017 = vector.extract_strided_slice %1015 {offsets = [0, 32], sizes = [16, 32], strides = [1, 1]} : vector<16x64xf32> to vector<16x32xf32>
    %1018 = arith.mulf %985, %1017 : vector<16x32xf32>
    %c0_449 = arith.constant 0 : index
    %c0_450 = arith.constant 0 : index
    %1019 = vector.load %arg9[%c0_449, %c0_450] : memref<32x128xbf16, #tpu.memory_space<vmem>>, vector<32x128xbf16>
    %1020 = arith.truncf %1018 : vector<16x32xf32> to vector<16x32xbf16>
    %cst_451 = arith.constant dense<0.000000e+00> : vector<16x128xf32>
    %1021 = tpu.matmul %1020, %1019, %cst_451 {dimension_numbers = #tpu.dot_dimension_numbers<[1], [0], [0], [1], [0, 0, 1, 1], [], []>} : vector<16x32xbf16>, vector<32x128xbf16>, vector<16x128xf32> -> vector<16x128xf32>
    %1022 = arith.mulf %907, %1017 : vector<16x32xf32>
    %c0_452 = arith.constant 0 : index
    %c0_453 = arith.constant 0 : index
    %1023 = vector.load %arg10[%c0_452, %c0_453] : memref<32x128xbf16, #tpu.memory_space<vmem>>, vector<32x128xbf16>
    %1024 = arith.truncf %1022 : vector<16x32xf32> to vector<16x32xbf16>
    %cst_454 = arith.constant dense<0.000000e+00> : vector<16x128xf32>
    %1025 = tpu.matmul %1024, %1023, %cst_454 {dimension_numbers = #tpu.dot_dimension_numbers<[1], [0], [0], [1], [0, 0, 1, 1], [], []>} : vector<16x32xbf16>, vector<32x128xbf16>, vector<16x128xf32> -> vector<16x128xf32>
    %1026 = arith.addf %1021, %1025 : vector<16x128xf32>
    %c0_455 = arith.constant 0 : index
    %c0_456 = arith.constant 0 : index
    %1027 = vector.load %arg11[%c0_455, %c0_456] : memref<16x128xbf16, #tpu.memory_space<vmem>>, vector<16x128xbf16>
    %1028 = arith.truncf %987 : vector<16x16xf32> to vector<16x16xbf16>
    %cst_457 = arith.constant dense<0.000000e+00> : vector<16x128xf32>
    %1029 = tpu.matmul %1028, %1027, %cst_457 {dimension_numbers = #tpu.dot_dimension_numbers<[1], [0], [0], [1], [0, 0, 1, 1], [], []>} : vector<16x16xbf16>, vector<16x128xbf16>, vector<16x128xf32> -> vector<16x128xf32>
    %1030 = arith.addf %1026, %1029 : vector<16x128xf32>
    %c0_458 = arith.constant 0 : index
    %c0_459 = arith.constant 0 : index
    %1031 = vector.load %arg12[%c0_458, %c0_459] : memref<1x128xf32, #tpu.memory_space<vmem>>, vector<1x128xf32>
    %1032 = vector.broadcast %1031 : vector<1x128xf32> to vector<16x128xf32>
    %1033 = arith.addf %1030, %1032 : vector<16x128xf32>
    %1034 = math.tanh %1033 : vector<16x128xf32>
    %c0_460 = arith.constant 0 : index
    %c0_461 = arith.constant 0 : index
    %1035 = vector.load %arg13[%c0_460, %c0_461] : memref<128x64xbf16, #tpu.memory_space<vmem>>, vector<128x64xbf16>
    %1036 = arith.truncf %1034 : vector<16x128xf32> to vector<16x128xbf16>
    %cst_462 = arith.constant dense<0.000000e+00> : vector<16x64xf32>
    %1037 = tpu.matmul %1036, %1035, %cst_462 {dimension_numbers = #tpu.dot_dimension_numbers<[1], [0], [0], [1], [0, 0, 1, 1], [], []>} : vector<16x128xbf16>, vector<128x64xbf16>, vector<16x64xf32> -> vector<16x64xf32>
    %c0_463 = arith.constant 0 : index
    %c0_464 = arith.constant 0 : index
    %1038 = vector.load %arg14[%c0_463, %c0_464] : memref<1x64xf32, #tpu.memory_space<vmem>>, vector<1x64xf32>
    %1039 = vector.broadcast %1038 : vector<1x64xf32> to vector<16x64xf32>
    %1040 = arith.addf %1037, %1039 : vector<16x64xf32>
    %1041 = vector.extract_strided_slice %1040 {offsets = [0, 0], sizes = [16, 32], strides = [1, 1]} : vector<16x64xf32> to vector<16x32xf32>
    %1042 = vector.extract_strided_slice %1040 {offsets = [0, 32], sizes = [16, 32], strides = [1, 1]} : vector<16x64xf32> to vector<16x32xf32>
    %1043 = math.absf %1042 : vector<16x32xf32>
    %cst_465 = arith.constant 1.000000e+00 : f32
    %1044 = vector.broadcast %cst_465 : f32 to vector<16x32xf32>
    %1045 = arith.subf %1044, %1016 : vector<16x32xf32>
    %1046 = arith.mulf %1045, %1041 : vector<16x32xf32>
    %1047 = arith.mulf %1016, %985 : vector<16x32xf32>
    %1048 = arith.addf %1046, %1047 : vector<16x32xf32>
    %cst_466 = arith.constant 1.000000e+00 : f32
    %1049 = vector.broadcast %cst_466 : f32 to vector<16x32xf32>
    %1050 = arith.subf %1049, %1016 : vector<16x32xf32>
    %1051 = arith.mulf %1050, %1043 : vector<16x32xf32>
    %1052 = arith.mulf %1016, %907 : vector<16x32xf32>
    %1053 = arith.addf %1051, %1052 : vector<16x32xf32>
    %1054 = vector.broadcast %989 : vector<16x1xf32> to vector<16x32xf32>
    %1055 = arith.mulf %1054, %1048 : vector<16x32xf32>
    %cst_467 = arith.constant 1.000000e+00 : f32
    %1056 = vector.broadcast %cst_467 : f32 to vector<16x1xf32>
    %1057 = arith.subf %1056, %989 : vector<16x1xf32>
    %1058 = vector.broadcast %1057 : vector<16x1xf32> to vector<16x32xf32>
    %1059 = arith.mulf %1058, %985 : vector<16x32xf32>
    %1060 = arith.addf %1055, %1059 : vector<16x32xf32>
    %1061 = vector.broadcast %989 : vector<16x1xf32> to vector<16x32xf32>
    %1062 = arith.mulf %1061, %1053 : vector<16x32xf32>
    %cst_468 = arith.constant 1.000000e+00 : f32
    %1063 = vector.broadcast %cst_468 : f32 to vector<16x1xf32>
    %1064 = arith.subf %1063, %989 : vector<16x1xf32>
    %1065 = vector.broadcast %1064 : vector<16x1xf32> to vector<16x32xf32>
    %1066 = arith.mulf %1065, %907 : vector<16x32xf32>
    %1067 = arith.addf %1062, %1066 : vector<16x32xf32>
    %1068 = math.absf %1067 : vector<16x32xf32>
    %c0_469 = arith.constant 0 : index
    %c0_470 = arith.constant 0 : index
    %1069 = vector.load %arg20[%c0_469, %c0_470] : memref<32x128xbf16, #tpu.memory_space<vmem>>, vector<32x128xbf16>
    %c0_471 = arith.constant 0 : index
    %c0_472 = arith.constant 0 : index
    %1070 = vector.load %arg22[%c0_471, %c0_472] : memref<128x32xbf16, #tpu.memory_space<vmem>>, vector<128x32xbf16>
    %c0_473 = arith.constant 0 : index
    %c0_474 = arith.constant 0 : index
    %1071 = vector.load %arg21[%c0_473, %c0_474] : memref<1x128xf32, #tpu.memory_space<vmem>>, vector<1x128xf32>
    %c0_475 = arith.constant 0 : index
    %c0_476 = arith.constant 0 : index
    %1072 = vector.load %arg23[%c0_475, %c0_476] : memref<1x32xf32, #tpu.memory_space<vmem>>, vector<1x32xf32>
    %cst_477 = arith.constant -0.0238095243 : f32
    %1073 = vector.broadcast %cst_477 : f32 to vector<1x32xf32>
    %1074 = arith.mulf %1072, %1073 : vector<1x32xf32>
    %1075 = arith.truncf %1060 : vector<16x32xf32> to vector<16x32xbf16>
    %cst_478 = arith.constant dense<0.000000e+00> : vector<16x128xf32>
    %1076 = tpu.matmul %1075, %1069, %cst_478 {dimension_numbers = #tpu.dot_dimension_numbers<[1], [0], [0], [1], [0, 0, 1, 1], [], []>} : vector<16x32xbf16>, vector<32x128xbf16>, vector<16x128xf32> -> vector<16x128xf32>
    %1077 = vector.broadcast %1071 : vector<1x128xf32> to vector<16x128xf32>
    %1078 = arith.addf %1076, %1077 : vector<16x128xf32>
    %1079 = math.tanh %1078 : vector<16x128xf32>
    %1080 = arith.truncf %1079 : vector<16x128xf32> to vector<16x128xbf16>
    %cst_479 = arith.constant dense<0.000000e+00> : vector<16x32xf32>
    %1081 = tpu.matmul %1080, %1070, %cst_479 {dimension_numbers = #tpu.dot_dimension_numbers<[1], [0], [0], [1], [0, 0, 1, 1], [], []>} : vector<16x128xbf16>, vector<128x32xbf16>, vector<16x32xf32> -> vector<16x32xf32>
    %cst_480 = arith.constant -0.0238095243 : f32
    %1082 = vector.broadcast %cst_480 : f32 to vector<16x32xf32>
    %1083 = arith.mulf %1081, %1082 : vector<16x32xf32>
    %1084 = arith.addf %1060, %1083 : vector<16x32xf32>
    %1085 = vector.broadcast %1074 : vector<1x32xf32> to vector<16x32xf32>
    %1086 = arith.addf %1084, %1085 : vector<16x32xf32>
    %1087 = arith.truncf %1086 : vector<16x32xf32> to vector<16x32xbf16>
    %cst_481 = arith.constant dense<0.000000e+00> : vector<16x128xf32>
    %1088 = tpu.matmul %1087, %1069, %cst_481 {dimension_numbers = #tpu.dot_dimension_numbers<[1], [0], [0], [1], [0, 0, 1, 1], [], []>} : vector<16x32xbf16>, vector<32x128xbf16>, vector<16x128xf32> -> vector<16x128xf32>
    %1089 = vector.broadcast %1071 : vector<1x128xf32> to vector<16x128xf32>
    %1090 = arith.addf %1088, %1089 : vector<16x128xf32>
    %1091 = math.tanh %1090 : vector<16x128xf32>
    %1092 = arith.truncf %1091 : vector<16x128xf32> to vector<16x128xbf16>
    %cst_482 = arith.constant dense<0.000000e+00> : vector<16x32xf32>
    %1093 = tpu.matmul %1092, %1070, %cst_482 {dimension_numbers = #tpu.dot_dimension_numbers<[1], [0], [0], [1], [0, 0, 1, 1], [], []>} : vector<16x128xbf16>, vector<128x32xbf16>, vector<16x32xf32> -> vector<16x32xf32>
    %cst_483 = arith.constant -0.0238095243 : f32
    %1094 = vector.broadcast %cst_483 : f32 to vector<16x32xf32>
    %1095 = arith.mulf %1093, %1094 : vector<16x32xf32>
    %1096 = arith.addf %1086, %1095 : vector<16x32xf32>
    %1097 = vector.broadcast %1074 : vector<1x32xf32> to vector<16x32xf32>
    %1098 = arith.addf %1096, %1097 : vector<16x32xf32>
    %1099 = arith.truncf %1098 : vector<16x32xf32> to vector<16x32xbf16>
    %cst_484 = arith.constant dense<0.000000e+00> : vector<16x128xf32>
    %1100 = tpu.matmul %1099, %1069, %cst_484 {dimension_numbers = #tpu.dot_dimension_numbers<[1], [0], [0], [1], [0, 0, 1, 1], [], []>} : vector<16x32xbf16>, vector<32x128xbf16>, vector<16x128xf32> -> vector<16x128xf32>
    %1101 = vector.broadcast %1071 : vector<1x128xf32> to vector<16x128xf32>
    %1102 = arith.addf %1100, %1101 : vector<16x128xf32>
    %1103 = math.tanh %1102 : vector<16x128xf32>
    %1104 = arith.truncf %1103 : vector<16x128xf32> to vector<16x128xbf16>
    %cst_485 = arith.constant dense<0.000000e+00> : vector<16x32xf32>
    %1105 = tpu.matmul %1104, %1070, %cst_485 {dimension_numbers = #tpu.dot_dimension_numbers<[1], [0], [0], [1], [0, 0, 1, 1], [], []>} : vector<16x128xbf16>, vector<128x32xbf16>, vector<16x32xf32> -> vector<16x32xf32>
    %cst_486 = arith.constant -0.0238095243 : f32
    %1106 = vector.broadcast %cst_486 : f32 to vector<16x32xf32>
    %1107 = arith.mulf %1105, %1106 : vector<16x32xf32>
    %1108 = arith.addf %1098, %1107 : vector<16x32xf32>
    %1109 = vector.broadcast %1074 : vector<1x32xf32> to vector<16x32xf32>
    %1110 = arith.addf %1108, %1109 : vector<16x32xf32>
    %1111 = arith.truncf %1110 : vector<16x32xf32> to vector<16x32xbf16>
    %cst_487 = arith.constant dense<0.000000e+00> : vector<16x128xf32>
    %1112 = tpu.matmul %1111, %1069, %cst_487 {dimension_numbers = #tpu.dot_dimension_numbers<[1], [0], [0], [1], [0, 0, 1, 1], [], []>} : vector<16x32xbf16>, vector<32x128xbf16>, vector<16x128xf32> -> vector<16x128xf32>
    %1113 = vector.broadcast %1071 : vector<1x128xf32> to vector<16x128xf32>
    %1114 = arith.addf %1112, %1113 : vector<16x128xf32>
    %1115 = math.tanh %1114 : vector<16x128xf32>
    %1116 = arith.truncf %1115 : vector<16x128xf32> to vector<16x128xbf16>
    %cst_488 = arith.constant dense<0.000000e+00> : vector<16x32xf32>
    %1117 = tpu.matmul %1116, %1070, %cst_488 {dimension_numbers = #tpu.dot_dimension_numbers<[1], [0], [0], [1], [0, 0, 1, 1], [], []>} : vector<16x128xbf16>, vector<128x32xbf16>, vector<16x32xf32> -> vector<16x32xf32>
    %cst_489 = arith.constant -0.0238095243 : f32
    %1118 = vector.broadcast %cst_489 : f32 to vector<16x32xf32>
    %1119 = arith.mulf %1117, %1118 : vector<16x32xf32>
    %1120 = arith.addf %1110, %1119 : vector<16x32xf32>
    %1121 = vector.broadcast %1074 : vector<1x32xf32> to vector<16x32xf32>
    %1122 = arith.addf %1120, %1121 : vector<16x32xf32>
    %1123 = arith.truncf %1122 : vector<16x32xf32> to vector<16x32xbf16>
    %cst_490 = arith.constant dense<0.000000e+00> : vector<16x128xf32>
    %1124 = tpu.matmul %1123, %1069, %cst_490 {dimension_numbers = #tpu.dot_dimension_numbers<[1], [0], [0], [1], [0, 0, 1, 1], [], []>} : vector<16x32xbf16>, vector<32x128xbf16>, vector<16x128xf32> -> vector<16x128xf32>
    %1125 = vector.broadcast %1071 : vector<1x128xf32> to vector<16x128xf32>
    %1126 = arith.addf %1124, %1125 : vector<16x128xf32>
    %1127 = math.tanh %1126 : vector<16x128xf32>
    %1128 = arith.truncf %1127 : vector<16x128xf32> to vector<16x128xbf16>
    %cst_491 = arith.constant dense<0.000000e+00> : vector<16x32xf32>
    %1129 = tpu.matmul %1128, %1070, %cst_491 {dimension_numbers = #tpu.dot_dimension_numbers<[1], [0], [0], [1], [0, 0, 1, 1], [], []>} : vector<16x128xbf16>, vector<128x32xbf16>, vector<16x32xf32> -> vector<16x32xf32>
    %cst_492 = arith.constant -0.0238095243 : f32
    %1130 = vector.broadcast %cst_492 : f32 to vector<16x32xf32>
    %1131 = arith.mulf %1129, %1130 : vector<16x32xf32>
    %1132 = arith.addf %1122, %1131 : vector<16x32xf32>
    %1133 = vector.broadcast %1074 : vector<1x32xf32> to vector<16x32xf32>
    %1134 = arith.addf %1132, %1133 : vector<16x32xf32>
    %1135 = arith.truncf %1134 : vector<16x32xf32> to vector<16x32xbf16>
    %cst_493 = arith.constant dense<0.000000e+00> : vector<16x128xf32>
    %1136 = tpu.matmul %1135, %1069, %cst_493 {dimension_numbers = #tpu.dot_dimension_numbers<[1], [0], [0], [1], [0, 0, 1, 1], [], []>} : vector<16x32xbf16>, vector<32x128xbf16>, vector<16x128xf32> -> vector<16x128xf32>
    %1137 = vector.broadcast %1071 : vector<1x128xf32> to vector<16x128xf32>
    %1138 = arith.addf %1136, %1137 : vector<16x128xf32>
    %1139 = math.tanh %1138 : vector<16x128xf32>
    %1140 = arith.truncf %1139 : vector<16x128xf32> to vector<16x128xbf16>
    %cst_494 = arith.constant dense<0.000000e+00> : vector<16x32xf32>
    %1141 = tpu.matmul %1140, %1070, %cst_494 {dimension_numbers = #tpu.dot_dimension_numbers<[1], [0], [0], [1], [0, 0, 1, 1], [], []>} : vector<16x128xbf16>, vector<128x32xbf16>, vector<16x32xf32> -> vector<16x32xf32>
    %cst_495 = arith.constant -0.0238095243 : f32
    %1142 = vector.broadcast %cst_495 : f32 to vector<16x32xf32>
    %1143 = arith.mulf %1141, %1142 : vector<16x32xf32>
    %1144 = arith.addf %1134, %1143 : vector<16x32xf32>
    %1145 = vector.broadcast %1074 : vector<1x32xf32> to vector<16x32xf32>
    %1146 = arith.addf %1144, %1145 : vector<16x32xf32>
    %c7 = arith.constant 7 : index
    %c0_496 = arith.constant 0 : index
    %c0_497 = arith.constant 0 : index
    %1147 = vector.load %arg1[%c7, %c0_496, %c0_497] : memref<8x16x16xf32, #tpu.memory_space<vmem>>, vector<1x16x16xf32>
    %1148 = vector.shape_cast %1147 : vector<1x16x16xf32> to vector<16x16xf32>
    %c7_498 = arith.constant 7 : index
    %c0_499 = arith.constant 0 : index
    %c0_500 = arith.constant 0 : index
    %1149 = vector.load %arg2[%c7_498, %c0_499, %c0_500] : memref<8x16x1xf32, #tpu.memory_space<vmem>>, vector<1x16x1xf32>
    %1150 = vector.shape_cast %1149 : vector<1x16x1xf32> to vector<16x1xf32>
    %c0_501 = arith.constant 0 : index
    %c0_502 = arith.constant 0 : index
    %1151 = vector.load %arg3[%c0_501, %c0_502] : memref<32x256xbf16, #tpu.memory_space<vmem>>, vector<32x256xbf16>
    %1152 = arith.truncf %1146 : vector<16x32xf32> to vector<16x32xbf16>
    %cst_503 = arith.constant dense<0.000000e+00> : vector<16x256xf32>
    %1153 = tpu.matmul %1152, %1151, %cst_503 {dimension_numbers = #tpu.dot_dimension_numbers<[1], [0], [0], [1], [0, 0, 1, 1], [], []>} : vector<16x32xbf16>, vector<32x256xbf16>, vector<16x256xf32> -> vector<16x256xf32>
    %c0_504 = arith.constant 0 : index
    %c0_505 = arith.constant 0 : index
    %1154 = vector.load %arg4[%c0_504, %c0_505] : memref<32x256xbf16, #tpu.memory_space<vmem>>, vector<32x256xbf16>
    %1155 = arith.truncf %1068 : vector<16x32xf32> to vector<16x32xbf16>
    %cst_506 = arith.constant dense<0.000000e+00> : vector<16x256xf32>
    %1156 = tpu.matmul %1155, %1154, %cst_506 {dimension_numbers = #tpu.dot_dimension_numbers<[1], [0], [0], [1], [0, 0, 1, 1], [], []>} : vector<16x32xbf16>, vector<32x256xbf16>, vector<16x256xf32> -> vector<16x256xf32>
    %1157 = arith.addf %1153, %1156 : vector<16x256xf32>
    %c0_507 = arith.constant 0 : index
    %c0_508 = arith.constant 0 : index
    %1158 = vector.load %arg5[%c0_507, %c0_508] : memref<16x256xbf16, #tpu.memory_space<vmem>>, vector<16x256xbf16>
    %1159 = arith.truncf %1148 : vector<16x16xf32> to vector<16x16xbf16>
    %cst_509 = arith.constant dense<0.000000e+00> : vector<16x256xf32>
    %1160 = tpu.matmul %1159, %1158, %cst_509 {dimension_numbers = #tpu.dot_dimension_numbers<[1], [0], [0], [1], [0, 0, 1, 1], [], []>} : vector<16x16xbf16>, vector<16x256xbf16>, vector<16x256xf32> -> vector<16x256xf32>
    %1161 = arith.addf %1157, %1160 : vector<16x256xf32>
    %c0_510 = arith.constant 0 : index
    %c0_511 = arith.constant 0 : index
    %1162 = vector.load %arg6[%c0_510, %c0_511] : memref<1x256xf32, #tpu.memory_space<vmem>>, vector<1x256xf32>
    %1163 = vector.broadcast %1162 : vector<1x256xf32> to vector<16x256xf32>
    %1164 = arith.addf %1161, %1163 : vector<16x256xf32>
    %1165 = math.tanh %1164 : vector<16x256xf32>
    %c0_512 = arith.constant 0 : index
    %c0_513 = arith.constant 0 : index
    %1166 = vector.load %arg7[%c0_512, %c0_513] : memref<256x64xbf16, #tpu.memory_space<vmem>>, vector<256x64xbf16>
    %1167 = arith.truncf %1165 : vector<16x256xf32> to vector<16x256xbf16>
    %cst_514 = arith.constant dense<0.000000e+00> : vector<16x64xf32>
    %1168 = tpu.matmul %1167, %1166, %cst_514 {dimension_numbers = #tpu.dot_dimension_numbers<[1], [0], [0], [1], [0, 0, 1, 1], [], []>} : vector<16x256xbf16>, vector<256x64xbf16>, vector<16x64xf32> -> vector<16x64xf32>
    %c0_515 = arith.constant 0 : index
    %c0_516 = arith.constant 0 : index
    %1169 = vector.load %arg8[%c0_515, %c0_516] : memref<1x64xf32, #tpu.memory_space<vmem>>, vector<1x64xf32>
    %1170 = vector.broadcast %1169 : vector<1x64xf32> to vector<16x64xf32>
    %1171 = arith.addf %1168, %1170 : vector<16x64xf32>
    %1172 = arith.negf %1171 : vector<16x64xf32>
    %1173 = math.exp %1172 : vector<16x64xf32>
    %cst_517 = arith.constant 1.000000e+00 : f32
    %1174 = vector.broadcast %cst_517 : f32 to vector<16x64xf32>
    %1175 = arith.addf %1174, %1173 : vector<16x64xf32>
    %1176 = arith.divf %1174, %1175 : vector<16x64xf32>
    %1177 = vector.extract_strided_slice %1176 {offsets = [0, 0], sizes = [16, 32], strides = [1, 1]} : vector<16x64xf32> to vector<16x32xf32>
    %1178 = vector.extract_strided_slice %1176 {offsets = [0, 32], sizes = [16, 32], strides = [1, 1]} : vector<16x64xf32> to vector<16x32xf32>
    %1179 = arith.mulf %1146, %1178 : vector<16x32xf32>
    %c0_518 = arith.constant 0 : index
    %c0_519 = arith.constant 0 : index
    %1180 = vector.load %arg9[%c0_518, %c0_519] : memref<32x128xbf16, #tpu.memory_space<vmem>>, vector<32x128xbf16>
    %1181 = arith.truncf %1179 : vector<16x32xf32> to vector<16x32xbf16>
    %cst_520 = arith.constant dense<0.000000e+00> : vector<16x128xf32>
    %1182 = tpu.matmul %1181, %1180, %cst_520 {dimension_numbers = #tpu.dot_dimension_numbers<[1], [0], [0], [1], [0, 0, 1, 1], [], []>} : vector<16x32xbf16>, vector<32x128xbf16>, vector<16x128xf32> -> vector<16x128xf32>
    %1183 = arith.mulf %1068, %1178 : vector<16x32xf32>
    %c0_521 = arith.constant 0 : index
    %c0_522 = arith.constant 0 : index
    %1184 = vector.load %arg10[%c0_521, %c0_522] : memref<32x128xbf16, #tpu.memory_space<vmem>>, vector<32x128xbf16>
    %1185 = arith.truncf %1183 : vector<16x32xf32> to vector<16x32xbf16>
    %cst_523 = arith.constant dense<0.000000e+00> : vector<16x128xf32>
    %1186 = tpu.matmul %1185, %1184, %cst_523 {dimension_numbers = #tpu.dot_dimension_numbers<[1], [0], [0], [1], [0, 0, 1, 1], [], []>} : vector<16x32xbf16>, vector<32x128xbf16>, vector<16x128xf32> -> vector<16x128xf32>
    %1187 = arith.addf %1182, %1186 : vector<16x128xf32>
    %c0_524 = arith.constant 0 : index
    %c0_525 = arith.constant 0 : index
    %1188 = vector.load %arg11[%c0_524, %c0_525] : memref<16x128xbf16, #tpu.memory_space<vmem>>, vector<16x128xbf16>
    %1189 = arith.truncf %1148 : vector<16x16xf32> to vector<16x16xbf16>
    %cst_526 = arith.constant dense<0.000000e+00> : vector<16x128xf32>
    %1190 = tpu.matmul %1189, %1188, %cst_526 {dimension_numbers = #tpu.dot_dimension_numbers<[1], [0], [0], [1], [0, 0, 1, 1], [], []>} : vector<16x16xbf16>, vector<16x128xbf16>, vector<16x128xf32> -> vector<16x128xf32>
    %1191 = arith.addf %1187, %1190 : vector<16x128xf32>
    %c0_527 = arith.constant 0 : index
    %c0_528 = arith.constant 0 : index
    %1192 = vector.load %arg12[%c0_527, %c0_528] : memref<1x128xf32, #tpu.memory_space<vmem>>, vector<1x128xf32>
    %1193 = vector.broadcast %1192 : vector<1x128xf32> to vector<16x128xf32>
    %1194 = arith.addf %1191, %1193 : vector<16x128xf32>
    %1195 = math.tanh %1194 : vector<16x128xf32>
    %c0_529 = arith.constant 0 : index
    %c0_530 = arith.constant 0 : index
    %1196 = vector.load %arg13[%c0_529, %c0_530] : memref<128x64xbf16, #tpu.memory_space<vmem>>, vector<128x64xbf16>
    %1197 = arith.truncf %1195 : vector<16x128xf32> to vector<16x128xbf16>
    %cst_531 = arith.constant dense<0.000000e+00> : vector<16x64xf32>
    %1198 = tpu.matmul %1197, %1196, %cst_531 {dimension_numbers = #tpu.dot_dimension_numbers<[1], [0], [0], [1], [0, 0, 1, 1], [], []>} : vector<16x128xbf16>, vector<128x64xbf16>, vector<16x64xf32> -> vector<16x64xf32>
    %c0_532 = arith.constant 0 : index
    %c0_533 = arith.constant 0 : index
    %1199 = vector.load %arg14[%c0_532, %c0_533] : memref<1x64xf32, #tpu.memory_space<vmem>>, vector<1x64xf32>
    %1200 = vector.broadcast %1199 : vector<1x64xf32> to vector<16x64xf32>
    %1201 = arith.addf %1198, %1200 : vector<16x64xf32>
    %1202 = vector.extract_strided_slice %1201 {offsets = [0, 0], sizes = [16, 32], strides = [1, 1]} : vector<16x64xf32> to vector<16x32xf32>
    %1203 = vector.extract_strided_slice %1201 {offsets = [0, 32], sizes = [16, 32], strides = [1, 1]} : vector<16x64xf32> to vector<16x32xf32>
    %1204 = math.absf %1203 : vector<16x32xf32>
    %cst_534 = arith.constant 1.000000e+00 : f32
    %1205 = vector.broadcast %cst_534 : f32 to vector<16x32xf32>
    %1206 = arith.subf %1205, %1177 : vector<16x32xf32>
    %1207 = arith.mulf %1206, %1202 : vector<16x32xf32>
    %1208 = arith.mulf %1177, %1146 : vector<16x32xf32>
    %1209 = arith.addf %1207, %1208 : vector<16x32xf32>
    %cst_535 = arith.constant 1.000000e+00 : f32
    %1210 = vector.broadcast %cst_535 : f32 to vector<16x32xf32>
    %1211 = arith.subf %1210, %1177 : vector<16x32xf32>
    %1212 = arith.mulf %1211, %1204 : vector<16x32xf32>
    %1213 = arith.mulf %1177, %1068 : vector<16x32xf32>
    %1214 = arith.addf %1212, %1213 : vector<16x32xf32>
    %1215 = vector.broadcast %1150 : vector<16x1xf32> to vector<16x32xf32>
    %1216 = arith.mulf %1215, %1209 : vector<16x32xf32>
    %cst_536 = arith.constant 1.000000e+00 : f32
    %1217 = vector.broadcast %cst_536 : f32 to vector<16x1xf32>
    %1218 = arith.subf %1217, %1150 : vector<16x1xf32>
    %1219 = vector.broadcast %1218 : vector<16x1xf32> to vector<16x32xf32>
    %1220 = arith.mulf %1219, %1146 : vector<16x32xf32>
    %1221 = arith.addf %1216, %1220 : vector<16x32xf32>
    %1222 = vector.broadcast %1150 : vector<16x1xf32> to vector<16x32xf32>
    %1223 = arith.mulf %1222, %1214 : vector<16x32xf32>
    %cst_537 = arith.constant 1.000000e+00 : f32
    %1224 = vector.broadcast %cst_537 : f32 to vector<16x1xf32>
    %1225 = arith.subf %1224, %1150 : vector<16x1xf32>
    %1226 = vector.broadcast %1225 : vector<16x1xf32> to vector<16x32xf32>
    %1227 = arith.mulf %1226, %1068 : vector<16x32xf32>
    %1228 = arith.addf %1223, %1227 : vector<16x32xf32>
    %1229 = math.absf %1228 : vector<16x32xf32>
    %c0_538 = arith.constant 0 : index
    %c0_539 = arith.constant 0 : index
    %1230 = vector.load %arg15[%c0_538, %c0_539] : memref<32x128xbf16, #tpu.memory_space<vmem>>, vector<32x128xbf16>
    %1231 = arith.truncf %1221 : vector<16x32xf32> to vector<16x32xbf16>
    %cst_540 = arith.constant dense<0.000000e+00> : vector<16x128xf32>
    %1232 = tpu.matmul %1231, %1230, %cst_540 {dimension_numbers = #tpu.dot_dimension_numbers<[1], [0], [0], [1], [0, 0, 1, 1], [], []>} : vector<16x32xbf16>, vector<32x128xbf16>, vector<16x128xf32> -> vector<16x128xf32>
    %c0_541 = arith.constant 0 : index
    %c0_542 = arith.constant 0 : index
    %1233 = vector.load %arg16[%c0_541, %c0_542] : memref<32x128xbf16, #tpu.memory_space<vmem>>, vector<32x128xbf16>
    %1234 = arith.truncf %1229 : vector<16x32xf32> to vector<16x32xbf16>
    %cst_543 = arith.constant dense<0.000000e+00> : vector<16x128xf32>
    %1235 = tpu.matmul %1234, %1233, %cst_543 {dimension_numbers = #tpu.dot_dimension_numbers<[1], [0], [0], [1], [0, 0, 1, 1], [], []>} : vector<16x32xbf16>, vector<32x128xbf16>, vector<16x128xf32> -> vector<16x128xf32>
    %1236 = arith.addf %1232, %1235 : vector<16x128xf32>
    %c0_544 = arith.constant 0 : index
    %c0_545 = arith.constant 0 : index
    %1237 = vector.load %arg17[%c0_544, %c0_545] : memref<1x128xf32, #tpu.memory_space<vmem>>, vector<1x128xf32>
    %1238 = vector.broadcast %1237 : vector<1x128xf32> to vector<16x128xf32>
    %1239 = arith.addf %1236, %1238 : vector<16x128xf32>
    %1240 = math.tanh %1239 : vector<16x128xf32>
    %c0_546 = arith.constant 0 : index
    %c0_547 = arith.constant 0 : index
    %1241 = vector.load %arg18[%c0_546, %c0_547] : memref<128x64xbf16, #tpu.memory_space<vmem>>, vector<128x64xbf16>
    %1242 = arith.truncf %1240 : vector<16x128xf32> to vector<16x128xbf16>
    %cst_548 = arith.constant dense<0.000000e+00> : vector<16x64xf32>
    %1243 = tpu.matmul %1242, %1241, %cst_548 {dimension_numbers = #tpu.dot_dimension_numbers<[1], [0], [0], [1], [0, 0, 1, 1], [], []>} : vector<16x128xbf16>, vector<128x64xbf16>, vector<16x64xf32> -> vector<16x64xf32>
    %c0_549 = arith.constant 0 : index
    %c0_550 = arith.constant 0 : index
    %1244 = vector.load %arg19[%c0_549, %c0_550] : memref<1x64xf32, #tpu.memory_space<vmem>>, vector<1x64xf32>
    %1245 = vector.broadcast %1244 : vector<1x64xf32> to vector<16x64xf32>
    %1246 = arith.addf %1243, %1245 : vector<16x64xf32>
    %1247 = vector.extract_strided_slice %1246 {offsets = [0, 0], sizes = [16, 32], strides = [1, 1]} : vector<16x64xf32> to vector<16x32xf32>
    %c0_551 = arith.constant 0 : index
    %c0_552 = arith.constant 0 : index
    %c0_553 = arith.constant 0 : index
    %1248 = vector.load %arg24[%c0_551, %c0_552, %c0_553] : memref<1x16x32xf32, #tpu.memory_space<vmem>>, vector<1x16x32xf32>
    %1249 = vector.shape_cast %1248 : vector<1x16x32xf32> to vector<16x32xf32>
    %1250 = vector.shape_cast %1247 : vector<16x32xf32> to vector<1x16x32xf32>
    tpu.vector_store %arg24[%c0_551, %c0_552, %c0_553], %1250 {strides = array<i32>} : memref<1x16x32xf32, #tpu.memory_space<vmem>>, vector<1x16x32xf32>,
    %1251 = vector.extract_strided_slice %1246 {offsets = [0, 32], sizes = [16, 32], strides = [1, 1]} : vector<16x64xf32> to vector<16x32xf32>
    %1252 = math.absf %1251 : vector<16x32xf32>
    %c0_554 = arith.constant 0 : index
    %c0_555 = arith.constant 0 : index
    %c0_556 = arith.constant 0 : index
    %1253 = vector.load %arg25[%c0_554, %c0_555, %c0_556] : memref<1x16x32xf32, #tpu.memory_space<vmem>>, vector<1x16x32xf32>
    %1254 = vector.shape_cast %1253 : vector<1x16x32xf32> to vector<16x32xf32>
    %1255 = vector.shape_cast %1252 : vector<16x32xf32> to vector<1x16x32xf32>
    tpu.vector_store %arg25[%c0_554, %c0_555, %c0_556], %1255 {strides = array<i32>} : memref<1x16x32xf32, #tpu.memory_space<vmem>>, vector<1x16x32xf32>,
    return
  }
  func.func @transform_0(%arg0: i32) -> (i32, i32, i32) {
    %c0_i32 = arith.constant 0 : i32
    %c0_i32_0 = arith.constant 0 : i32
    %c0_i32_1 = arith.constant 0 : i32
    return %c0_i32, %arg0, %c0_i32_0 : i32, i32, i32
  }
  func.func @transform_1(%arg0: i32) -> (i32, i32, i32) {
    %c0_i32 = arith.constant 0 : i32
    %c0_i32_0 = arith.constant 0 : i32
    %c0_i32_1 = arith.constant 0 : i32
    return %c0_i32, %arg0, %c0_i32_0 : i32, i32, i32
  }
  func.func @transform_2(%arg0: i32) -> (i32, i32) {
    %c0_i32 = arith.constant 0 : i32
    %c0_i32_0 = arith.constant 0 : i32
    %c0_i32_1 = arith.constant 0 : i32
    return %c0_i32, %c0_i32_0 : i32, i32
  }
  func.func @transform_3(%arg0: i32) -> (i32, i32) {
    %c0_i32 = arith.constant 0 : i32
    %c0_i32_0 = arith.constant 0 : i32
    %c0_i32_1 = arith.constant 0 : i32
    return %c0_i32, %c0_i32_0 : i32, i32
  }
  func.func @transform_4(%arg0: i32) -> (i32, i32) {
    %c0_i32 = arith.constant 0 : i32
    %c0_i32_0 = arith.constant 0 : i32
    %c0_i32_1 = arith.constant 0 : i32
    return %c0_i32, %c0_i32_0 : i32, i32
  }
  func.func @transform_5(%arg0: i32) -> (i32, i32) {
    %c0_i32 = arith.constant 0 : i32
    %c0_i32_0 = arith.constant 0 : i32
    %c0_i32_1 = arith.constant 0 : i32
    return %c0_i32, %c0_i32_0 : i32, i32
  }
  func.func @transform_6(%arg0: i32) -> (i32, i32) {
    %c0_i32 = arith.constant 0 : i32
    %c0_i32_0 = arith.constant 0 : i32
    %c0_i32_1 = arith.constant 0 : i32
    return %c0_i32, %c0_i32_0 : i32, i32
  }
  func.func @transform_7(%arg0: i32) -> (i32, i32) {
    %c0_i32 = arith.constant 0 : i32
    %c0_i32_0 = arith.constant 0 : i32
    %c0_i32_1 = arith.constant 0 : i32
    return %c0_i32, %c0_i32_0 : i32, i32
  }
  func.func @transform_8(%arg0: i32) -> (i32, i32) {
    %c0_i32 = arith.constant 0 : i32
    %c0_i32_0 = arith.constant 0 : i32
    %c0_i32_1 = arith.constant 0 : i32
    return %c0_i32, %c0_i32_0 : i32, i32
  }
  func.func @transform_9(%arg0: i32) -> (i32, i32) {
    %c0_i32 = arith.constant 0 : i32
    %c0_i32_0 = arith.constant 0 : i32
    %c0_i32_1 = arith.constant 0 : i32
    return %c0_i32, %c0_i32_0 : i32, i32
  }
  func.func @transform_10(%arg0: i32) -> (i32, i32) {
    %c0_i32 = arith.constant 0 : i32
    %c0_i32_0 = arith.constant 0 : i32
    %c0_i32_1 = arith.constant 0 : i32
    return %c0_i32, %c0_i32_0 : i32, i32
  }
  func.func @transform_11(%arg0: i32) -> (i32, i32) {
    %c0_i32 = arith.constant 0 : i32
    %c0_i32_0 = arith.constant 0 : i32
    %c0_i32_1 = arith.constant 0 : i32
    return %c0_i32, %c0_i32_0 : i32, i32
  }
  func.func @transform_12(%arg0: i32) -> (i32, i32) {
    %c0_i32 = arith.constant 0 : i32
    %c0_i32_0 = arith.constant 0 : i32
    %c0_i32_1 = arith.constant 0 : i32
    return %c0_i32, %c0_i32_0 : i32, i32
  }
  func.func @transform_13(%arg0: i32) -> (i32, i32) {
    %c0_i32 = arith.constant 0 : i32
    %c0_i32_0 = arith.constant 0 : i32
    %c0_i32_1 = arith.constant 0 : i32
    return %c0_i32, %c0_i32_0 : i32, i32
  }
  func.func @transform_14(%arg0: i32) -> (i32, i32) {
    %c0_i32 = arith.constant 0 : i32
    %c0_i32_0 = arith.constant 0 : i32
    %c0_i32_1 = arith.constant 0 : i32
    return %c0_i32, %c0_i32_0 : i32, i32
  }
  func.func @transform_15(%arg0: i32) -> (i32, i32) {
    %c0_i32 = arith.constant 0 : i32
    %c0_i32_0 = arith.constant 0 : i32
    %c0_i32_1 = arith.constant 0 : i32
    return %c0_i32, %c0_i32_0 : i32, i32
  }
  func.func @transform_16(%arg0: i32) -> (i32, i32) {
    %c0_i32 = arith.constant 0 : i32
    %c0_i32_0 = arith.constant 0 : i32
    %c0_i32_1 = arith.constant 0 : i32
    return %c0_i32, %c0_i32_0 : i32, i32
  }
  func.func @transform_17(%arg0: i32) -> (i32, i32) {
    %c0_i32 = arith.constant 0 : i32
    %c0_i32_0 = arith.constant 0 : i32
    %c0_i32_1 = arith.constant 0 : i32
    return %c0_i32, %c0_i32_0 : i32, i32
  }
  func.func @transform_18(%arg0: i32) -> (i32, i32) {
    %c0_i32 = arith.constant 0 : i32
    %c0_i32_0 = arith.constant 0 : i32
    %c0_i32_1 = arith.constant 0 : i32
    return %c0_i32, %c0_i32_0 : i32, i32
  }
  func.func @transform_19(%arg0: i32) -> (i32, i32) {
    %c0_i32 = arith.constant 0 : i32
    %c0_i32_0 = arith.constant 0 : i32
    %c0_i32_1 = arith.constant 0 : i32
    return %c0_i32, %c0_i32_0 : i32, i32
  }
  func.func @transform_20(%arg0: i32) -> (i32, i32) {
    %c0_i32 = arith.constant 0 : i32
    %c0_i32_0 = arith.constant 0 : i32
    %c0_i32_1 = arith.constant 0 : i32
    return %c0_i32, %c0_i32_0 : i32, i32
  }
  func.func @transform_21(%arg0: i32) -> (i32, i32) {
    %c0_i32 = arith.constant 0 : i32
    %c0_i32_0 = arith.constant 0 : i32
    %c0_i32_1 = arith.constant 0 : i32
    return %c0_i32, %c0_i32_0 : i32, i32
  }
  func.func @transform_22(%arg0: i32) -> (i32, i32) {
    %c0_i32 = arith.constant 0 : i32
    %c0_i32_0 = arith.constant 0 : i32
    %c0_i32_1 = arith.constant 0 : i32
    return %c0_i32, %c0_i32_0 : i32, i32
  }
  func.func @transform_23(%arg0: i32) -> (i32, i32, i32) {
    %c0_i32 = arith.constant 0 : i32
    %c0_i32_0 = arith.constant 0 : i32
    %c0_i32_1 = arith.constant 0 : i32
    return %c0_i32, %arg0, %c0_i32_0 : i32, i32, i32
  }
  func.func @transform_24(%arg0: i32) -> (i32, i32, i32) {
    %c0_i32 = arith.constant 0 : i32
    %c0_i32_0 = arith.constant 0 : i32
    %c0_i32_1 = arith.constant 0 : i32
    return %c0_i32, %arg0, %c0_i32_0 : i32, i32, i32
  }
}

</mosaic_0001>

<bundles_post_ra>
// kernel: tpu_custom_call.1
= control target key start
LH: loop header
LB: loop body
LE: loop exit
PB: predicated region body
PF: predicated region fallthrough
CT: control target
= control target key end

     0   :  { %s17261_s0 = inlined_call_operand.vmem [shape: f32[8,32,16], index: 0, kind: input, shape index: {}]   ;;  %s17262_s1 = inlined_call_operand.vmem [shape: f32[8,32,1], index: 1, kind: input, shape index: {}]   ;;  %s17263_s2 = inlined_call_operand.vmem [shape: bf16[32,256], index: 2, kind: input, shape index: {}]   ;;  %s17264_s3 = inlined_call_operand.vmem [shape: bf16[32,256], index: 3, kind: input, shape index: {}]   ;;  %s17265_s4 = inlined_call_operand.vmem [shape: bf16[16,256], index: 4, kind: input, shape index: {}]   ;;  %s17266_s5 = inlined_call_operand.vmem [shape: f32[1,256], index: 5, kind: input, shape index: {}]   ;;  %s17267_s6 = inlined_call_operand.vmem [shape: bf16[256,64], index: 6, kind: input, shape index: {}]   ;;  %s17268_s7 = inlined_call_operand.vmem [shape: f32[1,64], index: 7, kind: input, shape index: {}]   ;;  %s17269_s8 = inlined_call_operand.vmem [shape: bf16[32,128], index: 8, kind: input, shape index: {}]   ;;  %s17270_s9 = inlined_call_operand.vmem [shape: bf16[32,128], index: 9, kind: input, shape index: {}]   ;;  %s17271_s10 = inlined_call_operand.vmem [shape: bf16[16,128], index: 10, kind: input, shape index: {}]   ;;  %s17272_s11 = inlined_call_operand.vmem [shape: f32[1,128], index: 11, kind: input, shape index: {}]   ;;  %s17273_s12 = inlined_call_operand.vmem [shape: bf16[128,64], index: 12, kind: input, shape index: {}]   ;;  %s17274_s13 = inlined_call_operand.vmem [shape: f32[1,64], index: 13, kind: input, shape index: {}]   ;;  %s17275_s14 = inlined_call_operand.vmem [shape: bf16[32,128], index: 14, kind: input, shape index: {}]   ;;  %s17276_s15 = inlined_call_operand.vmem [shape: bf16[32,128], index: 15, kind: input, shape index: {}]   ;;  %s17277_s16 = inlined_call_operand.vmem [shape: f32[1,128], index: 16, kind: input, shape index: {}]   ;;  %s17278_s17 = inlined_call_operand.vmem [shape: bf16[128,64], index: 17, kind: input, shape index: {}]   ;;  %s17279_s18 = inlined_call_operand.vmem [shape: f32[1,64], index: 18, kind: input, shape index: {}]   ;;  %s17280_s19 = inlined_call_operand.vmem [shape: bf16[32,128], index: 19, kind: input, shape index: {}]   ;;  %s17281_s20 = inlined_call_operand.vmem [shape: f32[1,128], index: 20, kind: input, shape index: {}]   ;;  %s17282_s21 = inlined_call_operand.vmem [shape: bf16[128,32], index: 21, kind: input, shape index: {}]   ;;  %s17283_s22 = inlined_call_operand.vmem [shape: f32[1,32], index: 22, kind: input, shape index: {}]   ;;  %s17284_s23 = inlined_call_operand.hbm [shape: f32[1,32,32], index: 23, kind: output, shape index: {0}]   ;;  %s17285_s24 = inlined_call_operand.hbm [shape: f32[1,32,32], index: 24, kind: output, shape index: {1}]  }
   0x1   :  { %17373 = sst [smem:[#allocation30_spill]] %s17261_s0 }
   0x2   :  { %17374 = sst [smem:[#allocation31_spill]] %s17262_s1 }
   0x3   :  { %17375 = sst [smem:[#allocation32_spill]] %s17263_s2 }
   0x4   :  { %17376 = sst [smem:[#allocation33_spill]] %s17264_s3 }
   0x5   :  { %17377 = sst [smem:[#allocation34_spill]] %s17265_s4 }
   0x6   :  { %17378 = sst [smem:[#allocation35_spill]] %s17266_s5 }
   0x7   :  { %17379 = sst [smem:[#allocation36_spill]] %s17267_s6 }
   0x8   :  { %17380 = sst [smem:[#allocation37_spill]] %s17268_s7 }
   0x9   :  { %17381 = sst [smem:[#allocation38_spill]] %s17269_s8 }
   0xa   :  { %17382 = sst [smem:[#allocation39_spill]] %s17270_s9 }
   0xb   :  { %17383 = sst [smem:[#allocation40_spill]] %s17279_s18 }
   0xc   :  { %17384 = sst [smem:[#allocation41_spill]] %s17284_s23 }
   0xd   :  { %17385 = sst [smem:[#allocation42_spill]] %s17285_s24 }
   0xe   :  { %30 = vsyncpa [#allocation5], 0 }
   0xf   :  { %32 = vsyncpa [#allocation5 + $0x1], 0 }
  0x10   :  { %33 = vsyncpa [#allocation7], 0 }
  0x11   :  { %35 = vsyncpa [#allocation7 + $0x1], 0  ;;  %s13226_s5 = smov 0   ;;  %s13228_s26 = smov 0  }
  0x12   :  { %s13230_s27 = smov 0   ;;  %s13232_s28 = smov 0  }
  0x13 LB: > { %17386 = sst [smem:[#allocation10_spill]] %s13079_s5  ;;  %s17292_s6 = sadd.s32 4294967295, %s13091_s28   ;;  %s13091_s28 = sphi %s13232_s28, %s17515_s28   ;;  %s13087_s27 = sphi %s13230_s27, %s17518_s27   ;;  %s13083_s26 = sphi %s13228_s26, %s17517_s26   ;;  %s13079_s5 = sphi %s13226_s5, %s17516_s5  }
  0x14   : > { %17387 = sst [smem:[#allocation11_spill]] %s13083_s26  ;;  %s9631_s2 = sadd.s32 4294967294, %s13091_s28  }
  0x15   : > { %17388 = sst [smem:[#allocation12_spill]] %s13087_s27  ;;  %s13249_s29 = sadd.s32 1, %s13091_s28  }
  0x16   : > { %17389 = sst [smem:[#allocation13_spill]] %s13249_s29  ;;  %s48_s0 = sadd.s32 1, %s13087_s27 }
  0x17   : > { %s45_s7 = ssub.s32 %s13091_s28, %s13249_s29  ;;  %p55_p0 = scmp.ne.s32.totalorder %s13087_s27, %s13083_s26 }
  0x18   : > { %p46_p1 = scmp.eq.s32.totalorder %s45_s7, 0  ;;  %p56_p2 = scmp.eq.s32.totalorder %s13091_s28, 0 }
  0x19   : > { %p552_p3 = scmp.eq.s32.totalorder %s17292_s6, 1  ;;  %p557_p4 = scmp.ne.s32.totalorder %s13083_s26, %s13079_s5 }
  0x1a   : > { %s13262_s30 = scalar_select %p46_p1, %s13087_s27, %s48_s0  }
  0x1b   : > { %p13264_p5 = por %p56_p2, %p55_p0  ;;  %p13268_p6 = por %p552_p3, %p55_p0 }
  0x1c   : > { %17390 = sst [smem:[#allocation14_spill]] %s13262_s30  ;;  %p558_p7 = scmp.eq.s32.totalorder %s9631_s2, 1 }
  0x1d   : > { %s17392_s25 = scalar_select %p13268_p6, 1, 0 }
  0x1e   : > { %p13272_p8 = por %p558_p7, %p557_p4  ;;  %p9633_p9 = scmp.ge.s32.totalorder %s13091_s28, 2 }
  0x1f   : > { %17393 = sst [smem:[#allocation15_spill]] %s17392_s25 }
  0x20   : > { %s17394_s8 = scalar_select %p13272_p8, 1, 0 }
  0x21   : > { %663 = sbr.rel (%p9633_p9) target bundleno = 76 (0x4c), region = 100 }
  0x22   : > { %17395 = sst [smem:[#allocation16_spill]] %s17394_s8 }
  0x28   : > { %666 = sbr.rel (!%p13264_p5) target bundleno = 58 (0x3a), region = 104  ;;  %s668_s4 = sand.u32 (%p13264_p5), 1, %s13087_s27  }
  0x29   : > { %s9855_s1 = sshll.u32 (%p13264_p5), %s13091_s28, 4  ;;  %s9634_s0 = sshll.u32 (%p13264_p5), %s668_s4, 7 }
  0x2a   : > { %s17396_s2 = sld [smem:[#allocation30_spill]] (%p13264_p5)  ;;  %s670_s29 = scalar_lea.vmem (%p13264_p5), [#allocation2], %s9634_s0 }
  0x30   : > { %s13286_s30 = scalar_lea.vmem %s17396_s2, %s9855_s1 }
  0x31   : > { %v731_v0 = vld [vmem:[%s13286_s30] sm:$0xff]  ;;  %v733_v1 = vld [vmem:[%s13286_s30 + $0x8] sm:$0xff] }
  0x32   : > { %v735_v2 = vld [vmem:[%s13286_s30 + $0x20] sm:$0xff]  ;;  %732 = vst [vmem:[%s670_s29] sm:$0xff] %v731_v0  ;;  %734 = vst [vmem:[%s670_s29 + $0x8] sm:$0xff] %v733_v1  ;;  %v737_v3 = vld [vmem:[%s13286_s30 + $0x28] sm:$0xff] }
  0x33   : > { %736 = vst [vmem:[%s670_s29 + $0x10] sm:$0xff] %v735_v2  ;;  %v739_v4 = vld [vmem:[%s13286_s30 + $0x40] sm:$0xff]  ;;  %v741_v5 = vld [vmem:[%s13286_s30 + $0x48] sm:$0xff]  ;;  %738 = vst [vmem:[%s670_s29 + $0x18] sm:$0xff] %v737_v3 }
  0x34   : > { %740 = vst [vmem:[%s670_s29 + $0x20] sm:$0xff] %v739_v4  ;;  %742 = vst [vmem:[%s670_s29 + $0x28] sm:$0xff] %v741_v5  ;;  %v743_v6 = vld [vmem:[%s13286_s30 + $0x60] sm:$0xff]  ;;  %v745_v7 = vld [vmem:[%s13286_s30 + $0x68] sm:$0xff] }
  0x35   : > { %v747_v8 = vld [vmem:[%s13286_s30 + $0x80] sm:$0xff]  ;;  %744 = vst [vmem:[%s670_s29 + $0x30] sm:$0xff] %v743_v6  ;;  %746 = vst [vmem:[%s670_s29 + $0x38] sm:$0xff] %v745_v7  ;;  %v749_v9 = vld [vmem:[%s13286_s30 + $0x88] sm:$0xff] }
  0x36   : > { %748 = vst [vmem:[%s670_s29 + $0x40] sm:$0xff] %v747_v8  ;;  %v751_v10 = vld [vmem:[%s13286_s30 + $0xa0] sm:$0xff]  ;;  %v753_v11 = vld [vmem:[%s13286_s30 + $0xa8] sm:$0xff]  ;;  %750 = vst [vmem:[%s670_s29 + $0x48] sm:$0xff] %v749_v9 }
  0x37   : > { %752 = vst [vmem:[%s670_s29 + $0x50] sm:$0xff] %v751_v10  ;;  %754 = vst [vmem:[%s670_s29 + $0x58] sm:$0xff] %v753_v11  ;;  %v755_v12 = vld [vmem:[%s13286_s30 + $0xc0] sm:$0xff]  ;;  %v757_v13 = vld [vmem:[%s13286_s30 + $0xc8] sm:$0xff] }
  0x38   : > { %v759_v14 = vld [vmem:[%s13286_s30 + $0xe0] sm:$0xff]  ;;  %756 = vst [vmem:[%s670_s29 + $0x60] sm:$0xff] %v755_v12  ;;  %758 = vst [vmem:[%s670_s29 + $0x68] sm:$0xff] %v757_v13  ;;  %v761_v15 = vld [vmem:[%s13286_s30 + $0xe8] sm:$0xff] }
  0x39   : > { %760 = vst [vmem:[%s670_s29 + $0x70] sm:$0xff] %v759_v14  ;;  %762 = vst [vmem:[%s670_s29 + $0x78] sm:$0xff] %v761_v15 }
  0x3a PF: > { %768 = sbr.rel (!%p13264_p5) target bundleno = 76 (0x4c), region = 142  ;;  %s770_s6 = sand.u32 (%p13264_p5), 1, %s13087_s27  }
  0x3b   : > { %s9856_s4 = sshll.u32 (%p13264_p5), %s13091_s28, 4  ;;  %s9637_s1 = sshll.u32 (%p13264_p5), %s770_s6, 7 }
  0x3c   : > { %s17397_s2 = sld [smem:[#allocation31_spill]] (%p13264_p5)  ;;  %s772_s29 = scalar_lea.vmem (%p13264_p5), [#allocation3], %s9637_s1 }
  0x42   : > { %s13311_s8 = scalar_lea.vmem %s17397_s2, %s9856_s4 }
  0x43   : > { %v833_v16 = vld [vmem:[%s13311_s8] sm:$0xff]  ;;  %v835_v17 = vld [vmem:[%s13311_s8 + $0x8] sm:$0xff] }
  0x44   : > { %v837_v18 = vld [vmem:[%s13311_s8 + $0x20] sm:$0xff]  ;;  %834 = vst [vmem:[%s772_s29] sm:$0xff] %v833_v16  ;;  %836 = vst [vmem:[%s772_s29 + $0x8] sm:$0xff] %v835_v17  ;;  %v839_v19 = vld [vmem:[%s13311_s8 + $0x28] sm:$0xff] }
  0x45   : > { %838 = vst [vmem:[%s772_s29 + $0x10] sm:$0xff] %v837_v18  ;;  %v841_v20 = vld [vmem:[%s13311_s8 + $0x40] sm:$0xff]  ;;  %v843_v21 = vld [vmem:[%s13311_s8 + $0x48] sm:$0xff]  ;;  %840 = vst [vmem:[%s772_s29 + $0x18] sm:$0xff] %v839_v19 }
  0x46   : > { %842 = vst [vmem:[%s772_s29 + $0x20] sm:$0xff] %v841_v20  ;;  %844 = vst [vmem:[%s772_s29 + $0x28] sm:$0xff] %v843_v21  ;;  %v845_v22 = vld [vmem:[%s13311_s8 + $0x60] sm:$0xff]  ;;  %v847_v23 = vld [vmem:[%s13311_s8 + $0x68] sm:$0xff] }
  0x47   : > { %v849_v24 = vld [vmem:[%s13311_s8 + $0x80] sm:$0xff]  ;;  %846 = vst [vmem:[%s772_s29 + $0x30] sm:$0xff] %v845_v22  ;;  %848 = vst [vmem:[%s772_s29 + $0x38] sm:$0xff] %v847_v23  ;;  %v851_v25 = vld [vmem:[%s13311_s8 + $0x88] sm:$0xff] }
  0x48   : > { %850 = vst [vmem:[%s772_s29 + $0x40] sm:$0xff] %v849_v24  ;;  %v853_v26 = vld [vmem:[%s13311_s8 + $0xa0] sm:$0xff]  ;;  %v855_v27 = vld [vmem:[%s13311_s8 + $0xa8] sm:$0xff]  ;;  %852 = vst [vmem:[%s772_s29 + $0x48] sm:$0xff] %v851_v25 }
  0x49   : > { %854 = vst [vmem:[%s772_s29 + $0x50] sm:$0xff] %v853_v26  ;;  %856 = vst [vmem:[%s772_s29 + $0x58] sm:$0xff] %v855_v27  ;;  %v857_v28 = vld [vmem:[%s13311_s8 + $0xc0] sm:$0xff]  ;;  %v859_v29 = vld [vmem:[%s13311_s8 + $0xc8] sm:$0xff] }
  0x4a   : > { %v861_v30 = vld [vmem:[%s13311_s8 + $0xe0] sm:$0xff]  ;;  %858 = vst [vmem:[%s772_s29 + $0x60] sm:$0xff] %v857_v28  ;;  %860 = vst [vmem:[%s772_s29 + $0x68] sm:$0xff] %v859_v29  ;;  %v863_v31 = vld [vmem:[%s13311_s8 + $0xe8] sm:$0xff] }
  0x4b   : > { %862 = vst [vmem:[%s772_s29 + $0x70] sm:$0xff] %v861_v30  ;;  %864 = vst [vmem:[%s772_s29 + $0x78] sm:$0xff] %v863_v31 }
  0x4c PF: > { %p9640_p10 = scmp.ge.s32.totalorder %s13091_s28, 1  ;;  %p869_p11 = scmp.lt.s32.totalorder %s13091_s28, 3 }
  0x4e   : > { %p870_p12 = pnand %p9640_p10, %p869_p11 }
  0x50   : > { %873 = sbr.rel (%p870_p12) target bundleno = 28843 (0x70ab), region = 180 }
  0x57   : > { %v13334_v32 = vld [vmem:[%s17280_s19] sm:$0xff]   ;;  %v17312_v33 = vmov 0.0   ;;  %v13341_v34 = vld [vmem:[%s17280_s19 + $0x8] sm:$0xff]   ;;  %vm13094_vm0 = vmmov 0   ;;  %v17304_v35 = vmov 0   ;;  %v13369_v38 = vld [vmem:[%s17282_s21 + $0x10] sm:$0xff]   ;;  %v1145_v63 = vlaneseq }
  0x58   : > { %10702 = vmatprep.subr.bf16.mxu1 %v17312_v33  ;;  %10706 = vmatprep.mubr.msk.bf16.mxu1 %vm13094_vm0, %v17312_v33  ;;  %v13353_v36 = vld [vmem:[%s17282_s21] sm:$0xff]   ;;  %v13359_v37 = vld [vmem:[%s17282_s21 + $0x8] sm:$0xff]   ;;  %v13376_v39 = vld [vmem:[%s17282_s21 + $0x18] sm:$0xff]   ;;  %s17398_s8 = sld [smem:[#allocation33_spill]]  ;;  %s17399_s3 = sld [smem:[#allocation32_spill]]  ;;  %vm1003_vm1 = vcmask 261120  }
  0x59   : > { %10703 = vmatpush3.bf16.msra.mxu1 %v13334_v32  ;;  %1217 = vmatprep.mubr.bf16.mxu0 %v17304_v35  ;;  %v13385_v40 = vld [vmem:[%s17282_s21 + $0x20] sm:$0xff]   ;;  %v13392_v41 = vld [vmem:[%s17282_s21 + $0x28] sm:$0xff]   ;;  %v13398_v42 = vld [vmem:[%s17282_s21 + $0x30] sm:$0xff]   ;;  %s17400_s1 = sld [smem:[#allocation34_spill]]  ;;  %v13475_v0 = vshrl.u32 %v1145_v63, 7  ;;  %s13492_s2 = sand.u32 1, %s13083_s26  }
  0x5a   : > { %10704 = vmatprep.subr.bf16.mxu1 %v17312_v33  ;;  %12392 = vset.pattern.permute.xlu1 %v17304_v35  ;;  %v13405_v43 = vld [vmem:[%s17282_s21 + $0x38] sm:$0xff]   ;;  %v13451_v50 = vld [vmem:[%s17281_s20] ss:$0 sm:$0xff]  ;;  %s17402_s0 = sld [smem:[#allocation36_spill]]  ;;  %s17297_s7 = sshll.u32 %s13492_s2, 7  ;;  %vm1307_vm2 = vcmask 130048  }
  0x5b   : > { %12393 = vset.pattern.permute.xlu0 %v17304_v35  ;;  %v13480_v1 = vld [vmem:[%s17283_s22] sm:$0x1]  ;;  %v13484_v3 = vsub.s32 0, %v13475_v0  ;;  %s13507_s27 = scalar_lea.vmem [#allocation2], %s17297_s7  ;;  %s17403_s24 = sld [smem:[#allocation35_spill]] }
  0x5c   : > { %v984_v2 = vmul.f32 -0.00999999, %v13480_v1  ;;  %v1152_v16 = vld [vmem:[%s13507_s27] sm:$0xff]  ;;  %v1153_v17 = vld [vmem:[%s13507_s27 + $0x8] sm:$0xff]  ;;  %s17404_s9 = sld [smem:[#allocation39_spill]]  ;;  %s17405_s30 = sld [smem:[#allocation37_spill]] }
  0x5d   : > { %10705 = vmatpush3.bf16.msra.mxu1 %v13341_v34  ;;  %17401 = vst [vmem:[#allocation17_spill] sm:$0xff] %v13484_v3  ;;  %v13511_v18 = vpack.c.bf16 %v1153_v17, %v1152_v16  ;;  %s17302_s26 = smov 96   ;;  %s17407_s23 = sld [smem:[#allocation38_spill]] }
  0x5e   : > { %10710 = vmatprep.subr.bf16.mxu1 %v17312_v33  ;;  %v13413_v44 = vld [vmem:[%s17398_s8 + $0x4] ss:$8 sps:$4 sm:$0xff]   ;;  %v13418_v45 = vld [vmem:[%s17398_s8] ss:$8 sps:$4 sm:$0xff]   ;;  %v13423_v46 = vld [vmem:[%s17398_s8 + $0x14] ss:$8 sps:$4 sm:$0xff]   ;;  %v1148_v6 = vrot.slane %v984_v2, %v13484_v3 }
  0x5f   : > { %1185 = vmatprep.subr.bf16.mxu0 %v13413_v44  ;;  %v13430_v47 = vld [vmem:[%s17398_s8 + $0x10] ss:$8 sps:$4 sm:$0xff]   ;;  %v13436_v48 = vld [vmem:[%s17399_s3 + $0x4] ss:$8 sps:$4 sm:$0xff]   ;;  %v13442_v49 = vld [vmem:[%s17399_s3] ss:$8 sps:$4 sm:$0xff]  }
  0x60   : > { %10707 = vmatmul.mubr.bf16.vlgmr.msra.gmra.mrb[0].mxu1 %v17304_v35  ;;  %1186 = vmatpush1.bf16.msra.mxu0 %v13418_v45  ;;  %v13460_v60 = vld [vmem:[%s17399_s3 + $0x14] ss:$8 sps:$4 sm:$0xff]   ;;  %v13465_v61 = vld [vmem:[%s17399_s3 + $0x10] ss:$8 sps:$4 sm:$0xff]   ;;  %v13470_v62 = vld [vmem:[%s17400_s1 + $0x4] ss:$8 sps:$4 sm:$0xff]  }
  0x61   : > { %10711 = vmatpush3.bf16.msra.mxu1 %v13353_v36  ;;  %10726 = vmatprep.mubr.msk.bf16.mxu1 %vm13094_vm0, %v17312_v33  ;;  %v12418_v13 = vld [vmem:[%s17400_s1] ss:$8 sps:$4 sm:$0xff]   ;;  %v12423_v22 = vld [vmem:[%s17402_s0 + $0x50] sm:$0xff]   ;;  %v13533_v24 = vld [vmem:[%s17402_s0 + $0x58] sm:$0xff]   ;;  %s17419_s4 = smov 96   ;;  %s17369_s18 = sshll.u32 %s13492_s2, 4 }
  0x62   : > { %10712 = vmatprep.subr.bf16.mxu1 %v17312_v33  ;;  %1187 = vmatprep.subr.bf16.mxu0 %v13423_v46  ;;  %v12419_v15 = vld [vmem:[%s17402_s0 + $0x40] sm:$0xff]   ;;  %v12421_v20 = vld [vmem:[%s17402_s0 + $0x48] sm:$0xff]   ;;  %v12424_v23 = vld [vmem:[%s17402_s0 + $0x10] sm:$0xff]   ;;  %s17505_s29 = sld [smem:[#allocation40_spill]]  ;;  %s949_s6 = scalar_lea.vmem [#allocation4], %s17369_s18 }
  0x63   : > { %v12420_v19 = vld [vmem:[%s17402_s0] sm:$0xff]   ;;  %v12422_v21 = vld [vmem:[%s17402_s0 + $0x8] sm:$0xff]   ;;  %v13538_v25 = vld [vmem:[%s17402_s0 + $0x18] sm:$0xff]  }
  0x64   : > { %1188 = vmatpush1.bf16.msra.mxu0 %v13430_v47  ;;  %v13545_v26 = vld [vmem:[%s17402_s0 + $0x60] sm:$0xff]   ;;  %v13557_v28 = vld [vmem:[%s17402_s0 + $0x68] sm:$0xff]   ;;  %v13567_v30 = vld [vmem:[%s17402_s0 + $0x70] sm:$0xff]  }
  0x65   : > { %10713 = vmatpush3.bf16.msra.mxu1 %v13359_v37  ;;  %1251 = vmatprep.subr.bf16.mxu0 %v13436_v48  ;;  %v13550_v27 = vld [vmem:[%s17402_s0 + $0x20] sm:$0xff]   ;;  %v13562_v29 = vld [vmem:[%s17402_s0 + $0x28] sm:$0xff]   ;;  %v13574_v31 = vld [vmem:[%s17402_s0 + $0x30] sm:$0xff]  }
  0x66   : > { %10714 = vmatprep.subr.bf16.mxu1 %v17312_v33  ;;  %v13620_v16 = vld [vmem:[%s17405_s30] ss:$0 sm:$0xff] }
  0x67   : > { %1218 = vmatmul.mubr.bf16.vlgmr.msra.gmra.mrb[0].mxu0 %v17304_v35 }
  0x68   : > { %1252 = vmatpush1.bf16.msra.mxu0 %v13442_v49  ;;  %1283 = vmatprep.mubr.bf16.mxu0 %v17304_v35 }
  0x69   : > { %10715 = vmatpush3.bf16.msra.mxu1 %v13369_v38  ;;  %1253 = vmatprep.subr.bf16.mxu0 %v13460_v60 }
  0x6a   : > { %10716 = vmatprep.subr.bf16.mxu1 %v17312_v33 }
  0x6c   : > { %1254 = vmatpush1.bf16.msra.mxu0 %v13465_v61 }
  0x6d   : > { %10717 = vmatpush3.bf16.msra.mxu1 %v13376_v39  ;;  %1311 = vmatprep.subr.bf16.mxu0 %v13470_v62 }
  0x6e   : > { %10718 = vmatprep.subr.bf16.mxu1 %v17312_v33 }
  0x71   : > { %10719 = vmatpush3.bf16.msra.mxu1 %v13385_v40 }
  0x72   : > { %10720 = vmatprep.subr.bf16.mxu1 %v17312_v33 }
  0x75   : > { %10721 = vmatpush3.bf16.msra.mxu1 %v13392_v41 }
  0x76   : > { %10722 = vmatprep.subr.bf16.mxu1 %v17312_v33 }
  0x79   : > { %10723 = vmatpush3.bf16.msra.mxu1 %v13398_v42 }
  0x7a   : > { %10724 = vmatprep.subr.bf16.mxu1 %v17312_v33 }
  0x7d   : > { %10725 = vmatpush3.bf16.msra.mxu1 %v13405_v43 }
  0x7e   : > { %10730 = vmatprep.subr.bf16.mxu1 %v17312_v33 }
 0x133   : > { %v1041_v51 = vpop.f32.mrb[0].mxu1 }
 0x134   : > { %v1042_v52 = vadd.f32 %v13451_v50, %v1041_v51  ;;  %v10708_v53 = vpop.f32.mrb[1].mxu1  ;;  %v13580_v51 = vld [vmem:[%s17402_s0 + $0x78] sm:$0xff]  }
 0x135   : > { %v1044_v54 = vpop.f32.mrb[2].mxu1  ;;  %v1358_v53 = vld [vmem:[%s17403_s24] sm:$0x3]  ;;  %s17406_s24 = sshll.u32 %s13492_s2, 7 }
 0x136   : > { %v1045_v55 = vadd.f32 %v13451_v50, %v1044_v54  ;;  %v10709_v56 = vpop.f32.mrb[3].mxu1  ;;  %12460 = vtanh.f32 %v1042_v52  ;;  %v13586_v52 = vld [vmem:[%s17402_s0 + $0x38] sm:$0xff]   ;;  %v1366_v54 = vsub.s32 1, %v13475_v0  ;;  %s13645_s5 = scalar_lea.vmem [#allocation3], %s17406_s24  ;;  %s17506_s24 = sadd.s32 4294967295, %s13091_s28  }
 0x138   : > { %12462 = vtanh.f32 %v1045_v55  ;;  %v13596_v55 = vrot.slane %v1358_v53, %v13484_v3  ;;  %v13598_v56 = vrot.slane %v1358_v53, %v1366_v54 }
 0x140   : > { %v12461_v57 = vpop.eup %12460 }
 0x142   : > { %v12463_v58 = vpop.eup %12462 }
 0x143   : > { %v1050_v59 = vpack.c.bf16 %v12463_v58, %v12461_v57 }
 0x145   : > { %10727 = vmatmul.mubr.bf16.vlgmr.msra.gmra.mrb[4].mxu1 %v1050_v59 }
 0x146   : > { %10734 = vmatprep.mubr.msk.bf16.mxu1 %vm13094_vm0, %v17312_v33 }
 0x218   : > { %v1133_v4 = vpop.f32.mrb[4].mxu1 }
 0x219   : > { %v1140_v5 = vmul.f32 -0.00999999, %v1133_v4  ;;  %v10728_v7 = vpop.f32.mrb[5].mxu1 }
 0x21a   : > { %v1136_v8 = vpop.f32.mrb[6].mxu1 }
 0x21b   : > { %v1141_v9 = vmul.f32 -0.00999999, %v1136_v8  ;;  %v10729_v10 = vpop.f32.mrb[7].mxu1  ;;  %v13487_v11 = vadd.f32 %v1148_v6, %v1140_v5 }
 0x21d   : > { %v13489_v12 = vadd.f32 %v1148_v6, %v1141_v9 }
 0x21f   : > { %v1160_v14 = vpack.c.bf16 %v13489_v12, %v13487_v11 }
 0x221   : > { %9664 = vmatmul.mubr.msk.bf16.vlgmr.msra.gmra.mrb[0].mxu0 %vm1003_vm1, %v1160_v14  ;;  %v13613_v14 = vld [vmem:[%s17404_s9] sm:$0xff]  }
 0x222   : > { %1312 = vmatpush1.bf16.msra.mxu0 %v12418_v13  ;;  %1343 = vmatprep.mubr.bf16.mxu0 %v17304_v35 }
 0x223   : > { %9871 = vmatprep.subr.bf16.mxu0 %v12419_v15  ;;  %10731 = vmatpush3.bf16.msra.mxu1 %v13613_v14 }
 0x224   : > { %10732 = vmatprep.subr.bf16.mxu1 %v17312_v33 }
 0x22d   : > { %9667 = vmatmul.mubr.msk.bf16.vlgmr.msra.gmra.mrb[0].mxu0 %vm1307_vm2, %v13511_v18 }
 0x22e   : > { %9872 = vmatpush3.bf16.msra.mxu0 %v12420_v19 }
 0x22f   : > { %9873 = vmatprep.subr.bf16.mxu0 %v12421_v20 }
 0x232   : > { %9874 = vmatpush3.bf16.msra.mxu0 %v12422_v21 }
 0x233   : > { %9875 = vmatprep.subr.bf16.mxu0 %v12423_v22 }
 0x236   : > { %9876 = vmatpush3.bf16.msra.mxu0 %v12424_v23 }
 0x237   : > { %9877 = vmatprep.subr.bf16.mxu0 %v13533_v24 }
 0x23a   : > { %9878 = vmatpush3.bf16.msra.mxu0 %v13538_v25 }
 0x23b   : > { %9879 = vmatprep.subr.bf16.mxu0 %v13545_v26 }
 0x23e   : > { %9880 = vmatpush3.bf16.msra.mxu0 %v13550_v27 }
 0x23f   : > { %9881 = vmatprep.subr.bf16.mxu0 %v13557_v28 }
 0x242   : > { %9882 = vmatpush3.bf16.msra.mxu0 %v13562_v29 }
 0x243   : > { %9883 = vmatprep.subr.bf16.mxu0 %v13567_v30 }
 0x246   : > { %9884 = vmatpush3.bf16.msra.mxu0 %v13574_v31 }
 0x247   : > { %9885 = vmatprep.subr.bf16.mxu0 %v13580_v51 }
 0x24a   : > { %9886 = vmatpush3.bf16.msra.mxu0 %v13586_v52 }
 0x24b   : > { %10772 = vmatprep.subr.bf16.mxu0 %v17312_v33 }
 0x300   : > { %v1345_v57 = vpop.f32.mrb[0].mxu0 }
 0x301   : > { %v1370_v58 = vadd.f32 %v13596_v55, %v1345_v57  ;;  %v1347_v59 = vpop.f32.mrb[1].mxu0 }
 0x302   : > { %v1371_v63 = vadd.f32 %v13598_v56, %v1347_v59  ;;  %v1349_v2 = vpop.f32.mrb[2].mxu0 }
 0x303   : > { %12464 = vtanh.f32 %v1370_v58  ;;  %v1372_v4 = vadd.f32 %v13596_v55, %v1349_v2  ;;  %v1351_v5 = vpop.f32.mrb[3].mxu0  ;;  %v13627_v2 = vld [vmem:[%s17404_s9 + $0x8] sm:$0xff]  }
 0x304   : > { %12466 = vtanh.f32 %v1371_v63  ;;  %v1373_v6 = vadd.f32 %v13598_v56, %v1351_v5  ;;  %10733 = vmatpush3.bf16.msra.mxu1 %v13627_v2 }
 0x305   : > { %12468 = vtanh.f32 %v1372_v4  ;;  %10738 = vmatprep.subr.bf16.mxu1 %v17312_v33 }
 0x306   : > { %12470 = vtanh.f32 %v1373_v6 }
 0x30d   : > { %v12465_v0 = vpop.eup %12464 }
 0x30e   : > { %v12467_v7 = vpop.eup %12466 }
 0x30f   : > { %v12469_v8 = vpop.eup %12468 }
 0x310   : > { %v12471_v9 = vpop.eup %12470  ;;  %v1410_v10 = vpack.c.bf16 %v12469_v8, %v12465_v0  ;;  %v1154_v8 = vld [vmem:[%s13645_s5] sm:$0xff] }
 0x311   : > { %v1411_v13 = vpack.c.bf16 %v12471_v9, %v12467_v7 }
 0x313   : > { %1547 = vmatprep.mubr.bf16.mxu0 %v1411_v13  ;;  %v1155_v13 = vld [vmem:[%s13645_s5 + $0x8] sm:$0xff] }
 0x314   : > { %1548 = vmatmul.mubr.bf16.vlgmr.msra.gmra.mrb[4].mxu0 %v1410_v10  ;;  %v1914_v10 = vsub.f32 1.0, %v1154_v8 }
 0x315   : > { %10773 = vmatpush3.bf16.msra.mxu0 %v13334_v32  ;;  %10776 = vmatprep.mubr.msk.bf16.mxu0 %vm13094_vm0, %v17312_v33 }
 0x316   : > { %10774 = vmatprep.subr.bf16.mxu0 %v17312_v33 }
 0x319   : > { %10775 = vmatpush3.bf16.msra.mxu0 %v13341_v34 }
 0x31a   : > { %10780 = vmatprep.subr.bf16.mxu0 %v17312_v33 }
 0x3e7   : > { %v9887_v15 = vpop.f32.mrb[4].mxu0 }
 0x3e8   : > { %v9888_v17 = vpop.f32.mrb[5].mxu0 }
 0x3e9   : > { %v9889_v19 = vadd.f32 %v9888_v17, %v9887_v15  ;;  %v9890_v20 = vpop.f32.mrb[6].mxu0  ;;  %v1915_v15 = vsub.f32 1.0, %v1155_v13  ;;  %v13657_v17 = vld [vmem:[%s17407_s23] sm:$0xff]  }
 0x3ea   : > { %v9891_v21 = vpop.f32.mrb[7].mxu0 }
 0x3eb   : > { %v1550_v22 = vadd.f32 %v9889_v19, %v13620_v16  ;;  %v9892_v23 = vadd.f32 %v9891_v21, %v9890_v20  ;;  %v13664_v21 = vld [vmem:[%s17407_s23 + $0x8] sm:$0xff]  }
 0x3ed   : > { %v9685_v53 = vmul.f32 -1.442695, %v1550_v22  ;;  %v1553_v54 = vadd.f32 %v9892_v23, %v13620_v16 }
 0x3ef   : > { %12472 = vpow2.f32 %v9685_v53  ;;  %v9686_v57 = vmul.f32 -1.442695, %v1553_v54  ;;  %v13675_v54 = vld [vmem:[%s17271_s10] sm:$0xff]  }
 0x3f0   : > { %17408 = vst [vmem:[#allocation18_spill] sm:$0xff] %v13675_v54 }
 0x3f1   : > { %12474 = vpow2.f32 %v9686_v57 }
 0x3f9   : > { %v12473_v58 = vpop.eup %12472 }
 0x3fa   : > { %v1562_v59 = vadd.f32 1.0, %v12473_v58  ;;  %v13690_v58 = vld [vmem:[%s17273_s12] sm:$0xff]  }
 0x3fb   : > { %v12475_v63 = vpop.eup %12474  ;;  %17409 = vst [vmem:[#allocation19_spill] sm:$0xff] %v13690_v58 }
 0x3fc   : > { %12476 = vrcp.f32 %v1562_v59  ;;  %v1563_v4 = vadd.f32 1.0, %v12475_v63  ;;  %v13697_v59 = vld [vmem:[%s17273_s12 + $0x8] sm:$0xff]   ;;  %v13711_v63 = vld [vmem:[%s17273_s12 + $0x18] sm:$0xff]  }
 0x3fd   : > { %17410 = vst [vmem:[#allocation20_spill] sm:$0xff] %v13697_v59  ;;  %17412 = vst [vmem:[#allocation22_spill] sm:$0xff] %v13711_v63 }
 0x3fe   : > { %12478 = vrcp.f32 %v1563_v4  ;;  %v13718_v4 = vld [vmem:[%s17273_s12 + $0x20] sm:$0xff]  }
 0x3ff   : > { %17413 = vst [vmem:[#allocation23_spill] sm:$0xff] %v13718_v4 }
 0x406   : > { %v13631_v5 = vpop.eup %12476 }
 0x407   : > { %v13638_v0 = vmul.f32 0.0, %v13631_v5 }
 0x408   : > { %v13633_v6 = vpop.eup %12478 }
 0x409   : > { %1572 = vrot.lane.b32.xlu1 %v13633_v6, %s17302_s26  ;;  %v13641_v7 = vmul.f32 0.0, %v13633_v6 }
 0x40b   : > { %v1589_v9 = vpack.c.bf16 %v13641_v7, %v13638_v0 }
 0x40d   : > { %1904 = vperm.xlu1 %12392, %v1154_v8   ;;  %1591 = vrot.lane.b32.xlu0 %v1589_v9, %s17302_s26  ;;  %v13725_v8 = vld [vmem:[%s17273_s12 + $0x28] sm:$0xff]   ;;  %v13731_v9 = vld [vmem:[%s17273_s12 + $0x30] sm:$0xff]  }
 0x40e   : > { %17414 = vst [vmem:[#allocation24_spill] sm:$0xff] %v13725_v8  ;;  %17415 = vst [vmem:[#allocation25_spill] sm:$0xff] %v13731_v9 }
 0x411   : > { %1918 = vperm.xlu1 %12392, %v1914_v10   ;;  %1570 = vrot.lane.b32.xlu0 %v13631_v5, %s17302_s26  ;;  %v13738_v10 = vld [vmem:[%s17273_s12 + $0x38] sm:$0xff]   ;;  %s17508_s26 = sld [smem:[#allocation41_spill]] }
 0x412   : > { %17416 = vst [vmem:[#allocation26_spill] sm:$0xff] %v13738_v10 }
 0x415   : > { %1923 = vperm.xlu1 %12392, %v1915_v15   ;;  %1909 = vperm.xlu0 %12393, %v1155_v13  }
 0x417   : > { %s17509_s7 = smov %s17508_s26 }
 0x47b   : > { %v1573_v20 = vpop.permute.xlu1 %1572 }
 0x47c   : > { %v1577_v23 = vmul.f32 %v1573_v20, %v13489_v12 }
 0x47f   : > { %v1592_v19 = vpop.permute.xlu0 %1591 }
 0x480   : > { %10735 = vmatmul.mubr.msk.bf16.vlgmr.msra.gmra.mrb[8].mxu1 %vm1003_vm1, %v1592_v19 }
 0x481   : > { %10739 = vmatpush3.bf16.msra.mxu1 %v13657_v17  ;;  %10742 = vmatprep.mubr.msk.bf16.mxu1 %vm13094_vm0, %v17312_v33 }
 0x482   : > { %10740 = vmatprep.subr.bf16.mxu1 %v17312_v33 }
 0x483   : > { %v1571_v22 = vpop.permute.xlu0 %1570 }
 0x484   : > { %v1576_v53 = vmul.f32 %v1571_v22, %v13487_v11 }
 0x485   : > { %10741 = vmatpush3.bf16.msra.mxu1 %v13664_v21 }
 0x486   : > { %v1582_v57 = vpack.c.bf16 %v1577_v23, %v1576_v53  ;;  %10746 = vmatprep.subr.bf16.mxu1 %v17312_v33 }
 0x488   : > { %10743 = vmatmul.mubr.msk.bf16.vlgmr.msra.gmra.mrb[12].mxu1 %vm1003_vm1, %v1582_v57 }
 0x489   : > { %10747 = vmatpush3.bf16.msra.mxu1 %v13675_v54  ;;  %10748 = vmatprep.mubr.msk.bf16.mxu1 %vm13094_vm0, %v17312_v33 }
 0x48a   : > { %10752 = vmatprep.subr.bf16.mxu1 %v17312_v33 }
 0x490   : > { %10749 = vmatmul.mubr.msk.bf16.vlgmr.msra.gmra.mrb[16].mxu1 %vm1307_vm2, %v13511_v18  ;;  %v13704_v18 = vld [vmem:[%s17273_s12 + $0x10] sm:$0xff]  }
 0x491   : > { %10768 = vmatprep.mubr.msk.bf16.mxu1 %vm13094_vm0, %v17312_v33  ;;  %10753 = vmatpush3.bf16.msra.mxu1 %v13690_v58  ;;  %17411 = vst [vmem:[#allocation21_spill] sm:$0xff] %v13704_v18 }
 0x492   : > { %10754 = vmatprep.subr.bf16.mxu1 %v17312_v33 }
 0x494   : > { %v13780_v54 = vpop.permute.xlu0 %1909 }
 0x495   : > { %10755 = vmatpush3.bf16.msra.mxu1 %v13697_v59 }
 0x496   : > { %10756 = vmatprep.subr.bf16.mxu1 %v17312_v33 }
 0x499   : > { %10757 = vmatpush3.bf16.msra.mxu1 %v13704_v18 }
 0x49a   : > { %10758 = vmatprep.subr.bf16.mxu1 %v17312_v33 }
 0x49d   : > { %10759 = vmatpush3.bf16.msra.mxu1 %v13711_v63 }
 0x49e   : > { %10760 = vmatprep.subr.bf16.mxu1 %v17312_v33 }
 0x4a1   : > { %10761 = vmatpush3.bf16.msra.mxu1 %v13718_v4  ;;  %v13746_v4 = vld [vmem:[%s17272_s11] ss:$0 sm:$0xff] }
 0x4a2   : > { %10762 = vmatprep.subr.bf16.mxu1 %v17312_v33  ;;  %17417 = vst [vmem:[#allocation27_spill] sm:$0xff] %v13746_v4 }
 0x4a5   : > { %10763 = vmatpush3.bf16.msra.mxu1 %v13725_v8 }
 0x4a6   : > { %10764 = vmatprep.subr.bf16.mxu1 %v17312_v33 }
 0x4a9   : > { %10765 = vmatpush3.bf16.msra.mxu1 %v13731_v9 }
 0x4aa   : > { %10766 = vmatprep.subr.bf16.mxu1 %v17312_v33 }
 0x4ad   : > { %10767 = vmatpush3.bf16.msra.mxu1 %v13738_v10 }
 0x4ae   : > { %10800 = vmatprep.subr.bf16.mxu1 %v17312_v33 }
 0x553   : > { %v1642_v13 = vpop.f32.mrb[8].mxu1 }
 0x554   : > { %v10736_v15 = vpop.f32.mrb[9].mxu1 }
 0x555   : > { %v1645_v19 = vpop.f32.mrb[10].mxu1 }
 0x556   : > { %v10737_v20 = vpop.f32.mrb[11].mxu1 }
 0x55b   : > { %v1698_v22 = vpop.f32.mrb[12].mxu1 }
 0x55c   : > { %v1699_v23 = vadd.f32 %v1698_v22, %v1642_v13  ;;  %v10744_v53 = vpop.f32.mrb[13].mxu1  ;;  %v17418_v22 = vmov 0.0  }
 0x55d   : > { %v1701_v57 = vpop.f32.mrb[14].mxu1 }
 0x55e   : > { %v1702_v35 = vadd.f32 %v1701_v57, %v1645_v19  ;;  %v10745_v9 = vpop.f32.mrb[15].mxu1 }
 0x563   : > { %v1747_v8 = vpop.f32.mrb[16].mxu1 }
 0x564   : > { %v1754_v63 = vadd.f32 %v1747_v8, %v1699_v23  ;;  %v10750_v10 = vpop.f32.mrb[17].mxu1  ;;  %v17319_v8 = vsub.f32 1.0, %v13631_v5  ;;  %v1886_v23 = vmul.f32 %v13631_v5, %v13487_v11 }
 0x565   : > { %v1750_v18 = vpop.f32.mrb[18].mxu1 }
 0x566   : > { %v1763_v33 = vadd.f32 %v13746_v4, %v1754_v63  ;;  %v1755_v15 = vadd.f32 %v1750_v18, %v1702_v35  ;;  %v10751_v59 = vpop.f32.mrb[19].mxu1  ;;  %v13756_v35 = vpop.permute.xlu1 %1904 }
 0x568   : > { %v1764_v20 = vadd.f32 %v13746_v4, %v1755_v15  ;;  %12480 = vtanh.f32 %v1763_v33  ;;  %v13761_v33 = vld [vmem:[%s17274_s13] ss:$0 sm:$0xff]  ;;  %v1887_v4 = vmul.f32 %v13633_v6, %v13489_v12 }
 0x56a   : > { %12482 = vtanh.f32 %v1764_v20  ;;  %v13763_v59 = vpop.permute.xlu1 %1918  ;;  %v17320_v20 = vsub.f32 1.0, %v13633_v6 }
 0x56e   : > { %v13778_v58 = vpop.permute.xlu1 %1923 }
 0x572   : > { %v12481_v13 = vpop.eup %12480 }
 0x574   : > { %v12483_v19 = vpop.eup %12482 }
 0x575   : > { %v1783_v9 = vpack.c.bf16 %v12483_v19, %v12481_v13 }
 0x577   : > { %10769 = vmatmul.mubr.bf16.vlgmr.msra.gmra.mrb[20].mxu1 %v1783_v9 }
 0x578   : > { %10801 = vmatpush3.bf16.msra.mxu1 %v13334_v32  ;;  %10804 = vmatprep.mubr.msk.bf16.mxu1 %vm13094_vm0, %v17418_v22 }
 0x579   : > { %10802 = vmatprep.subr.bf16.mxu1 %v17418_v22 }
 0x57c   : > { %10803 = vmatpush3.bf16.msra.mxu1 %v13341_v34 }
 0x57d   : > { %10808 = vmatprep.subr.bf16.mxu1 %v17418_v22 }
 0x64a   : > { %v1873_v18 = vpop.f32.mrb[20].mxu1 }
 0x64b   : > { %v1874_v63 = vadd.f32 %v13761_v33, %v1873_v18  ;;  %v10770_v10 = vpop.f32.mrb[21].mxu1 }
 0x64c   : > { %v1876_v53 = vpop.f32.mrb[22].mxu1 }
 0x64d   : > { %v1884_v57 = vmul.f32 %v17319_v8, %v1874_v63  ;;  %v1877_v15 = vadd.f32 %v13761_v33, %v1876_v53  ;;  %v10771_v13 = vpop.f32.mrb[23].mxu1  ;;  %v1880_v19 = vand.u32 2147483647, %v1874_v63  ;;  %v1926_v63 = vmul.f32 %v13763_v59, %v13487_v11 }
 0x64f   : > { %v1888_v9 = vadd.f32 %v1886_v23, %v1884_v57  ;;  %v1885_v18 = vmul.f32 %v17320_v20, %v1877_v15  ;;  %1892 = vrot.lane.b32.xlu0 %v1880_v19, %s17419_s4  ;;  %v1881_v10 = vand.u32 2147483647, %v1877_v15  ;;  %v1927_v23 = vmul.f32 %v13778_v58, %v13489_v12 }
 0x651   : > { %v1912_v53 = vmul.f32 %v13756_v35, %v1888_v9  ;;  %1894 = vrot.lane.b32.xlu1 %v1881_v10, %s17419_s4  ;;  %v1889_v13 = vadd.f32 %v1887_v4, %v1885_v18 }
 0x653   : > { %v1913_v57 = vmul.f32 %v13780_v54, %v1889_v13  ;;  %v1928_v15 = vadd.f32 %v1926_v63, %v1912_v53  ;;  %v1938_v63 = vmul.f32 -0.023809513, %v13480_v1 }
 0x655   : > { %v1929_v19 = vadd.f32 %v1927_v23, %v1913_v57 }
 0x657   : > { %v1939_v8 = vpack.c.bf16 %v1929_v19, %v1928_v15 }
 0x659   : > { %10777 = vmatmul.mubr.msk.bf16.vlgmr.msra.gmra.mrb[8].mxu0 %vm1003_vm1, %v1939_v8 }
 0x65a   : > { %10781 = vmatpush3.bf16.msra.mxu0 %v13353_v36  ;;  %10796 = vmatprep.mubr.msk.bf16.mxu0 %vm13094_vm0, %v17418_v22 }
 0x65b   : > { %10782 = vmatprep.subr.bf16.mxu0 %v17418_v22 }
 0x65e   : > { %10783 = vmatpush3.bf16.msra.mxu0 %v13359_v37 }
 0x65f   : > { %10784 = vmatprep.subr.bf16.mxu0 %v17418_v22 }
 0x662   : > { %10785 = vmatpush3.bf16.msra.mxu0 %v13369_v38 }
 0x663   : > { %10786 = vmatprep.subr.bf16.mxu0 %v17418_v22 }
 0x666   : > { %10787 = vmatpush3.bf16.msra.mxu0 %v13376_v39 }
 0x667   : > { %10788 = vmatprep.subr.bf16.mxu0 %v17418_v22 }
 0x66a   : > { %10789 = vmatpush3.bf16.msra.mxu0 %v13385_v40 }
 0x66b   : > { %10790 = vmatprep.subr.bf16.mxu0 %v17418_v22 }
 0x66e   : > { %10791 = vmatpush3.bf16.msra.mxu0 %v13392_v41 }
 0x66f   : > { %10792 = vmatprep.subr.bf16.mxu0 %v17418_v22 }
 0x672   : > { %10793 = vmatpush3.bf16.msra.mxu0 %v13398_v42 }
 0x673   : > { %10794 = vmatprep.subr.bf16.mxu0 %v17418_v22 }
 0x676   : > { %10795 = vmatpush3.bf16.msra.mxu0 %v13405_v43 }
 0x677   : > { %10828 = vmatprep.subr.bf16.mxu0 %v17418_v22 }
 0x72c   : > { %v1977_v11 = vpop.f32.mrb[8].mxu0 }
 0x72d   : > { %v1978_v12 = vadd.f32 %v13451_v50, %v1977_v11  ;;  %v10778_v4 = vpop.f32.mrb[9].mxu0 }
 0x72e   : > { %v1980_v8 = vpop.f32.mrb[10].mxu0  ;;  %v13818_v4 = vrot.slane %v1938_v63, %v13484_v3 }
 0x72f   : > { %v1981_v9 = vadd.f32 %v13451_v50, %v1980_v8  ;;  %v10779_v18 = vpop.f32.mrb[11].mxu0  ;;  %12484 = vtanh.f32 %v1978_v12 }
 0x731   : > { %12486 = vtanh.f32 %v1981_v9 }
 0x739   : > { %v12485_v10 = vpop.eup %12484 }
 0x73b   : > { %v12487_v53 = vpop.eup %12486 }
 0x73c   : > { %v1986_v13 = vpack.c.bf16 %v12487_v53, %v12485_v10 }
 0x73e   : > { %10797 = vmatmul.mubr.bf16.vlgmr.msra.gmra.mrb[12].mxu0 %v1986_v13 }
 0x73f   : > { %10829 = vmatpush3.bf16.msra.mxu0 %v13334_v32  ;;  %10832 = vmatprep.mubr.msk.bf16.mxu0 %vm13094_vm0, %v17418_v22 }
 0x740   : > { %10830 = vmatprep.subr.bf16.mxu0 %v17418_v22 }
 0x743   : > { %10831 = vmatpush3.bf16.msra.mxu0 %v13341_v34 }
 0x744   : > { %10836 = vmatprep.subr.bf16.mxu0 %v17418_v22 }
 0x811   : > { %v2021_v23 = vpop.f32.mrb[12].mxu0 }
 0x812   : > { %v2028_v57 = vmul.f32 -0.023809513, %v2021_v23  ;;  %v10798_v11 = vpop.f32.mrb[13].mxu0 }
 0x813   : > { %v2024_v12 = vpop.f32.mrb[14].mxu0 }
 0x814   : > { %v2030_v8 = vadd.f32 %v2028_v57, %v1928_v15  ;;  %v2029_v9 = vmul.f32 -0.023809513, %v2024_v12  ;;  %v10799_v18 = vpop.f32.mrb[15].mxu0 }
 0x816   : > { %v2031_v10 = vadd.f32 %v2029_v9, %v1929_v19  ;;  %v2038_v53 = vadd.f32 %v13818_v4, %v2030_v8 }
 0x818   : > { %v2039_v13 = vadd.f32 %v13818_v4, %v2031_v10 }
 0x81a   : > { %v2040_v20 = vpack.c.bf16 %v2039_v13, %v2038_v53 }
 0x81c   : > { %10805 = vmatmul.mubr.msk.bf16.vlgmr.msra.gmra.mrb[24].mxu1 %vm1003_vm1, %v2040_v20 }
 0x81d   : > { %10809 = vmatpush3.bf16.msra.mxu1 %v13353_v36  ;;  %10824 = vmatprep.mubr.msk.bf16.mxu1 %vm13094_vm0, %v17418_v22 }
 0x81e   : > { %10810 = vmatprep.subr.bf16.mxu1 %v17418_v22 }
 0x821   : > { %10811 = vmatpush3.bf16.msra.mxu1 %v13359_v37 }
 0x822   : > { %10812 = vmatprep.subr.bf16.mxu1 %v17418_v22 }
 0x825   : > { %10813 = vmatpush3.bf16.msra.mxu1 %v13369_v38 }
 0x826   : > { %10814 = vmatprep.subr.bf16.mxu1 %v17418_v22 }
 0x829   : > { %10815 = vmatpush3.bf16.msra.mxu1 %v13376_v39 }
 0x82a   : > { %10816 = vmatprep.subr.bf16.mxu1 %v17418_v22 }
 0x82d   : > { %10817 = vmatpush3.bf16.msra.mxu1 %v13385_v40 }
 0x82e   : > { %10818 = vmatprep.subr.bf16.mxu1 %v17418_v22 }
 0x831   : > { %10819 = vmatpush3.bf16.msra.mxu1 %v13392_v41 }
 0x832   : > { %10820 = vmatprep.subr.bf16.mxu1 %v17418_v22 }
 0x835   : > { %10821 = vmatpush3.bf16.msra.mxu1 %v13398_v42 }
 0x836   : > { %10822 = vmatprep.subr.bf16.mxu1 %v17418_v22 }
 0x839   : > { %10823 = vmatpush3.bf16.msra.mxu1 %v13405_v43 }
 0x83a   : > { %10856 = vmatprep.subr.bf16.mxu1 %v17418_v22 }
 0x8ef   : > { %v2078_v1 = vpop.f32.mrb[24].mxu1 }
 0x8f0   : > { %v2079_v20 = vadd.f32 %v13451_v50, %v2078_v1  ;;  %v10806_v15 = vpop.f32.mrb[25].mxu1 }
 0x8f1   : > { %v2081_v19 = vpop.f32.mrb[26].mxu1 }
 0x8f2   : > { %v2082_v63 = vadd.f32 %v13451_v50, %v2081_v19  ;;  %v10807_v23 = vpop.f32.mrb[27].mxu1  ;;  %12488 = vtanh.f32 %v2079_v20 }
 0x8f4   : > { %12490 = vtanh.f32 %v2082_v63 }
 0x8fc   : > { %v12489_v57 = vpop.eup %12488 }
 0x8fe   : > { %v12491_v11 = vpop.eup %12490 }
 0x8ff   : > { %v2087_v12 = vpack.c.bf16 %v12491_v11, %v12489_v57 }
 0x901   : > { %10825 = vmatmul.mubr.bf16.vlgmr.msra.gmra.mrb[28].mxu1 %v2087_v12 }
 0x902   : > { %10857 = vmatpush3.bf16.msra.mxu1 %v13334_v32  ;;  %10860 = vmatprep.mubr.msk.bf16.mxu1 %vm13094_vm0, %v17418_v22 }
 0x903   : > { %10858 = vmatprep.subr.bf16.mxu1 %v17418_v22 }
 0x906   : > { %10859 = vmatpush3.bf16.msra.mxu1 %v13341_v34 }
 0x907   : > { %10864 = vmatprep.subr.bf16.mxu1 %v17418_v22 }
 0x9d4   : > { %v2122_v8 = vpop.f32.mrb[28].mxu1 }
 0x9d5   : > { %v2129_v9 = vmul.f32 -0.023809513, %v2122_v8  ;;  %v10826_v18 = vpop.f32.mrb[29].mxu1  ;;  %v13875_v8 = vld [vmem:[%s17280_s19] sm:$0xff]  }
 0x9d6   : > { %v2125_v10 = vpop.f32.mrb[30].mxu1 }
 0x9d7   : > { %v2131_v1 = vadd.f32 %v2129_v9, %v2038_v53  ;;  %v2130_v20 = vmul.f32 -0.023809513, %v2125_v10  ;;  %v10827_v15 = vpop.f32.mrb[31].mxu1  ;;  %v13884_v9 = vld [vmem:[%s17280_s19 + $0x8] sm:$0xff]  }
 0x9d9   : > { %v2132_v19 = vadd.f32 %v2130_v20, %v2039_v13  ;;  %v2133_v63 = vadd.f32 %v2131_v1, %v13818_v4 }
 0x9db   : > { %v2134_v32 = vadd.f32 %v2132_v19, %v13818_v4 }
 0x9dd   : > { %v2135_v23 = vpack.c.bf16 %v2134_v32, %v2133_v63 }
 0x9df   : > { %10833 = vmatmul.mubr.msk.bf16.vlgmr.msra.gmra.mrb[16].mxu0 %vm1003_vm1, %v2135_v23 }
 0x9e0   : > { %10837 = vmatpush3.bf16.msra.mxu0 %v13353_v36  ;;  %10852 = vmatprep.mubr.msk.bf16.mxu0 %vm13094_vm0, %v17418_v22 }
 0x9e1   : > { %10838 = vmatprep.subr.bf16.mxu0 %v17418_v22 }
 0x9e4   : > { %10839 = vmatpush3.bf16.msra.mxu0 %v13359_v37 }
 0x9e5   : > { %10840 = vmatprep.subr.bf16.mxu0 %v17418_v22 }
 0x9e8   : > { %10841 = vmatpush3.bf16.msra.mxu0 %v13369_v38 }
 0x9e9   : > { %10842 = vmatprep.subr.bf16.mxu0 %v17418_v22 }
 0x9ec   : > { %10843 = vmatpush3.bf16.msra.mxu0 %v13376_v39 }
 0x9ed   : > { %10844 = vmatprep.subr.bf16.mxu0 %v17418_v22 }
 0x9f0   : > { %10845 = vmatpush3.bf16.msra.mxu0 %v13385_v40 }
 0x9f1   : > { %10846 = vmatprep.subr.bf16.mxu0 %v17418_v22 }
 0x9f4   : > { %10847 = vmatpush3.bf16.msra.mxu0 %v13392_v41 }
 0x9f5   : > { %10848 = vmatprep.subr.bf16.mxu0 %v17418_v22 }
 0x9f8   : > { %10849 = vmatpush3.bf16.msra.mxu0 %v13398_v42 }
 0x9f9   : > { %10850 = vmatprep.subr.bf16.mxu0 %v17418_v22 }
 0x9fc   : > { %10851 = vmatpush3.bf16.msra.mxu0 %v13405_v43 }
 0x9fd   : > { %10884 = vmatprep.subr.bf16.mxu0 %v17418_v22 }
 0xab2   : > { %v2173_v34 = vpop.f32.mrb[16].mxu0 }
 0xab3   : > { %v2174_v36 = vadd.f32 %v13451_v50, %v2173_v34  ;;  %v10834_v37 = vpop.f32.mrb[17].mxu0 }
 0xab4   : > { %v2176_v38 = vpop.f32.mrb[18].mxu0 }
 0xab5   : > { %v2177_v53 = vadd.f32 %v13451_v50, %v2176_v38  ;;  %v10835_v13 = vpop.f32.mrb[19].mxu0  ;;  %12492 = vtanh.f32 %v2174_v36 }
 0xab7   : > { %12494 = vtanh.f32 %v2177_v53  ;;  %v13894_v53 = vld [vmem:[%s17282_s21] sm:$0xff]  }
 0xabf   : > { %v12493_v57 = vpop.eup %12492 }
 0xac1   : > { %v12495_v11 = vpop.eup %12494 }
 0xac2   : > { %v2182_v12 = vpack.c.bf16 %v12495_v11, %v12493_v57 }
 0xac4   : > { %10853 = vmatmul.mubr.bf16.vlgmr.msra.gmra.mrb[20].mxu0 %v2182_v12 }
 0xac5   : > { %10885 = vmatpush3.bf16.msra.mxu0 %v13875_v8  ;;  %10888 = vmatprep.mubr.msk.bf16.mxu0 %vm13094_vm0, %v17418_v22 }
 0xac6   : > { %10886 = vmatprep.subr.bf16.mxu0 %v17418_v22 }
 0xac9   : > { %10887 = vmatpush3.bf16.msra.mxu0 %v13884_v9 }
 0xaca   : > { %10892 = vmatprep.subr.bf16.mxu0 %v17418_v22 }
 0xb97   : > { %v2217_v18 = vpop.f32.mrb[20].mxu0 }
 0xb98   : > { %v2224_v10 = vmul.f32 -0.023809513, %v2217_v18  ;;  %v10854_v1 = vpop.f32.mrb[21].mxu0 }
 0xb99   : > { %v2220_v20 = vpop.f32.mrb[22].mxu0 }
 0xb9a   : > { %v2226_v15 = vadd.f32 %v2224_v10, %v2133_v63  ;;  %v2225_v19 = vmul.f32 -0.023809513, %v2220_v20  ;;  %v10855_v23 = vpop.f32.mrb[23].mxu0  ;;  %v13903_v63 = vld [vmem:[%s17282_s21 + $0x8] sm:$0xff]  }
 0xb9c   : > { %v2227_v34 = vadd.f32 %v2225_v19, %v2134_v32  ;;  %v2228_v36 = vadd.f32 %v2226_v15, %v13818_v4  ;;  %v13910_v32 = vld [vmem:[%s17282_s21 + $0x10] sm:$0xff]  }
 0xb9e   : > { %v2229_v37 = vadd.f32 %v2227_v34, %v13818_v4 }
 0xba0   : > { %v2230_v38 = vpack.c.bf16 %v2229_v37, %v2228_v36 }
 0xba2   : > { %10861 = vmatmul.mubr.msk.bf16.vlgmr.msra.gmra.mrb[32].mxu1 %vm1003_vm1, %v2230_v38 }
 0xba3   : > { %10865 = vmatpush3.bf16.msra.mxu1 %v13894_v53  ;;  %10880 = vmatprep.mubr.msk.bf16.mxu1 %vm13094_vm0, %v17418_v22 }
 0xba4   : > { %10866 = vmatprep.subr.bf16.mxu1 %v17418_v22 }
 0xba7   : > { %10867 = vmatpush3.bf16.msra.mxu1 %v13903_v63 }
 0xba8   : > { %10868 = vmatprep.subr.bf16.mxu1 %v17418_v22 }
 0xbab   : > { %10869 = vmatpush3.bf16.msra.mxu1 %v13910_v32 }
 0xbac   : > { %10870 = vmatprep.subr.bf16.mxu1 %v17418_v22 }
 0xbaf   : > { %10871 = vmatpush3.bf16.msra.mxu1 %v13376_v39 }
 0xbb0   : > { %10872 = vmatprep.subr.bf16.mxu1 %v17418_v22 }
 0xbb3   : > { %10873 = vmatpush3.bf16.msra.mxu1 %v13385_v40 }
 0xbb4   : > { %10874 = vmatprep.subr.bf16.mxu1 %v17418_v22 }
 0xbb7   : > { %10875 = vmatpush3.bf16.msra.mxu1 %v13392_v41 }
 0xbb8   : > { %10876 = vmatprep.subr.bf16.mxu1 %v17418_v22 }
 0xbbb   : > { %10877 = vmatpush3.bf16.msra.mxu1 %v13398_v42 }
 0xbbc   : > { %10878 = vmatprep.subr.bf16.mxu1 %v17418_v22 }
 0xbbf   : > { %10879 = vmatpush3.bf16.msra.mxu1 %v13405_v43 }
 0xbc0   : > { %10912 = vmatprep.subr.bf16.mxu1 %v17418_v22 }
 0xc75   : > { %v2268_v13 = vpop.f32.mrb[32].mxu1 }
 0xc76   : > { %v2269_v39 = vadd.f32 %v13451_v50, %v2268_v13  ;;  %v10862_v57 = vpop.f32.mrb[33].mxu1 }
 0xc77   : > { %v2271_v11 = vpop.f32.mrb[34].mxu1 }
 0xc78   : > { %v2272_v12 = vadd.f32 %v13451_v50, %v2271_v11  ;;  %v10863_v18 = vpop.f32.mrb[35].mxu1  ;;  %12496 = vtanh.f32 %v2269_v39 }
 0xc7a   : > { %12498 = vtanh.f32 %v2272_v12 }
 0xc82   : > { %v12497_v10 = vpop.eup %12496 }
 0xc84   : > { %v12499_v1 = vpop.eup %12498 }
 0xc85   : > { %v2277_v20 = vpack.c.bf16 %v12499_v1, %v12497_v10  ;;  %v1895_v10 = vpop.permute.xlu1 %1894 }
 0xc87   : > { %10881 = vmatmul.mubr.bf16.vlgmr.msra.gmra.mrb[36].mxu1 %v2277_v20 }
 0xc88   : > { %10913 = vmatpush3.bf16.msra.mxu1 %v13875_v8  ;;  %10916 = vmatprep.mubr.msk.bf16.mxu1 %vm13094_vm0, %v17418_v22 }
 0xc89   : > { %10914 = vmatprep.subr.bf16.mxu1 %v17418_v22 }
 0xc8c   : > { %10915 = vmatpush3.bf16.msra.mxu1 %v13884_v9 }
 0xc8d   : > { %10920 = vmatprep.subr.bf16.mxu1 %v17418_v22 }
 0xd5a   : > { %v2312_v15 = vpop.f32.mrb[36].mxu1 }
 0xd5b   : > { %v2319_v19 = vmul.f32 -0.023809513, %v2312_v15  ;;  %v10882_v23 = vpop.f32.mrb[37].mxu1  ;;  %v1893_v15 = vpop.permute.xlu0 %1892 }
 0xd5c   : > { %v2315_v34 = vpop.f32.mrb[38].mxu1  ;;  %v17420_v23 = vsub.f32 1.0, %v13633_v6  ;;  %v1932_v6 = vmul.f32 0.0, %v13763_v59 }
 0xd5d   : > { %v2321_v38 = vadd.f32 %v2319_v19, %v2228_v36  ;;  %v2320_v13 = vmul.f32 -0.023809513, %v2315_v34  ;;  %v10883_v39 = vpop.f32.mrb[39].mxu1  ;;  %v13952_v36 = vld [vmem:[%s17282_s21 + $0x18] sm:$0xff]  }
 0xd5e   : > { %v1899_v34 = vmul.f32 %v1895_v10, %v17420_v23 }
 0xd5f   : > { %v2322_v57 = vadd.f32 %v2320_v13, %v2229_v37  ;;  %v13933_v11 = vadd.f32 %v2321_v38, %v13818_v4 }
 0xd61   : > { %v13936_v12 = vadd.f32 %v2322_v57, %v13818_v4  ;;  %v1933_v57 = vmul.f32 0.0, %v13778_v58 }
 0xd63   : > { %v2325_v18 = vpack.c.bf16 %v13936_v12, %v13933_v11 }
 0xd65   : > { %10889 = vmatmul.mubr.msk.bf16.vlgmr.msra.gmra.mrb[24].mxu0 %vm1003_vm1, %v2325_v18 }
 0xd66   : > { %10893 = vmatpush3.bf16.msra.mxu0 %v13894_v53  ;;  %10908 = vmatprep.mubr.msk.bf16.mxu0 %vm13094_vm0, %v17418_v22 }
 0xd67   : > { %10894 = vmatprep.subr.bf16.mxu0 %v17418_v22 }
 0xd6a   : > { %10895 = vmatpush3.bf16.msra.mxu0 %v13903_v63 }
 0xd6b   : > { %10896 = vmatprep.subr.bf16.mxu0 %v17418_v22 }
 0xd6e   : > { %10897 = vmatpush3.bf16.msra.mxu0 %v13910_v32 }
 0xd6f   : > { %10898 = vmatprep.subr.bf16.mxu0 %v17418_v22 }
 0xd72   : > { %10899 = vmatpush3.bf16.msra.mxu0 %v13952_v36 }
 0xd73   : > { %10900 = vmatprep.subr.bf16.mxu0 %v17418_v22 }
 0xd76   : > { %10901 = vmatpush3.bf16.msra.mxu0 %v13385_v40 }
 0xd77   : > { %10902 = vmatprep.subr.bf16.mxu0 %v17418_v22 }
 0xd7a   : > { %10903 = vmatpush3.bf16.msra.mxu0 %v13392_v41 }
 0xd7b   : > { %10904 = vmatprep.subr.bf16.mxu0 %v17418_v22 }
 0xd7e   : > { %10905 = vmatpush3.bf16.msra.mxu0 %v13398_v42  ;;  %v17421_v42 = vsub.f32 1.0, %v13631_v5  ;;  %v17422_v5 = vmov 0  }
 0xd7f   : > { %10906 = vmatprep.subr.bf16.mxu0 %v17418_v22 }
 0xd82   : > { %10907 = vmatpush3.bf16.msra.mxu0 %v13405_v43  ;;  %v1898_v43 = vmul.f32 %v1893_v15, %v17421_v42 }
 0xd83   : > { %2526 = vmatprep.subr.bf16.mxu0 %v13413_v44  ;;  %v1901_v44 = vadd.f32 %v1899_v34, %v13641_v7 }
 0xd84   : > { %v1900_v38 = vadd.f32 %v1898_v43, %v13638_v0 }
 0xd85   : > { %v1931_v13 = vmul.f32 %v13780_v54, %v1901_v44 }
 0xe38   : > { %v2363_v37 = vpop.f32.mrb[24].mxu0 }
 0xe39   : > { %v2364_v1 = vadd.f32 %v13451_v50, %v2363_v37  ;;  %v10890_v20 = vpop.f32.mrb[25].mxu0  ;;  %v1935_v37 = vadd.f32 %v1933_v57, %v1931_v13 }
 0xe3a   : > { %v2366_v40 = vpop.f32.mrb[26].mxu0 }
 0xe3b   : > { %v2367_v19 = vadd.f32 %v13451_v50, %v2366_v40  ;;  %v10891_v41 = vpop.f32.mrb[27].mxu0  ;;  %12500 = vtanh.f32 %v2364_v1  ;;  %v1930_v50 = vmul.f32 %v13756_v35, %v1900_v38  ;;  %v13978_v7 = vand.u32 2147483647, %v1935_v37 }
 0xe3d   : > { %12502 = vtanh.f32 %v2367_v19  ;;  %v1934_v1 = vadd.f32 %v1932_v6, %v1930_v50  ;;  %v14039_v19 = vld [vmem:[%s17281_s20] ss:$0 sm:$0xff] }
 0xe3f   : > { %v13981_v0 = vand.u32 2147483647, %v1934_v1 }
 0xe41   : > { %v2522_v54 = vpack.c.bf16 %v13978_v7, %v13981_v0 }
 0xe45   : > { %v12501_v39 = vpop.eup %12500 }
 0xe47   : > { %v12503_v18 = vpop.eup %12502 }
 0xe48   : > { %v2372_v10 = vpack.c.bf16 %v12503_v18, %v12501_v39 }
 0xe4a   : > { %10909 = vmatmul.mubr.bf16.vlgmr.msra.gmra.mrb[28].mxu0 %v2372_v10 }
 0xe4b   : > { %2527 = vmatpush1.bf16.msra.mxu0 %v13418_v45  ;;  %2558 = vmatprep.mubr.bf16.mxu0 %v17422_v5 }
 0xe4c   : > { %2528 = vmatprep.subr.bf16.mxu0 %v13423_v46 }
 0xe4f   : > { %2529 = vmatpush1.bf16.msra.mxu0 %v13430_v47 }
 0xe50   : > { %2572 = vmatprep.subr.bf16.mxu0 %v13436_v48 }
 0xe52   : > { %9715 = vmatmul.mubr.msk.bf16.vlgmr.msra.gmra.mrb[32].mxu0 %vm1003_vm1, %v2522_v54 }
 0xe53   : > { %2573 = vmatpush1.bf16.msra.mxu0 %v13442_v49  ;;  %2604 = vmatprep.mubr.bf16.mxu0 %v17422_v5 }
 0xe54   : > { %2574 = vmatprep.subr.bf16.mxu0 %v13460_v60  ;;  %v14011_v60 = vld [vmem:[%s17282_s21 + $0x20] sm:$0xff]  }
 0xe57   : > { %2575 = vmatpush1.bf16.msra.mxu0 %v13465_v61  ;;  %v14018_v61 = vld [vmem:[%s17282_s21 + $0x28] sm:$0xff]  }
 0xe58   : > { %2619 = vmatprep.subr.bf16.mxu0 %v13470_v62  ;;  %v14025_v62 = vld [vmem:[%s17282_s21 + $0x30] sm:$0xff]  }
 0xf1d   : > { %v2407_v45 = vpop.f32.mrb[28].mxu0 }
 0xf1e   : > { %v2414_v46 = vmul.f32 -0.023809513, %v2407_v45  ;;  %v10910_v47 = vpop.f32.mrb[29].mxu0  ;;  %v14061_v45 = vld [vmem:[%s17400_s1] ss:$8 sps:$4 sm:$0xff]  }
 0xf1f   : > { %v2410_v58 = vpop.f32.mrb[30].mxu0  ;;  %v9712_v47 = vld [vmem:[%s13507_s27 + $0x18] sm:$0xff] }
 0xf20   : > { %v2416_v35 = vadd.f32 %v2414_v46, %v13933_v11  ;;  %v2415_v59 = vmul.f32 -0.023809513, %v2410_v58  ;;  %v10911_v48 = vpop.f32.mrb[31].mxu0  ;;  %v14032_v11 = vld [vmem:[%s17282_s21 + $0x38] sm:$0xff]   ;;  %v14068_v46 = vld [vmem:[%s17402_s0 + $0x40] sm:$0xff]  }
 0xf21   : > { %v14092_v48 = vld [vmem:[%s17402_s0 + $0x8] sm:$0xff]  }
 0xf22   : > { %v2417_v20 = vadd.f32 %v2415_v59, %v13936_v12  ;;  %v2418_v49 = vadd.f32 %v2416_v35, %v13818_v4  ;;  %v14080_v35 = vld [vmem:[%s17402_s0] sm:$0xff]   ;;  %v14086_v59 = vld [vmem:[%s17402_s0 + $0x48] sm:$0xff]  }
 0xf24   : > { %v2419_v40 = vadd.f32 %v2417_v20, %v13818_v4  ;;  %v14098_v20 = vld [vmem:[%s17402_s0 + $0x50] sm:$0xff]  }
 0xf26   : > { %v2420_v15 = vpack.c.bf16 %v2419_v40, %v2418_v49 }
 0xf28   : > { %10917 = vmatmul.mubr.msk.bf16.vlgmr.msra.gmra.mrb[40].mxu1 %vm1003_vm1, %v2420_v15 }
 0xf29   : > { %10921 = vmatpush3.bf16.msra.mxu1 %v13894_v53  ;;  %10936 = vmatprep.mubr.msk.bf16.mxu1 %vm13094_vm0, %v17418_v22 }
 0xf2a   : > { %10922 = vmatprep.subr.bf16.mxu1 %v17418_v22 }
 0xf2d   : > { %10923 = vmatpush3.bf16.msra.mxu1 %v13903_v63 }
 0xf2e   : > { %10924 = vmatprep.subr.bf16.mxu1 %v17418_v22 }
 0xf31   : > { %10925 = vmatpush3.bf16.msra.mxu1 %v13910_v32 }
 0xf32   : > { %10926 = vmatprep.subr.bf16.mxu1 %v17418_v22 }
 0xf35   : > { %10927 = vmatpush3.bf16.msra.mxu1 %v13952_v36 }
 0xf36   : > { %10928 = vmatprep.subr.bf16.mxu1 %v17418_v22 }
 0xf39   : > { %10929 = vmatpush3.bf16.msra.mxu1 %v14011_v60 }
 0xf3a   : > { %10930 = vmatprep.subr.bf16.mxu1 %v17418_v22 }
 0xf3d   : > { %10931 = vmatpush3.bf16.msra.mxu1 %v14018_v61 }
 0xf3e   : > { %10932 = vmatprep.subr.bf16.mxu1 %v17418_v22 }
 0xf41   : > { %10933 = vmatpush3.bf16.msra.mxu1 %v14025_v62 }
 0xf42   : > { %10934 = vmatprep.subr.bf16.mxu1 %v17418_v22 }
 0xf45   : > { %10935 = vmatpush3.bf16.msra.mxu1 %v14032_v11 }
 0xf46   : > { %10940 = vmatprep.subr.bf16.mxu1 %v17418_v22 }
 0xffb   : > { %v2458_v12 = vpop.f32.mrb[40].mxu1 }
 0xffc   : > { %v2459_v41 = vadd.f32 %v14039_v19, %v2458_v12  ;;  %v10918_v23 = vpop.f32.mrb[41].mxu1 }
 0xffd   : > { %v2461_v34 = vpop.f32.mrb[42].mxu1 }
 0xffe   : > { %v2462_v42 = vadd.f32 %v14039_v19, %v2461_v34  ;;  %v10919_v43 = vpop.f32.mrb[43].mxu1  ;;  %12504 = vtanh.f32 %v2459_v41 }
0x1000   : > { %12506 = vtanh.f32 %v2462_v42 }
0x1008   : > { %v12505_v44 = vpop.eup %12504 }
0x100a   : > { %v12507_v38 = vpop.eup %12506 }
0x100b   : > { %v2467_v13 = vpack.c.bf16 %v12507_v38, %v12505_v44 }
0x100d   : > { %10937 = vmatmul.mubr.bf16.vlgmr.msra.gmra.mrb[44].mxu1 %v2467_v13 }
0x100e   : > { %10941 = vmatpush3.bf16.msra.mxu1 %v13613_v14  ;;  %10944 = vmatprep.mubr.msk.bf16.mxu1 %vm13094_vm0, %v17418_v22 }
0x100f   : > { %10942 = vmatprep.subr.bf16.mxu1 %v17418_v22 }
0x1012   : > { %10943 = vmatpush3.bf16.msra.mxu1 %v13627_v2 }
0x1013   : > { %10948 = vmatprep.subr.bf16.mxu1 %v17418_v22 }
0x10e0   : > { %v2502_v39 = vpop.f32.mrb[44].mxu1 }
0x10e1   : > { %v2509_v57 = vmul.f32 -0.023809513, %v2502_v39  ;;  %v10938_v50 = vpop.f32.mrb[45].mxu1 }
0x10e2   : > { %v2505_v18 = vpop.f32.mrb[46].mxu1 }
0x10e3   : > { %v2511_v6 = vadd.f32 %v2509_v57, %v2418_v49  ;;  %v2510_v37 = vmul.f32 -0.023809513, %v2505_v18  ;;  %v10939_v10 = vpop.f32.mrb[47].mxu1  ;;  %v14104_v49 = vld [vmem:[%s17402_s0 + $0x10] sm:$0xff]  }
0x10e5   : > { %v2512_v1 = vadd.f32 %v2510_v37, %v2419_v40  ;;  %v14050_v14 = vadd.f32 %v2511_v6, %v13818_v4 }
0x10e7   : > { %v14053_v54 = vadd.f32 %v2512_v1, %v13818_v4  ;;  %v9711_v4 = vld [vmem:[%s13507_s27 + $0x10] sm:$0xff] }
0x10e8   : > { %v14073_v58 = vpack.c.bf16 %v9712_v47, %v9711_v4  ;;  %v9713_v4 = vld [vmem:[%s13645_s5 + $0x10] sm:$0xff] }
0x10e9   : > { %v2521_v2 = vpack.c.bf16 %v14053_v54, %v14050_v14  ;;  %v2956_v47 = vsub.f32 1.0, %v9713_v4 }
0x10eb   : > { %9716 = vmatmul.mubr.msk.bf16.vlgmr.msra.gmra.mrb[32].mxu0 %vm1003_vm1, %v2521_v2 }
0x10ec   : > { %2620 = vmatpush1.bf16.msra.mxu0 %v14061_v45  ;;  %2651 = vmatprep.mubr.bf16.mxu0 %v17422_v5 }
0x10ed   : > { %9982 = vmatprep.subr.bf16.mxu0 %v14068_v46 }
0x10f7   : > { %9717 = vmatmul.mubr.msk.bf16.vlgmr.msra.gmra.mrb[32].mxu0 %vm1307_vm2, %v14073_v58 }
0x10f8   : > { %9983 = vmatpush3.bf16.msra.mxu0 %v14080_v35 }
0x10f9   : > { %9984 = vmatprep.subr.bf16.mxu0 %v14086_v59 }
0x10fc   : > { %9985 = vmatpush3.bf16.msra.mxu0 %v14092_v48 }
0x10fd   : > { %9986 = vmatprep.subr.bf16.mxu0 %v14098_v20 }
0x1100   : > { %9987 = vmatpush3.bf16.msra.mxu0 %v14104_v49 }
0x1101   : > { %9988 = vmatprep.subr.bf16.mxu0 %v13533_v24 }
0x1104   : > { %9989 = vmatpush3.bf16.msra.mxu0 %v13538_v25 }
0x1105   : > { %9990 = vmatprep.subr.bf16.mxu0 %v13545_v26 }
0x1108   : > { %9991 = vmatpush3.bf16.msra.mxu0 %v13550_v27 }
0x1109   : > { %9992 = vmatprep.subr.bf16.mxu0 %v13557_v28 }
0x110c   : > { %9993 = vmatpush3.bf16.msra.mxu0 %v13562_v29 }
0x110d   : > { %9994 = vmatprep.subr.bf16.mxu0 %v13567_v30 }
0x1110   : > { %9995 = vmatpush3.bf16.msra.mxu0 %v13574_v31 }
0x1111   : > { %9996 = vmatprep.subr.bf16.mxu0 %v13580_v51 }
0x1114   : > { %9997 = vmatpush3.bf16.msra.mxu0 %v13586_v52 }
0x1115   : > { %10982 = vmatprep.subr.bf16.mxu0 %v17418_v22 }
0x11ca   : > { %v2653_v24 = vpop.f32.mrb[32].mxu0 }
0x11cb   : > { %v2666_v25 = vadd.f32 %v2653_v24, %v13596_v55  ;;  %v2655_v26 = vpop.f32.mrb[33].mxu0 }
0x11cc   : > { %v2667_v27 = vadd.f32 %v2655_v26, %v13598_v56  ;;  %v2657_v40 = vpop.f32.mrb[34].mxu0 }
0x11cd   : > { %12508 = vtanh.f32 %v2666_v25  ;;  %v2668_v28 = vadd.f32 %v2657_v40, %v13596_v55  ;;  %v2659_v29 = vpop.f32.mrb[35].mxu0 }
0x11ce   : > { %12510 = vtanh.f32 %v2667_v27  ;;  %v2669_v30 = vadd.f32 %v2659_v29, %v13598_v56 }
0x11cf   : > { %12512 = vtanh.f32 %v2668_v28 }
0x11d0   : > { %12514 = vtanh.f32 %v2669_v30 }
0x11d7   : > { %v12509_v31 = vpop.eup %12508 }
0x11d8   : > { %v12511_v51 = vpop.eup %12510 }
0x11d9   : > { %v12513_v52 = vpop.eup %12512 }
0x11da   : > { %v12515_v15 = vpop.eup %12514  ;;  %v2674_v12 = vpack.c.bf16 %v12513_v52, %v12509_v31  ;;  %v17426_v52 = vld [vmem:[#allocation21_spill] sm:$0xff] }
0x11db   : > { %v2675_v41 = vpack.c.bf16 %v12515_v15, %v12511_v51  ;;  %v17423_v51 = vld [vmem:[#allocation18_spill] sm:$0xff] }
0x11dc   : > { %v17427_v15 = vld [vmem:[#allocation22_spill] sm:$0xff] }
0x11dd   : > { %2708 = vmatprep.mubr.bf16.mxu0 %v2675_v41  ;;  %v17430_v41 = vld [vmem:[#allocation25_spill] sm:$0xff] }
0x11de   : > { %2709 = vmatmul.mubr.bf16.vlgmr.msra.gmra.mrb[36].mxu0 %v2674_v12  ;;  %v17429_v12 = vld [vmem:[#allocation24_spill] sm:$0xff] }
0x11df   : > { %10983 = vmatpush3.bf16.msra.mxu0 %v13875_v8  ;;  %10986 = vmatprep.mubr.msk.bf16.mxu0 %vm13094_vm0, %v17418_v22 }
0x11e0   : > { %10984 = vmatprep.subr.bf16.mxu0 %v17418_v22 }
0x11e3   : > { %10985 = vmatpush3.bf16.msra.mxu0 %v13884_v9 }
0x11e4   : > { %10990 = vmatprep.subr.bf16.mxu0 %v17418_v22 }
0x12b1   : > { %v9998_v23 = vpop.f32.mrb[36].mxu0 }
0x12b2   : > { %v9999_v34 = vpop.f32.mrb[37].mxu0 }
0x12b3   : > { %v10000_v42 = vadd.f32 %v9999_v34, %v9998_v23  ;;  %v10001_v43 = vpop.f32.mrb[38].mxu0  ;;  %v17431_v23 = vld [vmem:[#allocation26_spill] sm:$0xff] }
0x12b4   : > { %v10002_v44 = vpop.f32.mrb[39].mxu0 }
0x12b5   : > { %v2711_v38 = vadd.f32 %v10000_v42, %v13620_v16  ;;  %v10003_v13 = vadd.f32 %v10002_v44, %v10001_v43 }
0x12b7   : > { %v9718_v39 = vmul.f32 -1.442695, %v2711_v38  ;;  %v2714_v57 = vadd.f32 %v10003_v13, %v13620_v16  ;;  %v9714_v16 = vld [vmem:[%s13645_s5 + $0x18] sm:$0xff] }
0x12b8   : > { %v2957_v24 = vsub.f32 1.0, %v9714_v16 }
0x12b9   : > { %12516 = vpow2.f32 %v9718_v39  ;;  %v9719_v50 = vmul.f32 -1.442695, %v2714_v57 }
0x12bb   : > { %12518 = vpow2.f32 %v9719_v50 }
0x12c3   : > { %v12517_v18 = vpop.eup %12516 }
0x12c4   : > { %v2723_v6 = vadd.f32 1.0, %v12517_v18 }
0x12c5   : > { %v12519_v37 = vpop.eup %12518 }
0x12c6   : > { %12520 = vrcp.f32 %v2723_v6  ;;  %v2724_v10 = vadd.f32 1.0, %v12519_v37 }
0x12c8   : > { %12522 = vrcp.f32 %v2724_v10 }
0x12d0   : > { %v14130_v1 = vpop.eup %12520 }
0x12d1   : > { %2731 = vrot.lane.b32.xlu0 %v14130_v1, %s17419_s4 }
0x12d2   : > { %v14134_v2 = vpop.eup %12522 }
0x12d3   : > { %2733 = vrot.lane.b32.xlu1 %v14134_v2, %s17419_s4 }
0x12d5   : > { %2946 = vperm.xlu0 %12393, %v9713_v4  }
0x12d7   : > { %2951 = vperm.xlu1 %12392, %v9714_v16   ;;  %v17432_v16 = vld [vmem:[#allocation27_spill] sm:$0xff] }
0x12d9   : > { %2960 = vperm.xlu0 %12393, %v2956_v47  }
0x12db   : > { %2965 = vperm.xlu1 %12392, %v2957_v24  }
0x1343   : > { %v2732_v25 = vpop.permute.xlu0 %2731 }
0x1344   : > { %v2740_v27 = vmul.f32 %v2732_v25, %v13981_v0  ;;  %v2737_v30 = vmul.f32 %v2732_v25, %v14050_v14 }
0x1345   : > { %v2734_v26 = vpop.permute.xlu1 %2733 }
0x1346   : > { %v2741_v40 = vmul.f32 %v2734_v26, %v13978_v7  ;;  %v2738_v29 = vmul.f32 %v2734_v26, %v14053_v54 }
0x1348   : > { %v2742_v28 = vpack.c.bf16 %v2741_v40, %v2740_v27  ;;  %v2739_v31 = vpack.c.bf16 %v2738_v29, %v2737_v30 }
0x134a   : > { %10945 = vmatmul.mubr.msk.bf16.vlgmr.msra.gmra.mrb[48].mxu1 %vm1003_vm1, %v2742_v28 }
0x134b   : > { %10949 = vmatpush3.bf16.msra.mxu1 %v13657_v17  ;;  %10952 = vmatprep.mubr.msk.bf16.mxu1 %vm13094_vm0, %v17418_v22  ;;  %v17424_v17 = vld [vmem:[#allocation19_spill] sm:$0xff] }
0x134c   : > { %10950 = vmatprep.subr.bf16.mxu1 %v17418_v22 }
0x134f   : > { %10951 = vmatpush3.bf16.msra.mxu1 %v13664_v21  ;;  %v17425_v21 = vld [vmem:[#allocation20_spill] sm:$0xff] }
0x1350   : > { %10956 = vmatprep.subr.bf16.mxu1 %v17418_v22 }
0x1352   : > { %10953 = vmatmul.mubr.msk.bf16.vlgmr.msra.gmra.mrb[52].mxu1 %vm1003_vm1, %v2739_v31 }
0x1353   : > { %10957 = vmatpush3.bf16.msra.mxu1 %v17423_v51  ;;  %10958 = vmatprep.mubr.msk.bf16.mxu1 %vm13094_vm0, %v17418_v22 }
0x1354   : > { %10962 = vmatprep.subr.bf16.mxu1 %v17418_v22  ;;  %v14184_v29 = vpop.permute.xlu0 %2946 }
0x1356   : > { %v14186_v30 = vpop.permute.xlu1 %2951 }
0x135a   : > { %10959 = vmatmul.mubr.msk.bf16.vlgmr.msra.gmra.mrb[56].mxu1 %vm1307_vm2, %v14073_v58  ;;  %v17428_v58 = vld [vmem:[#allocation23_spill] sm:$0xff] }
0x135b   : > { %10963 = vmatpush3.bf16.msra.mxu1 %v17424_v17  ;;  %10978 = vmatprep.mubr.msk.bf16.mxu1 %vm13094_vm0, %v17418_v22  ;;  %v2922_v17 = vsub.f32 1.0, %v14130_v1 }
0x135c   : > { %10964 = vmatprep.subr.bf16.mxu1 %v17418_v22 }
0x135f   : > { %10965 = vmatpush3.bf16.msra.mxu1 %v17425_v21 }
0x1360   : > { %10966 = vmatprep.subr.bf16.mxu1 %v17418_v22 }
0x1363   : > { %10967 = vmatpush3.bf16.msra.mxu1 %v17426_v52  ;;  %v2926_v52 = vmul.f32 %v14130_v1, %v14050_v14 }
0x1364   : > { %10968 = vmatprep.subr.bf16.mxu1 %v17418_v22 }
0x1367   : > { %10969 = vmatpush3.bf16.msra.mxu1 %v17427_v15 }
0x1368   : > { %10970 = vmatprep.subr.bf16.mxu1 %v17418_v22 }
0x136b   : > { %10971 = vmatpush3.bf16.msra.mxu1 %v17428_v58 }
0x136c   : > { %10972 = vmatprep.subr.bf16.mxu1 %v17418_v22 }
0x136f   : > { %10973 = vmatpush3.bf16.msra.mxu1 %v17429_v12 }
0x1370   : > { %10974 = vmatprep.subr.bf16.mxu1 %v17418_v22 }
0x1373   : > { %10975 = vmatpush3.bf16.msra.mxu1 %v17430_v41 }
0x1374   : > { %10976 = vmatprep.subr.bf16.mxu1 %v17418_v22 }
0x1377   : > { %10977 = vmatpush3.bf16.msra.mxu1 %v17431_v23  ;;  %v2923_v23 = vsub.f32 1.0, %v14134_v2 }
0x1378   : > { %11010 = vmatprep.subr.bf16.mxu1 %v17418_v22 }
0x141d   : > { %v2780_v34 = vpop.f32.mrb[48].mxu1 }
0x141e   : > { %v10946_v42 = vpop.f32.mrb[49].mxu1 }
0x141f   : > { %v2783_v43 = vpop.f32.mrb[50].mxu1 }
0x1420   : > { %v10947_v44 = vpop.f32.mrb[51].mxu1 }
0x1425   : > { %v2824_v38 = vpop.f32.mrb[52].mxu1 }
0x1426   : > { %v2825_v13 = vadd.f32 %v2824_v38, %v2780_v34  ;;  %v10954_v39 = vpop.f32.mrb[53].mxu1  ;;  %v2927_v38 = vmul.f32 %v14134_v2, %v14053_v54 }
0x1427   : > { %v2827_v57 = vpop.f32.mrb[54].mxu1  ;;  %v14203_v39 = vpop.permute.xlu1 %2965 }
0x1428   : > { %v2828_v50 = vadd.f32 %v2827_v57, %v2783_v43  ;;  %v10955_v18 = vpop.f32.mrb[55].mxu1 }
0x1429   : > { %v2969_v18 = vmul.f32 %v14203_v39, %v14053_v54 }
0x142d   : > { %v2865_v6 = vpop.f32.mrb[56].mxu1 }
0x142e   : > { %v2872_v37 = vadd.f32 %v2865_v6, %v2825_v13  ;;  %v10960_v10 = vpop.f32.mrb[57].mxu1  ;;  %v14201_v13 = vpop.permute.xlu0 %2960 }
0x142f   : > { %v2868_v4 = vpop.f32.mrb[58].mxu1 }
0x1430   : > { %v2874_v47 = vadd.f32 %v17432_v16, %v2872_v37  ;;  %v2873_v24 = vadd.f32 %v2868_v4, %v2828_v50  ;;  %v10961_v25 = vpop.f32.mrb[59].mxu1  ;;  %v2968_v50 = vmul.f32 %v14201_v13, %v14050_v14 }
0x1432   : > { %v2875_v26 = vadd.f32 %v17432_v16, %v2873_v24  ;;  %12524 = vtanh.f32 %v2874_v47 }
0x1434   : > { %12526 = vtanh.f32 %v2875_v26 }
0x143c   : > { %v12525_v27 = vpop.eup %12524 }
0x143e   : > { %v12527_v40 = vpop.eup %12526 }
0x143f   : > { %v2878_v28 = vpack.c.bf16 %v12527_v40, %v12525_v27 }
0x1441   : > { %10979 = vmatmul.mubr.bf16.vlgmr.msra.gmra.mrb[60].mxu1 %v2878_v28  ;;  %v14242_v28 = vld [vmem:[%s17283_s22] sm:$0x1] }
0x1442   : > { %11011 = vmatpush3.bf16.msra.mxu1 %v13875_v8  ;;  %11014 = vmatprep.mubr.msk.bf16.mxu1 %vm13094_vm0, %v17418_v22 }
0x1443   : > { %11012 = vmatprep.subr.bf16.mxu1 %v17418_v22 }
0x1446   : > { %11013 = vmatpush3.bf16.msra.mxu1 %v13884_v9 }
0x1447   : > { %11018 = vmatprep.subr.bf16.mxu1 %v17418_v22 }
0x1514   : > { %v2913_v31 = vpop.f32.mrb[60].mxu1 }
0x1515   : > { %v2914_v51 = vadd.f32 %v13761_v33, %v2913_v31  ;;  %v10980_v21 = vpop.f32.mrb[61].mxu1  ;;  %v2980_v31 = vmul.f32 -0.023809532, %v14242_v28 }
0x1516   : > { %v2916_v15 = vpop.f32.mrb[62].mxu1 }
0x1517   : > { %v2920_v58 = vand.u32 2147483647, %v2914_v51  ;;  %v2924_v12 = vmul.f32 %v2922_v17, %v2914_v51  ;;  %v2917_v41 = vadd.f32 %v13761_v33, %v2916_v15  ;;  %v10981_v34 = vpop.f32.mrb[63].mxu1 }
0x1519   : > { %v2928_v42 = vadd.f32 %v2926_v52, %v2924_v12  ;;  %v2921_v43 = vand.u32 2147483647, %v2917_v41  ;;  %v2925_v44 = vmul.f32 %v2923_v23, %v2917_v41  ;;  %2932 = vrot.lane.b32.xlu0 %v2920_v58, %s17419_s4  ;;  %v14246_v58 = vrot.slane %v2980_v31, %v13484_v3 }
0x151b   : > { %v2954_v57 = vmul.f32 %v14184_v29, %v2928_v42  ;;  %v2929_v33 = vadd.f32 %v2927_v38, %v2925_v44  ;;  %2934 = vrot.lane.b32.xlu1 %v2921_v43, %s17419_s4 }
0x151d   : > { %v2955_v6 = vmul.f32 %v14186_v30, %v2929_v33  ;;  %v2970_v37 = vadd.f32 %v2968_v50, %v2954_v57 }
0x151f   : > { %v2971_v10 = vadd.f32 %v2969_v18, %v2955_v6 }
0x1521   : > { %v2981_v4 = vpack.c.bf16 %v2971_v10, %v2970_v37 }
0x1523   : > { %10987 = vmatmul.mubr.msk.bf16.vlgmr.msra.gmra.mrb[40].mxu0 %vm1003_vm1, %v2981_v4 }
0x1524   : > { %10991 = vmatpush3.bf16.msra.mxu0 %v13894_v53  ;;  %11006 = vmatprep.mubr.msk.bf16.mxu0 %vm13094_vm0, %v17418_v22 }
0x1525   : > { %10992 = vmatprep.subr.bf16.mxu0 %v17418_v22 }
0x1528   : > { %10993 = vmatpush3.bf16.msra.mxu0 %v13903_v63 }
0x1529   : > { %10994 = vmatprep.subr.bf16.mxu0 %v17418_v22 }
0x152c   : > { %10995 = vmatpush3.bf16.msra.mxu0 %v13910_v32 }
0x152d   : > { %10996 = vmatprep.subr.bf16.mxu0 %v17418_v22 }
0x1530   : > { %10997 = vmatpush3.bf16.msra.mxu0 %v13952_v36 }
0x1531   : > { %10998 = vmatprep.subr.bf16.mxu0 %v17418_v22 }
0x1534   : > { %10999 = vmatpush3.bf16.msra.mxu0 %v14011_v60 }
0x1535   : > { %11000 = vmatprep.subr.bf16.mxu0 %v17418_v22 }
0x1538   : > { %11001 = vmatpush3.bf16.msra.mxu0 %v14018_v61 }
0x1539   : > { %11002 = vmatprep.subr.bf16.mxu0 %v17418_v22 }
0x153c   : > { %11003 = vmatpush3.bf16.msra.mxu0 %v14025_v62 }
0x153d   : > { %11004 = vmatprep.subr.bf16.mxu0 %v17418_v22 }
0x1540   : > { %11005 = vmatpush3.bf16.msra.mxu0 %v14032_v11 }
0x1541   : > { %11038 = vmatprep.subr.bf16.mxu0 %v17418_v22 }
0x15f6   : > { %v3019_v14 = vpop.f32.mrb[40].mxu0 }
0x15f7   : > { %v3020_v54 = vadd.f32 %v14039_v19, %v3019_v14  ;;  %v10988_v16 = vpop.f32.mrb[41].mxu0 }
0x15f8   : > { %v3022_v47 = vpop.f32.mrb[42].mxu0 }
0x15f9   : > { %v3023_v24 = vadd.f32 %v14039_v19, %v3022_v47  ;;  %v10989_v25 = vpop.f32.mrb[43].mxu0  ;;  %12528 = vtanh.f32 %v3020_v54 }
0x15fb   : > { %12530 = vtanh.f32 %v3023_v24 }
0x1603   : > { %v12529_v26 = vpop.eup %12528 }
0x1605   : > { %v12531_v27 = vpop.eup %12530 }
0x1606   : > { %v3028_v40 = vpack.c.bf16 %v12531_v27, %v12529_v26 }
0x1608   : > { %11007 = vmatmul.mubr.bf16.vlgmr.msra.gmra.mrb[44].mxu0 %v3028_v40 }
0x1609   : > { %11039 = vmatpush3.bf16.msra.mxu0 %v13875_v8  ;;  %11042 = vmatprep.mubr.msk.bf16.mxu0 %vm13094_vm0, %v17418_v22 }
0x160a   : > { %11040 = vmatprep.subr.bf16.mxu0 %v17418_v22 }
0x160d   : > { %11041 = vmatpush3.bf16.msra.mxu0 %v13884_v9 }
0x160e   : > { %11046 = vmatprep.subr.bf16.mxu0 %v17418_v22 }
0x16db   : > { %v3063_v51 = vpop.f32.mrb[44].mxu0 }
0x16dc   : > { %v3070_v21 = vmul.f32 -0.023809532, %v3063_v51  ;;  %v11008_v52 = vpop.f32.mrb[45].mxu0 }
0x16dd   : > { %v3066_v15 = vpop.f32.mrb[46].mxu0 }
0x16de   : > { %v3072_v12 = vadd.f32 %v3070_v21, %v2970_v37  ;;  %v3071_v41 = vmul.f32 -0.023809532, %v3066_v15  ;;  %v11009_v34 = vpop.f32.mrb[47].mxu0 }
0x16e0   : > { %v3073_v42 = vadd.f32 %v3071_v41, %v2971_v10  ;;  %v3080_v43 = vadd.f32 %v14246_v58, %v3072_v12 }
0x16e2   : > { %v3081_v44 = vadd.f32 %v14246_v58, %v3073_v42 }
0x16e4   : > { %v3082_v38 = vpack.c.bf16 %v3081_v44, %v3080_v43 }
0x16e6   : > { %11015 = vmatmul.mubr.msk.bf16.vlgmr.msra.gmra.mrb[64].mxu1 %vm1003_vm1, %v3082_v38 }
0x16e7   : > { %11019 = vmatpush3.bf16.msra.mxu1 %v13894_v53  ;;  %11034 = vmatprep.mubr.msk.bf16.mxu1 %vm13094_vm0, %v17418_v22 }
0x16e8   : > { %11020 = vmatprep.subr.bf16.mxu1 %v17418_v22 }
0x16eb   : > { %11021 = vmatpush3.bf16.msra.mxu1 %v13903_v63 }
0x16ec   : > { %11022 = vmatprep.subr.bf16.mxu1 %v17418_v22 }
0x16ef   : > { %11023 = vmatpush3.bf16.msra.mxu1 %v13910_v32 }
0x16f0   : > { %11024 = vmatprep.subr.bf16.mxu1 %v17418_v22 }
0x16f3   : > { %11025 = vmatpush3.bf16.msra.mxu1 %v13952_v36 }
0x16f4   : > { %11026 = vmatprep.subr.bf16.mxu1 %v17418_v22 }
0x16f7   : > { %11027 = vmatpush3.bf16.msra.mxu1 %v14011_v60 }
0x16f8   : > { %11028 = vmatprep.subr.bf16.mxu1 %v17418_v22 }
0x16fb   : > { %11029 = vmatpush3.bf16.msra.mxu1 %v14018_v61 }
0x16fc   : > { %11030 = vmatprep.subr.bf16.mxu1 %v17418_v22 }
0x16ff   : > { %11031 = vmatpush3.bf16.msra.mxu1 %v14025_v62 }
0x1700   : > { %11032 = vmatprep.subr.bf16.mxu1 %v17418_v22 }
0x1703   : > { %11033 = vmatpush3.bf16.msra.mxu1 %v14032_v11 }
0x1704   : > { %11066 = vmatprep.subr.bf16.mxu1 %v17418_v22 }
0x17b9   : > { %v3120_v57 = vpop.f32.mrb[64].mxu1 }
0x17ba   : > { %v3121_v33 = vadd.f32 %v14039_v19, %v3120_v57  ;;  %v11016_v50 = vpop.f32.mrb[65].mxu1 }
0x17bb   : > { %v3123_v18 = vpop.f32.mrb[66].mxu1 }
0x17bc   : > { %v3124_v6 = vadd.f32 %v14039_v19, %v3123_v18  ;;  %v11017_v37 = vpop.f32.mrb[67].mxu1  ;;  %12532 = vtanh.f32 %v3121_v33 }
0x17be   : > { %12534 = vtanh.f32 %v3124_v6 }
0x17c6   : > { %v12533_v10 = vpop.eup %12532 }
0x17c8   : > { %v12535_v4 = vpop.eup %12534 }
0x17c9   : > { %v3129_v14 = vpack.c.bf16 %v12535_v4, %v12533_v10 }
0x17cb   : > { %11035 = vmatmul.mubr.bf16.vlgmr.msra.gmra.mrb[68].mxu1 %v3129_v14 }
0x17cc   : > { %11067 = vmatpush3.bf16.msra.mxu1 %v13875_v8  ;;  %11070 = vmatprep.mubr.msk.bf16.mxu1 %vm13094_vm0, %v17418_v22 }
0x17cd   : > { %11068 = vmatprep.subr.bf16.mxu1 %v17418_v22 }
0x17d0   : > { %11069 = vmatpush3.bf16.msra.mxu1 %v13884_v9 }
0x17d1   : > { %11074 = vmatprep.subr.bf16.mxu1 %v17418_v22 }
0x189e   : > { %v3164_v54 = vpop.f32.mrb[68].mxu1 }
0x189f   : > { %v3171_v16 = vmul.f32 -0.023809532, %v3164_v54  ;;  %v11036_v47 = vpop.f32.mrb[69].mxu1 }
0x18a0   : > { %v3167_v24 = vpop.f32.mrb[70].mxu1 }
0x18a1   : > { %v3173_v25 = vadd.f32 %v3171_v16, %v3080_v43  ;;  %v3172_v26 = vmul.f32 -0.023809532, %v3167_v24  ;;  %v11037_v27 = vpop.f32.mrb[71].mxu1 }
0x18a2   : > { %v14332_v27 = vld [vmem:[%s17280_s19] sm:$0xff]  }
0x18a3   : > { %v3174_v40 = vadd.f32 %v3172_v26, %v3081_v44  ;;  %v3175_v31 = vadd.f32 %v3173_v25, %v14246_v58 }
0x18a5   : > { %v3176_v51 = vadd.f32 %v3174_v40, %v14246_v58  ;;  %v14341_v40 = vld [vmem:[%s17280_s19 + $0x8] sm:$0xff]  }
0x18a7   : > { %v3177_v21 = vpack.c.bf16 %v3176_v51, %v3175_v31 }
0x18a9   : > { %11043 = vmatmul.mubr.msk.bf16.vlgmr.msra.gmra.mrb[48].mxu0 %vm1003_vm1, %v3177_v21 }
0x18aa   : > { %11047 = vmatpush3.bf16.msra.mxu0 %v13894_v53  ;;  %11062 = vmatprep.mubr.msk.bf16.mxu0 %vm13094_vm0, %v17418_v22 }
0x18ab   : > { %11048 = vmatprep.subr.bf16.mxu0 %v17418_v22 }
0x18ae   : > { %11049 = vmatpush3.bf16.msra.mxu0 %v13903_v63 }
0x18af   : > { %11050 = vmatprep.subr.bf16.mxu0 %v17418_v22 }
0x18b2   : > { %11051 = vmatpush3.bf16.msra.mxu0 %v13910_v32 }
0x18b3   : > { %11052 = vmatprep.subr.bf16.mxu0 %v17418_v22 }
0x18b6   : > { %11053 = vmatpush3.bf16.msra.mxu0 %v13952_v36 }
0x18b7   : > { %11054 = vmatprep.subr.bf16.mxu0 %v17418_v22 }
0x18ba   : > { %11055 = vmatpush3.bf16.msra.mxu0 %v14011_v60 }
0x18bb   : > { %11056 = vmatprep.subr.bf16.mxu0 %v17418_v22 }
0x18be   : > { %11057 = vmatpush3.bf16.msra.mxu0 %v14018_v61 }
0x18bf   : > { %11058 = vmatprep.subr.bf16.mxu0 %v17418_v22 }
0x18c2   : > { %11059 = vmatpush3.bf16.msra.mxu0 %v14025_v62 }
0x18c3   : > { %11060 = vmatprep.subr.bf16.mxu0 %v17418_v22 }
0x18c6   : > { %11061 = vmatpush3.bf16.msra.mxu0 %v14032_v11 }
0x18c7   : > { %11094 = vmatprep.subr.bf16.mxu0 %v17418_v22 }
0x197c   : > { %v3215_v52 = vpop.f32.mrb[48].mxu0 }
0x197d   : > { %v3216_v15 = vadd.f32 %v14039_v19, %v3215_v52  ;;  %v11044_v12 = vpop.f32.mrb[49].mxu0 }
0x197e   : > { %v3218_v41 = vpop.f32.mrb[50].mxu0 }
0x197f   : > { %v3219_v34 = vadd.f32 %v14039_v19, %v3218_v41  ;;  %v11045_v42 = vpop.f32.mrb[51].mxu0  ;;  %12536 = vtanh.f32 %v3216_v15 }
0x1981   : > { %12538 = vtanh.f32 %v3219_v34 }
0x1989   : > { %v12537_v43 = vpop.eup %12536 }
0x198b   : > { %v12539_v44 = vpop.eup %12538 }
0x198c   : > { %v3224_v38 = vpack.c.bf16 %v12539_v44, %v12537_v43 }
0x198e   : > { %11063 = vmatmul.mubr.bf16.vlgmr.msra.gmra.mrb[52].mxu0 %v3224_v38  ;;  %v14357_v38 = vld [vmem:[%s17282_s21] sm:$0xff]  }
0x198f   : > { %11095 = vmatpush3.bf16.msra.mxu0 %v13875_v8  ;;  %11098 = vmatprep.mubr.msk.bf16.mxu0 %vm13094_vm0, %v17418_v22 }
0x1990   : > { %11096 = vmatprep.subr.bf16.mxu0 %v17418_v22 }
0x1993   : > { %11097 = vmatpush3.bf16.msra.mxu0 %v13884_v9 }
0x1994   : > { %11102 = vmatprep.subr.bf16.mxu0 %v17418_v22 }
0x1a61   : > { %v3259_v57 = vpop.f32.mrb[52].mxu0 }
0x1a62   : > { %v3266_v33 = vmul.f32 -0.023809532, %v3259_v57  ;;  %v11064_v50 = vpop.f32.mrb[53].mxu0  ;;  %v14366_v57 = vld [vmem:[%s17282_s21 + $0x8] sm:$0xff]  }
0x1a63   : > { %v3262_v18 = vpop.f32.mrb[54].mxu0 }
0x1a64   : > { %v3268_v6 = vadd.f32 %v3266_v33, %v3175_v31  ;;  %v3267_v37 = vmul.f32 -0.023809532, %v3262_v18  ;;  %v11065_v10 = vpop.f32.mrb[55].mxu0  ;;  %v14373_v33 = vld [vmem:[%s17282_s21 + $0x10] sm:$0xff]   ;;  %v2935_v18 = vpop.permute.xlu1 %2934 }
0x1a66   : > { %v3269_v4 = vadd.f32 %v3267_v37, %v3176_v51  ;;  %v3270_v14 = vadd.f32 %v3268_v6, %v14246_v58 }
0x1a68   : > { %v3271_v8 = vadd.f32 %v3269_v4, %v14246_v58  ;;  %v2933_v4 = vpop.permute.xlu0 %2932 }
0x1a6a   : > { %v3272_v54 = vpack.c.bf16 %v3271_v8, %v3270_v14 }
0x1a6c   : > { %11071 = vmatmul.mubr.msk.bf16.vlgmr.msra.gmra.mrb[72].mxu1 %vm1003_vm1, %v3272_v54  ;;  %v2939_v54 = vmul.f32 %v2935_v18, %v2923_v23 }
0x1a6d   : > { %11075 = vmatpush3.bf16.msra.mxu1 %v13894_v53  ;;  %11090 = vmatprep.mubr.msk.bf16.mxu1 %vm13094_vm0, %v17418_v22 }
0x1a6e   : > { %11076 = vmatprep.subr.bf16.mxu1 %v17418_v22 }
0x1a71   : > { %11077 = vmatpush3.bf16.msra.mxu1 %v13903_v63 }
0x1a72   : > { %11078 = vmatprep.subr.bf16.mxu1 %v17418_v22 }
0x1a75   : > { %11079 = vmatpush3.bf16.msra.mxu1 %v13910_v32 }
0x1a76   : > { %11080 = vmatprep.subr.bf16.mxu1 %v17418_v22 }
0x1a79   : > { %11081 = vmatpush3.bf16.msra.mxu1 %v13952_v36 }
0x1a7a   : > { %11082 = vmatprep.subr.bf16.mxu1 %v17418_v22 }
0x1a7d   : > { %11083 = vmatpush3.bf16.msra.mxu1 %v14011_v60 }
0x1a7e   : > { %11084 = vmatprep.subr.bf16.mxu1 %v17418_v22 }
0x1a81   : > { %11085 = vmatpush3.bf16.msra.mxu1 %v14018_v61 }
0x1a82   : > { %11086 = vmatprep.subr.bf16.mxu1 %v17418_v22 }
0x1a85   : > { %11087 = vmatpush3.bf16.msra.mxu1 %v14025_v62 }
0x1a86   : > { %11088 = vmatprep.subr.bf16.mxu1 %v17418_v22 }
0x1a89   : > { %11089 = vmatpush3.bf16.msra.mxu1 %v14032_v11 }
0x1a8a   : > { %11122 = vmatprep.subr.bf16.mxu1 %v17418_v22 }
0x1b3f   : > { %v3310_v9 = vpop.f32.mrb[72].mxu1 }
0x1b40   : > { %v3311_v53 = vadd.f32 %v14039_v19, %v3310_v9  ;;  %v11072_v63 = vpop.f32.mrb[73].mxu1  ;;  %v2938_v9 = vmul.f32 %v2933_v4, %v2922_v17  ;;  %v2974_v17 = vmul.f32 %v14201_v13, %v13981_v0 }
0x1b41   : > { %v3313_v32 = vpop.f32.mrb[74].mxu1  ;;  %v2940_v63 = vmul.f32 %v14130_v1, %v13981_v0  ;;  %v14411_v1 = vld [vmem:[%s17398_s8] ss:$8 sps:$4 sm:$0xff]  }
0x1b42   : > { %v3314_v16 = vadd.f32 %v14039_v19, %v3313_v32  ;;  %v11073_v47 = vpop.f32.mrb[75].mxu1  ;;  %12540 = vtanh.f32 %v3311_v53  ;;  %v2941_v53 = vmul.f32 %v14134_v2, %v13978_v7 }
0x1b44   : > { %12542 = vtanh.f32 %v3314_v16  ;;  %v2943_v32 = vadd.f32 %v2941_v53, %v2939_v54  ;;  %v2942_v16 = vadd.f32 %v2940_v63, %v2938_v9 }
0x1b46   : > { %v2973_v47 = vmul.f32 %v14186_v30, %v2943_v32  ;;  %v2972_v23 = vmul.f32 %v14184_v29, %v2942_v16  ;;  %v14420_v29 = vld [vmem:[%s17398_s8 + $0x14] ss:$8 sps:$4 sm:$0xff]   ;;  %v14428_v30 = vld [vmem:[%s17398_s8 + $0x10] ss:$8 sps:$4 sm:$0xff]  }
0x1b48   : > { %v2976_v2 = vadd.f32 %v2974_v17, %v2972_v23 }
0x1b4a   : > { %v14423_v0 = vand.u32 2147483647, %v2976_v2 }
0x1b4c   : > { %v12541_v24 = vpop.eup %12540 }
0x1b4e   : > { %v12543_v25 = vpop.eup %12542 }
0x1b4f   : > { %v3319_v26 = vpack.c.bf16 %v12543_v25, %v12541_v24  ;;  %v2975_v25 = vmul.f32 %v14203_v39, %v13978_v7  ;;  %v14436_v39 = vld [vmem:[%s17399_s3 + $0x4] ss:$8 sps:$4 sm:$0xff]  }
0x1b51   : > { %11091 = vmatmul.mubr.bf16.vlgmr.msra.gmra.mrb[76].mxu1 %v3319_v26 }
0x1b52   : > { %11123 = vmatpush3.bf16.msra.mxu1 %v14332_v27  ;;  %11126 = vmatprep.mubr.msk.bf16.mxu1 %vm13094_vm0, %v17418_v22 }
0x1b53   : > { %11124 = vmatprep.subr.bf16.mxu1 %v17418_v22 }
0x1b56   : > { %11125 = vmatpush3.bf16.msra.mxu1 %v14341_v40 }
0x1b57   : > { %11130 = vmatprep.subr.bf16.mxu1 %v17418_v22 }
0x1c24   : > { %v3354_v31 = vpop.f32.mrb[76].mxu1 }
0x1c25   : > { %v3361_v51 = vmul.f32 -0.023809532, %v3354_v31  ;;  %v11092_v21 = vpop.f32.mrb[77].mxu1  ;;  %v2977_v31 = vadd.f32 %v2975_v25, %v2973_v47 }
0x1c26   : > { %v3357_v52 = vpop.f32.mrb[78].mxu1  ;;  %v14443_v21 = vld [vmem:[%s17399_s3] ss:$8 sps:$4 sm:$0xff]  }
0x1c27   : > { %v3363_v15 = vadd.f32 %v3361_v51, %v3270_v14  ;;  %v3362_v12 = vmul.f32 -0.023809532, %v3357_v52  ;;  %v11093_v41 = vpop.f32.mrb[79].mxu1  ;;  %v14415_v7 = vand.u32 2147483647, %v2977_v31 }
0x1c28   : > { %v14450_v52 = vld [vmem:[%s17399_s3 + $0x14] ss:$8 sps:$4 sm:$0xff]  }
0x1c29   : > { %v3364_v34 = vadd.f32 %v3362_v12, %v3271_v8  ;;  %v14346_v42 = vadd.f32 %v3363_v15, %v14246_v58  ;;  %v3564_v13 = vpack.c.bf16 %v14415_v7, %v14423_v0  ;;  %v14456_v15 = vld [vmem:[%s17399_s3 + $0x10] ss:$8 sps:$4 sm:$0xff]   ;;  %v14462_v12 = vld [vmem:[%s17400_s1 + $0x4] ss:$8 sps:$4 sm:$0xff]  }
0x1c2b   : > { %v14349_v43 = vadd.f32 %v3364_v34, %v14246_v58 }
0x1c2d   : > { %v3367_v44 = vpack.c.bf16 %v14349_v43, %v14346_v42 }
0x1c2f   : > { %11099 = vmatmul.mubr.msk.bf16.vlgmr.msra.gmra.mrb[56].mxu0 %vm1003_vm1, %v3367_v44 }
0x1c30   : > { %11103 = vmatpush3.bf16.msra.mxu0 %v14357_v38  ;;  %11118 = vmatprep.mubr.msk.bf16.mxu0 %vm13094_vm0, %v17418_v22 }
0x1c31   : > { %11104 = vmatprep.subr.bf16.mxu0 %v17418_v22 }
0x1c34   : > { %11105 = vmatpush3.bf16.msra.mxu0 %v14366_v57 }
0x1c35   : > { %11106 = vmatprep.subr.bf16.mxu0 %v17418_v22 }
0x1c38   : > { %11107 = vmatpush3.bf16.msra.mxu0 %v14373_v33 }
0x1c39   : > { %11108 = vmatprep.subr.bf16.mxu0 %v17418_v22 }
0x1c3c   : > { %11109 = vmatpush3.bf16.msra.mxu0 %v13952_v36  ;;  %v14389_v36 = vld [vmem:[%s17398_s8 + $0x4] ss:$8 sps:$4 sm:$0xff]  }
0x1c3d   : > { %11110 = vmatprep.subr.bf16.mxu0 %v17418_v22 }
0x1c40   : > { %11111 = vmatpush3.bf16.msra.mxu0 %v14011_v60 }
0x1c41   : > { %11112 = vmatprep.subr.bf16.mxu0 %v17418_v22 }
0x1c44   : > { %11113 = vmatpush3.bf16.msra.mxu0 %v14018_v61 }
0x1c45   : > { %11114 = vmatprep.subr.bf16.mxu0 %v17418_v22 }
0x1c48   : > { %11115 = vmatpush3.bf16.msra.mxu0 %v14025_v62 }
0x1c49   : > { %11116 = vmatprep.subr.bf16.mxu0 %v17418_v22 }
0x1c4c   : > { %11117 = vmatpush3.bf16.msra.mxu0 %v14032_v11 }
0x1c4d   : > { %3568 = vmatprep.subr.bf16.mxu0 %v14389_v36 }
0x1d02   : > { %v3405_v50 = vpop.f32.mrb[56].mxu0 }
0x1d03   : > { %v3406_v6 = vadd.f32 %v14039_v19, %v3405_v50  ;;  %v11100_v37 = vpop.f32.mrb[57].mxu0 }
0x1d04   : > { %v3408_v10 = vpop.f32.mrb[58].mxu0 }
0x1d05   : > { %v3409_v14 = vadd.f32 %v14039_v19, %v3408_v10  ;;  %v11101_v8 = vpop.f32.mrb[59].mxu0  ;;  %12544 = vtanh.f32 %v3406_v6 }
0x1d07   : > { %12546 = vtanh.f32 %v3409_v14 }
0x1d0f   : > { %v12545_v24 = vpop.eup %12544 }
0x1d11   : > { %v12547_v26 = vpop.eup %12546 }
0x1d12   : > { %v3414_v51 = vpack.c.bf16 %v12547_v26, %v12545_v24 }
0x1d14   : > { %11119 = vmatmul.mubr.bf16.vlgmr.msra.gmra.mrb[60].mxu0 %v3414_v51 }
0x1d15   : > { %3569 = vmatpush1.bf16.msra.mxu0 %v14411_v1  ;;  %3600 = vmatprep.mubr.bf16.mxu0 %v17422_v5 }
0x1d16   : > { %3570 = vmatprep.subr.bf16.mxu0 %v14420_v29 }
0x1d19   : > { %3571 = vmatpush1.bf16.msra.mxu0 %v14428_v30 }
0x1d1a   : > { %3614 = vmatprep.subr.bf16.mxu0 %v14436_v39 }
0x1d1c   : > { %9733 = vmatmul.mubr.msk.bf16.vlgmr.msra.gmra.mrb[64].mxu0 %vm1003_vm1, %v3564_v13 }
0x1d1d   : > { %3615 = vmatpush1.bf16.msra.mxu0 %v14443_v21  ;;  %3646 = vmatprep.mubr.bf16.mxu0 %v17422_v5 }
0x1d1e   : > { %3616 = vmatprep.subr.bf16.mxu0 %v14450_v52 }
0x1d21   : > { %3617 = vmatpush1.bf16.msra.mxu0 %v14456_v15 }
0x1d22   : > { %3661 = vmatprep.subr.bf16.mxu0 %v14462_v12 }
0x1de7   : > { %v3449_v41 = vpop.f32.mrb[60].mxu0 }
0x1de8   : > { %v3456_v34 = vmul.f32 -0.023809532, %v3449_v41  ;;  %v11120_v44 = vpop.f32.mrb[61].mxu0  ;;  %v9729_v41 = vld [vmem:[%s13507_s27 + $0x20] sm:$0xff] }
0x1de9   : > { %v3452_v50 = vpop.f32.mrb[62].mxu0 }
0x1dea   : > { %v3458_v18 = vadd.f32 %v3456_v34, %v14346_v42  ;;  %v3457_v6 = vmul.f32 -0.023809532, %v3452_v50  ;;  %v11121_v37 = vpop.f32.mrb[63].mxu0  ;;  %v14481_v42 = vld [vmem:[%s17282_s21 + $0x18] sm:$0xff]   ;;  %v9730_v34 = vld [vmem:[%s13507_s27 + $0x28] sm:$0xff] }
0x1deb   : > { %v14525_v44 = vpack.c.bf16 %v9730_v34, %v9729_v41  ;;  %v14585_v50 = vld [vmem:[%s17402_s0 + $0x78] sm:$0xff]  }
0x1dec   : > { %v3459_v10 = vadd.f32 %v3457_v6, %v14349_v43  ;;  %v3460_v4 = vadd.f32 %v3458_v18, %v14246_v58  ;;  %v14591_v18 = vld [vmem:[%s17402_s0 + $0x38] sm:$0xff]  }
0x1dee   : > { %v3461_v14 = vadd.f32 %v3459_v10, %v14246_v58 }
0x1df0   : > { %v3462_v8 = vpack.c.bf16 %v3461_v14, %v3460_v4 }
0x1df2   : > { %11127 = vmatmul.mubr.msk.bf16.vlgmr.msra.gmra.mrb[80].mxu1 %vm1003_vm1, %v3462_v8 }
0x1df3   : > { %11131 = vmatpush3.bf16.msra.mxu1 %v14357_v38  ;;  %11146 = vmatprep.mubr.msk.bf16.mxu1 %vm13094_vm0, %v17418_v22 }
0x1df4   : > { %11132 = vmatprep.subr.bf16.mxu1 %v17418_v22 }
0x1df7   : > { %11133 = vmatpush3.bf16.msra.mxu1 %v14366_v57 }
0x1df8   : > { %11134 = vmatprep.subr.bf16.mxu1 %v17418_v22 }
0x1dfb   : > { %11135 = vmatpush3.bf16.msra.mxu1 %v14373_v33 }
0x1dfc   : > { %11136 = vmatprep.subr.bf16.mxu1 %v17418_v22 }
0x1dff   : > { %11137 = vmatpush3.bf16.msra.mxu1 %v14481_v42 }
0x1e00   : > { %11138 = vmatprep.subr.bf16.mxu1 %v17418_v22 }
0x1e03   : > { %11139 = vmatpush3.bf16.msra.mxu1 %v14011_v60 }
0x1e04   : > { %11140 = vmatprep.subr.bf16.mxu1 %v17418_v22 }
0x1e07   : > { %11141 = vmatpush3.bf16.msra.mxu1 %v14018_v61 }
0x1e08   : > { %11142 = vmatprep.subr.bf16.mxu1 %v17418_v22 }
0x1e0b   : > { %11143 = vmatpush3.bf16.msra.mxu1 %v14025_v62  ;;  %v14498_v62 = vld [vmem:[%s17404_s9] sm:$0xff]  }
0x1e0c   : > { %11144 = vmatprep.subr.bf16.mxu1 %v17418_v22 }
0x1e0f   : > { %11145 = vmatpush3.bf16.msra.mxu1 %v14032_v11  ;;  %v14507_v11 = vld [vmem:[%s17404_s9 + $0x8] sm:$0xff]  }
0x1e10   : > { %11150 = vmatprep.subr.bf16.mxu1 %v17418_v22 }
0x1ec5   : > { %v3500_v43 = vpop.f32.mrb[80].mxu1 }
0x1ec6   : > { %v3501_v54 = vadd.f32 %v14039_v19, %v3500_v43  ;;  %v11128_v9 = vpop.f32.mrb[81].mxu1 }
0x1ec7   : > { %v3503_v53 = vpop.f32.mrb[82].mxu1 }
0x1ec8   : > { %v3504_v60 = vadd.f32 %v14039_v19, %v3503_v53  ;;  %v11129_v63 = vpop.f32.mrb[83].mxu1  ;;  %12548 = vtanh.f32 %v3501_v54 }
0x1eca   : > { %12550 = vtanh.f32 %v3504_v60 }
0x1ed2   : > { %v12549_v61 = vpop.eup %12548 }
0x1ed4   : > { %v12551_v32 = vpop.eup %12550 }
0x1ed5   : > { %v3509_v16 = vpack.c.bf16 %v12551_v32, %v12549_v61 }
0x1ed7   : > { %11147 = vmatmul.mubr.bf16.vlgmr.msra.gmra.mrb[84].mxu1 %v3509_v16 }
0x1ed8   : > { %11151 = vmatpush3.bf16.msra.mxu1 %v14498_v62  ;;  %11154 = vmatprep.mubr.msk.bf16.mxu1 %vm13094_vm0, %v17418_v22 }
0x1ed9   : > { %11152 = vmatprep.subr.bf16.mxu1 %v17418_v22 }
0x1edc   : > { %11153 = vmatpush3.bf16.msra.mxu1 %v14507_v11 }
0x1edd   : > { %11158 = vmatprep.subr.bf16.mxu1 %v17418_v22 }
0x1faa   : > { %v3544_v19 = vpop.f32.mrb[84].mxu1 }
0x1fab   : > { %v3551_v47 = vmul.f32 -0.023809532, %v3544_v19  ;;  %v11148_v24 = vpop.f32.mrb[85].mxu1 }
0x1fac   : > { %v3547_v25 = vpop.f32.mrb[86].mxu1 }
0x1fad   : > { %v3553_v23 = vadd.f32 %v3551_v47, %v3460_v4  ;;  %v3552_v26 = vmul.f32 -0.023809532, %v3547_v25  ;;  %v11149_v17 = vpop.f32.mrb[87].mxu1 }
0x1faf   : > { %v3554_v31 = vadd.f32 %v3552_v26, %v3461_v14  ;;  %v14512_v51 = vadd.f32 %v3553_v23, %v14246_v58  ;;  %v14608_v23 = vld [vmem:[%s17405_s30] ss:$0 sm:$0xff] }
0x1fb1   : > { %v14515_v2 = vadd.f32 %v3554_v31, %v14246_v58  ;;  %v14579_v58 = vld [vmem:[%s17402_s0 + $0x30] sm:$0xff]  }
0x1fb3   : > { %v3563_v13 = vpack.c.bf16 %v14515_v2, %v14512_v51 }
0x1fb5   : > { %9734 = vmatmul.mubr.msk.bf16.vlgmr.msra.gmra.mrb[64].mxu0 %vm1003_vm1, %v3563_v13 }
0x1fb6   : > { %3662 = vmatpush1.bf16.msra.mxu0 %v14061_v45  ;;  %3693 = vmatprep.mubr.bf16.mxu0 %v17422_v5  ;;  %v14537_v45 = vld [vmem:[%s17402_s0 + $0x58] sm:$0xff]  }
0x1fb7   : > { %10093 = vmatprep.subr.bf16.mxu0 %v14068_v46  ;;  %v14543_v46 = vld [vmem:[%s17402_s0 + $0x18] sm:$0xff]  }
0x1fc1   : > { %9735 = vmatmul.mubr.msk.bf16.vlgmr.msra.gmra.mrb[64].mxu0 %vm1307_vm2, %v14525_v44 }
0x1fc2   : > { %10094 = vmatpush3.bf16.msra.mxu0 %v14080_v35  ;;  %v14549_v35 = vld [vmem:[%s17402_s0 + $0x60] sm:$0xff]  }
0x1fc3   : > { %10095 = vmatprep.subr.bf16.mxu0 %v14086_v59  ;;  %v14555_v59 = vld [vmem:[%s17402_s0 + $0x20] sm:$0xff]  }
0x1fc6   : > { %10096 = vmatpush3.bf16.msra.mxu0 %v14092_v48  ;;  %v14561_v48 = vld [vmem:[%s17402_s0 + $0x68] sm:$0xff]  }
0x1fc7   : > { %10097 = vmatprep.subr.bf16.mxu0 %v14098_v20  ;;  %v14567_v20 = vld [vmem:[%s17402_s0 + $0x28] sm:$0xff]  }
0x1fca   : > { %10098 = vmatpush3.bf16.msra.mxu0 %v14104_v49  ;;  %v14573_v49 = vld [vmem:[%s17402_s0 + $0x70] sm:$0xff]  }
0x1fcb   : > { %10099 = vmatprep.subr.bf16.mxu0 %v14537_v45 }
0x1fce   : > { %10100 = vmatpush3.bf16.msra.mxu0 %v14543_v46 }
0x1fcf   : > { %10101 = vmatprep.subr.bf16.mxu0 %v14549_v35 }
0x1fd2   : > { %10102 = vmatpush3.bf16.msra.mxu0 %v14555_v59 }
0x1fd3   : > { %10103 = vmatprep.subr.bf16.mxu0 %v14561_v48 }
0x1fd6   : > { %10104 = vmatpush3.bf16.msra.mxu0 %v14567_v20 }
0x1fd7   : > { %10105 = vmatprep.subr.bf16.mxu0 %v14573_v49 }
0x1fda   : > { %10106 = vmatpush3.bf16.msra.mxu0 %v14579_v58 }
0x1fdb   : > { %10107 = vmatprep.subr.bf16.mxu0 %v14585_v50 }
0x1fde   : > { %10108 = vmatpush3.bf16.msra.mxu0 %v14591_v18 }
0x1fdf   : > { %11192 = vmatprep.subr.bf16.mxu0 %v17418_v22 }
0x2094   : > { %v3695_v6 = vpop.f32.mrb[64].mxu0 }
0x2095   : > { %v3708_v37 = vadd.f32 %v3695_v6, %v13596_v55  ;;  %v3697_v10 = vpop.f32.mrb[65].mxu0 }
0x2096   : > { %v3709_v4 = vadd.f32 %v3697_v10, %v13598_v56  ;;  %v3699_v14 = vpop.f32.mrb[66].mxu0 }
0x2097   : > { %12552 = vtanh.f32 %v3708_v37  ;;  %v3710_v8 = vadd.f32 %v3699_v14, %v13596_v55  ;;  %v3701_v43 = vpop.f32.mrb[67].mxu0 }
0x2098   : > { %12554 = vtanh.f32 %v3709_v4  ;;  %v3711_v54 = vadd.f32 %v3701_v43, %v13598_v56  ;;  %v9732_v43 = vld [vmem:[%s13645_s5 + $0x28] sm:$0xff] }
0x2099   : > { %12556 = vtanh.f32 %v3710_v8  ;;  %v9731_v8 = vld [vmem:[%s13645_s5 + $0x20] sm:$0xff] }
0x209a   : > { %12558 = vtanh.f32 %v3711_v54  ;;  %v3998_v54 = vsub.f32 1.0, %v9731_v8 }
0x20a1   : > { %v12553_v9 = vpop.eup %12552 }
0x20a2   : > { %v12555_v53 = vpop.eup %12554 }
0x20a3   : > { %v12557_v60 = vpop.eup %12556 }
0x20a4   : > { %v12559_v63 = vpop.eup %12558  ;;  %v3716_v61 = vpack.c.bf16 %v12557_v60, %v12553_v9  ;;  %v3999_v9 = vsub.f32 1.0, %v9732_v43 }
0x20a5   : > { %v3717_v32 = vpack.c.bf16 %v12559_v63, %v12555_v53 }
0x20a7   : > { %3750 = vmatprep.mubr.bf16.mxu0 %v3717_v32 }
0x20a8   : > { %3751 = vmatmul.mubr.bf16.vlgmr.msra.gmra.mrb[68].mxu0 %v3716_v61 }
0x20a9   : > { %11193 = vmatpush3.bf16.msra.mxu0 %v14332_v27  ;;  %11196 = vmatprep.mubr.msk.bf16.mxu0 %vm13094_vm0, %v17418_v22 }
0x20aa   : > { %11194 = vmatprep.subr.bf16.mxu0 %v17418_v22 }
0x20ad   : > { %11195 = vmatpush3.bf16.msra.mxu0 %v14341_v40 }
0x20ae   : > { %11200 = vmatprep.subr.bf16.mxu0 %v17418_v22 }
0x217b   : > { %v10109_v16 = vpop.f32.mrb[68].mxu0 }
0x217c   : > { %v10110_v19 = vpop.f32.mrb[69].mxu0 }
0x217d   : > { %v10111_v47 = vadd.f32 %v10110_v19, %v10109_v16  ;;  %v10112_v24 = vpop.f32.mrb[70].mxu0  ;;  %v14628_v16 = vld [vmem:[%s17407_s23] sm:$0xff]  }
0x217e   : > { %v10113_v25 = vpop.f32.mrb[71].mxu0 }
0x217f   : > { %v3753_v26 = vadd.f32 %v14608_v23, %v10111_v47  ;;  %v10114_v17 = vadd.f32 %v10113_v25, %v10112_v24  ;;  %v14639_v24 = vld [vmem:[%s17407_s23 + $0x8] sm:$0xff]  }
0x2181   : > { %v9736_v31 = vmul.f32 -1.442695, %v3753_v26  ;;  %v3756_v13 = vadd.f32 %v14608_v23, %v10114_v17  ;;  %v14647_v26 = vld [vmem:[%s17271_s10] sm:$0xff]  }
0x2182   : > { %17433 = vst [vmem:[#allocation18_spill] sm:$0xff] %v14647_v26  ;;  %v14658_v17 = vld [vmem:[%s17273_s12] sm:$0xff]  }
0x2183   : > { %12560 = vpow2.f32 %v9736_v31  ;;  %v9737_v41 = vmul.f32 -1.442695, %v3756_v13  ;;  %17434 = vst [vmem:[#allocation19_spill] sm:$0xff] %v14658_v17  ;;  %v14667_v31 = vld [vmem:[%s17273_s12 + $0x8] sm:$0xff]   ;;  %v14681_v13 = vld [vmem:[%s17273_s12 + $0x18] sm:$0xff]  }
0x2184   : > { %17435 = vst [vmem:[#allocation20_spill] sm:$0xff] %v14667_v31  ;;  %17437 = vst [vmem:[#allocation22_spill] sm:$0xff] %v14681_v13 }
0x2185   : > { %12562 = vpow2.f32 %v9737_v41  ;;  %v14688_v41 = vld [vmem:[%s17273_s12 + $0x20] sm:$0xff]  }
0x2186   : > { %17438 = vst [vmem:[#allocation23_spill] sm:$0xff] %v14688_v41 }
0x218d   : > { %v12561_v34 = vpop.eup %12560 }
0x218e   : > { %v3765_v6 = vadd.f32 1.0, %v12561_v34  ;;  %v14695_v34 = vld [vmem:[%s17273_s12 + $0x28] sm:$0xff]  }
0x218f   : > { %v12563_v37 = vpop.eup %12562  ;;  %17439 = vst [vmem:[#allocation24_spill] sm:$0xff] %v14695_v34 }
0x2190   : > { %12564 = vrcp.f32 %v3765_v6  ;;  %v3766_v10 = vadd.f32 1.0, %v12563_v37  ;;  %v14702_v6 = vld [vmem:[%s17273_s12 + $0x30] sm:$0xff]   ;;  %v14709_v37 = vld [vmem:[%s17273_s12 + $0x38] sm:$0xff]  }
0x2191   : > { %17440 = vst [vmem:[#allocation25_spill] sm:$0xff] %v14702_v6  ;;  %17441 = vst [vmem:[#allocation26_spill] sm:$0xff] %v14709_v37 }
0x2192   : > { %12566 = vrcp.f32 %v3766_v10 }
0x219a   : > { %v14612_v4 = vpop.eup %12564 }
0x219b   : > { %3773 = vrot.lane.b32.xlu0 %v14612_v4, %s17419_s4 }
0x219c   : > { %v14616_v14 = vpop.eup %12566 }
0x219d   : > { %3775 = vrot.lane.b32.xlu1 %v14616_v14, %s17419_s4 }
0x219f   : > { %3988 = vperm.xlu0 %12393, %v9731_v8  }
0x21a1   : > { %3993 = vperm.xlu1 %12392, %v9732_v43  }
0x21a3   : > { %4002 = vperm.xlu0 %12393, %v3998_v54  }
0x21a5   : > { %4007 = vperm.xlu1 %12392, %v3999_v9  }
0x220d   : > { %v3774_v53 = vpop.permute.xlu0 %3773 }
0x220e   : > { %v3782_v63 = vmul.f32 %v3774_v53, %v14423_v0  ;;  %v3779_v47 = vmul.f32 %v3774_v53, %v14512_v51 }
0x220f   : > { %v3776_v60 = vpop.permute.xlu1 %3775 }
0x2210   : > { %v3783_v61 = vmul.f32 %v3776_v60, %v14415_v7  ;;  %v3780_v19 = vmul.f32 %v3776_v60, %v14515_v2 }
0x2212   : > { %v3784_v32 = vpack.c.bf16 %v3783_v61, %v3782_v63  ;;  %v3781_v25 = vpack.c.bf16 %v3780_v19, %v3779_v47 }
0x2214   : > { %11155 = vmatmul.mubr.msk.bf16.vlgmr.msra.gmra.mrb[88].mxu1 %vm1003_vm1, %v3784_v32 }
0x2215   : > { %11159 = vmatpush3.bf16.msra.mxu1 %v14628_v16  ;;  %11162 = vmatprep.mubr.msk.bf16.mxu1 %vm13094_vm0, %v17418_v22 }
0x2216   : > { %11160 = vmatprep.subr.bf16.mxu1 %v17418_v22 }
0x2219   : > { %11161 = vmatpush3.bf16.msra.mxu1 %v14639_v24 }
0x221a   : > { %11166 = vmatprep.subr.bf16.mxu1 %v17418_v22 }
0x221c   : > { %11163 = vmatmul.mubr.msk.bf16.vlgmr.msra.gmra.mrb[92].mxu1 %vm1003_vm1, %v3781_v25 }
0x221d   : > { %11167 = vmatpush3.bf16.msra.mxu1 %v14647_v26  ;;  %11168 = vmatprep.mubr.msk.bf16.mxu1 %vm13094_vm0, %v17418_v22 }
0x221e   : > { %11172 = vmatprep.subr.bf16.mxu1 %v17418_v22 }
0x2224   : > { %11169 = vmatmul.mubr.msk.bf16.vlgmr.msra.gmra.mrb[96].mxu1 %vm1307_vm2, %v14525_v44  ;;  %v14674_v44 = vld [vmem:[%s17273_s12 + $0x10] sm:$0xff]  }
0x2225   : > { %11173 = vmatpush3.bf16.msra.mxu1 %v14658_v17  ;;  %11188 = vmatprep.mubr.msk.bf16.mxu1 %vm13094_vm0, %v17418_v22  ;;  %17436 = vst [vmem:[#allocation21_spill] sm:$0xff] %v14674_v44 }
0x2226   : > { %11174 = vmatprep.subr.bf16.mxu1 %v17418_v22 }
0x2229   : > { %11175 = vmatpush3.bf16.msra.mxu1 %v14667_v31 }
0x222a   : > { %11176 = vmatprep.subr.bf16.mxu1 %v17418_v22 }
0x222d   : > { %11177 = vmatpush3.bf16.msra.mxu1 %v14674_v44 }
0x222e   : > { %11178 = vmatprep.subr.bf16.mxu1 %v17418_v22 }
0x2231   : > { %11179 = vmatpush3.bf16.msra.mxu1 %v14681_v13 }
0x2232   : > { %11180 = vmatprep.subr.bf16.mxu1 %v17418_v22 }
0x2235   : > { %11181 = vmatpush3.bf16.msra.mxu1 %v14688_v41 }
0x2236   : > { %11182 = vmatprep.subr.bf16.mxu1 %v17418_v22 }
0x2239   : > { %11183 = vmatpush3.bf16.msra.mxu1 %v14695_v34 }
0x223a   : > { %11184 = vmatprep.subr.bf16.mxu1 %v17418_v22 }
0x223d   : > { %11185 = vmatpush3.bf16.msra.mxu1 %v14702_v6 }
0x223e   : > { %11186 = vmatprep.subr.bf16.mxu1 %v17418_v22 }
0x2241   : > { %11187 = vmatpush3.bf16.msra.mxu1 %v14709_v37  ;;  %v14716_v37 = vld [vmem:[%s17272_s11] ss:$0 sm:$0xff] }
0x2242   : > { %11220 = vmatprep.subr.bf16.mxu1 %v17418_v22  ;;  %17442 = vst [vmem:[#allocation27_spill] sm:$0xff] %v14716_v37 }
0x22e7   : > { %v3822_v10 = vpop.f32.mrb[88].mxu1 }
0x22e8   : > { %v11156_v8 = vpop.f32.mrb[89].mxu1 }
0x22e9   : > { %v3825_v43 = vpop.f32.mrb[90].mxu1 }
0x22ea   : > { %v11157_v54 = vpop.f32.mrb[91].mxu1 }
0x22ef   : > { %v3866_v9 = vpop.f32.mrb[92].mxu1 }
0x22f0   : > { %v3867_v53 = vadd.f32 %v3866_v9, %v3822_v10  ;;  %v11164_v60 = vpop.f32.mrb[93].mxu1 }
0x22f1   : > { %v3869_v63 = vpop.f32.mrb[94].mxu1 }
0x22f2   : > { %v3870_v61 = vadd.f32 %v3869_v63, %v3825_v43  ;;  %v11165_v32 = vpop.f32.mrb[95].mxu1  ;;  %v17330_v63 = vsub.f32 1.0, %v14612_v4 }
0x22f3   : > { %v3968_v32 = vmul.f32 %v14612_v4, %v14512_v51 }
0x22f7   : > { %v3907_v19 = vpop.f32.mrb[96].mxu1 }
0x22f8   : > { %v3914_v47 = vadd.f32 %v3907_v19, %v3867_v53  ;;  %v11170_v25 = vpop.f32.mrb[97].mxu1  ;;  %v14733_v53 = vld [vmem:[%s17274_s13] ss:$0 sm:$0xff] }
0x22f9   : > { %v3910_v6 = vpop.f32.mrb[98].mxu1  ;;  %17443 = vst [vmem:[#allocation28_spill] sm:$0xff] %v14733_v53 }
0x22fa   : > { %v3916_v34 = vadd.f32 %v14716_v37, %v3914_v47  ;;  %v3915_v8 = vadd.f32 %v3910_v6, %v3870_v61  ;;  %v11171_v41 = vpop.f32.mrb[99].mxu1  ;;  %v14728_v6 = vpop.permute.xlu1 %3993 }
0x22fb   : > { %v14726_v41 = vpop.permute.xlu0 %3988 }
0x22fc   : > { %v3917_v54 = vadd.f32 %v14716_v37, %v3915_v8  ;;  %12568 = vtanh.f32 %v3916_v34 }
0x22fe   : > { %12570 = vtanh.f32 %v3917_v54  ;;  %v17331_v54 = vsub.f32 1.0, %v14616_v14  ;;  %v14750_v13 = vpop.permute.xlu1 %4007 }
0x22ff   : > { %v14748_v37 = vpop.permute.xlu0 %4002 }
0x2306   : > { %v12569_v10 = vpop.eup %12568 }
0x2308   : > { %v12571_v43 = vpop.eup %12570 }
0x2309   : > { %v3920_v9 = vpack.c.bf16 %v12571_v43, %v12569_v10 }
0x230b   : > { %11189 = vmatmul.mubr.bf16.vlgmr.msra.gmra.mrb[100].mxu1 %v3920_v9 }
0x230c   : > { %11221 = vmatpush3.bf16.msra.mxu1 %v14332_v27  ;;  %11224 = vmatprep.mubr.msk.bf16.mxu1 %vm13094_vm0, %v17418_v22 }
0x230d   : > { %11222 = vmatprep.subr.bf16.mxu1 %v17418_v22 }
0x2310   : > { %11223 = vmatpush3.bf16.msra.mxu1 %v14341_v40 }
0x2311   : > { %11228 = vmatprep.subr.bf16.mxu1 %v17418_v22 }
0x23de   : > { %v3955_v34 = vpop.f32.mrb[100].mxu1 }
0x23df   : > { %v3956_v60 = vadd.f32 %v14733_v53, %v3955_v34  ;;  %v11190_v61 = vpop.f32.mrb[101].mxu1 }
0x23e0   : > { %v3958_v19 = vpop.f32.mrb[102].mxu1  ;;  %v3969_v61 = vmul.f32 %v14616_v14, %v14515_v2 }
0x23e1   : > { %v3962_v47 = vand.u32 2147483647, %v3956_v60  ;;  %v3966_v25 = vmul.f32 %v17330_v63, %v3956_v60  ;;  %v3959_v8 = vadd.f32 %v14733_v53, %v3958_v19  ;;  %v11191_v10 = vpop.f32.mrb[103].mxu1 }
0x23e3   : > { %v3970_v43 = vadd.f32 %v3968_v32, %v3966_v25  ;;  %v3963_v9 = vand.u32 2147483647, %v3959_v8  ;;  %v3967_v34 = vmul.f32 %v17331_v54, %v3959_v8  ;;  %3974 = vrot.lane.b32.xlu0 %v3962_v47, %s17419_s4  ;;  %v4010_v32 = vmul.f32 %v14748_v37, %v14512_v51  ;;  %v14773_v51 = vld [vmem:[%s17282_s21 + $0x20] sm:$0xff]  }
0x23e4   : > { %v4011_v25 = vmul.f32 %v14750_v13, %v14515_v2  ;;  %v14780_v2 = vld [vmem:[%s17282_s21 + $0x28] sm:$0xff]  }
0x23e5   : > { %v3996_v60 = vmul.f32 %v14726_v41, %v3970_v43  ;;  %v3971_v19 = vadd.f32 %v3969_v61, %v3967_v34  ;;  %3976 = vrot.lane.b32.xlu1 %v3963_v9, %s17419_s4  ;;  %v14787_v43 = vld [vmem:[%s17282_s21 + $0x30] sm:$0xff]   ;;  %v14794_v9 = vld [vmem:[%s17282_s21 + $0x38] sm:$0xff]   ;;  %v14801_v61 = vld [vmem:[%s17281_s20] ss:$0 sm:$0xff] }
0x23e7   : > { %v3997_v8 = vmul.f32 %v14728_v6, %v3971_v19  ;;  %v4012_v10 = vadd.f32 %v4010_v32, %v3996_v60 }
0x23e9   : > { %v4013_v63 = vadd.f32 %v4011_v25, %v3997_v8 }
0x23eb   : > { %v4023_v47 = vpack.c.bf16 %v4013_v63, %v4012_v10 }
0x23ed   : > { %11197 = vmatmul.mubr.msk.bf16.vlgmr.msra.gmra.mrb[72].mxu0 %vm1003_vm1, %v4023_v47 }
0x23ee   : > { %11201 = vmatpush3.bf16.msra.mxu0 %v14357_v38  ;;  %11216 = vmatprep.mubr.msk.bf16.mxu0 %vm13094_vm0, %v17418_v22 }
0x23ef   : > { %11202 = vmatprep.subr.bf16.mxu0 %v17418_v22 }
0x23f2   : > { %11203 = vmatpush3.bf16.msra.mxu0 %v14366_v57 }
0x23f3   : > { %11204 = vmatprep.subr.bf16.mxu0 %v17418_v22 }
0x23f6   : > { %11205 = vmatpush3.bf16.msra.mxu0 %v14373_v33 }
0x23f7   : > { %11206 = vmatprep.subr.bf16.mxu0 %v17418_v22 }
0x23fa   : > { %11207 = vmatpush3.bf16.msra.mxu0 %v14481_v42 }
0x23fb   : > { %11208 = vmatprep.subr.bf16.mxu0 %v17418_v22 }
0x23fe   : > { %11209 = vmatpush3.bf16.msra.mxu0 %v14773_v51 }
0x23ff   : > { %11210 = vmatprep.subr.bf16.mxu0 %v17418_v22 }
0x2402   : > { %11211 = vmatpush3.bf16.msra.mxu0 %v14780_v2 }
0x2403   : > { %11212 = vmatprep.subr.bf16.mxu0 %v17418_v22 }
0x2406   : > { %11213 = vmatpush3.bf16.msra.mxu0 %v14787_v43 }
0x2407   : > { %11214 = vmatprep.subr.bf16.mxu0 %v17418_v22 }
0x240a   : > { %11215 = vmatpush3.bf16.msra.mxu0 %v14794_v9 }
0x240b   : > { %11248 = vmatprep.subr.bf16.mxu0 %v17418_v22 }
0x24c0   : > { %v4061_v34 = vpop.f32.mrb[72].mxu0 }
0x24c1   : > { %v4062_v60 = vadd.f32 %v14801_v61, %v4061_v34  ;;  %v11198_v19 = vpop.f32.mrb[73].mxu0  ;;  %v4022_v34 = vmul.f32 -0.023809522, %v14242_v28 }
0x24c2   : > { %v4064_v32 = vpop.f32.mrb[74].mxu0 }
0x24c3   : > { %v4065_v25 = vadd.f32 %v14801_v61, %v4064_v32  ;;  %v11199_v8 = vpop.f32.mrb[75].mxu0  ;;  %12572 = vtanh.f32 %v4062_v60 }
0x24c5   : > { %12574 = vtanh.f32 %v4065_v25 }
0x24cd   : > { %v12573_v47 = vpop.eup %12572 }
0x24cf   : > { %v12575_v54 = vpop.eup %12574 }
0x24d0   : > { %v4070_v53 = vpack.c.bf16 %v12575_v54, %v12573_v47  ;;  %v14813_v54 = vrot.slane %v4022_v34, %v13484_v3 }
0x24d2   : > { %11217 = vmatmul.mubr.bf16.vlgmr.msra.gmra.mrb[76].mxu0 %v4070_v53 }
0x24d3   : > { %11249 = vmatpush3.bf16.msra.mxu0 %v14332_v27  ;;  %11252 = vmatprep.mubr.msk.bf16.mxu0 %vm13094_vm0, %v17418_v22 }
0x24d4   : > { %11250 = vmatprep.subr.bf16.mxu0 %v17418_v22 }
0x24d7   : > { %11251 = vmatpush3.bf16.msra.mxu0 %v14341_v40 }
0x24d8   : > { %11256 = vmatprep.subr.bf16.mxu0 %v17418_v22 }
0x25a5   : > { %v4105_v19 = vpop.f32.mrb[76].mxu0 }
0x25a6   : > { %v4112_v60 = vmul.f32 -0.023809522, %v4105_v19  ;;  %v11218_v32 = vpop.f32.mrb[77].mxu0 }
0x25a7   : > { %v4108_v25 = vpop.f32.mrb[78].mxu0 }
0x25a8   : > { %v4114_v53 = vadd.f32 %v4112_v60, %v4012_v10  ;;  %v4113_v8 = vmul.f32 -0.023809522, %v4108_v25  ;;  %v11219_v47 = vpop.f32.mrb[79].mxu0 }
0x25aa   : > { %v4115_v44 = vadd.f32 %v4113_v8, %v4013_v63  ;;  %v4122_v31 = vadd.f32 %v14813_v54, %v4114_v53 }
0x25ac   : > { %v4123_v17 = vadd.f32 %v14813_v54, %v4115_v44 }
0x25ae   : > { %v4124_v26 = vpack.c.bf16 %v4123_v17, %v4122_v31 }
0x25b0   : > { %11225 = vmatmul.mubr.msk.bf16.vlgmr.msra.gmra.mrb[104].mxu1 %vm1003_vm1, %v4124_v26 }
0x25b1   : > { %11229 = vmatpush3.bf16.msra.mxu1 %v14357_v38  ;;  %11244 = vmatprep.mubr.msk.bf16.mxu1 %vm13094_vm0, %v17418_v22 }
0x25b2   : > { %11230 = vmatprep.subr.bf16.mxu1 %v17418_v22 }
0x25b5   : > { %11231 = vmatpush3.bf16.msra.mxu1 %v14366_v57 }
0x25b6   : > { %11232 = vmatprep.subr.bf16.mxu1 %v17418_v22 }
0x25b9   : > { %11233 = vmatpush3.bf16.msra.mxu1 %v14373_v33 }
0x25ba   : > { %11234 = vmatprep.subr.bf16.mxu1 %v17418_v22 }
0x25bd   : > { %11235 = vmatpush3.bf16.msra.mxu1 %v14481_v42 }
0x25be   : > { %11236 = vmatprep.subr.bf16.mxu1 %v17418_v22 }
0x25c1   : > { %11237 = vmatpush3.bf16.msra.mxu1 %v14773_v51 }
0x25c2   : > { %11238 = vmatprep.subr.bf16.mxu1 %v17418_v22 }
0x25c5   : > { %11239 = vmatpush3.bf16.msra.mxu1 %v14780_v2 }
0x25c6   : > { %11240 = vmatprep.subr.bf16.mxu1 %v17418_v22 }
0x25c9   : > { %11241 = vmatpush3.bf16.msra.mxu1 %v14787_v43 }
0x25ca   : > { %11242 = vmatprep.subr.bf16.mxu1 %v17418_v22 }
0x25cd   : > { %11243 = vmatpush3.bf16.msra.mxu1 %v14794_v9 }
0x25ce   : > { %11276 = vmatprep.subr.bf16.mxu1 %v17418_v22 }
0x2683   : > { %v4162_v28 = vpop.f32.mrb[104].mxu1 }
0x2684   : > { %v4163_v26 = vadd.f32 %v14801_v61, %v4162_v28  ;;  %v11226_v44 = vpop.f32.mrb[105].mxu1 }
0x2685   : > { %v4165_v63 = vpop.f32.mrb[106].mxu1 }
0x2686   : > { %v4166_v10 = vadd.f32 %v14801_v61, %v4165_v63  ;;  %v11227_v34 = vpop.f32.mrb[107].mxu1  ;;  %12576 = vtanh.f32 %v4163_v26 }
0x2688   : > { %12578 = vtanh.f32 %v4166_v10 }
0x2690   : > { %v12577_v19 = vpop.eup %12576 }
0x2692   : > { %v12579_v60 = vpop.eup %12578 }
0x2693   : > { %v4171_v32 = vpack.c.bf16 %v12579_v60, %v12577_v19 }
0x2695   : > { %11245 = vmatmul.mubr.bf16.vlgmr.msra.gmra.mrb[108].mxu1 %v4171_v32 }
0x2696   : > { %11277 = vmatpush3.bf16.msra.mxu1 %v14332_v27  ;;  %11280 = vmatprep.mubr.msk.bf16.mxu1 %vm13094_vm0, %v17418_v22 }
0x2697   : > { %11278 = vmatprep.subr.bf16.mxu1 %v17418_v22 }
0x269a   : > { %11279 = vmatpush3.bf16.msra.mxu1 %v14341_v40 }
0x269b   : > { %11284 = vmatprep.subr.bf16.mxu1 %v17418_v22 }
0x2768   : > { %v4206_v25 = vpop.f32.mrb[108].mxu1 }
0x2769   : > { %v4213_v53 = vmul.f32 -0.023809522, %v4206_v25  ;;  %v11246_v8 = vpop.f32.mrb[109].mxu1 }
0x276a   : > { %v4209_v47 = vpop.f32.mrb[110].mxu1 }
0x276b   : > { %v4215_v28 = vadd.f32 %v4213_v53, %v4122_v31  ;;  %v4214_v26 = vmul.f32 -0.023809522, %v4209_v47  ;;  %v11247_v44 = vpop.f32.mrb[111].mxu1 }
0x276d   : > { %v4216_v63 = vadd.f32 %v4214_v26, %v4123_v17  ;;  %v4217_v10 = vadd.f32 %v4215_v28, %v14813_v54 }
0x276f   : > { %v4218_v34 = vadd.f32 %v4216_v63, %v14813_v54 }
0x2771   : > { %v4219_v19 = vpack.c.bf16 %v4218_v34, %v4217_v10 }
0x2773   : > { %11253 = vmatmul.mubr.msk.bf16.vlgmr.msra.gmra.mrb[80].mxu0 %vm1003_vm1, %v4219_v19 }
0x2774   : > { %11257 = vmatpush3.bf16.msra.mxu0 %v14357_v38  ;;  %11272 = vmatprep.mubr.msk.bf16.mxu0 %vm13094_vm0, %v17418_v22 }
0x2775   : > { %11258 = vmatprep.subr.bf16.mxu0 %v17418_v22 }
0x2778   : > { %11259 = vmatpush3.bf16.msra.mxu0 %v14366_v57 }
0x2779   : > { %11260 = vmatprep.subr.bf16.mxu0 %v17418_v22 }
0x277c   : > { %11261 = vmatpush3.bf16.msra.mxu0 %v14373_v33 }
0x277d   : > { %11262 = vmatprep.subr.bf16.mxu0 %v17418_v22 }
0x2780   : > { %11263 = vmatpush3.bf16.msra.mxu0 %v14481_v42 }
0x2781   : > { %11264 = vmatprep.subr.bf16.mxu0 %v17418_v22 }
0x2784   : > { %11265 = vmatpush3.bf16.msra.mxu0 %v14773_v51 }
0x2785   : > { %11266 = vmatprep.subr.bf16.mxu0 %v17418_v22 }
0x2788   : > { %11267 = vmatpush3.bf16.msra.mxu0 %v14780_v2 }
0x2789   : > { %11268 = vmatprep.subr.bf16.mxu0 %v17418_v22 }
0x278c   : > { %11269 = vmatpush3.bf16.msra.mxu0 %v14787_v43 }
0x278d   : > { %11270 = vmatprep.subr.bf16.mxu0 %v17418_v22 }
0x2790   : > { %11271 = vmatpush3.bf16.msra.mxu0 %v14794_v9 }
0x2791   : > { %11304 = vmatprep.subr.bf16.mxu0 %v17418_v22 }
0x2846   : > { %v4257_v17 = vpop.f32.mrb[80].mxu0 }
0x2847   : > { %v4258_v31 = vadd.f32 %v14801_v61, %v4257_v17  ;;  %v11254_v60 = vpop.f32.mrb[81].mxu0 }
0x2848   : > { %v4260_v32 = vpop.f32.mrb[82].mxu0 }
0x2849   : > { %v4261_v25 = vadd.f32 %v14801_v61, %v4260_v32  ;;  %v11255_v53 = vpop.f32.mrb[83].mxu0  ;;  %12580 = vtanh.f32 %v4258_v31 }
0x284b   : > { %12582 = vtanh.f32 %v4261_v25 }
0x2853   : > { %v12581_v8 = vpop.eup %12580 }
0x2855   : > { %v12583_v47 = vpop.eup %12582 }
0x2856   : > { %v4266_v28 = vpack.c.bf16 %v12583_v47, %v12581_v8 }
0x2858   : > { %11273 = vmatmul.mubr.bf16.vlgmr.msra.gmra.mrb[84].mxu0 %v4266_v28 }
0x2859   : > { %11305 = vmatpush3.bf16.msra.mxu0 %v14332_v27  ;;  %11308 = vmatprep.mubr.msk.bf16.mxu0 %vm13094_vm0, %v17418_v22 }
0x285a   : > { %11306 = vmatprep.subr.bf16.mxu0 %v17418_v22 }
0x285d   : > { %11307 = vmatpush3.bf16.msra.mxu0 %v14341_v40 }
0x285e   : > { %11312 = vmatprep.subr.bf16.mxu0 %v17418_v22 }
0x292b   : > { %v4301_v26 = vpop.f32.mrb[84].mxu0 }
0x292c   : > { %v4308_v44 = vmul.f32 -0.023809522, %v4301_v26  ;;  %v11274_v63 = vpop.f32.mrb[85].mxu0 }
0x292d   : > { %v4304_v19 = vpop.f32.mrb[86].mxu0 }
0x292e   : > { %v4310_v17 = vadd.f32 %v4308_v44, %v4217_v10  ;;  %v4309_v31 = vmul.f32 -0.023809522, %v4304_v19  ;;  %v11275_v60 = vpop.f32.mrb[87].mxu0 }
0x2930   : > { %v4311_v32 = vadd.f32 %v4309_v31, %v4218_v34  ;;  %v4312_v25 = vadd.f32 %v4310_v17, %v14813_v54 }
0x2932   : > { %v4313_v53 = vadd.f32 %v4311_v32, %v14813_v54 }
0x2934   : > { %v4314_v8 = vpack.c.bf16 %v4313_v53, %v4312_v25 }
0x2936   : > { %11281 = vmatmul.mubr.msk.bf16.vlgmr.msra.gmra.mrb[112].mxu1 %vm1003_vm1, %v4314_v8 }
0x2937   : > { %11285 = vmatpush3.bf16.msra.mxu1 %v14357_v38  ;;  %11300 = vmatprep.mubr.msk.bf16.mxu1 %vm13094_vm0, %v17418_v22 }
0x2938   : > { %11286 = vmatprep.subr.bf16.mxu1 %v17418_v22 }
0x293b   : > { %11287 = vmatpush3.bf16.msra.mxu1 %v14366_v57 }
0x293c   : > { %11288 = vmatprep.subr.bf16.mxu1 %v17418_v22 }
0x293f   : > { %11289 = vmatpush3.bf16.msra.mxu1 %v14373_v33 }
0x2940   : > { %11290 = vmatprep.subr.bf16.mxu1 %v17418_v22 }
0x2943   : > { %11291 = vmatpush3.bf16.msra.mxu1 %v14481_v42 }
0x2944   : > { %11292 = vmatprep.subr.bf16.mxu1 %v17418_v22 }
0x2947   : > { %11293 = vmatpush3.bf16.msra.mxu1 %v14773_v51 }
0x2948   : > { %11294 = vmatprep.subr.bf16.mxu1 %v17418_v22 }
0x294b   : > { %11295 = vmatpush3.bf16.msra.mxu1 %v14780_v2 }
0x294c   : > { %11296 = vmatprep.subr.bf16.mxu1 %v17418_v22 }
0x294f   : > { %11297 = vmatpush3.bf16.msra.mxu1 %v14787_v43 }
0x2950   : > { %11298 = vmatprep.subr.bf16.mxu1 %v17418_v22 }
0x2953   : > { %11299 = vmatpush3.bf16.msra.mxu1 %v14794_v9 }
0x2954   : > { %11332 = vmatprep.subr.bf16.mxu1 %v17418_v22 }
0x2a09   : > { %v4352_v10 = vpop.f32.mrb[112].mxu1 }
0x2a0a   : > { %v4353_v34 = vadd.f32 %v14801_v61, %v4352_v10  ;;  %v11282_v47 = vpop.f32.mrb[113].mxu1 }
0x2a0b   : > { %v4355_v28 = vpop.f32.mrb[114].mxu1 }
0x2a0c   : > { %v4356_v26 = vadd.f32 %v14801_v61, %v4355_v28  ;;  %v11283_v44 = vpop.f32.mrb[115].mxu1  ;;  %12584 = vtanh.f32 %v4353_v34 }
0x2a0e   : > { %12586 = vtanh.f32 %v4356_v26 }
0x2a16   : > { %v12585_v63 = vpop.eup %12584 }
0x2a18   : > { %v12587_v19 = vpop.eup %12586 }
0x2a19   : > { %v4361_v17 = vpack.c.bf16 %v12587_v19, %v12585_v63 }
0x2a1b   : > { %11301 = vmatmul.mubr.bf16.vlgmr.msra.gmra.mrb[116].mxu1 %v4361_v17  ;;  %v17444_v17 = vsub.f32 1.0, %v14616_v14 }
0x2a1c   : > { %11333 = vmatpush3.bf16.msra.mxu1 %v14332_v27  ;;  %11336 = vmatprep.mubr.msk.bf16.mxu1 %vm13094_vm0, %v17418_v22 }
0x2a1d   : > { %11334 = vmatprep.subr.bf16.mxu1 %v17418_v22 }
0x2a20   : > { %11335 = vmatpush3.bf16.msra.mxu1 %v14341_v40 }
0x2a21   : > { %11340 = vmatprep.subr.bf16.mxu1 %v17418_v22 }
0x2aee   : > { %v4396_v31 = vpop.f32.mrb[116].mxu1 }
0x2aef   : > { %v4403_v60 = vmul.f32 -0.023809522, %v4396_v31  ;;  %v11302_v32 = vpop.f32.mrb[117].mxu1 }
0x2af0   : > { %v4399_v8 = vpop.f32.mrb[118].mxu1 }
0x2af1   : > { %v4405_v10 = vadd.f32 %v4403_v60, %v4312_v25  ;;  %v4404_v34 = vmul.f32 -0.023809522, %v4399_v8  ;;  %v11303_v47 = vpop.f32.mrb[119].mxu1  ;;  %v17445_v60 = vsub.f32 1.0, %v14612_v4  ;;  %v3982_v8 = vmul.f32 %v14612_v4, %v14423_v0 }
0x2af3   : > { %v4406_v28 = vadd.f32 %v4404_v34, %v4313_v53  ;;  %v14903_v26 = vadd.f32 %v4405_v10, %v14813_v54  ;;  %v3975_v53 = vpop.permute.xlu0 %3974 }
0x2af4   : > { %v3980_v32 = vmul.f32 %v3975_v53, %v17445_v60 }
0x2af5   : > { %v14906_v27 = vadd.f32 %v4406_v28, %v14813_v54 }
0x2af6   : > { %v3984_v34 = vadd.f32 %v3982_v8, %v3980_v32 }
0x2af7   : > { %v4409_v44 = vpack.c.bf16 %v14906_v27, %v14903_v26 }
0x2af9   : > { %11309 = vmatmul.mubr.msk.bf16.vlgmr.msra.gmra.mrb[88].mxu0 %vm1003_vm1, %v4409_v44  ;;  %v4017_v44 = vmul.f32 %v14750_v13, %v14415_v7 }
0x2afa   : > { %11313 = vmatpush3.bf16.msra.mxu0 %v14357_v38  ;;  %11328 = vmatprep.mubr.msk.bf16.mxu0 %vm13094_vm0, %v17418_v22  ;;  %v3977_v38 = vpop.permute.xlu1 %3976 }
0x2afb   : > { %11314 = vmatprep.subr.bf16.mxu0 %v17418_v22  ;;  %v3981_v31 = vmul.f32 %v3977_v38, %v17444_v17 }
0x2afe   : > { %11315 = vmatpush3.bf16.msra.mxu0 %v14366_v57 }
0x2aff   : > { %11316 = vmatprep.subr.bf16.mxu0 %v17418_v22 }
0x2b02   : > { %11317 = vmatpush3.bf16.msra.mxu0 %v14373_v33 }
0x2b03   : > { %11318 = vmatprep.subr.bf16.mxu0 %v17418_v22 }
0x2b06   : > { %11319 = vmatpush3.bf16.msra.mxu0 %v14481_v42 }
0x2b07   : > { %11320 = vmatprep.subr.bf16.mxu0 %v17418_v22 }
0x2b0a   : > { %11321 = vmatpush3.bf16.msra.mxu0 %v14773_v51 }
0x2b0b   : > { %11322 = vmatprep.subr.bf16.mxu0 %v17418_v22 }
0x2b0e   : > { %11323 = vmatpush3.bf16.msra.mxu0 %v14780_v2 }
0x2b0f   : > { %11324 = vmatprep.subr.bf16.mxu0 %v17418_v22 }
0x2b12   : > { %11325 = vmatpush3.bf16.msra.mxu0 %v14787_v43 }
0x2b13   : > { %11326 = vmatprep.subr.bf16.mxu0 %v17418_v22 }
0x2b16   : > { %11327 = vmatpush3.bf16.msra.mxu0 %v14794_v9 }
0x2b17   : > { %4610 = vmatprep.subr.bf16.mxu0 %v14389_v36  ;;  %v3983_v36 = vmul.f32 %v14616_v14, %v14415_v7 }
0x2b19   : > { %v3985_v10 = vadd.f32 %v3983_v36, %v3981_v31 }
0x2b1b   : > { %v4015_v47 = vmul.f32 %v14728_v6, %v3985_v10 }
0x2bcc   : > { %v4447_v40 = vpop.f32.mrb[88].mxu0 }
0x2bcd   : > { %v4448_v57 = vadd.f32 %v14801_v61, %v4447_v40  ;;  %v11310_v33 = vpop.f32.mrb[89].mxu0  ;;  %v4014_v40 = vmul.f32 %v14726_v41, %v3984_v34 }
0x2bce   : > { %v4450_v25 = vpop.f32.mrb[90].mxu0  ;;  %v4019_v33 = vadd.f32 %v4017_v44, %v4015_v47 }
0x2bcf   : > { %v4451_v63 = vadd.f32 %v14801_v61, %v4450_v25  ;;  %v11311_v19 = vpop.f32.mrb[91].mxu0  ;;  %12588 = vtanh.f32 %v4448_v57  ;;  %v4016_v57 = vmul.f32 %v14748_v37, %v14423_v0 }
0x2bd0   : > { %v14947_v4 = vand.u32 2147483647, %v4019_v33  ;;  %v15020_v33 = vld [vmem:[%s17400_s1] ss:$8 sps:$4 sm:$0xff]  }
0x2bd1   : > { %12590 = vtanh.f32 %v4451_v63  ;;  %v4018_v14 = vadd.f32 %v4016_v57, %v4014_v40 }
0x2bd3   : > { %v14950_v6 = vand.u32 2147483647, %v4018_v14  ;;  %v9747_v14 = vld [vmem:[%s13507_s27 + $0x30] sm:$0xff] }
0x2bd5   : > { %v4606_v7 = vpack.c.bf16 %v14947_v4, %v14950_v6 }
0x2bd9   : > { %v12589_v28 = vpop.eup %12588 }
0x2bdb   : > { %v12591_v38 = vpop.eup %12590 }
0x2bdc   : > { %v4456_v25 = vpack.c.bf16 %v12591_v38, %v12589_v28 }
0x2bde   : > { %11329 = vmatmul.mubr.bf16.vlgmr.msra.gmra.mrb[92].mxu0 %v4456_v25  ;;  %v15027_v25 = vld [vmem:[%s17402_s0 + $0x40] sm:$0xff]  }
0x2bdf   : > { %4611 = vmatpush1.bf16.msra.mxu0 %v14411_v1  ;;  %4642 = vmatprep.mubr.bf16.mxu0 %v17422_v5 }
0x2be0   : > { %4612 = vmatprep.subr.bf16.mxu0 %v14420_v29 }
0x2be3   : > { %4613 = vmatpush1.bf16.msra.mxu0 %v14428_v30 }
0x2be4   : > { %4656 = vmatprep.subr.bf16.mxu0 %v14436_v39 }
0x2be6   : > { %9751 = vmatmul.mubr.msk.bf16.vlgmr.msra.gmra.mrb[96].mxu0 %vm1003_vm1, %v4606_v7  ;;  %v9748_v7 = vld [vmem:[%s13507_s27 + $0x38] sm:$0xff] }
0x2be7   : > { %4657 = vmatpush1.bf16.msra.mxu0 %v14443_v21  ;;  %4688 = vmatprep.mubr.bf16.mxu0 %v17422_v5 }
0x2be8   : > { %4658 = vmatprep.subr.bf16.mxu0 %v14450_v52  ;;  %v14970_v52 = vld [vmem:[%s17282_s21] sm:$0xff]  }
0x2beb   : > { %4659 = vmatpush1.bf16.msra.mxu0 %v14456_v15  ;;  %v14979_v15 = vld [vmem:[%s17282_s21 + $0x8] sm:$0xff]  }
0x2bec   : > { %4703 = vmatprep.subr.bf16.mxu0 %v14462_v12  ;;  %v14986_v12 = vld [vmem:[%s17282_s21 + $0x10] sm:$0xff]  }
0x2cb1   : > { %v4491_v1 = vpop.f32.mrb[92].mxu0 }
0x2cb2   : > { %v4498_v29 = vmul.f32 -0.023809522, %v4491_v1  ;;  %v11330_v0 = vpop.f32.mrb[93].mxu0  ;;  %v15032_v1 = vpack.c.bf16 %v9748_v7, %v9747_v14 }
0x2cb3   : > { %v4494_v30 = vpop.f32.mrb[94].mxu0  ;;  %v15045_v0 = vld [vmem:[%s17402_s0 + $0x48] sm:$0xff]  }
0x2cb4   : > { %v4500_v13 = vadd.f32 %v4498_v29, %v14903_v26  ;;  %v4499_v37 = vmul.f32 -0.023809522, %v4494_v30  ;;  %v11331_v39 = vpop.f32.mrb[95].mxu0  ;;  %v15039_v29 = vld [vmem:[%s17402_s0] sm:$0xff]   ;;  %v15051_v30 = vld [vmem:[%s17402_s0 + $0x8] sm:$0xff]  }
0x2cb6   : > { %v4501_v41 = vadd.f32 %v4499_v37, %v14906_v27  ;;  %v4502_v21 = vadd.f32 %v4500_v13, %v14813_v54  ;;  %v15057_v13 = vld [vmem:[%s17402_s0 + $0x50] sm:$0xff]  }
0x2cb7   : > { %v15063_v37 = vld [vmem:[%s17402_s0 + $0x10] sm:$0xff]  }
0x2cb8   : > { %v4503_v53 = vadd.f32 %v4501_v41, %v14813_v54 }
0x2cba   : > { %v4504_v63 = vpack.c.bf16 %v4503_v53, %v4502_v21 }
0x2cbc   : > { %11337 = vmatmul.mubr.msk.bf16.vlgmr.msra.gmra.mrb[120].mxu1 %vm1003_vm1, %v4504_v63  ;;  %v15084_v63 = vld [vmem:[%s17280_s19] sm:$0xff]  }
0x2cbd   : > { %11341 = vmatpush3.bf16.msra.mxu1 %v14970_v52  ;;  %11356 = vmatprep.mubr.msk.bf16.mxu1 %vm13094_vm0, %v17418_v22 }
0x2cbe   : > { %11342 = vmatprep.subr.bf16.mxu1 %v17418_v22 }
0x2cc1   : > { %11343 = vmatpush3.bf16.msra.mxu1 %v14979_v15 }
0x2cc2   : > { %11344 = vmatprep.subr.bf16.mxu1 %v17418_v22 }
0x2cc5   : > { %11345 = vmatpush3.bf16.msra.mxu1 %v14986_v12 }
0x2cc6   : > { %11346 = vmatprep.subr.bf16.mxu1 %v17418_v22 }
0x2cc9   : > { %11347 = vmatpush3.bf16.msra.mxu1 %v14481_v42 }
0x2cca   : > { %11348 = vmatprep.subr.bf16.mxu1 %v17418_v22 }
0x2ccd   : > { %11349 = vmatpush3.bf16.msra.mxu1 %v14773_v51 }
0x2cce   : > { %11350 = vmatprep.subr.bf16.mxu1 %v17418_v22 }
0x2cd1   : > { %11351 = vmatpush3.bf16.msra.mxu1 %v14780_v2 }
0x2cd2   : > { %11352 = vmatprep.subr.bf16.mxu1 %v17418_v22 }
0x2cd5   : > { %11353 = vmatpush3.bf16.msra.mxu1 %v14787_v43 }
0x2cd6   : > { %11354 = vmatprep.subr.bf16.mxu1 %v17418_v22 }
0x2cd9   : > { %11355 = vmatpush3.bf16.msra.mxu1 %v14794_v9 }
0x2cda   : > { %11360 = vmatprep.subr.bf16.mxu1 %v17418_v22 }
0x2d8f   : > { %v4542_v26 = vpop.f32.mrb[120].mxu1 }
0x2d90   : > { %v4543_v42 = vadd.f32 %v14801_v61, %v4542_v26  ;;  %v11338_v27 = vpop.f32.mrb[121].mxu1  ;;  %v15093_v26 = vld [vmem:[%s17280_s19 + $0x8] sm:$0xff]  }
0x2d91   : > { %v4545_v19 = vpop.f32.mrb[122].mxu1 }
0x2d92   : > { %v4546_v17 = vadd.f32 %v14801_v61, %v4545_v19  ;;  %v11339_v31 = vpop.f32.mrb[123].mxu1  ;;  %12592 = vtanh.f32 %v4543_v42 }
0x2d94   : > { %12594 = vtanh.f32 %v4546_v17 }
0x2d9c   : > { %v12593_v60 = vpop.eup %12592 }
0x2d9e   : > { %v12595_v32 = vpop.eup %12594 }
0x2d9f   : > { %v4551_v36 = vpack.c.bf16 %v12595_v32, %v12593_v60 }
0x2da1   : > { %11357 = vmatmul.mubr.bf16.vlgmr.msra.gmra.mrb[124].mxu1 %v4551_v36 }
0x2da2   : > { %11361 = vmatpush3.bf16.msra.mxu1 %v14498_v62  ;;  %11364 = vmatprep.mubr.msk.bf16.mxu1 %vm13094_vm0, %v17418_v22 }
0x2da3   : > { %11362 = vmatprep.subr.bf16.mxu1 %v17418_v22 }
0x2da6   : > { %11363 = vmatpush3.bf16.msra.mxu1 %v14507_v11 }
0x2da7   : > { %11368 = vmatprep.subr.bf16.mxu1 %v17418_v22 }
0x2e74   : > { %v4586_v8 = vpop.f32.mrb[124].mxu1 }
0x2e75   : > { %v4593_v10 = vmul.f32 -0.023809522, %v4586_v8  ;;  %v11358_v34 = vpop.f32.mrb[125].mxu1 }
0x2e76   : > { %v4589_v47 = vpop.f32.mrb[126].mxu1 }
0x2e77   : > { %v4595_v28 = vadd.f32 %v4593_v10, %v4502_v21  ;;  %v4594_v44 = vmul.f32 -0.023809522, %v4589_v47  ;;  %v11359_v40 = vpop.f32.mrb[127].mxu1 }
0x2e79   : > { %v4596_v38 = vadd.f32 %v4594_v44, %v4503_v53  ;;  %v15009_v62 = vadd.f32 %v4595_v28, %v14813_v54 }
0x2e7b   : > { %v15012_v57 = vadd.f32 %v4596_v38, %v14813_v54 }
0x2e7d   : > { %v4605_v11 = vpack.c.bf16 %v15012_v57, %v15009_v62 }
0x2e7f   : > { %9752 = vmatmul.mubr.msk.bf16.vlgmr.msra.gmra.mrb[96].mxu0 %vm1003_vm1, %v4605_v11  ;;  %v9749_v11 = vld [vmem:[%s13645_s5 + $0x30] sm:$0xff] }
0x2e80   : > { %4704 = vmatpush1.bf16.msra.mxu0 %v15020_v33  ;;  %4735 = vmatprep.mubr.bf16.mxu0 %v17422_v5  ;;  %v5040_v14 = vsub.f32 1.0, %v9749_v11 }
0x2e81   : > { %10204 = vmatprep.subr.bf16.mxu0 %v15027_v25 }
0x2e8b   : > { %9753 = vmatmul.mubr.msk.bf16.vlgmr.msra.gmra.mrb[96].mxu0 %vm1307_vm2, %v15032_v1 }
0x2e8c   : > { %10205 = vmatpush3.bf16.msra.mxu0 %v15039_v29 }
0x2e8d   : > { %10206 = vmatprep.subr.bf16.mxu0 %v15045_v0 }
0x2e90   : > { %10207 = vmatpush3.bf16.msra.mxu0 %v15051_v30 }
0x2e91   : > { %10208 = vmatprep.subr.bf16.mxu0 %v15057_v13 }
0x2e94   : > { %10209 = vmatpush3.bf16.msra.mxu0 %v15063_v37 }
0x2e95   : > { %10210 = vmatprep.subr.bf16.mxu0 %v14537_v45 }
0x2e98   : > { %10211 = vmatpush3.bf16.msra.mxu0 %v14543_v46 }
0x2e99   : > { %10212 = vmatprep.subr.bf16.mxu0 %v14549_v35 }
0x2e9c   : > { %10213 = vmatpush3.bf16.msra.mxu0 %v14555_v59 }
0x2e9d   : > { %10214 = vmatprep.subr.bf16.mxu0 %v14561_v48 }
0x2ea0   : > { %10215 = vmatpush3.bf16.msra.mxu0 %v14567_v20 }
0x2ea1   : > { %10216 = vmatprep.subr.bf16.mxu0 %v14573_v49 }
0x2ea4   : > { %10217 = vmatpush3.bf16.msra.mxu0 %v14579_v58 }
0x2ea5   : > { %10218 = vmatprep.subr.bf16.mxu0 %v14585_v50 }
0x2ea8   : > { %10219 = vmatpush3.bf16.msra.mxu0 %v14591_v18 }
0x2ea9   : > { %11402 = vmatprep.subr.bf16.mxu0 %v17418_v22 }
0x2f5e   : > { %v4737_v45 = vpop.f32.mrb[96].mxu0 }
0x2f5f   : > { %v4750_v46 = vadd.f32 %v4737_v45, %v13596_v55  ;;  %v4739_v35 = vpop.f32.mrb[97].mxu0 }
0x2f60   : > { %v4751_v59 = vadd.f32 %v4739_v35, %v13598_v56  ;;  %v4741_v39 = vpop.f32.mrb[98].mxu0 }
0x2f61   : > { %12596 = vtanh.f32 %v4750_v46  ;;  %v4752_v48 = vadd.f32 %v4741_v39, %v13596_v55  ;;  %v4743_v20 = vpop.f32.mrb[99].mxu0 }
0x2f62   : > { %12598 = vtanh.f32 %v4751_v59  ;;  %v4753_v49 = vadd.f32 %v4743_v20, %v13598_v56 }
0x2f63   : > { %12600 = vtanh.f32 %v4752_v48 }
0x2f64   : > { %12602 = vtanh.f32 %v4753_v49 }
0x2f6b   : > { %v12597_v58 = vpop.eup %12596 }
0x2f6c   : > { %v12599_v50 = vpop.eup %12598 }
0x2f6d   : > { %v12601_v18 = vpop.eup %12600 }
0x2f6e   : > { %v12603_v41 = vpop.eup %12602  ;;  %v4758_v21 = vpack.c.bf16 %v12601_v18, %v12597_v58  ;;  %v17446_v58 = vld [vmem:[#allocation18_spill] sm:$0xff] }
0x2f6f   : > { %v4759_v53 = vpack.c.bf16 %v12603_v41, %v12599_v50  ;;  %v17449_v50 = vld [vmem:[#allocation21_spill] sm:$0xff]  ;;  %v17450_v18 = vld [vmem:[#allocation22_spill] sm:$0xff]  ;;  %v17452_v41 = vld [vmem:[#allocation24_spill] sm:$0xff] }
0x2f71   : > { %4792 = vmatprep.mubr.bf16.mxu0 %v4759_v53  ;;  %v17454_v53 = vld [vmem:[#allocation26_spill] sm:$0xff] }
0x2f72   : > { %4793 = vmatmul.mubr.bf16.vlgmr.msra.gmra.mrb[100].mxu0 %v4758_v21  ;;  %v17453_v21 = vld [vmem:[#allocation25_spill] sm:$0xff] }
0x2f73   : > { %11403 = vmatpush3.bf16.msra.mxu0 %v15084_v63  ;;  %11406 = vmatprep.mubr.msk.bf16.mxu0 %vm13094_vm0, %v17418_v22 }
0x2f74   : > { %11404 = vmatprep.subr.bf16.mxu0 %v17418_v22 }
0x2f77   : > { %11405 = vmatpush3.bf16.msra.mxu0 %v15093_v26 }
0x2f78   : > { %11410 = vmatprep.subr.bf16.mxu0 %v17418_v22 }
0x3045   : > { %v10220_v42 = vpop.f32.mrb[100].mxu0 }
0x3046   : > { %v10221_v27 = vpop.f32.mrb[101].mxu0 }
0x3047   : > { %v10222_v19 = vadd.f32 %v10221_v27, %v10220_v42  ;;  %v10223_v17 = vpop.f32.mrb[102].mxu0 }
0x3048   : > { %v10224_v31 = vpop.f32.mrb[103].mxu0 }
0x3049   : > { %v4795_v60 = vadd.f32 %v14608_v23, %v10222_v19  ;;  %v10225_v32 = vadd.f32 %v10224_v31, %v10223_v17 }
0x304b   : > { %v9754_v36 = vmul.f32 -1.442695, %v4795_v60  ;;  %v4798_v8 = vadd.f32 %v14608_v23, %v10225_v32  ;;  %v9750_v23 = vld [vmem:[%s13645_s5 + $0x38] sm:$0xff] }
0x304c   : > { %v5041_v7 = vsub.f32 1.0, %v9750_v23 }
0x304d   : > { %12604 = vpow2.f32 %v9754_v36  ;;  %v9755_v10 = vmul.f32 -1.442695, %v4798_v8 }
0x304f   : > { %12606 = vpow2.f32 %v9755_v10 }
0x3057   : > { %v12605_v34 = vpop.eup %12604 }
0x3058   : > { %v4807_v47 = vadd.f32 1.0, %v12605_v34 }
0x3059   : > { %v12607_v28 = vpop.eup %12606 }
0x305a   : > { %12608 = vrcp.f32 %v4807_v47  ;;  %v4808_v44 = vadd.f32 1.0, %v12607_v28 }
0x305c   : > { %12610 = vrcp.f32 %v4808_v44 }
0x3064   : > { %v15099_v40 = vpop.eup %12608 }
0x3065   : > { %4815 = vrot.lane.b32.xlu0 %v15099_v40, %s17419_s4 }
0x3066   : > { %v15103_v38 = vpop.eup %12610 }
0x3067   : > { %4817 = vrot.lane.b32.xlu1 %v15103_v38, %s17419_s4 }
0x3069   : > { %5030 = vperm.xlu0 %12393, %v9749_v11   ;;  %v17455_v11 = vld [vmem:[#allocation27_spill] sm:$0xff] }
0x306b   : > { %5035 = vperm.xlu1 %12392, %v9750_v23  }
0x306d   : > { %5044 = vperm.xlu0 %12393, %v5040_v14  }
0x306f   : > { %5049 = vperm.xlu1 %12392, %v5041_v7  }
0x30d7   : > { %v4816_v45 = vpop.permute.xlu0 %4815 }
0x30d8   : > { %v4824_v35 = vmul.f32 %v4816_v45, %v14950_v6  ;;  %v4821_v20 = vmul.f32 %v4816_v45, %v15009_v62 }
0x30d9   : > { %v4818_v46 = vpop.permute.xlu1 %4817 }
0x30da   : > { %v4825_v59 = vmul.f32 %v4818_v46, %v14947_v4  ;;  %v4822_v48 = vmul.f32 %v4818_v46, %v15012_v57 }
0x30dc   : > { %v4826_v39 = vpack.c.bf16 %v4825_v59, %v4824_v35  ;;  %v4823_v49 = vpack.c.bf16 %v4822_v48, %v4821_v20 }
0x30de   : > { %11365 = vmatmul.mubr.msk.bf16.vlgmr.msra.gmra.mrb[128].mxu1 %vm1003_vm1, %v4826_v39 }
0x30df   : > { %11369 = vmatpush3.bf16.msra.mxu1 %v14628_v16  ;;  %11372 = vmatprep.mubr.msk.bf16.mxu1 %vm13094_vm0, %v17418_v22  ;;  %v17447_v16 = vld [vmem:[#allocation19_spill] sm:$0xff] }
0x30e0   : > { %11370 = vmatprep.subr.bf16.mxu1 %v17418_v22 }
0x30e3   : > { %11371 = vmatpush3.bf16.msra.mxu1 %v14639_v24  ;;  %v17448_v24 = vld [vmem:[#allocation20_spill] sm:$0xff] }
0x30e4   : > { %11376 = vmatprep.subr.bf16.mxu1 %v17418_v22 }
0x30e6   : > { %11373 = vmatmul.mubr.msk.bf16.vlgmr.msra.gmra.mrb[132].mxu1 %vm1003_vm1, %v4823_v49  ;;  %v17456_v49 = vld [vmem:[#allocation28_spill] sm:$0xff] }
0x30e7   : > { %11377 = vmatpush3.bf16.msra.mxu1 %v17446_v58  ;;  %11378 = vmatprep.mubr.msk.bf16.mxu1 %vm13094_vm0, %v17418_v22 }
0x30e8   : > { %11382 = vmatprep.subr.bf16.mxu1 %v17418_v22  ;;  %v15153_v39 = vpop.permute.xlu0 %5030 }
0x30ea   : > { %v15155_v48 = vpop.permute.xlu1 %5035 }
0x30ee   : > { %11379 = vmatmul.mubr.msk.bf16.vlgmr.msra.gmra.mrb[136].mxu1 %vm1307_vm2, %v15032_v1  ;;  %v17451_v1 = vld [vmem:[#allocation23_spill] sm:$0xff] }
0x30ef   : > { %11383 = vmatpush3.bf16.msra.mxu1 %v17447_v16  ;;  %11398 = vmatprep.mubr.msk.bf16.mxu1 %vm13094_vm0, %v17418_v22  ;;  %v5006_v16 = vsub.f32 1.0, %v15099_v40 }
0x30f0   : > { %11384 = vmatprep.subr.bf16.mxu1 %v17418_v22 }
0x30f3   : > { %11385 = vmatpush3.bf16.msra.mxu1 %v17448_v24 }
0x30f4   : > { %11386 = vmatprep.subr.bf16.mxu1 %v17418_v22 }
0x30f7   : > { %11387 = vmatpush3.bf16.msra.mxu1 %v17449_v50  ;;  %v5010_v50 = vmul.f32 %v15099_v40, %v15009_v62 }
0x30f8   : > { %11388 = vmatprep.subr.bf16.mxu1 %v17418_v22 }
0x30fb   : > { %11389 = vmatpush3.bf16.msra.mxu1 %v17450_v18 }
0x30fc   : > { %11390 = vmatprep.subr.bf16.mxu1 %v17418_v22 }
0x30ff   : > { %11391 = vmatpush3.bf16.msra.mxu1 %v17451_v1 }
0x3100   : > { %11392 = vmatprep.subr.bf16.mxu1 %v17418_v22 }
0x3103   : > { %11393 = vmatpush3.bf16.msra.mxu1 %v17452_v41 }
0x3104   : > { %11394 = vmatprep.subr.bf16.mxu1 %v17418_v22 }
0x3107   : > { %11395 = vmatpush3.bf16.msra.mxu1 %v17453_v21 }
0x3108   : > { %11396 = vmatprep.subr.bf16.mxu1 %v17418_v22 }
0x310b   : > { %11397 = vmatpush3.bf16.msra.mxu1 %v17454_v53  ;;  %v5007_v53 = vsub.f32 1.0, %v15103_v38 }
0x310c   : > { %11430 = vmatprep.subr.bf16.mxu1 %v17418_v22 }
0x31b1   : > { %v4864_v42 = vpop.f32.mrb[128].mxu1 }
0x31b2   : > { %v11366_v27 = vpop.f32.mrb[129].mxu1 }
0x31b3   : > { %v4867_v19 = vpop.f32.mrb[130].mxu1 }
0x31b4   : > { %v11367_v17 = vpop.f32.mrb[131].mxu1 }
0x31b9   : > { %v4908_v31 = vpop.f32.mrb[132].mxu1 }
0x31ba   : > { %v4909_v60 = vadd.f32 %v4908_v31, %v4864_v42  ;;  %v11374_v32 = vpop.f32.mrb[133].mxu1  ;;  %v5011_v31 = vmul.f32 %v15103_v38, %v15012_v57 }
0x31bb   : > { %v4911_v36 = vpop.f32.mrb[134].mxu1  ;;  %v15172_v32 = vpop.permute.xlu1 %5049 }
0x31bc   : > { %v4912_v8 = vadd.f32 %v4911_v36, %v4867_v19  ;;  %v11375_v10 = vpop.f32.mrb[135].mxu1 }
0x31c1   : > { %v4949_v34 = vpop.f32.mrb[136].mxu1 }
0x31c2   : > { %v4956_v47 = vadd.f32 %v4949_v34, %v4909_v60  ;;  %v11380_v28 = vpop.f32.mrb[137].mxu1  ;;  %v15170_v60 = vpop.permute.xlu0 %5044  ;;  %v5053_v34 = vmul.f32 %v15172_v32, %v15012_v57 }
0x31c3   : > { %v4952_v44 = vpop.f32.mrb[138].mxu1  ;;  %v5052_v10 = vmul.f32 %v15170_v60, %v15009_v62  ;;  %v15193_v62 = vld [vmem:[%s17282_s21 + $0x18] sm:$0xff]  }
0x31c4   : > { %v4958_v23 = vadd.f32 %v17455_v11, %v4956_v47  ;;  %v4957_v14 = vadd.f32 %v4952_v44, %v4912_v8  ;;  %v11381_v7 = vpop.f32.mrb[139].mxu1 }
0x31c6   : > { %v4959_v45 = vadd.f32 %v17455_v11, %v4957_v14  ;;  %12612 = vtanh.f32 %v4958_v23 }
0x31c8   : > { %12614 = vtanh.f32 %v4959_v45 }
0x31d0   : > { %v12613_v46 = vpop.eup %12612 }
0x31d2   : > { %v12615_v35 = vpop.eup %12614 }
0x31d3   : > { %v4962_v59 = vpack.c.bf16 %v12615_v35, %v12613_v46 }
0x31d5   : > { %11399 = vmatmul.mubr.bf16.vlgmr.msra.gmra.mrb[140].mxu1 %v4962_v59 }
0x31d6   : > { %11431 = vmatpush3.bf16.msra.mxu1 %v15084_v63  ;;  %11434 = vmatprep.mubr.msk.bf16.mxu1 %vm13094_vm0, %v17418_v22 }
0x31d7   : > { %11432 = vmatprep.subr.bf16.mxu1 %v17418_v22 }
0x31da   : > { %11433 = vmatpush3.bf16.msra.mxu1 %v15093_v26 }
0x31db   : > { %11438 = vmatprep.subr.bf16.mxu1 %v17418_v22 }
0x32a8   : > { %v4997_v20 = vpop.f32.mrb[140].mxu1 }
0x32a9   : > { %v4998_v58 = vadd.f32 %v17456_v49, %v4997_v20  ;;  %v11400_v24 = vpop.f32.mrb[141].mxu1 }
0x32aa   : > { %v5000_v18 = vpop.f32.mrb[142].mxu1 }
0x32ab   : > { %v5004_v1 = vand.u32 2147483647, %v4998_v58  ;;  %v5008_v41 = vmul.f32 %v5006_v16, %v4998_v58  ;;  %v5001_v21 = vadd.f32 %v17456_v49, %v5000_v18  ;;  %v11401_v42 = vpop.f32.mrb[143].mxu1 }
0x32ac   : > { %v15243_v42 = vld [vmem:[%s17282_s21 + $0x30] sm:$0xff]  }
0x32ad   : > { %v5012_v27 = vadd.f32 %v5010_v50, %v5008_v41  ;;  %v5005_v19 = vand.u32 2147483647, %v5001_v21  ;;  %v5009_v17 = vmul.f32 %v5007_v53, %v5001_v21  ;;  %5016 = vrot.lane.b32.xlu0 %v5004_v1, %s17419_s4  ;;  %v15229_v41 = vld [vmem:[%s17282_s21 + $0x20] sm:$0xff]   ;;  %v15236_v21 = vld [vmem:[%s17282_s21 + $0x28] sm:$0xff]  }
0x32af   : > { %v5038_v36 = vmul.f32 %v15153_v39, %v5012_v27  ;;  %v5013_v8 = vadd.f32 %v5011_v31, %v5009_v17  ;;  %5018 = vrot.lane.b32.xlu1 %v5005_v19, %s17419_s4  ;;  %v15250_v27 = vld [vmem:[%s17282_s21 + $0x38] sm:$0xff]   ;;  %v15257_v17 = vld [vmem:[%s17281_s20] ss:$0 sm:$0xff] }
0x32b1   : > { %v5039_v47 = vmul.f32 %v15155_v48, %v5013_v8  ;;  %v5054_v28 = vadd.f32 %v5052_v10, %v5038_v36 }
0x32b3   : > { %v5055_v44 = vadd.f32 %v5053_v34, %v5039_v47 }
0x32b5   : > { %v5064_v11 = vpack.c.bf16 %v5055_v44, %v5054_v28 }
0x32b7   : > { %11407 = vmatmul.mubr.msk.bf16.vlgmr.msra.gmra.mrb[104].mxu0 %vm1003_vm1, %v5064_v11 }
0x32b8   : > { %11411 = vmatpush3.bf16.msra.mxu0 %v14970_v52  ;;  %11426 = vmatprep.mubr.msk.bf16.mxu0 %vm13094_vm0, %v17418_v22 }
0x32b9   : > { %11412 = vmatprep.subr.bf16.mxu0 %v17418_v22 }
0x32bc   : > { %11413 = vmatpush3.bf16.msra.mxu0 %v14979_v15 }
0x32bd   : > { %11414 = vmatprep.subr.bf16.mxu0 %v17418_v22 }
0x32c0   : > { %11415 = vmatpush3.bf16.msra.mxu0 %v14986_v12 }
0x32c1   : > { %11416 = vmatprep.subr.bf16.mxu0 %v17418_v22 }
0x32c4   : > { %11417 = vmatpush3.bf16.msra.mxu0 %v15193_v62 }
0x32c5   : > { %11418 = vmatprep.subr.bf16.mxu0 %v17418_v22 }
0x32c8   : > { %11419 = vmatpush3.bf16.msra.mxu0 %v14773_v51 }
0x32c9   : > { %11420 = vmatprep.subr.bf16.mxu0 %v17418_v22 }
0x32cc   : > { %11421 = vmatpush3.bf16.msra.mxu0 %v14780_v2 }
0x32cd   : > { %11422 = vmatprep.subr.bf16.mxu0 %v17418_v22 }
0x32d0   : > { %11423 = vmatpush3.bf16.msra.mxu0 %v14787_v43 }
0x32d1   : > { %11424 = vmatprep.subr.bf16.mxu0 %v17418_v22 }
0x32d4   : > { %11425 = vmatpush3.bf16.msra.mxu0 %v14794_v9 }
0x32d5   : > { %11458 = vmatprep.subr.bf16.mxu0 %v17418_v22 }
0x338a   : > { %v5102_v57 = vpop.f32.mrb[104].mxu0 }
0x338b   : > { %v5103_v23 = vadd.f32 %v14801_v61, %v5102_v57  ;;  %v11408_v14 = vpop.f32.mrb[105].mxu0 }
0x338c   : > { %v5105_v7 = vpop.f32.mrb[106].mxu0 }
0x338d   : > { %v5106_v51 = vadd.f32 %v14801_v61, %v5105_v7  ;;  %v11409_v45 = vpop.f32.mrb[107].mxu0  ;;  %12616 = vtanh.f32 %v5103_v23 }
0x338f   : > { %12618 = vtanh.f32 %v5106_v51 }
0x3397   : > { %v12617_v2 = vpop.eup %12616 }
0x3399   : > { %v12619_v46 = vpop.eup %12618 }
0x339a   : > { %v5111_v35 = vpack.c.bf16 %v12619_v46, %v12617_v2 }
0x339c   : > { %11427 = vmatmul.mubr.bf16.vlgmr.msra.gmra.mrb[108].mxu0 %v5111_v35 }
0x339d   : > { %11459 = vmatpush3.bf16.msra.mxu0 %v15084_v63  ;;  %11462 = vmatprep.mubr.msk.bf16.mxu0 %vm13094_vm0, %v17418_v22 }
0x339e   : > { %11460 = vmatprep.subr.bf16.mxu0 %v17418_v22 }
0x33a1   : > { %11461 = vmatpush3.bf16.msra.mxu0 %v15093_v26 }
0x33a2   : > { %11466 = vmatprep.subr.bf16.mxu0 %v17418_v22 }
0x346f   : > { %v5146_v43 = vpop.f32.mrb[108].mxu0 }
0x3470   : > { %v5153_v9 = vmul.f32 -0.023809522, %v5146_v43  ;;  %v11428_v61 = vpop.f32.mrb[109].mxu0 }
0x3471   : > { %v5149_v59 = vpop.f32.mrb[110].mxu0 }
0x3472   : > { %v5155_v20 = vadd.f32 %v5153_v9, %v5054_v28  ;;  %v5154_v49 = vmul.f32 -0.023809522, %v5149_v59  ;;  %v11429_v58 = vpop.f32.mrb[111].mxu0 }
0x3474   : > { %v5156_v24 = vadd.f32 %v5154_v49, %v5055_v44  ;;  %v5157_v50 = vadd.f32 %v5155_v20, %v14813_v54 }
0x3476   : > { %v5158_v18 = vadd.f32 %v5156_v24, %v14813_v54 }
0x3478   : > { %v5159_v1 = vpack.c.bf16 %v5158_v18, %v5157_v50 }
0x347a   : > { %11435 = vmatmul.mubr.msk.bf16.vlgmr.msra.gmra.mrb[144].mxu1 %vm1003_vm1, %v5159_v1 }
0x347b   : > { %11439 = vmatpush3.bf16.msra.mxu1 %v14970_v52  ;;  %11454 = vmatprep.mubr.msk.bf16.mxu1 %vm13094_vm0, %v17418_v22 }
0x347c   : > { %11440 = vmatprep.subr.bf16.mxu1 %v17418_v22 }
0x347f   : > { %11441 = vmatpush3.bf16.msra.mxu1 %v14979_v15 }
0x3480   : > { %11442 = vmatprep.subr.bf16.mxu1 %v17418_v22 }
0x3483   : > { %11443 = vmatpush3.bf16.msra.mxu1 %v14986_v12 }
0x3484   : > { %11444 = vmatprep.subr.bf16.mxu1 %v17418_v22 }
0x3487   : > { %11445 = vmatpush3.bf16.msra.mxu1 %v15193_v62 }
0x3488   : > { %11446 = vmatprep.subr.bf16.mxu1 %v17418_v22 }
0x348b   : > { %11447 = vmatpush3.bf16.msra.mxu1 %v15229_v41 }
0x348c   : > { %11448 = vmatprep.subr.bf16.mxu1 %v17418_v22 }
0x348f   : > { %11449 = vmatpush3.bf16.msra.mxu1 %v15236_v21 }
0x3490   : > { %11450 = vmatprep.subr.bf16.mxu1 %v17418_v22 }
0x3493   : > { %11451 = vmatpush3.bf16.msra.mxu1 %v15243_v42 }
0x3494   : > { %11452 = vmatprep.subr.bf16.mxu1 %v17418_v22 }
0x3497   : > { %11453 = vmatpush3.bf16.msra.mxu1 %v15250_v27 }
0x3498   : > { %11486 = vmatprep.subr.bf16.mxu1 %v17418_v22 }
0x354d   : > { %v5197_v19 = vpop.f32.mrb[144].mxu1 }
0x354e   : > { %v5198_v31 = vadd.f32 %v15257_v17, %v5197_v19  ;;  %v11436_v36 = vpop.f32.mrb[145].mxu1 }
0x354f   : > { %v5200_v8 = vpop.f32.mrb[146].mxu1 }
0x3550   : > { %v5201_v10 = vadd.f32 %v15257_v17, %v5200_v8  ;;  %v11437_v34 = vpop.f32.mrb[147].mxu1  ;;  %12620 = vtanh.f32 %v5198_v31 }
0x3552   : > { %12622 = vtanh.f32 %v5201_v10 }
0x355a   : > { %v12621_v47 = vpop.eup %12620 }
0x355c   : > { %v12623_v28 = vpop.eup %12622 }
0x355d   : > { %v5206_v44 = vpack.c.bf16 %v12623_v28, %v12621_v47 }
0x355f   : > { %11455 = vmatmul.mubr.bf16.vlgmr.msra.gmra.mrb[148].mxu1 %v5206_v44 }
0x3560   : > { %11487 = vmatpush3.bf16.msra.mxu1 %v15084_v63  ;;  %11490 = vmatprep.mubr.msk.bf16.mxu1 %vm13094_vm0, %v17418_v22 }
0x3561   : > { %11488 = vmatprep.subr.bf16.mxu1 %v17418_v22 }
0x3564   : > { %11489 = vmatpush3.bf16.msra.mxu1 %v15093_v26 }
0x3565   : > { %11494 = vmatprep.subr.bf16.mxu1 %v17418_v22 }
0x3632   : > { %v5241_v11 = vpop.f32.mrb[148].mxu1 }
0x3633   : > { %v5248_v57 = vmul.f32 -0.023809522, %v5241_v11  ;;  %v11456_v23 = vpop.f32.mrb[149].mxu1 }
0x3634   : > { %v5244_v14 = vpop.f32.mrb[150].mxu1 }
0x3635   : > { %v5250_v7 = vadd.f32 %v5248_v57, %v5157_v50  ;;  %v5249_v51 = vmul.f32 -0.023809522, %v5244_v14  ;;  %v11457_v45 = vpop.f32.mrb[151].mxu1 }
0x3637   : > { %v5251_v2 = vadd.f32 %v5249_v51, %v5158_v18  ;;  %v5252_v46 = vadd.f32 %v5250_v7, %v14813_v54 }
0x3639   : > { %v5253_v35 = vadd.f32 %v5251_v2, %v14813_v54 }
0x363b   : > { %v5254_v43 = vpack.c.bf16 %v5253_v35, %v5252_v46 }
0x363d   : > { %11463 = vmatmul.mubr.msk.bf16.vlgmr.msra.gmra.mrb[112].mxu0 %vm1003_vm1, %v5254_v43 }
0x363e   : > { %11467 = vmatpush3.bf16.msra.mxu0 %v14970_v52  ;;  %11482 = vmatprep.mubr.msk.bf16.mxu0 %vm13094_vm0, %v17418_v22 }
0x363f   : > { %11468 = vmatprep.subr.bf16.mxu0 %v17418_v22 }
0x3642   : > { %11469 = vmatpush3.bf16.msra.mxu0 %v14979_v15 }
0x3643   : > { %11470 = vmatprep.subr.bf16.mxu0 %v17418_v22 }
0x3646   : > { %11471 = vmatpush3.bf16.msra.mxu0 %v14986_v12 }
0x3647   : > { %11472 = vmatprep.subr.bf16.mxu0 %v17418_v22 }
0x364a   : > { %11473 = vmatpush3.bf16.msra.mxu0 %v15193_v62 }
0x364b   : > { %11474 = vmatprep.subr.bf16.mxu0 %v17418_v22 }
0x364e   : > { %11475 = vmatpush3.bf16.msra.mxu0 %v15229_v41 }
0x364f   : > { %11476 = vmatprep.subr.bf16.mxu0 %v17418_v22 }
0x3652   : > { %11477 = vmatpush3.bf16.msra.mxu0 %v15236_v21 }
0x3653   : > { %11478 = vmatprep.subr.bf16.mxu0 %v17418_v22 }
0x3656   : > { %11479 = vmatpush3.bf16.msra.mxu0 %v15243_v42 }
0x3657   : > { %11480 = vmatprep.subr.bf16.mxu0 %v17418_v22 }
0x365a   : > { %11481 = vmatpush3.bf16.msra.mxu0 %v15250_v27 }
0x365b   : > { %11514 = vmatprep.subr.bf16.mxu0 %v17418_v22 }
0x3710   : > { %v5292_v9 = vpop.f32.mrb[112].mxu0 }
0x3711   : > { %v5293_v61 = vadd.f32 %v15257_v17, %v5292_v9  ;;  %v11464_v59 = vpop.f32.mrb[113].mxu0 }
0x3712   : > { %v5295_v20 = vpop.f32.mrb[114].mxu0 }
0x3713   : > { %v5296_v49 = vadd.f32 %v15257_v17, %v5295_v20  ;;  %v11465_v58 = vpop.f32.mrb[115].mxu0  ;;  %12624 = vtanh.f32 %v5293_v61 }
0x3715   : > { %12626 = vtanh.f32 %v5296_v49 }
0x371d   : > { %v12625_v24 = vpop.eup %12624 }
0x371f   : > { %v12627_v50 = vpop.eup %12626 }
0x3720   : > { %v5301_v18 = vpack.c.bf16 %v12627_v50, %v12625_v24 }
0x3722   : > { %11483 = vmatmul.mubr.bf16.vlgmr.msra.gmra.mrb[116].mxu0 %v5301_v18 }
0x3723   : > { %11515 = vmatpush3.bf16.msra.mxu0 %v15084_v63  ;;  %11518 = vmatprep.mubr.msk.bf16.mxu0 %vm13094_vm0, %v17418_v22 }
0x3724   : > { %11516 = vmatprep.subr.bf16.mxu0 %v17418_v22 }
0x3727   : > { %11517 = vmatpush3.bf16.msra.mxu0 %v15093_v26 }
0x3728   : > { %11522 = vmatprep.subr.bf16.mxu0 %v17418_v22 }
0x37f5   : > { %v5336_v1 = vpop.f32.mrb[116].mxu0 }
0x37f6   : > { %v5343_v19 = vmul.f32 -0.023809522, %v5336_v1  ;;  %v11484_v31 = vpop.f32.mrb[117].mxu0 }
0x37f7   : > { %v5339_v36 = vpop.f32.mrb[118].mxu0 }
0x37f8   : > { %v5345_v8 = vadd.f32 %v5343_v19, %v5252_v46  ;;  %v5344_v10 = vmul.f32 -0.023809522, %v5339_v36  ;;  %v11485_v34 = vpop.f32.mrb[119].mxu0  ;;  %v15354_v19 = vld [vmem:[%s17398_s8 + $0x4] ss:$8 sps:$4 sm:$0xff]   ;;  %v5019_v36 = vpop.permute.xlu1 %5018 }
0x37fa   : > { %v5346_v47 = vadd.f32 %v5344_v10, %v5253_v35  ;;  %v5347_v28 = vadd.f32 %v5345_v8, %v14813_v54 }
0x37fc   : > { %v5348_v44 = vadd.f32 %v5346_v47, %v14813_v54  ;;  %v5017_v47 = vpop.permute.xlu0 %5016 }
0x37fe   : > { %v5349_v11 = vpack.c.bf16 %v5348_v44, %v5347_v28 }
0x3800   : > { %11491 = vmatmul.mubr.msk.bf16.vlgmr.msra.gmra.mrb[152].mxu1 %vm1003_vm1, %v5349_v11  ;;  %v5023_v11 = vmul.f32 %v5019_v36, %v5007_v53 }
0x3801   : > { %11495 = vmatpush3.bf16.msra.mxu1 %v14970_v52  ;;  %11510 = vmatprep.mubr.msk.bf16.mxu1 %vm13094_vm0, %v17418_v22 }
0x3802   : > { %11496 = vmatprep.subr.bf16.mxu1 %v17418_v22 }
0x3805   : > { %11497 = vmatpush3.bf16.msra.mxu1 %v14979_v15 }
0x3806   : > { %11498 = vmatprep.subr.bf16.mxu1 %v17418_v22 }
0x3809   : > { %11499 = vmatpush3.bf16.msra.mxu1 %v14986_v12 }
0x380a   : > { %11500 = vmatprep.subr.bf16.mxu1 %v17418_v22 }
0x380d   : > { %11501 = vmatpush3.bf16.msra.mxu1 %v15193_v62 }
0x380e   : > { %11502 = vmatprep.subr.bf16.mxu1 %v17418_v22 }
0x3811   : > { %11503 = vmatpush3.bf16.msra.mxu1 %v15229_v41 }
0x3812   : > { %11504 = vmatprep.subr.bf16.mxu1 %v17418_v22 }
0x3815   : > { %11505 = vmatpush3.bf16.msra.mxu1 %v15236_v21 }
0x3816   : > { %11506 = vmatprep.subr.bf16.mxu1 %v17418_v22 }
0x3819   : > { %11507 = vmatpush3.bf16.msra.mxu1 %v15243_v42 }
0x381a   : > { %11508 = vmatprep.subr.bf16.mxu1 %v17418_v22 }
0x381d   : > { %11509 = vmatpush3.bf16.msra.mxu1 %v15250_v27 }
0x381e   : > { %11542 = vmatprep.subr.bf16.mxu1 %v17418_v22 }
0x38d3   : > { %v5387_v57 = vpop.f32.mrb[152].mxu1 }
0x38d4   : > { %v5388_v23 = vadd.f32 %v15257_v17, %v5387_v57  ;;  %v11492_v14 = vpop.f32.mrb[153].mxu1  ;;  %v5022_v57 = vmul.f32 %v5017_v47, %v5006_v16  ;;  %v5058_v16 = vmul.f32 %v15170_v60, %v14950_v6 }
0x38d5   : > { %v5390_v7 = vpop.f32.mrb[154].mxu1  ;;  %v5024_v14 = vmul.f32 %v15099_v40, %v14950_v6  ;;  %v15376_v40 = vld [vmem:[%s17398_s8] ss:$8 sps:$4 sm:$0xff]  }
0x38d6   : > { %v5391_v51 = vadd.f32 %v15257_v17, %v5390_v7  ;;  %v11493_v45 = vpop.f32.mrb[155].mxu1  ;;  %12628 = vtanh.f32 %v5388_v23  ;;  %v5025_v23 = vmul.f32 %v15103_v38, %v14947_v4 }
0x38d8   : > { %12630 = vtanh.f32 %v5391_v51  ;;  %v5027_v7 = vadd.f32 %v5025_v23, %v5023_v11  ;;  %v5026_v51 = vadd.f32 %v5024_v14, %v5022_v57 }
0x38da   : > { %v5057_v45 = vmul.f32 %v15155_v48, %v5027_v7  ;;  %v5056_v53 = vmul.f32 %v15153_v39, %v5026_v51  ;;  %v15385_v39 = vld [vmem:[%s17398_s8 + $0x14] ss:$8 sps:$4 sm:$0xff]   ;;  %v15393_v48 = vld [vmem:[%s17398_s8 + $0x10] ss:$8 sps:$4 sm:$0xff]   ;;  %v15458_v7 = vld [vmem:[%s17404_s9] sm:$0xff]  }
0x38db   : > { %v15467_v51 = vld [vmem:[%s17404_s9 + $0x8] sm:$0xff]  }
0x38dc   : > { %v5060_v38 = vadd.f32 %v5058_v16, %v5056_v53 }
0x38de   : > { %v15388_v6 = vand.u32 2147483647, %v5060_v38 }
0x38e0   : > { %v12629_v2 = vpop.eup %12628 }
0x38e2   : > { %v12631_v46 = vpop.eup %12630 }
0x38e3   : > { %v5396_v35 = vpack.c.bf16 %v12631_v46, %v12629_v2  ;;  %v5059_v46 = vmul.f32 %v15172_v32, %v14947_v4  ;;  %v15401_v32 = vld [vmem:[%s17399_s3 + $0x4] ss:$8 sps:$4 sm:$0xff]  }
0x38e5   : > { %11511 = vmatmul.mubr.bf16.vlgmr.msra.gmra.mrb[156].mxu1 %v5396_v35 }
0x38e6   : > { %11543 = vmatpush3.bf16.msra.mxu1 %v15084_v63  ;;  %11546 = vmatprep.mubr.msk.bf16.mxu1 %vm13094_vm0, %v17418_v22 }
0x38e7   : > { %11544 = vmatprep.subr.bf16.mxu1 %v17418_v22 }
0x38ea   : > { %11545 = vmatpush3.bf16.msra.mxu1 %v15093_v26 }
0x38eb   : > { %11550 = vmatprep.subr.bf16.mxu1 %v17418_v22 }
0x39b8   : > { %v5431_v43 = vpop.f32.mrb[156].mxu1 }
0x39b9   : > { %v5438_v9 = vmul.f32 -0.023809522, %v5431_v43  ;;  %v11512_v61 = vpop.f32.mrb[157].mxu1  ;;  %v5061_v43 = vadd.f32 %v5059_v46, %v5057_v45 }
0x39ba   : > { %v5434_v59 = vpop.f32.mrb[158].mxu1  ;;  %v15408_v61 = vld [vmem:[%s17399_s3] ss:$8 sps:$4 sm:$0xff]  }
0x39bb   : > { %v5440_v20 = vadd.f32 %v5438_v9, %v5347_v28  ;;  %v5439_v49 = vmul.f32 -0.023809522, %v5434_v59  ;;  %v11513_v58 = vpop.f32.mrb[159].mxu1  ;;  %v15380_v4 = vand.u32 2147483647, %v5061_v43 }
0x39bc   : > { %v15415_v59 = vld [vmem:[%s17399_s3 + $0x14] ss:$8 sps:$4 sm:$0xff]  }
0x39bd   : > { %v5441_v24 = vadd.f32 %v5439_v49, %v5348_v44  ;;  %v15326_v50 = vadd.f32 %v5440_v20, %v14813_v54  ;;  %v5641_v60 = vpack.c.bf16 %v15380_v4, %v15388_v6  ;;  %v15421_v20 = vld [vmem:[%s17399_s3 + $0x10] ss:$8 sps:$4 sm:$0xff]   ;;  %v15427_v49 = vld [vmem:[%s17400_s1 + $0x4] ss:$8 sps:$4 sm:$0xff]  }
0x39bf   : > { %v15329_v18 = vadd.f32 %v5441_v24, %v14813_v54 }
0x39c1   : > { %v5444_v1 = vpack.c.bf16 %v15329_v18, %v15326_v50 }
0x39c3   : > { %11519 = vmatmul.mubr.msk.bf16.vlgmr.msra.gmra.mrb[120].mxu0 %vm1003_vm1, %v5444_v1 }
0x39c4   : > { %11523 = vmatpush3.bf16.msra.mxu0 %v14970_v52  ;;  %11538 = vmatprep.mubr.msk.bf16.mxu0 %vm13094_vm0, %v17418_v22 }
0x39c5   : > { %11524 = vmatprep.subr.bf16.mxu0 %v17418_v22 }
0x39c8   : > { %11525 = vmatpush3.bf16.msra.mxu0 %v14979_v15 }
0x39c9   : > { %11526 = vmatprep.subr.bf16.mxu0 %v17418_v22 }
0x39cc   : > { %11527 = vmatpush3.bf16.msra.mxu0 %v14986_v12 }
0x39cd   : > { %11528 = vmatprep.subr.bf16.mxu0 %v17418_v22 }
0x39d0   : > { %11529 = vmatpush3.bf16.msra.mxu0 %v15193_v62 }
0x39d1   : > { %11530 = vmatprep.subr.bf16.mxu0 %v17418_v22 }
0x39d4   : > { %11531 = vmatpush3.bf16.msra.mxu0 %v15229_v41 }
0x39d5   : > { %11532 = vmatprep.subr.bf16.mxu0 %v17418_v22 }
0x39d8   : > { %11533 = vmatpush3.bf16.msra.mxu0 %v15236_v21 }
0x39d9   : > { %11534 = vmatprep.subr.bf16.mxu0 %v17418_v22 }
0x39dc   : > { %11535 = vmatpush3.bf16.msra.mxu0 %v15243_v42 }
0x39dd   : > { %11536 = vmatprep.subr.bf16.mxu0 %v17418_v22 }
0x39e0   : > { %11537 = vmatpush3.bf16.msra.mxu0 %v15250_v27 }
0x39e1   : > { %5645 = vmatprep.subr.bf16.mxu0 %v15354_v19 }
0x3a96   : > { %v5482_v31 = vpop.f32.mrb[120].mxu0 }
0x3a97   : > { %v5483_v8 = vadd.f32 %v15257_v17, %v5482_v31  ;;  %v11520_v10 = vpop.f32.mrb[121].mxu0 }
0x3a98   : > { %v5485_v34 = vpop.f32.mrb[122].mxu0 }
0x3a99   : > { %v5486_v28 = vadd.f32 %v15257_v17, %v5485_v34  ;;  %v11521_v44 = vpop.f32.mrb[123].mxu0  ;;  %12632 = vtanh.f32 %v5483_v8 }
0x3a9b   : > { %12634 = vtanh.f32 %v5486_v28 }
0x3aa3   : > { %v12633_v2 = vpop.eup %12632 }
0x3aa5   : > { %v12635_v35 = vpop.eup %12634 }
0x3aa6   : > { %v5491_v9 = vpack.c.bf16 %v12635_v35, %v12633_v2 }
0x3aa8   : > { %11539 = vmatmul.mubr.bf16.vlgmr.msra.gmra.mrb[124].mxu0 %v5491_v9 }
0x3aa9   : > { %5646 = vmatpush1.bf16.msra.mxu0 %v15376_v40  ;;  %5677 = vmatprep.mubr.bf16.mxu0 %v17422_v5 }
0x3aaa   : > { %5647 = vmatprep.subr.bf16.mxu0 %v15385_v39 }
0x3aad   : > { %5648 = vmatpush1.bf16.msra.mxu0 %v15393_v48 }
0x3aae   : > { %5691 = vmatprep.subr.bf16.mxu0 %v15401_v32 }
0x3ab0   : > { %9769 = vmatmul.mubr.msk.bf16.vlgmr.msra.gmra.mrb[128].mxu0 %vm1003_vm1, %v5641_v60 }
0x3ab1   : > { %5692 = vmatpush1.bf16.msra.mxu0 %v15408_v61  ;;  %5723 = vmatprep.mubr.bf16.mxu0 %v17422_v5 }
0x3ab2   : > { %5693 = vmatprep.subr.bf16.mxu0 %v15415_v59 }
0x3ab5   : > { %5694 = vmatpush1.bf16.msra.mxu0 %v15421_v20 }
0x3ab6   : > { %5738 = vmatprep.subr.bf16.mxu0 %v15427_v49 }
0x3b7b   : > { %v5526_v58 = vpop.f32.mrb[124].mxu0 }
0x3b7c   : > { %v5533_v24 = vmul.f32 -0.023809522, %v5526_v58  ;;  %v11540_v1 = vpop.f32.mrb[125].mxu0 }
0x3b7d   : > { %v5529_v31 = vpop.f32.mrb[126].mxu0  ;;  %v9766_v1 = vld [vmem:[%s13507_s27 + $0x48] sm:$0xff] }
0x3b7e   : > { %v5535_v36 = vadd.f32 %v5533_v24, %v15326_v50  ;;  %v5534_v8 = vmul.f32 -0.023809522, %v5529_v31  ;;  %v11541_v10 = vpop.f32.mrb[127].mxu0  ;;  %v9765_v24 = vld [vmem:[%s13507_s27 + $0x40] sm:$0xff] }
0x3b7f   : > { %v15485_v31 = vpack.c.bf16 %v9766_v1, %v9765_v24 }
0x3b80   : > { %v5536_v34 = vadd.f32 %v5534_v8, %v15329_v18  ;;  %v5537_v47 = vadd.f32 %v5535_v36, %v14813_v54  ;;  %v15545_v36 = vld [vmem:[%s17402_s0 + $0x78] sm:$0xff]  }
0x3b81   : > { %v15551_v8 = vld [vmem:[%s17402_s0 + $0x38] sm:$0xff]  }
0x3b82   : > { %v5538_v28 = vadd.f32 %v5536_v34, %v14813_v54 }
0x3b84   : > { %v5539_v44 = vpack.c.bf16 %v5538_v28, %v5537_v47 }
0x3b86   : > { %11547 = vmatmul.mubr.msk.bf16.vlgmr.msra.gmra.mrb[160].mxu1 %vm1003_vm1, %v5539_v44 }
0x3b87   : > { %11551 = vmatpush3.bf16.msra.mxu1 %v14970_v52  ;;  %11566 = vmatprep.mubr.msk.bf16.mxu1 %vm13094_vm0, %v17418_v22 }
0x3b88   : > { %11552 = vmatprep.subr.bf16.mxu1 %v17418_v22 }
0x3b8b   : > { %11553 = vmatpush3.bf16.msra.mxu1 %v14979_v15 }
0x3b8c   : > { %11554 = vmatprep.subr.bf16.mxu1 %v17418_v22 }
0x3b8f   : > { %11555 = vmatpush3.bf16.msra.mxu1 %v14986_v12 }
0x3b90   : > { %11556 = vmatprep.subr.bf16.mxu1 %v17418_v22 }
0x3b93   : > { %11557 = vmatpush3.bf16.msra.mxu1 %v15193_v62 }
0x3b94   : > { %11558 = vmatprep.subr.bf16.mxu1 %v17418_v22 }
0x3b97   : > { %11559 = vmatpush3.bf16.msra.mxu1 %v15229_v41 }
0x3b98   : > { %11560 = vmatprep.subr.bf16.mxu1 %v17418_v22 }
0x3b9b   : > { %11561 = vmatpush3.bf16.msra.mxu1 %v15236_v21 }
0x3b9c   : > { %11562 = vmatprep.subr.bf16.mxu1 %v17418_v22 }
0x3b9f   : > { %11563 = vmatpush3.bf16.msra.mxu1 %v15243_v42 }
0x3ba0   : > { %11564 = vmatprep.subr.bf16.mxu1 %v17418_v22 }
0x3ba3   : > { %11565 = vmatpush3.bf16.msra.mxu1 %v15250_v27 }
0x3ba4   : > { %11570 = vmatprep.subr.bf16.mxu1 %v17418_v22 }
0x3c59   : > { %v5577_v52 = vpop.f32.mrb[160].mxu1 }
0x3c5a   : > { %v5578_v15 = vadd.f32 %v15257_v17, %v5577_v52  ;;  %v11548_v12 = vpop.f32.mrb[161].mxu1 }
0x3c5b   : > { %v5580_v50 = vpop.f32.mrb[162].mxu1 }
0x3c5c   : > { %v5581_v18 = vadd.f32 %v15257_v17, %v5580_v50  ;;  %v11549_v11 = vpop.f32.mrb[163].mxu1  ;;  %12636 = vtanh.f32 %v5578_v15 }
0x3c5e   : > { %12638 = vtanh.f32 %v5581_v18 }
0x3c66   : > { %v12637_v57 = vpop.eup %12636 }
0x3c68   : > { %v12639_v23 = vpop.eup %12638 }
0x3c69   : > { %v5586_v14 = vpack.c.bf16 %v12639_v23, %v12637_v57 }
0x3c6b   : > { %11567 = vmatmul.mubr.bf16.vlgmr.msra.gmra.mrb[164].mxu1 %v5586_v14 }
0x3c6c   : > { %11571 = vmatpush3.bf16.msra.mxu1 %v15458_v7  ;;  %11574 = vmatprep.mubr.msk.bf16.mxu1 %vm13094_vm0, %v17418_v22 }
0x3c6d   : > { %11572 = vmatprep.subr.bf16.mxu1 %v17418_v22 }
0x3c70   : > { %11573 = vmatpush3.bf16.msra.mxu1 %v15467_v51 }
0x3c71   : > { %11578 = vmatprep.subr.bf16.mxu1 %v17418_v22 }
0x3d3e   : > { %v5621_v45 = vpop.f32.mrb[164].mxu1 }
0x3d3f   : > { %v5628_v2 = vmul.f32 -0.023809522, %v5621_v45  ;;  %v11568_v46 = vpop.f32.mrb[165].mxu1 }
0x3d40   : > { %v5624_v53 = vpop.f32.mrb[166].mxu1 }
0x3d41   : > { %v5630_v35 = vadd.f32 %v5628_v2, %v5537_v47  ;;  %v5629_v16 = vmul.f32 -0.023809522, %v5624_v53  ;;  %v11569_v43 = vpop.f32.mrb[167].mxu1 }
0x3d43   : > { %v5631_v9 = vadd.f32 %v5629_v16, %v5538_v28  ;;  %v15472_v38 = vadd.f32 %v5630_v35, %v14813_v54  ;;  %v15568_v16 = vld [vmem:[%s17405_s30] ss:$0 sm:$0xff] }
0x3d45   : > { %v15475_v60 = vadd.f32 %v5631_v9, %v14813_v54  ;;  %v15497_v54 = vld [vmem:[%s17402_s0 + $0x58] sm:$0xff]  }
0x3d47   : > { %v5640_v58 = vpack.c.bf16 %v15475_v60, %v15472_v38 }
0x3d49   : > { %9770 = vmatmul.mubr.msk.bf16.vlgmr.msra.gmra.mrb[128].mxu0 %vm1003_vm1, %v5640_v58 }
0x3d4a   : > { %5739 = vmatpush1.bf16.msra.mxu0 %v15020_v33  ;;  %5770 = vmatprep.mubr.bf16.mxu0 %v17422_v5  ;;  %v15503_v33 = vld [vmem:[%s17402_s0 + $0x18] sm:$0xff]  }
0x3d4b   : > { %10315 = vmatprep.subr.bf16.mxu0 %v15027_v25  ;;  %v15509_v25 = vld [vmem:[%s17402_s0 + $0x60] sm:$0xff]  }
0x3d55   : > { %9771 = vmatmul.mubr.msk.bf16.vlgmr.msra.gmra.mrb[128].mxu0 %vm1307_vm2, %v15485_v31 }
0x3d56   : > { %10316 = vmatpush3.bf16.msra.mxu0 %v15039_v29  ;;  %v15515_v29 = vld [vmem:[%s17402_s0 + $0x20] sm:$0xff]  }
0x3d57   : > { %10317 = vmatprep.subr.bf16.mxu0 %v15045_v0  ;;  %v15521_v0 = vld [vmem:[%s17402_s0 + $0x68] sm:$0xff]  }
0x3d5a   : > { %10318 = vmatpush3.bf16.msra.mxu0 %v15051_v30  ;;  %v15527_v30 = vld [vmem:[%s17402_s0 + $0x28] sm:$0xff]  }
0x3d5b   : > { %10319 = vmatprep.subr.bf16.mxu0 %v15057_v13  ;;  %v15533_v13 = vld [vmem:[%s17402_s0 + $0x70] sm:$0xff]  }
0x3d5e   : > { %10320 = vmatpush3.bf16.msra.mxu0 %v15063_v37  ;;  %v15539_v37 = vld [vmem:[%s17402_s0 + $0x30] sm:$0xff]  }
0x3d5f   : > { %10321 = vmatprep.subr.bf16.mxu0 %v15497_v54 }
0x3d62   : > { %10322 = vmatpush3.bf16.msra.mxu0 %v15503_v33 }
0x3d63   : > { %10323 = vmatprep.subr.bf16.mxu0 %v15509_v25 }
0x3d66   : > { %10324 = vmatpush3.bf16.msra.mxu0 %v15515_v29 }
0x3d67   : > { %10325 = vmatprep.subr.bf16.mxu0 %v15521_v0 }
0x3d6a   : > { %10326 = vmatpush3.bf16.msra.mxu0 %v15527_v30 }
0x3d6b   : > { %10327 = vmatprep.subr.bf16.mxu0 %v15533_v13 }
0x3d6e   : > { %10328 = vmatpush3.bf16.msra.mxu0 %v15539_v37 }
0x3d6f   : > { %10329 = vmatprep.subr.bf16.mxu0 %v15545_v36 }
0x3d72   : > { %10330 = vmatpush3.bf16.msra.mxu0 %v15551_v8 }
0x3d73   : > { %11612 = vmatprep.subr.bf16.mxu0 %v17418_v22 }
0x3e28   : > { %v5772_v10 = vpop.f32.mrb[128].mxu0 }
0x3e29   : > { %v5785_v34 = vadd.f32 %v5772_v10, %v13596_v55  ;;  %v5774_v47 = vpop.f32.mrb[129].mxu0 }
0x3e2a   : > { %v5786_v28 = vadd.f32 %v5774_v47, %v13598_v56  ;;  %v5776_v44 = vpop.f32.mrb[130].mxu0 }
0x3e2b   : > { %12640 = vtanh.f32 %v5785_v34  ;;  %v5787_v52 = vadd.f32 %v5776_v44, %v13596_v55  ;;  %v5778_v15 = vpop.f32.mrb[131].mxu0  ;;  %v9767_v44 = vld [vmem:[%s13645_s5 + $0x40] sm:$0xff] }
0x3e2c   : > { %12642 = vtanh.f32 %v5786_v28  ;;  %v5788_v12 = vadd.f32 %v5778_v15, %v13598_v56  ;;  %v6075_v15 = vsub.f32 1.0, %v9767_v44 }
0x3e2d   : > { %12644 = vtanh.f32 %v5787_v52  ;;  %v9768_v52 = vld [vmem:[%s13645_s5 + $0x48] sm:$0xff] }
0x3e2e   : > { %12646 = vtanh.f32 %v5788_v12  ;;  %v6076_v12 = vsub.f32 1.0, %v9768_v52 }
0x3e35   : > { %v12641_v50 = vpop.eup %12640 }
0x3e36   : > { %v12643_v18 = vpop.eup %12642 }
0x3e37   : > { %v12645_v11 = vpop.eup %12644 }
0x3e38   : > { %v12647_v57 = vpop.eup %12646  ;;  %v5793_v23 = vpack.c.bf16 %v12645_v11, %v12641_v50 }
0x3e39   : > { %v5794_v14 = vpack.c.bf16 %v12647_v57, %v12643_v18 }
0x3e3b   : > { %5827 = vmatprep.mubr.bf16.mxu0 %v5794_v14  ;;  %v15588_v14 = vld [vmem:[%s17407_s23] sm:$0xff]  }
0x3e3c   : > { %5828 = vmatmul.mubr.bf16.vlgmr.msra.gmra.mrb[132].mxu0 %v5793_v23 }
0x3e3d   : > { %11613 = vmatpush3.bf16.msra.mxu0 %v15084_v63  ;;  %11616 = vmatprep.mubr.msk.bf16.mxu0 %vm13094_vm0, %v17418_v22 }
0x3e3e   : > { %11614 = vmatprep.subr.bf16.mxu0 %v17418_v22 }
0x3e41   : > { %11615 = vmatpush3.bf16.msra.mxu0 %v15093_v26 }
0x3e42   : > { %11620 = vmatprep.subr.bf16.mxu0 %v17418_v22 }
0x3f0f   : > { %v10331_v45 = vpop.f32.mrb[132].mxu0 }
0x3f10   : > { %v10332_v2 = vpop.f32.mrb[133].mxu0 }
0x3f11   : > { %v10333_v46 = vadd.f32 %v10332_v2, %v10331_v45  ;;  %v10334_v53 = vpop.f32.mrb[134].mxu0 }
0x3f12   : > { %v10335_v35 = vpop.f32.mrb[135].mxu0 }
0x3f13   : > { %v5830_v63 = vadd.f32 %v15568_v16, %v10333_v46  ;;  %v10336_v43 = vadd.f32 %v10335_v35, %v10334_v53  ;;  %v15599_v46 = vld [vmem:[%s17407_s23 + $0x8] sm:$0xff]   ;;  %v15607_v35 = vld [vmem:[%s17271_s10] sm:$0xff]  }
0x3f14   : > { %17457 = vst [vmem:[#allocation18_spill] sm:$0xff] %v15607_v35 }
0x3f15   : > { %v9772_v9 = vmul.f32 -1.442695, %v5830_v63  ;;  %v5833_v26 = vadd.f32 %v15568_v16, %v10336_v43  ;;  %v15618_v63 = vld [vmem:[%s17273_s12] sm:$0xff]   ;;  %v15627_v43 = vld [vmem:[%s17273_s12 + $0x8] sm:$0xff]  }
0x3f16   : > { %17458 = vst [vmem:[#allocation19_spill] sm:$0xff] %v15618_v63  ;;  %17459 = vst [vmem:[#allocation20_spill] sm:$0xff] %v15627_v43 }
0x3f17   : > { %12648 = vpow2.f32 %v9772_v9  ;;  %v9773_v58 = vmul.f32 -1.442695, %v5833_v26  ;;  %v15641_v9 = vld [vmem:[%s17273_s12 + $0x18] sm:$0xff]   ;;  %v15648_v26 = vld [vmem:[%s17273_s12 + $0x20] sm:$0xff]  }
0x3f18   : > { %17461 = vst [vmem:[#allocation22_spill] sm:$0xff] %v15641_v9  ;;  %17462 = vst [vmem:[#allocation23_spill] sm:$0xff] %v15648_v26 }
0x3f19   : > { %12650 = vpow2.f32 %v9773_v58  ;;  %v15655_v58 = vld [vmem:[%s17273_s12 + $0x28] sm:$0xff]  }
0x3f1a   : > { %17463 = vst [vmem:[#allocation24_spill] sm:$0xff] %v15655_v58 }
0x3f21   : > { %v12649_v24 = vpop.eup %12648 }
0x3f22   : > { %v5842_v1 = vadd.f32 1.0, %v12649_v24  ;;  %v15662_v24 = vld [vmem:[%s17273_s12 + $0x30] sm:$0xff]  }
0x3f23   : > { %v12651_v10 = vpop.eup %12650  ;;  %17464 = vst [vmem:[#allocation25_spill] sm:$0xff] %v15662_v24 }
0x3f24   : > { %12652 = vrcp.f32 %v5842_v1  ;;  %v5843_v34 = vadd.f32 1.0, %v12651_v10  ;;  %v15669_v1 = vld [vmem:[%s17273_s12 + $0x38] sm:$0xff]  }
0x3f25   : > { %17465 = vst [vmem:[#allocation26_spill] sm:$0xff] %v15669_v1 }
0x3f26   : > { %12654 = vrcp.f32 %v5843_v34 }
0x3f2e   : > { %v15572_v47 = vpop.eup %12652 }
0x3f2f   : > { %5850 = vrot.lane.b32.xlu0 %v15572_v47, %s17419_s4 }
0x3f30   : > { %v15576_v28 = vpop.eup %12654 }
0x3f31   : > { %5852 = vrot.lane.b32.xlu1 %v15576_v28, %s17419_s4 }
0x3f33   : > { %6065 = vperm.xlu0 %12393, %v9767_v44  }
0x3f35   : > { %6070 = vperm.xlu1 %12392, %v9768_v52  }
0x3f37   : > { %6079 = vperm.xlu0 %12393, %v6075_v15  }
0x3f39   : > { %6084 = vperm.xlu1 %12392, %v6076_v12  }
0x3fa1   : > { %v5851_v50 = vpop.permute.xlu0 %5850 }
0x3fa2   : > { %v5859_v11 = vmul.f32 %v5851_v50, %v15388_v6  ;;  %v5856_v2 = vmul.f32 %v5851_v50, %v15472_v38 }
0x3fa3   : > { %v5853_v18 = vpop.permute.xlu1 %5852 }
0x3fa4   : > { %v5860_v57 = vmul.f32 %v5853_v18, %v15380_v4  ;;  %v5857_v45 = vmul.f32 %v5853_v18, %v15475_v60 }
0x3fa6   : > { %v5861_v23 = vpack.c.bf16 %v5860_v57, %v5859_v11  ;;  %v5858_v53 = vpack.c.bf16 %v5857_v45, %v5856_v2 }
0x3fa8   : > { %11575 = vmatmul.mubr.msk.bf16.vlgmr.msra.gmra.mrb[168].mxu1 %vm1003_vm1, %v5861_v23 }
0x3fa9   : > { %11579 = vmatpush3.bf16.msra.mxu1 %v15588_v14  ;;  %11582 = vmatprep.mubr.msk.bf16.mxu1 %vm13094_vm0, %v17418_v22 }
0x3faa   : > { %11580 = vmatprep.subr.bf16.mxu1 %v17418_v22 }
0x3fad   : > { %11581 = vmatpush3.bf16.msra.mxu1 %v15599_v46 }
0x3fae   : > { %11586 = vmatprep.subr.bf16.mxu1 %v17418_v22 }
0x3fb0   : > { %11583 = vmatmul.mubr.msk.bf16.vlgmr.msra.gmra.mrb[172].mxu1 %vm1003_vm1, %v5858_v53 }
0x3fb1   : > { %11587 = vmatpush3.bf16.msra.mxu1 %v15607_v35  ;;  %11588 = vmatprep.mubr.msk.bf16.mxu1 %vm13094_vm0, %v17418_v22 }
0x3fb2   : > { %11592 = vmatprep.subr.bf16.mxu1 %v17418_v22 }
0x3fb8   : > { %11589 = vmatmul.mubr.msk.bf16.vlgmr.msra.gmra.mrb[176].mxu1 %vm1307_vm2, %v15485_v31  ;;  %v15634_v31 = vld [vmem:[%s17273_s12 + $0x10] sm:$0xff]  }
0x3fb9   : > { %11593 = vmatpush3.bf16.msra.mxu1 %v15618_v63  ;;  %11608 = vmatprep.mubr.msk.bf16.mxu1 %vm13094_vm0, %v17418_v22  ;;  %17460 = vst [vmem:[#allocation21_spill] sm:$0xff] %v15634_v31 }
0x3fba   : > { %11594 = vmatprep.subr.bf16.mxu1 %v17418_v22 }
0x3fbd   : > { %11595 = vmatpush3.bf16.msra.mxu1 %v15627_v43 }
0x3fbe   : > { %11596 = vmatprep.subr.bf16.mxu1 %v17418_v22 }
0x3fc1   : > { %11597 = vmatpush3.bf16.msra.mxu1 %v15634_v31 }
0x3fc2   : > { %11598 = vmatprep.subr.bf16.mxu1 %v17418_v22 }
0x3fc5   : > { %11599 = vmatpush3.bf16.msra.mxu1 %v15641_v9 }
0x3fc6   : > { %11600 = vmatprep.subr.bf16.mxu1 %v17418_v22 }
0x3fc9   : > { %11601 = vmatpush3.bf16.msra.mxu1 %v15648_v26 }
0x3fca   : > { %11602 = vmatprep.subr.bf16.mxu1 %v17418_v22 }
0x3fcd   : > { %11603 = vmatpush3.bf16.msra.mxu1 %v15655_v58 }
0x3fce   : > { %11604 = vmatprep.subr.bf16.mxu1 %v17418_v22 }
0x3fd1   : > { %11605 = vmatpush3.bf16.msra.mxu1 %v15662_v24 }
0x3fd2   : > { %11606 = vmatprep.subr.bf16.mxu1 %v17418_v22 }
0x3fd5   : > { %11607 = vmatpush3.bf16.msra.mxu1 %v15669_v1  ;;  %v15676_v1 = vld [vmem:[%s17272_s11] ss:$0 sm:$0xff] }
0x3fd6   : > { %11640 = vmatprep.subr.bf16.mxu1 %v17418_v22  ;;  %17466 = vst [vmem:[#allocation27_spill] sm:$0xff] %v15676_v1 }
0x407b   : > { %v5899_v10 = vpop.f32.mrb[168].mxu1 }
0x407c   : > { %v11576_v34 = vpop.f32.mrb[169].mxu1 }
0x407d   : > { %v5902_v44 = vpop.f32.mrb[170].mxu1 }
0x407e   : > { %v11577_v52 = vpop.f32.mrb[171].mxu1 }
0x4083   : > { %v5943_v15 = vpop.f32.mrb[172].mxu1 }
0x4084   : > { %v5944_v12 = vadd.f32 %v5943_v15, %v5899_v10  ;;  %v11584_v50 = vpop.f32.mrb[173].mxu1 }
0x4085   : > { %v5946_v18 = vpop.f32.mrb[174].mxu1  ;;  %v15698_v50 = vpop.permute.xlu1 %6070 }
0x4086   : > { %v5947_v11 = vadd.f32 %v5946_v18, %v5902_v44  ;;  %v11585_v57 = vpop.f32.mrb[175].mxu1 }
0x4089   : > { %v15720_v31 = vpop.permute.xlu1 %6084 }
0x408b   : > { %v5984_v23 = vpop.f32.mrb[176].mxu1 }
0x408c   : > { %v5991_v45 = vadd.f32 %v5984_v23, %v5944_v12  ;;  %v11590_v2 = vpop.f32.mrb[177].mxu1  ;;  %v15683_v12 = vld [vmem:[%s17280_s19] sm:$0xff]   ;;  %v17346_v23 = vsub.f32 1.0, %v15572_v47 }
0x408d   : > { %v5987_v53 = vpop.f32.mrb[178].mxu1  ;;  %v6045_v2 = vmul.f32 %v15572_v47, %v15472_v38 }
0x408e   : > { %v5993_v24 = vadd.f32 %v15676_v1, %v5991_v45  ;;  %v5992_v34 = vadd.f32 %v5987_v53, %v5947_v11  ;;  %v11591_v58 = vpop.f32.mrb[179].mxu1  ;;  %v15703_v11 = vld [vmem:[%s17274_s13] ss:$0 sm:$0xff] }
0x408f   : > { %v15692_v58 = vld [vmem:[%s17280_s19 + $0x8] sm:$0xff]   ;;  %17467 = vst [vmem:[#allocation28_spill] sm:$0xff] %v15703_v11 }
0x4090   : > { %v5994_v52 = vadd.f32 %v15676_v1, %v5992_v34  ;;  %12656 = vtanh.f32 %v5993_v24  ;;  %v15696_v24 = vpop.permute.xlu0 %6065 }
0x4092   : > { %12658 = vtanh.f32 %v5994_v52 }
0x4094   : > { %v15718_v9 = vpop.permute.xlu0 %6079 }
0x409a   : > { %v12657_v10 = vpop.eup %12656 }
0x409c   : > { %v12659_v44 = vpop.eup %12658 }
0x409d   : > { %v5997_v15 = vpack.c.bf16 %v12659_v44, %v12657_v10  ;;  %v17347_v44 = vsub.f32 1.0, %v15576_v28 }
0x409f   : > { %11609 = vmatmul.mubr.bf16.vlgmr.msra.gmra.mrb[180].mxu1 %v5997_v15 }
0x40a0   : > { %11641 = vmatpush3.bf16.msra.mxu1 %v15683_v12  ;;  %11644 = vmatprep.mubr.msk.bf16.mxu1 %vm13094_vm0, %v17418_v22 }
0x40a1   : > { %11642 = vmatprep.subr.bf16.mxu1 %v17418_v22 }
0x40a4   : > { %11643 = vmatpush3.bf16.msra.mxu1 %v15692_v58 }
0x40a5   : > { %11648 = vmatprep.subr.bf16.mxu1 %v17418_v22 }
0x4172   : > { %v6032_v18 = vpop.f32.mrb[180].mxu1 }
0x4173   : > { %v6033_v57 = vadd.f32 %v15703_v11, %v6032_v18  ;;  %v11610_v45 = vpop.f32.mrb[181].mxu1 }
0x4174   : > { %v6035_v53 = vpop.f32.mrb[182].mxu1  ;;  %v6046_v45 = vmul.f32 %v15576_v28, %v15475_v60 }
0x4175   : > { %v6039_v34 = vand.u32 2147483647, %v6033_v57  ;;  %v6043_v52 = vmul.f32 %v17346_v23, %v6033_v57  ;;  %v6036_v10 = vadd.f32 %v15703_v11, %v6035_v53  ;;  %v11611_v15 = vpop.f32.mrb[183].mxu1 }
0x4177   : > { %v6047_v1 = vadd.f32 %v6045_v2, %v6043_v52  ;;  %v6040_v26 = vand.u32 2147483647, %v6036_v10  ;;  %v6044_v18 = vmul.f32 %v17347_v44, %v6036_v10  ;;  %6051 = vrot.lane.b32.xlu0 %v6039_v34, %s17419_s4  ;;  %v6087_v2 = vmul.f32 %v15718_v9, %v15472_v38  ;;  %v15742_v38 = vld [vmem:[%s17282_s21 + $0x8] sm:$0xff]  }
0x4178   : > { %v6088_v52 = vmul.f32 %v15720_v31, %v15475_v60  ;;  %v15749_v60 = vld [vmem:[%s17282_s21 + $0x10] sm:$0xff]  }
0x4179   : > { %v6073_v57 = vmul.f32 %v15696_v24, %v6047_v1  ;;  %v6048_v53 = vadd.f32 %v6046_v45, %v6044_v18  ;;  %6053 = vrot.lane.b32.xlu1 %v6040_v26, %s17419_s4  ;;  %v15733_v1 = vld [vmem:[%s17282_s21] sm:$0xff]  }
0x417b   : > { %v6074_v10 = vmul.f32 %v15698_v50, %v6048_v53  ;;  %v6089_v15 = vadd.f32 %v6087_v2, %v6073_v57 }
0x417d   : > { %v6090_v23 = vadd.f32 %v6088_v52, %v6074_v10 }
0x417f   : > { %v6100_v34 = vpack.c.bf16 %v6090_v23, %v6089_v15 }
0x4181   : > { %11617 = vmatmul.mubr.msk.bf16.vlgmr.msra.gmra.mrb[136].mxu0 %vm1003_vm1, %v6100_v34  ;;  %v15774_v34 = vld [vmem:[%s17283_s22] sm:$0x1] }
0x4182   : > { %11621 = vmatpush3.bf16.msra.mxu0 %v15733_v1  ;;  %11636 = vmatprep.mubr.msk.bf16.mxu0 %vm13094_vm0, %v17418_v22  ;;  %17468 = vst [vmem:[#allocation29_spill] sm:$0xff] %v15774_v34 }
0x4183   : > { %11622 = vmatprep.subr.bf16.mxu0 %v17418_v22 }
0x4186   : > { %11623 = vmatpush3.bf16.msra.mxu0 %v15742_v38 }
0x4187   : > { %11624 = vmatprep.subr.bf16.mxu0 %v17418_v22 }
0x418a   : > { %11625 = vmatpush3.bf16.msra.mxu0 %v15749_v60 }
0x418b   : > { %11626 = vmatprep.subr.bf16.mxu0 %v17418_v22 }
0x418e   : > { %11627 = vmatpush3.bf16.msra.mxu0 %v15193_v62 }
0x418f   : > { %11628 = vmatprep.subr.bf16.mxu0 %v17418_v22 }
0x4192   : > { %11629 = vmatpush3.bf16.msra.mxu0 %v15229_v41 }
0x4193   : > { %11630 = vmatprep.subr.bf16.mxu0 %v17418_v22 }
0x4196   : > { %11631 = vmatpush3.bf16.msra.mxu0 %v15236_v21 }
0x4197   : > { %11632 = vmatprep.subr.bf16.mxu0 %v17418_v22 }
0x419a   : > { %11633 = vmatpush3.bf16.msra.mxu0 %v15243_v42 }
0x419b   : > { %11634 = vmatprep.subr.bf16.mxu0 %v17418_v22 }
0x419e   : > { %11635 = vmatpush3.bf16.msra.mxu0 %v15250_v27 }
0x419f   : > { %11668 = vmatprep.subr.bf16.mxu0 %v17418_v22 }
0x4254   : > { %v6138_v26 = vpop.f32.mrb[136].mxu0 }
0x4255   : > { %v6139_v62 = vadd.f32 %v15257_v17, %v6138_v26  ;;  %v11618_v18 = vpop.f32.mrb[137].mxu0  ;;  %v6099_v26 = vmul.f32 -0.023809528, %v15774_v34 }
0x4256   : > { %v6141_v45 = vpop.f32.mrb[138].mxu0 }
0x4257   : > { %v6142_v57 = vadd.f32 %v15257_v17, %v6141_v45  ;;  %v11619_v53 = vpop.f32.mrb[139].mxu0  ;;  %12660 = vtanh.f32 %v6139_v62 }
0x4258   : > { %v15778_v53 = vrot.slane %v6099_v26, %v13484_v3 }
0x4259   : > { %12662 = vtanh.f32 %v6142_v57 }
0x4261   : > { %v12661_v2 = vpop.eup %12660 }
0x4263   : > { %v12663_v52 = vpop.eup %12662 }
0x4264   : > { %v6147_v10 = vpack.c.bf16 %v12663_v52, %v12661_v2 }
0x4266   : > { %11637 = vmatmul.mubr.bf16.vlgmr.msra.gmra.mrb[140].mxu0 %v6147_v10 }
0x4267   : > { %11669 = vmatpush3.bf16.msra.mxu0 %v15683_v12  ;;  %11672 = vmatprep.mubr.msk.bf16.mxu0 %vm13094_vm0, %v17418_v22 }
0x4268   : > { %11670 = vmatprep.subr.bf16.mxu0 %v17418_v22 }
0x426b   : > { %11671 = vmatpush3.bf16.msra.mxu0 %v15692_v58 }
0x426c   : > { %11676 = vmatprep.subr.bf16.mxu0 %v17418_v22 }
0x4339   : > { %v6182_v62 = vpop.f32.mrb[140].mxu0 }
0x433a   : > { %v6189_v18 = vmul.f32 -0.023809528, %v6182_v62  ;;  %v11638_v45 = vpop.f32.mrb[141].mxu0 }
0x433b   : > { %v6185_v57 = vpop.f32.mrb[142].mxu0 }
0x433c   : > { %v6191_v2 = vadd.f32 %v6189_v18, %v6089_v15  ;;  %v6190_v52 = vmul.f32 -0.023809528, %v6185_v57  ;;  %v11639_v10 = vpop.f32.mrb[143].mxu0 }
0x433e   : > { %v6192_v44 = vadd.f32 %v6190_v52, %v6090_v23  ;;  %v6199_v11 = vadd.f32 %v15778_v53, %v6191_v2  ;;  %v15794_v23 = vld [vmem:[%s17282_s21 + $0x18] sm:$0xff]  }
0x4340   : > { %v6200_v43 = vadd.f32 %v15778_v53, %v6192_v44 }
0x4342   : > { %v6201_v63 = vpack.c.bf16 %v6200_v43, %v6199_v11 }
0x4344   : > { %11645 = vmatmul.mubr.msk.bf16.vlgmr.msra.gmra.mrb[184].mxu1 %vm1003_vm1, %v6201_v63 }
0x4345   : > { %11649 = vmatpush3.bf16.msra.mxu1 %v15733_v1  ;;  %11664 = vmatprep.mubr.msk.bf16.mxu1 %vm13094_vm0, %v17418_v22 }
0x4346   : > { %11650 = vmatprep.subr.bf16.mxu1 %v17418_v22 }
0x4349   : > { %11651 = vmatpush3.bf16.msra.mxu1 %v15742_v38 }
0x434a   : > { %11652 = vmatprep.subr.bf16.mxu1 %v17418_v22 }
0x434d   : > { %11653 = vmatpush3.bf16.msra.mxu1 %v15749_v60 }
0x434e   : > { %11654 = vmatprep.subr.bf16.mxu1 %v17418_v22 }
0x4351   : > { %11655 = vmatpush3.bf16.msra.mxu1 %v15794_v23 }
0x4352   : > { %11656 = vmatprep.subr.bf16.mxu1 %v17418_v22 }
0x4355   : > { %11657 = vmatpush3.bf16.msra.mxu1 %v15229_v41 }
0x4356   : > { %11658 = vmatprep.subr.bf16.mxu1 %v17418_v22 }
0x4359   : > { %11659 = vmatpush3.bf16.msra.mxu1 %v15236_v21 }
0x435a   : > { %11660 = vmatprep.subr.bf16.mxu1 %v17418_v22 }
0x435d   : > { %11661 = vmatpush3.bf16.msra.mxu1 %v15243_v42 }
0x435e   : > { %11662 = vmatprep.subr.bf16.mxu1 %v17418_v22 }
0x4361   : > { %11663 = vmatpush3.bf16.msra.mxu1 %v15250_v27 }
0x4362   : > { %11696 = vmatprep.subr.bf16.mxu1 %v17418_v22 }
0x4417   : > { %v6239_v63 = vpop.f32.mrb[184].mxu1 }
0x4418   : > { %v6240_v44 = vadd.f32 %v15257_v17, %v6239_v63  ;;  %v11646_v15 = vpop.f32.mrb[185].mxu1 }
0x4419   : > { %v6242_v26 = vpop.f32.mrb[186].mxu1 }
0x441a   : > { %v6243_v41 = vadd.f32 %v15257_v17, %v6242_v26  ;;  %v11647_v62 = vpop.f32.mrb[187].mxu1  ;;  %12664 = vtanh.f32 %v6240_v44 }
0x441b   : > { %v15851_v62 = vld [vmem:[%s17282_s21 + $0x38] sm:$0xff]  }
0x441c   : > { %12666 = vtanh.f32 %v6243_v41  ;;  %v15844_v41 = vld [vmem:[%s17282_s21 + $0x30] sm:$0xff]  }
0x4424   : > { %v12665_v21 = vpop.eup %12664 }
0x4426   : > { %v12667_v18 = vpop.eup %12666 }
0x4427   : > { %v6248_v45 = vpack.c.bf16 %v12667_v18, %v12665_v21  ;;  %v15858_v18 = vld [vmem:[%s17281_s20] ss:$0 sm:$0xff] }
0x4429   : > { %11665 = vmatmul.mubr.bf16.vlgmr.msra.gmra.mrb[188].mxu1 %v6248_v45 }
0x442a   : > { %11697 = vmatpush3.bf16.msra.mxu1 %v15683_v12  ;;  %11700 = vmatprep.mubr.msk.bf16.mxu1 %vm13094_vm0, %v17418_v22 }
0x442b   : > { %11698 = vmatprep.subr.bf16.mxu1 %v17418_v22 }
0x442e   : > { %11699 = vmatpush3.bf16.msra.mxu1 %v15692_v58 }
0x442f   : > { %11704 = vmatprep.subr.bf16.mxu1 %v17418_v22 }
0x44fc   : > { %v6283_v42 = vpop.f32.mrb[188].mxu1 }
0x44fd   : > { %v6290_v27 = vmul.f32 -0.023809528, %v6283_v42  ;;  %v11666_v17 = vpop.f32.mrb[189].mxu1 }
0x44fe   : > { %v6286_v57 = vpop.f32.mrb[190].mxu1 }
0x44ff   : > { %v6292_v2 = vadd.f32 %v6290_v27, %v6199_v11  ;;  %v6291_v52 = vmul.f32 -0.023809528, %v6286_v57  ;;  %v11667_v10 = vpop.f32.mrb[191].mxu1  ;;  %v15837_v11 = vld [vmem:[%s17282_s21 + $0x28] sm:$0xff]  }
0x4501   : > { %v6293_v63 = vadd.f32 %v6291_v52, %v6200_v43  ;;  %v6294_v44 = vadd.f32 %v6292_v2, %v15778_v53  ;;  %v15830_v43 = vld [vmem:[%s17282_s21 + $0x20] sm:$0xff]  }
0x4503   : > { %v6295_v15 = vadd.f32 %v6293_v63, %v15778_v53 }
0x4505   : > { %v6296_v26 = vpack.c.bf16 %v6295_v15, %v6294_v44 }
0x4507   : > { %11673 = vmatmul.mubr.msk.bf16.vlgmr.msra.gmra.mrb[144].mxu0 %vm1003_vm1, %v6296_v26 }
0x4508   : > { %11677 = vmatpush3.bf16.msra.mxu0 %v15733_v1  ;;  %11692 = vmatprep.mubr.msk.bf16.mxu0 %vm13094_vm0, %v17418_v22 }
0x4509   : > { %11678 = vmatprep.subr.bf16.mxu0 %v17418_v22 }
0x450c   : > { %11679 = vmatpush3.bf16.msra.mxu0 %v15742_v38 }
0x450d   : > { %11680 = vmatprep.subr.bf16.mxu0 %v17418_v22 }
0x4510   : > { %11681 = vmatpush3.bf16.msra.mxu0 %v15749_v60 }
0x4511   : > { %11682 = vmatprep.subr.bf16.mxu0 %v17418_v22 }
0x4514   : > { %11683 = vmatpush3.bf16.msra.mxu0 %v15794_v23 }
0x4515   : > { %11684 = vmatprep.subr.bf16.mxu0 %v17418_v22 }
0x4518   : > { %11685 = vmatpush3.bf16.msra.mxu0 %v15830_v43 }
0x4519   : > { %11686 = vmatprep.subr.bf16.mxu0 %v17418_v22 }
0x451c   : > { %11687 = vmatpush3.bf16.msra.mxu0 %v15837_v11 }
0x451d   : > { %11688 = vmatprep.subr.bf16.mxu0 %v17418_v22 }
0x4520   : > { %11689 = vmatpush3.bf16.msra.mxu0 %v15844_v41 }
0x4521   : > { %11690 = vmatprep.subr.bf16.mxu0 %v17418_v22 }
0x4524   : > { %11691 = vmatpush3.bf16.msra.mxu0 %v15851_v62 }
0x4525   : > { %11724 = vmatprep.subr.bf16.mxu0 %v17418_v22 }
0x45da   : > { %v6334_v21 = vpop.f32.mrb[144].mxu0 }
0x45db   : > { %v6335_v45 = vadd.f32 %v15858_v18, %v6334_v21  ;;  %v11674_v42 = vpop.f32.mrb[145].mxu0 }
0x45dc   : > { %v6337_v27 = vpop.f32.mrb[146].mxu0 }
0x45dd   : > { %v6338_v17 = vadd.f32 %v15858_v18, %v6337_v27  ;;  %v11675_v57 = vpop.f32.mrb[147].mxu0  ;;  %12668 = vtanh.f32 %v6335_v45 }
0x45df   : > { %12670 = vtanh.f32 %v6338_v17 }
0x45e7   : > { %v12669_v2 = vpop.eup %12668 }
0x45e9   : > { %v12671_v52 = vpop.eup %12670 }
0x45ea   : > { %v6343_v10 = vpack.c.bf16 %v12671_v52, %v12669_v2 }
0x45ec   : > { %11693 = vmatmul.mubr.bf16.vlgmr.msra.gmra.mrb[148].mxu0 %v6343_v10 }
0x45ed   : > { %11725 = vmatpush3.bf16.msra.mxu0 %v15683_v12  ;;  %11728 = vmatprep.mubr.msk.bf16.mxu0 %vm13094_vm0, %v17418_v22 }
0x45ee   : > { %11726 = vmatprep.subr.bf16.mxu0 %v17418_v22 }
0x45f1   : > { %11727 = vmatpush3.bf16.msra.mxu0 %v15692_v58 }
0x45f2   : > { %11732 = vmatprep.subr.bf16.mxu0 %v17418_v22 }
0x46bf   : > { %v6378_v63 = vpop.f32.mrb[148].mxu0 }
0x46c0   : > { %v6385_v26 = vmul.f32 -0.023809528, %v6378_v63  ;;  %v11694_v21 = vpop.f32.mrb[149].mxu0 }
0x46c1   : > { %v6381_v45 = vpop.f32.mrb[150].mxu0 }
0x46c2   : > { %v6387_v42 = vadd.f32 %v6385_v26, %v6294_v44  ;;  %v6386_v27 = vmul.f32 -0.023809528, %v6381_v45  ;;  %v11695_v17 = vpop.f32.mrb[151].mxu0 }
0x46c4   : > { %v6388_v57 = vadd.f32 %v6386_v27, %v6295_v15  ;;  %v6389_v2 = vadd.f32 %v6387_v42, %v15778_v53 }
0x46c6   : > { %v6390_v52 = vadd.f32 %v6388_v57, %v15778_v53 }
0x46c8   : > { %v6391_v10 = vpack.c.bf16 %v6390_v52, %v6389_v2 }
0x46ca   : > { %11701 = vmatmul.mubr.msk.bf16.vlgmr.msra.gmra.mrb[192].mxu1 %vm1003_vm1, %v6391_v10 }
0x46cb   : > { %11705 = vmatpush3.bf16.msra.mxu1 %v15733_v1  ;;  %11720 = vmatprep.mubr.msk.bf16.mxu1 %vm13094_vm0, %v17418_v22 }
0x46cc   : > { %11706 = vmatprep.subr.bf16.mxu1 %v17418_v22 }
0x46cf   : > { %11707 = vmatpush3.bf16.msra.mxu1 %v15742_v38 }
0x46d0   : > { %11708 = vmatprep.subr.bf16.mxu1 %v17418_v22 }
0x46d3   : > { %11709 = vmatpush3.bf16.msra.mxu1 %v15749_v60 }
0x46d4   : > { %11710 = vmatprep.subr.bf16.mxu1 %v17418_v22 }
0x46d7   : > { %11711 = vmatpush3.bf16.msra.mxu1 %v15794_v23 }
0x46d8   : > { %11712 = vmatprep.subr.bf16.mxu1 %v17418_v22 }
0x46db   : > { %11713 = vmatpush3.bf16.msra.mxu1 %v15830_v43 }
0x46dc   : > { %11714 = vmatprep.subr.bf16.mxu1 %v17418_v22 }
0x46df   : > { %11715 = vmatpush3.bf16.msra.mxu1 %v15837_v11 }
0x46e0   : > { %11716 = vmatprep.subr.bf16.mxu1 %v17418_v22 }
0x46e3   : > { %11717 = vmatpush3.bf16.msra.mxu1 %v15844_v41 }
0x46e4   : > { %11718 = vmatprep.subr.bf16.mxu1 %v17418_v22 }
0x46e7   : > { %11719 = vmatpush3.bf16.msra.mxu1 %v15851_v62 }
0x46e8   : > { %11752 = vmatprep.subr.bf16.mxu1 %v17418_v22 }
0x479d   : > { %v6429_v44 = vpop.f32.mrb[192].mxu1 }
0x479e   : > { %v6430_v15 = vadd.f32 %v15858_v18, %v6429_v44  ;;  %v11702_v63 = vpop.f32.mrb[193].mxu1 }
0x479f   : > { %v6432_v26 = vpop.f32.mrb[194].mxu1 }
0x47a0   : > { %v6433_v21 = vadd.f32 %v15858_v18, %v6432_v26  ;;  %v11703_v45 = vpop.f32.mrb[195].mxu1  ;;  %12672 = vtanh.f32 %v6430_v15 }
0x47a2   : > { %12674 = vtanh.f32 %v6433_v21 }
0x47aa   : > { %v12673_v42 = vpop.eup %12672 }
0x47ac   : > { %v12675_v27 = vpop.eup %12674 }
0x47ad   : > { %v6438_v17 = vpack.c.bf16 %v12675_v27, %v12673_v42 }
0x47af   : > { %11721 = vmatmul.mubr.bf16.vlgmr.msra.gmra.mrb[196].mxu1 %v6438_v17 }
0x47b0   : > { %11753 = vmatpush3.bf16.msra.mxu1 %v15683_v12  ;;  %11756 = vmatprep.mubr.msk.bf16.mxu1 %vm13094_vm0, %v17418_v22 }
0x47b1   : > { %11754 = vmatprep.subr.bf16.mxu1 %v17418_v22 }
0x47b4   : > { %11755 = vmatpush3.bf16.msra.mxu1 %v15692_v58 }
0x47b5   : > { %11760 = vmatprep.subr.bf16.mxu1 %v17418_v22 }
0x4882   : > { %v6473_v57 = vpop.f32.mrb[196].mxu1 }
0x4883   : > { %v6480_v10 = vmul.f32 -0.023809528, %v6473_v57  ;;  %v11722_v44 = vpop.f32.mrb[197].mxu1 }
0x4884   : > { %v6476_v15 = vpop.f32.mrb[198].mxu1 }
0x4885   : > { %v6482_v63 = vadd.f32 %v6480_v10, %v6389_v2  ;;  %v6481_v26 = vmul.f32 -0.023809528, %v6476_v15  ;;  %v11723_v21 = vpop.f32.mrb[199].mxu1  ;;  %v6052_v15 = vpop.permute.xlu0 %6051 }
0x4886   : > { %v17469_v21 = vsub.f32 1.0, %v15576_v28 }
0x4887   : > { %v6483_v45 = vadd.f32 %v6481_v26, %v6390_v52  ;;  %v15898_v42 = vadd.f32 %v6482_v63, %v15778_v53  ;;  %v6054_v52 = vpop.permute.xlu1 %6053 }
0x4889   : > { %v15901_v27 = vadd.f32 %v6483_v45, %v15778_v53  ;;  %v6058_v45 = vmul.f32 %v6054_v52, %v17469_v21 }
0x488b   : > { %v6486_v17 = vpack.c.bf16 %v15901_v27, %v15898_v42 }
0x488d   : > { %11729 = vmatmul.mubr.msk.bf16.vlgmr.msra.gmra.mrb[152].mxu0 %vm1003_vm1, %v6486_v17  ;;  %v17470_v17 = vsub.f32 1.0, %v15572_v47 }
0x488e   : > { %11733 = vmatpush3.bf16.msra.mxu0 %v15733_v1  ;;  %11748 = vmatprep.mubr.msk.bf16.mxu0 %vm13094_vm0, %v17418_v22 }
0x488f   : > { %11734 = vmatprep.subr.bf16.mxu0 %v17418_v22  ;;  %v6057_v3 = vmul.f32 %v6052_v15, %v17470_v17  ;;  %v6093_v15 = vmul.f32 %v15718_v9, %v15388_v6 }
0x4892   : > { %11735 = vmatpush3.bf16.msra.mxu0 %v15742_v38 }
0x4893   : > { %11736 = vmatprep.subr.bf16.mxu0 %v17418_v22 }
0x4896   : > { %11737 = vmatpush3.bf16.msra.mxu0 %v15749_v60 }
0x4897   : > { %11738 = vmatprep.subr.bf16.mxu0 %v17418_v22 }
0x489a   : > { %11739 = vmatpush3.bf16.msra.mxu0 %v15794_v23 }
0x489b   : > { %11740 = vmatprep.subr.bf16.mxu0 %v17418_v22 }
0x489e   : > { %11741 = vmatpush3.bf16.msra.mxu0 %v15830_v43 }
0x489f   : > { %11742 = vmatprep.subr.bf16.mxu0 %v17418_v22 }
0x48a2   : > { %11743 = vmatpush3.bf16.msra.mxu0 %v15837_v11 }
0x48a3   : > { %11744 = vmatprep.subr.bf16.mxu0 %v17418_v22 }
0x48a6   : > { %11745 = vmatpush3.bf16.msra.mxu0 %v15844_v41 }
0x48a7   : > { %11746 = vmatprep.subr.bf16.mxu0 %v17418_v22 }
0x48aa   : > { %11747 = vmatpush3.bf16.msra.mxu0 %v15851_v62 }
0x48ab   : > { %6687 = vmatprep.subr.bf16.mxu0 %v15354_v19  ;;  %v6060_v19 = vmul.f32 %v15576_v28, %v15380_v4 }
0x4960   : > { %v6524_v2 = vpop.f32.mrb[152].mxu0 }
0x4961   : > { %v6525_v57 = vadd.f32 %v15858_v18, %v6524_v2  ;;  %v11730_v10 = vpop.f32.mrb[153].mxu0  ;;  %v6059_v2 = vmul.f32 %v15572_v47, %v15388_v6 }
0x4962   : > { %v6527_v44 = vpop.f32.mrb[154].mxu0  ;;  %v6062_v10 = vadd.f32 %v6060_v19, %v6058_v45 }
0x4963   : > { %v6528_v63 = vadd.f32 %v15858_v18, %v6527_v44  ;;  %v11731_v26 = vpop.f32.mrb[155].mxu0  ;;  %12676 = vtanh.f32 %v6525_v57  ;;  %v6061_v34 = vadd.f32 %v6059_v2, %v6057_v3 }
0x4964   : > { %v6092_v35 = vmul.f32 %v15698_v50, %v6062_v10  ;;  %v6094_v26 = vmul.f32 %v15720_v31, %v15380_v4 }
0x4965   : > { %12678 = vtanh.f32 %v6528_v63  ;;  %v6091_v52 = vmul.f32 %v15696_v24, %v6061_v34 }
0x4966   : > { %v6096_v63 = vadd.f32 %v6094_v26, %v6092_v35 }
0x4967   : > { %v6095_v28 = vadd.f32 %v6093_v15, %v6091_v52 }
0x4968   : > { %v15942_v3 = vand.u32 2147483647, %v6096_v63 }
0x4969   : > { %v15945_v47 = vand.u32 2147483647, %v6095_v28  ;;  %v16000_v28 = vld [vmem:[%s17400_s1] ss:$8 sps:$4 sm:$0xff]  }
0x496b   : > { %v6683_v4 = vpack.c.bf16 %v15942_v3, %v15945_v47 }
0x496d   : > { %v12677_v44 = vpop.eup %12676 }
0x496f   : > { %v12679_v57 = vpop.eup %12678 }
0x4970   : > { %v6533_v21 = vpack.c.bf16 %v12679_v57, %v12677_v44 }
0x4972   : > { %11749 = vmatmul.mubr.bf16.vlgmr.msra.gmra.mrb[156].mxu0 %v6533_v21 }
0x4973   : > { %6688 = vmatpush1.bf16.msra.mxu0 %v15376_v40  ;;  %6719 = vmatprep.mubr.bf16.mxu0 %v17422_v5 }
0x4974   : > { %6689 = vmatprep.subr.bf16.mxu0 %v15385_v39 }
0x4977   : > { %6690 = vmatpush1.bf16.msra.mxu0 %v15393_v48 }
0x4978   : > { %6733 = vmatprep.subr.bf16.mxu0 %v15401_v32 }
0x497a   : > { %9787 = vmatmul.mubr.msk.bf16.vlgmr.msra.gmra.mrb[160].mxu0 %vm1003_vm1, %v6683_v4  ;;  %v16007_v4 = vld [vmem:[%s17402_s0 + $0x40] sm:$0xff]  }
0x497b   : > { %6734 = vmatpush1.bf16.msra.mxu0 %v15408_v61  ;;  %6765 = vmatprep.mubr.bf16.mxu0 %v17422_v5 }
0x497c   : > { %6735 = vmatprep.subr.bf16.mxu0 %v15415_v59 }
0x497f   : > { %6736 = vmatpush1.bf16.msra.mxu0 %v15421_v20 }
0x4980   : > { %6780 = vmatprep.subr.bf16.mxu0 %v15427_v49 }
0x4a45   : > { %v6568_v40 = vpop.f32.mrb[156].mxu0 }
0x4a46   : > { %v6575_v39 = vmul.f32 -0.023809528, %v6568_v40  ;;  %v11750_v6 = vpop.f32.mrb[157].mxu0  ;;  %v9784_v40 = vld [vmem:[%s13507_s27 + $0x58] sm:$0xff] }
0x4a47   : > { %v6571_v48 = vpop.f32.mrb[158].mxu0  ;;  %v16019_v6 = vld [vmem:[%s17402_s0] sm:$0xff]  }
0x4a48   : > { %v6577_v35 = vadd.f32 %v6575_v39, %v15898_v42  ;;  %v6576_v31 = vmul.f32 -0.023809528, %v6571_v48  ;;  %v11751_v32 = vpop.f32.mrb[159].mxu0  ;;  %v16025_v48 = vld [vmem:[%s17402_s0 + $0x48] sm:$0xff]  }
0x4a49   : > { %v16043_v32 = vld [vmem:[%s17402_s0 + $0x10] sm:$0xff]  }
0x4a4a   : > { %v6578_v9 = vadd.f32 %v6576_v31, %v15901_v27  ;;  %v6579_v61 = vadd.f32 %v6577_v35, %v15778_v53  ;;  %v16031_v35 = vld [vmem:[%s17402_s0 + $0x8] sm:$0xff]   ;;  %v16037_v31 = vld [vmem:[%s17402_s0 + $0x50] sm:$0xff]  }
0x4a4c   : > { %v6580_v24 = vadd.f32 %v6578_v9, %v15778_v53 }
0x4a4e   : > { %v6581_v50 = vpack.c.bf16 %v6580_v24, %v6579_v61 }
0x4a50   : > { %11757 = vmatmul.mubr.msk.bf16.vlgmr.msra.gmra.mrb[200].mxu1 %vm1003_vm1, %v6581_v50 }
0x4a51   : > { %11761 = vmatpush3.bf16.msra.mxu1 %v15733_v1  ;;  %11776 = vmatprep.mubr.msk.bf16.mxu1 %vm13094_vm0, %v17418_v22 }
0x4a52   : > { %11762 = vmatprep.subr.bf16.mxu1 %v17418_v22 }
0x4a55   : > { %11763 = vmatpush3.bf16.msra.mxu1 %v15742_v38 }
0x4a56   : > { %11764 = vmatprep.subr.bf16.mxu1 %v17418_v22 }
0x4a59   : > { %11765 = vmatpush3.bf16.msra.mxu1 %v15749_v60 }
0x4a5a   : > { %11766 = vmatprep.subr.bf16.mxu1 %v17418_v22 }
0x4a5d   : > { %11767 = vmatpush3.bf16.msra.mxu1 %v15794_v23 }
0x4a5e   : > { %11768 = vmatprep.subr.bf16.mxu1 %v17418_v22 }
0x4a61   : > { %11769 = vmatpush3.bf16.msra.mxu1 %v15830_v43 }
0x4a62   : > { %11770 = vmatprep.subr.bf16.mxu1 %v17418_v22 }
0x4a65   : > { %11771 = vmatpush3.bf16.msra.mxu1 %v15837_v11 }
0x4a66   : > { %11772 = vmatprep.subr.bf16.mxu1 %v17418_v22 }
0x4a69   : > { %11773 = vmatpush3.bf16.msra.mxu1 %v15844_v41 }
0x4a6a   : > { %11774 = vmatprep.subr.bf16.mxu1 %v17418_v22 }
0x4a6d   : > { %11775 = vmatpush3.bf16.msra.mxu1 %v15851_v62 }
0x4a6e   : > { %11780 = vmatprep.subr.bf16.mxu1 %v17418_v22 }
0x4b23   : > { %v6619_v59 = vpop.f32.mrb[200].mxu1 }
0x4b24   : > { %v6620_v20 = vadd.f32 %v15858_v18, %v6619_v59  ;;  %v11758_v49 = vpop.f32.mrb[201].mxu1 }
0x4b25   : > { %v6622_v34 = vpop.f32.mrb[202].mxu1 }
0x4b26   : > { %v6623_v42 = vadd.f32 %v15858_v18, %v6622_v34  ;;  %v11759_v27 = vpop.f32.mrb[203].mxu1  ;;  %12680 = vtanh.f32 %v6620_v20 }
0x4b28   : > { %12682 = vtanh.f32 %v6623_v42 }
0x4b30   : > { %v12681_v45 = vpop.eup %12680 }
0x4b32   : > { %v12683_v17 = vpop.eup %12682 }
0x4b33   : > { %v6628_v19 = vpack.c.bf16 %v12683_v17, %v12681_v45 }
0x4b35   : > { %11777 = vmatmul.mubr.bf16.vlgmr.msra.gmra.mrb[204].mxu1 %v6628_v19 }
0x4b36   : > { %11781 = vmatpush3.bf16.msra.mxu1 %v15458_v7  ;;  %11784 = vmatprep.mubr.msk.bf16.mxu1 %vm13094_vm0, %v17418_v22 }
0x4b37   : > { %11782 = vmatprep.subr.bf16.mxu1 %v17418_v22 }
0x4b3a   : > { %11783 = vmatpush3.bf16.msra.mxu1 %v15467_v51 }
0x4b3b   : > { %11788 = vmatprep.subr.bf16.mxu1 %v17418_v22 }
0x4c08   : > { %v6663_v2 = vpop.f32.mrb[204].mxu1 }
0x4c09   : > { %v6670_v10 = vmul.f32 -0.023809528, %v6663_v2  ;;  %v11778_v44 = vpop.f32.mrb[205].mxu1 }
0x4c0a   : > { %v6666_v26 = vpop.f32.mrb[206].mxu1 }
0x4c0b   : > { %v6672_v52 = vadd.f32 %v6670_v10, %v6579_v61  ;;  %v6671_v57 = vmul.f32 -0.023809528, %v6666_v26  ;;  %v11779_v15 = vpop.f32.mrb[207].mxu1 }
0x4c0d   : > { %v6673_v63 = vadd.f32 %v6671_v57, %v6580_v24  ;;  %v15989_v7 = vadd.f32 %v6672_v52, %v15778_v53 }
0x4c0f   : > { %v15992_v21 = vadd.f32 %v6673_v63, %v15778_v53  ;;  %v9783_v53 = vld [vmem:[%s13507_s27 + $0x50] sm:$0xff] }
0x4c10   : > { %v16012_v39 = vpack.c.bf16 %v9784_v40, %v9783_v53  ;;  %v9785_v63 = vld [vmem:[%s13645_s5 + $0x50] sm:$0xff] }
0x4c11   : > { %v6682_v51 = vpack.c.bf16 %v15992_v21, %v15989_v7 }
0x4c13   : > { %9788 = vmatmul.mubr.msk.bf16.vlgmr.msra.gmra.mrb[160].mxu0 %vm1003_vm1, %v6682_v51  ;;  %v7117_v51 = vsub.f32 1.0, %v9785_v63 }
0x4c14   : > { %6781 = vmatpush1.bf16.msra.mxu0 %v16000_v28  ;;  %6812 = vmatprep.mubr.bf16.mxu0 %v17422_v5 }
0x4c15   : > { %10426 = vmatprep.subr.bf16.mxu0 %v16007_v4 }
0x4c1f   : > { %9789 = vmatmul.mubr.msk.bf16.vlgmr.msra.gmra.mrb[160].mxu0 %vm1307_vm2, %v16012_v39 }
0x4c20   : > { %10427 = vmatpush3.bf16.msra.mxu0 %v16019_v6 }
0x4c21   : > { %10428 = vmatprep.subr.bf16.mxu0 %v16025_v48 }
0x4c24   : > { %10429 = vmatpush3.bf16.msra.mxu0 %v16031_v35 }
0x4c25   : > { %10430 = vmatprep.subr.bf16.mxu0 %v16037_v31 }
0x4c28   : > { %10431 = vmatpush3.bf16.msra.mxu0 %v16043_v32 }
0x4c29   : > { %10432 = vmatprep.subr.bf16.mxu0 %v15497_v54 }
0x4c2c   : > { %10433 = vmatpush3.bf16.msra.mxu0 %v15503_v33 }
0x4c2d   : > { %10434 = vmatprep.subr.bf16.mxu0 %v15509_v25 }
0x4c30   : > { %10435 = vmatpush3.bf16.msra.mxu0 %v15515_v29 }
0x4c31   : > { %10436 = vmatprep.subr.bf16.mxu0 %v15521_v0 }
0x4c34   : > { %10437 = vmatpush3.bf16.msra.mxu0 %v15527_v30 }
0x4c35   : > { %10438 = vmatprep.subr.bf16.mxu0 %v15533_v13 }
0x4c38   : > { %10439 = vmatpush3.bf16.msra.mxu0 %v15539_v37 }
0x4c39   : > { %10440 = vmatprep.subr.bf16.mxu0 %v15545_v36 }
0x4c3c   : > { %10441 = vmatpush3.bf16.msra.mxu0 %v15551_v8 }
0x4c3d   : > { %11822 = vmatprep.subr.bf16.mxu0 %v17418_v22 }
0x4cf2   : > { %v6814_v54 = vpop.f32.mrb[160].mxu0 }
0x4cf3   : > { %v6827_v33 = vadd.f32 %v6814_v54, %v13596_v55  ;;  %v6816_v25 = vpop.f32.mrb[161].mxu0 }
0x4cf4   : > { %v6828_v29 = vadd.f32 %v6816_v25, %v13598_v56  ;;  %v6818_v9 = vpop.f32.mrb[162].mxu0 }
0x4cf5   : > { %12684 = vtanh.f32 %v6827_v33  ;;  %v6829_v0 = vadd.f32 %v6818_v9, %v13596_v55  ;;  %v6820_v30 = vpop.f32.mrb[163].mxu0 }
0x4cf6   : > { %12686 = vtanh.f32 %v6828_v29  ;;  %v6830_v13 = vadd.f32 %v6820_v30, %v13598_v56 }
0x4cf7   : > { %12688 = vtanh.f32 %v6829_v0 }
0x4cf8   : > { %12690 = vtanh.f32 %v6830_v13  ;;  %v17471_v13 = vld [vmem:[#allocation18_spill] sm:$0xff] }
0x4cff   : > { %v12685_v37 = vpop.eup %12684 }
0x4d00   : > { %v12687_v36 = vpop.eup %12686 }
0x4d01   : > { %v12689_v8 = vpop.eup %12688 }
0x4d02   : > { %v12691_v61 = vpop.eup %12690  ;;  %v6835_v24 = vpack.c.bf16 %v12689_v8, %v12685_v37  ;;  %v17474_v37 = vld [vmem:[#allocation21_spill] sm:$0xff]  ;;  %v17477_v8 = vld [vmem:[#allocation24_spill] sm:$0xff] }
0x4d03   : > { %v6836_v50 = vpack.c.bf16 %v12691_v61, %v12687_v36  ;;  %v17475_v36 = vld [vmem:[#allocation22_spill] sm:$0xff]  ;;  %v17478_v61 = vld [vmem:[#allocation25_spill] sm:$0xff] }
0x4d05   : > { %6869 = vmatprep.mubr.bf16.mxu0 %v6836_v50 }
0x4d06   : > { %6870 = vmatmul.mubr.bf16.vlgmr.msra.gmra.mrb[164].mxu0 %v6835_v24  ;;  %v17479_v24 = vld [vmem:[#allocation26_spill] sm:$0xff] }
0x4d07   : > { %11823 = vmatpush3.bf16.msra.mxu0 %v15683_v12  ;;  %11826 = vmatprep.mubr.msk.bf16.mxu0 %vm13094_vm0, %v17418_v22 }
0x4d08   : > { %11824 = vmatprep.subr.bf16.mxu0 %v17418_v22 }
0x4d0b   : > { %11825 = vmatpush3.bf16.msra.mxu0 %v15692_v58 }
0x4d0c   : > { %11830 = vmatprep.subr.bf16.mxu0 %v17418_v22 }
0x4dd9   : > { %v10442_v59 = vpop.f32.mrb[164].mxu0 }
0x4dda   : > { %v10443_v20 = vpop.f32.mrb[165].mxu0 }
0x4ddb   : > { %v10444_v49 = vadd.f32 %v10443_v20, %v10442_v59  ;;  %v10445_v34 = vpop.f32.mrb[166].mxu0 }
0x4ddc   : > { %v10446_v42 = vpop.f32.mrb[167].mxu0 }
0x4ddd   : > { %v6872_v27 = vadd.f32 %v15568_v16, %v10444_v49  ;;  %v10447_v45 = vadd.f32 %v10446_v42, %v10445_v34 }
0x4ddf   : > { %v9790_v17 = vmul.f32 -1.442695, %v6872_v27  ;;  %v6875_v19 = vadd.f32 %v15568_v16, %v10447_v45  ;;  %v9786_v16 = vld [vmem:[%s13645_s5 + $0x58] sm:$0xff] }
0x4de0   : > { %v7118_v53 = vsub.f32 1.0, %v9786_v16 }
0x4de1   : > { %12692 = vpow2.f32 %v9790_v17  ;;  %v9791_v2 = vmul.f32 -1.442695, %v6875_v19 }
0x4de3   : > { %12694 = vpow2.f32 %v9791_v2 }
0x4deb   : > { %v12693_v10 = vpop.eup %12692 }
0x4dec   : > { %v6884_v44 = vadd.f32 1.0, %v12693_v10 }
0x4ded   : > { %v12695_v26 = vpop.eup %12694 }
0x4dee   : > { %12696 = vrcp.f32 %v6884_v44  ;;  %v6885_v52 = vadd.f32 1.0, %v12695_v26 }
0x4df0   : > { %12698 = vrcp.f32 %v6885_v52  ;;  %v17480_v52 = vld [vmem:[#allocation27_spill] sm:$0xff] }
0x4df8   : > { %v16069_v57 = vpop.eup %12696 }
0x4df9   : > { %6892 = vrot.lane.b32.xlu0 %v16069_v57, %s17419_s4 }
0x4dfa   : > { %v16073_v15 = vpop.eup %12698 }
0x4dfb   : > { %6894 = vrot.lane.b32.xlu1 %v16073_v15, %s17419_s4 }
0x4dfd   : > { %7107 = vperm.xlu0 %12393, %v9785_v63  }
0x4dff   : > { %7112 = vperm.xlu1 %12392, %v9786_v16  }
0x4e01   : > { %7121 = vperm.xlu0 %12393, %v7117_v51  }
0x4e03   : > { %7126 = vperm.xlu1 %12392, %v7118_v53  }
0x4e6b   : > { %v6893_v40 = vpop.permute.xlu0 %6892 }
0x4e6c   : > { %v6901_v33 = vmul.f32 %v6893_v40, %v15945_v47  ;;  %v6898_v0 = vmul.f32 %v6893_v40, %v15989_v7 }
0x4e6d   : > { %v6895_v54 = vpop.permute.xlu1 %6894 }
0x4e6e   : > { %v6902_v25 = vmul.f32 %v6895_v54, %v15942_v3  ;;  %v6899_v9 = vmul.f32 %v6895_v54, %v15992_v21 }
0x4e70   : > { %v6903_v29 = vpack.c.bf16 %v6902_v25, %v6901_v33  ;;  %v6900_v30 = vpack.c.bf16 %v6899_v9, %v6898_v0  ;;  %v17481_v0 = vld [vmem:[#allocation28_spill] sm:$0xff] }
0x4e72   : > { %11785 = vmatmul.mubr.msk.bf16.vlgmr.msra.gmra.mrb[208].mxu1 %vm1003_vm1, %v6903_v29 }
0x4e73   : > { %11789 = vmatpush3.bf16.msra.mxu1 %v15588_v14  ;;  %11792 = vmatprep.mubr.msk.bf16.mxu1 %vm13094_vm0, %v17418_v22  ;;  %v17472_v14 = vld [vmem:[#allocation19_spill] sm:$0xff] }
0x4e74   : > { %11790 = vmatprep.subr.bf16.mxu1 %v17418_v22 }
0x4e77   : > { %11791 = vmatpush3.bf16.msra.mxu1 %v15599_v46  ;;  %v17473_v46 = vld [vmem:[#allocation20_spill] sm:$0xff] }
0x4e78   : > { %11796 = vmatprep.subr.bf16.mxu1 %v17418_v22 }
0x4e7a   : > { %11793 = vmatmul.mubr.msk.bf16.vlgmr.msra.gmra.mrb[212].mxu1 %vm1003_vm1, %v6900_v30 }
0x4e7b   : > { %11797 = vmatpush3.bf16.msra.mxu1 %v17471_v13  ;;  %11798 = vmatprep.mubr.msk.bf16.mxu1 %vm13094_vm0, %v17418_v22  ;;  %v7083_v13 = vsub.f32 1.0, %v16069_v57 }
0x4e7c   : > { %11802 = vmatprep.subr.bf16.mxu1 %v17418_v22  ;;  %v16123_v25 = vpop.permute.xlu0 %7107 }
0x4e7e   : > { %v16125_v29 = vpop.permute.xlu1 %7112 }
0x4e82   : > { %11799 = vmatmul.mubr.msk.bf16.vlgmr.msra.gmra.mrb[216].mxu1 %vm1307_vm2, %v16012_v39  ;;  %v17476_v39 = vld [vmem:[#allocation23_spill] sm:$0xff] }
0x4e83   : > { %11803 = vmatpush3.bf16.msra.mxu1 %v17472_v14  ;;  %11818 = vmatprep.mubr.msk.bf16.mxu1 %vm13094_vm0, %v17418_v22 }
0x4e84   : > { %11804 = vmatprep.subr.bf16.mxu1 %v17418_v22 }
0x4e87   : > { %11805 = vmatpush3.bf16.msra.mxu1 %v17473_v46 }
0x4e88   : > { %11806 = vmatprep.subr.bf16.mxu1 %v17418_v22 }
0x4e8b   : > { %11807 = vmatpush3.bf16.msra.mxu1 %v17474_v37 }
0x4e8c   : > { %11808 = vmatprep.subr.bf16.mxu1 %v17418_v22 }
0x4e8f   : > { %11809 = vmatpush3.bf16.msra.mxu1 %v17475_v36 }
0x4e90   : > { %11810 = vmatprep.subr.bf16.mxu1 %v17418_v22 }
0x4e93   : > { %11811 = vmatpush3.bf16.msra.mxu1 %v17476_v39  ;;  %v7084_v39 = vsub.f32 1.0, %v16073_v15 }
0x4e94   : > { %11812 = vmatprep.subr.bf16.mxu1 %v17418_v22 }
0x4e97   : > { %11813 = vmatpush3.bf16.msra.mxu1 %v17477_v8 }
0x4e98   : > { %11814 = vmatprep.subr.bf16.mxu1 %v17418_v22 }
0x4e9b   : > { %11815 = vmatpush3.bf16.msra.mxu1 %v17478_v61 }
0x4e9c   : > { %11816 = vmatprep.subr.bf16.mxu1 %v17418_v22 }
0x4e9f   : > { %11817 = vmatpush3.bf16.msra.mxu1 %v17479_v24 }
0x4ea0   : > { %11850 = vmatprep.subr.bf16.mxu1 %v17418_v22 }
0x4f45   : > { %v6941_v50 = vpop.f32.mrb[208].mxu1 }
0x4f46   : > { %v11786_v59 = vpop.f32.mrb[209].mxu1 }
0x4f47   : > { %v6944_v20 = vpop.f32.mrb[210].mxu1  ;;  %v7088_v59 = vmul.f32 %v16073_v15, %v15992_v21 }
0x4f48   : > { %v11787_v49 = vpop.f32.mrb[211].mxu1 }
0x4f49   : > { %v16142_v49 = vpop.permute.xlu1 %7126 }
0x4f4d   : > { %v6985_v34 = vpop.f32.mrb[212].mxu1 }
0x4f4e   : > { %v6986_v42 = vadd.f32 %v6985_v34, %v6941_v50  ;;  %v11794_v27 = vpop.f32.mrb[213].mxu1 }
0x4f4f   : > { %v6988_v45 = vpop.f32.mrb[214].mxu1 }
0x4f50   : > { %v6989_v17 = vadd.f32 %v6988_v45, %v6944_v20  ;;  %v11795_v19 = vpop.f32.mrb[215].mxu1  ;;  %v16140_v20 = vpop.permute.xlu0 %7121  ;;  %v7130_v45 = vmul.f32 %v16142_v49, %v15992_v21 }
0x4f51   : > { %v7129_v27 = vmul.f32 %v16140_v20, %v15989_v7 }
0x4f55   : > { %v7026_v2 = vpop.f32.mrb[216].mxu1 }
0x4f56   : > { %v7033_v10 = vadd.f32 %v7026_v2, %v6986_v42  ;;  %v11800_v44 = vpop.f32.mrb[217].mxu1 }
0x4f57   : > { %v7029_v26 = vpop.f32.mrb[218].mxu1 }
0x4f58   : > { %v7035_v63 = vadd.f32 %v17480_v52, %v7033_v10  ;;  %v7034_v16 = vadd.f32 %v7029_v26, %v6989_v17  ;;  %v11801_v51 = vpop.f32.mrb[219].mxu1 }
0x4f59   : > { %v16184_v51 = vld [vmem:[%s17280_s19 + $0x8] sm:$0xff]  }
0x4f5a   : > { %v7036_v53 = vadd.f32 %v17480_v52, %v7034_v16  ;;  %12700 = vtanh.f32 %v7035_v63  ;;  %v16175_v16 = vld [vmem:[%s17280_s19] sm:$0xff]  }
0x4f5c   : > { %12702 = vtanh.f32 %v7036_v53  ;;  %v17482_v53 = vld [vmem:[#allocation29_spill] sm:$0xff] }
0x4f64   : > { %v12701_v40 = vpop.eup %12700 }
0x4f66   : > { %v12703_v54 = vpop.eup %12702 }
0x4f67   : > { %v7039_v33 = vpack.c.bf16 %v12703_v54, %v12701_v40  ;;  %v7141_v40 = vmul.f32 -0.023809524, %v17482_v53 }
0x4f69   : > { %11819 = vmatmul.mubr.bf16.vlgmr.msra.gmra.mrb[220].mxu1 %v7039_v33 }
0x4f6a   : > { %11851 = vmatpush3.bf16.msra.mxu1 %v15683_v12  ;;  %11854 = vmatprep.mubr.msk.bf16.mxu1 %vm13094_vm0, %v17418_v22  ;;  %v7087_v12 = vmul.f32 %v16069_v57, %v15989_v7 }
0x4f6b   : > { %11852 = vmatprep.subr.bf16.mxu1 %v17418_v22 }
0x4f6e   : > { %11853 = vmatpush3.bf16.msra.mxu1 %v15692_v58 }
0x4f6f   : > { %11858 = vmatprep.subr.bf16.mxu1 %v17418_v22 }
0x503c   : > { %v7074_v9 = vpop.f32.mrb[220].mxu1 }
0x503d   : > { %v7075_v30 = vadd.f32 %v17481_v0, %v7074_v9  ;;  %v11820_v14 = vpop.f32.mrb[221].mxu1 }
0x503e   : > { %v7077_v46 = vpop.f32.mrb[222].mxu1 }
0x503f   : > { %v7081_v37 = vand.u32 2147483647, %v7075_v30  ;;  %v7085_v58 = vmul.f32 %v7083_v13, %v7075_v30  ;;  %v7078_v36 = vadd.f32 %v17481_v0, %v7077_v46  ;;  %v11821_v8 = vpop.f32.mrb[223].mxu1  ;;  %v17483_v30 = vld [vmem:[#allocation17_spill] sm:$0xff] }
0x5040   : > { %v16190_v14 = vrot.slane %v7141_v40, %v17483_v30 }
0x5041   : > { %v7089_v61 = vadd.f32 %v7087_v12, %v7085_v58  ;;  %v7082_v24 = vand.u32 2147483647, %v7078_v36  ;;  %v7086_v50 = vmul.f32 %v7084_v39, %v7078_v36  ;;  %7093 = vrot.lane.b32.xlu0 %v7081_v37, %s17419_s4 }
0x5043   : > { %v7115_v34 = vmul.f32 %v16123_v25, %v7089_v61  ;;  %v7090_v42 = vadd.f32 %v7088_v59, %v7086_v50  ;;  %7095 = vrot.lane.b32.xlu1 %v7082_v24, %s17419_s4  ;;  %v16198_v24 = vld [vmem:[%s17282_s21] sm:$0xff]   ;;  %v16207_v50 = vld [vmem:[%s17282_s21 + $0x8] sm:$0xff]   ;;  %v16214_v59 = vld [vmem:[%s17282_s21 + $0x10] sm:$0xff]  }
0x5045   : > { %v7116_v17 = vmul.f32 %v16125_v29, %v7090_v42  ;;  %v7131_v19 = vadd.f32 %v7129_v27, %v7115_v34 }
0x5047   : > { %v7132_v2 = vadd.f32 %v7130_v45, %v7116_v17 }
0x5049   : > { %v7142_v10 = vpack.c.bf16 %v7132_v2, %v7131_v19 }
0x504b   : > { %11827 = vmatmul.mubr.msk.bf16.vlgmr.msra.gmra.mrb[168].mxu0 %vm1003_vm1, %v7142_v10 }
0x504c   : > { %11831 = vmatpush3.bf16.msra.mxu0 %v15733_v1  ;;  %11846 = vmatprep.mubr.msk.bf16.mxu0 %vm13094_vm0, %v17418_v22 }
0x504d   : > { %11832 = vmatprep.subr.bf16.mxu0 %v17418_v22 }
0x5050   : > { %11833 = vmatpush3.bf16.msra.mxu0 %v15742_v38 }
0x5051   : > { %11834 = vmatprep.subr.bf16.mxu0 %v17418_v22 }
0x5054   : > { %11835 = vmatpush3.bf16.msra.mxu0 %v15749_v60 }
0x5055   : > { %11836 = vmatprep.subr.bf16.mxu0 %v17418_v22 }
0x5058   : > { %11837 = vmatpush3.bf16.msra.mxu0 %v15794_v23 }
0x5059   : > { %11838 = vmatprep.subr.bf16.mxu0 %v17418_v22 }
0x505c   : > { %11839 = vmatpush3.bf16.msra.mxu0 %v15830_v43 }
0x505d   : > { %11840 = vmatprep.subr.bf16.mxu0 %v17418_v22 }
0x5060   : > { %11841 = vmatpush3.bf16.msra.mxu0 %v15837_v11 }
0x5061   : > { %11842 = vmatprep.subr.bf16.mxu0 %v17418_v22 }
0x5064   : > { %11843 = vmatpush3.bf16.msra.mxu0 %v15844_v41 }
0x5065   : > { %11844 = vmatprep.subr.bf16.mxu0 %v17418_v22 }
0x5068   : > { %11845 = vmatpush3.bf16.msra.mxu0 %v15851_v62 }
0x5069   : > { %11878 = vmatprep.subr.bf16.mxu0 %v17418_v22 }
0x511e   : > { %v7180_v1 = vpop.f32.mrb[168].mxu0 }
0x511f   : > { %v7181_v38 = vadd.f32 %v15858_v18, %v7180_v1  ;;  %v11828_v60 = vpop.f32.mrb[169].mxu0 }
0x5120   : > { %v7183_v7 = vpop.f32.mrb[170].mxu0 }
0x5121   : > { %v7184_v21 = vadd.f32 %v15858_v18, %v7183_v7  ;;  %v11829_v44 = vpop.f32.mrb[171].mxu0  ;;  %12704 = vtanh.f32 %v7181_v38 }
0x5123   : > { %12706 = vtanh.f32 %v7184_v21 }
0x512b   : > { %v12705_v26 = vpop.eup %12704 }
0x512d   : > { %v12707_v52 = vpop.eup %12706 }
0x512e   : > { %v7189_v63 = vpack.c.bf16 %v12707_v52, %v12705_v26 }
0x5130   : > { %11847 = vmatmul.mubr.bf16.vlgmr.msra.gmra.mrb[172].mxu0 %v7189_v63 }
0x5131   : > { %11879 = vmatpush3.bf16.msra.mxu0 %v16175_v16  ;;  %11882 = vmatprep.mubr.msk.bf16.mxu0 %vm13094_vm0, %v17418_v22 }
0x5132   : > { %11880 = vmatprep.subr.bf16.mxu0 %v17418_v22 }
0x5135   : > { %11881 = vmatpush3.bf16.msra.mxu0 %v16184_v51 }
0x5136   : > { %11886 = vmatprep.subr.bf16.mxu0 %v17418_v22 }
0x5203   : > { %v7224_v54 = vpop.f32.mrb[172].mxu0 }
0x5204   : > { %v7231_v33 = vmul.f32 -0.023809524, %v7224_v54  ;;  %v11848_v9 = vpop.f32.mrb[173].mxu0  ;;  %v16250_v54 = vld [vmem:[%s17282_s21 + $0x18] sm:$0xff]  }
0x5205   : > { %v7227_v0 = vpop.f32.mrb[174].mxu0 }
0x5206   : > { %v7233_v12 = vadd.f32 %v7231_v33, %v7131_v19  ;;  %v7232_v46 = vmul.f32 -0.023809524, %v7227_v0  ;;  %v11849_v37 = vpop.f32.mrb[175].mxu0 }
0x5208   : > { %v7234_v58 = vadd.f32 %v7232_v46, %v7132_v2  ;;  %v7241_v36 = vadd.f32 %v16190_v14, %v7233_v12 }
0x520a   : > { %v7242_v8 = vadd.f32 %v16190_v14, %v7234_v58 }
0x520c   : > { %v7243_v61 = vpack.c.bf16 %v7242_v8, %v7241_v36 }
0x520e   : > { %11855 = vmatmul.mubr.msk.bf16.vlgmr.msra.gmra.mrb[224].mxu1 %vm1003_vm1, %v7243_v61 }
0x520f   : > { %11859 = vmatpush3.bf16.msra.mxu1 %v16198_v24  ;;  %11874 = vmatprep.mubr.msk.bf16.mxu1 %vm13094_vm0, %v17418_v22 }
0x5210   : > { %11860 = vmatprep.subr.bf16.mxu1 %v17418_v22 }
0x5213   : > { %11861 = vmatpush3.bf16.msra.mxu1 %v16207_v50 }
0x5214   : > { %11862 = vmatprep.subr.bf16.mxu1 %v17418_v22 }
0x5217   : > { %11863 = vmatpush3.bf16.msra.mxu1 %v16214_v59 }
0x5218   : > { %11864 = vmatprep.subr.bf16.mxu1 %v17418_v22 }
0x521b   : > { %11865 = vmatpush3.bf16.msra.mxu1 %v15794_v23 }
0x521c   : > { %11866 = vmatprep.subr.bf16.mxu1 %v17418_v22 }
0x521f   : > { %11867 = vmatpush3.bf16.msra.mxu1 %v15830_v43 }
0x5220   : > { %11868 = vmatprep.subr.bf16.mxu1 %v17418_v22 }
0x5223   : > { %11869 = vmatpush3.bf16.msra.mxu1 %v15837_v11 }
0x5224   : > { %11870 = vmatprep.subr.bf16.mxu1 %v17418_v22 }
0x5227   : > { %11871 = vmatpush3.bf16.msra.mxu1 %v15844_v41 }
0x5228   : > { %11872 = vmatprep.subr.bf16.mxu1 %v17418_v22 }
0x522b   : > { %11873 = vmatpush3.bf16.msra.mxu1 %v15851_v62 }
0x522c   : > { %11906 = vmatprep.subr.bf16.mxu1 %v17418_v22 }
0x52e1   : > { %v7281_v34 = vpop.f32.mrb[224].mxu1 }
0x52e2   : > { %v7282_v23 = vadd.f32 %v15858_v18, %v7281_v34  ;;  %v11856_v42 = vpop.f32.mrb[225].mxu1 }
0x52e3   : > { %v7284_v27 = vpop.f32.mrb[226].mxu1 }
0x52e4   : > { %v7285_v45 = vadd.f32 %v15858_v18, %v7284_v27  ;;  %v11857_v17 = vpop.f32.mrb[227].mxu1  ;;  %12708 = vtanh.f32 %v7282_v23 }
0x52e5   : > { %v16293_v17 = vld [vmem:[%s17282_s21 + $0x28] sm:$0xff]  }
0x52e6   : > { %12710 = vtanh.f32 %v7285_v45  ;;  %v16286_v45 = vld [vmem:[%s17282_s21 + $0x20] sm:$0xff]  }
0x52ee   : > { %v12709_v19 = vpop.eup %12708 }
0x52f0   : > { %v12711_v2 = vpop.eup %12710 }
0x52f1   : > { %v7290_v10 = vpack.c.bf16 %v12711_v2, %v12709_v19  ;;  %v16300_v19 = vld [vmem:[%s17282_s21 + $0x30] sm:$0xff]   ;;  %v16307_v2 = vld [vmem:[%s17282_s21 + $0x38] sm:$0xff]  }
0x52f3   : > { %11875 = vmatmul.mubr.bf16.vlgmr.msra.gmra.mrb[228].mxu1 %v7290_v10 }
0x52f4   : > { %11907 = vmatpush3.bf16.msra.mxu1 %v16175_v16  ;;  %11910 = vmatprep.mubr.msk.bf16.mxu1 %vm13094_vm0, %v17418_v22 }
0x52f5   : > { %11908 = vmatprep.subr.bf16.mxu1 %v17418_v22 }
0x52f8   : > { %11909 = vmatpush3.bf16.msra.mxu1 %v16184_v51 }
0x52f9   : > { %11914 = vmatprep.subr.bf16.mxu1 %v17418_v22 }
0x53c6   : > { %v7325_v1 = vpop.f32.mrb[228].mxu1 }
0x53c7   : > { %v7332_v38 = vmul.f32 -0.023809524, %v7325_v1  ;;  %v11876_v60 = vpop.f32.mrb[229].mxu1  ;;  %v16314_v1 = vld [vmem:[%s17281_s20] ss:$0 sm:$0xff] }
0x53c8   : > { %v7328_v7 = vpop.f32.mrb[230].mxu1 }
0x53c9   : > { %v7334_v21 = vadd.f32 %v7332_v38, %v7241_v36  ;;  %v7333_v44 = vmul.f32 -0.023809524, %v7328_v7  ;;  %v11877_v26 = vpop.f32.mrb[231].mxu1 }
0x53cb   : > { %v7335_v52 = vadd.f32 %v7333_v44, %v7242_v8  ;;  %v7336_v63 = vadd.f32 %v7334_v21, %v16190_v14 }
0x53cd   : > { %v7337_v53 = vadd.f32 %v7335_v52, %v16190_v14 }
0x53cf   : > { %v7338_v40 = vpack.c.bf16 %v7337_v53, %v7336_v63 }
0x53d1   : > { %11883 = vmatmul.mubr.msk.bf16.vlgmr.msra.gmra.mrb[176].mxu0 %vm1003_vm1, %v7338_v40 }
0x53d2   : > { %11887 = vmatpush3.bf16.msra.mxu0 %v16198_v24  ;;  %11902 = vmatprep.mubr.msk.bf16.mxu0 %vm13094_vm0, %v17418_v22 }
0x53d3   : > { %11888 = vmatprep.subr.bf16.mxu0 %v17418_v22 }
0x53d6   : > { %11889 = vmatpush3.bf16.msra.mxu0 %v16207_v50 }
0x53d7   : > { %11890 = vmatprep.subr.bf16.mxu0 %v17418_v22 }
0x53da   : > { %11891 = vmatpush3.bf16.msra.mxu0 %v16214_v59 }
0x53db   : > { %11892 = vmatprep.subr.bf16.mxu0 %v17418_v22 }
0x53de   : > { %11893 = vmatpush3.bf16.msra.mxu0 %v16250_v54 }
0x53df   : > { %11894 = vmatprep.subr.bf16.mxu0 %v17418_v22 }
0x53e2   : > { %11895 = vmatpush3.bf16.msra.mxu0 %v15830_v43 }
0x53e3   : > { %11896 = vmatprep.subr.bf16.mxu0 %v17418_v22 }
0x53e6   : > { %11897 = vmatpush3.bf16.msra.mxu0 %v15837_v11 }
0x53e7   : > { %11898 = vmatprep.subr.bf16.mxu0 %v17418_v22 }
0x53ea   : > { %11899 = vmatpush3.bf16.msra.mxu0 %v15844_v41 }
0x53eb   : > { %11900 = vmatprep.subr.bf16.mxu0 %v17418_v22 }
0x53ee   : > { %11901 = vmatpush3.bf16.msra.mxu0 %v15851_v62 }
0x53ef   : > { %11934 = vmatprep.subr.bf16.mxu0 %v17418_v22 }
0x54a4   : > { %v7376_v33 = vpop.f32.mrb[176].mxu0 }
0x54a5   : > { %v7377_v9 = vadd.f32 %v15858_v18, %v7376_v33  ;;  %v11884_v0 = vpop.f32.mrb[177].mxu0 }
0x54a6   : > { %v7379_v30 = vpop.f32.mrb[178].mxu0 }
0x54a7   : > { %v7380_v43 = vadd.f32 %v15858_v18, %v7379_v30  ;;  %v11885_v12 = vpop.f32.mrb[179].mxu0  ;;  %12712 = vtanh.f32 %v7377_v9 }
0x54a9   : > { %12714 = vtanh.f32 %v7380_v43 }
0x54b1   : > { %v12713_v11 = vpop.eup %12712 }
0x54b3   : > { %v12715_v46 = vpop.eup %12714 }
0x54b4   : > { %v7385_v37 = vpack.c.bf16 %v12715_v46, %v12713_v11 }
0x54b6   : > { %11903 = vmatmul.mubr.bf16.vlgmr.msra.gmra.mrb[180].mxu0 %v7385_v37 }
0x54b7   : > { %11935 = vmatpush3.bf16.msra.mxu0 %v16175_v16  ;;  %11938 = vmatprep.mubr.msk.bf16.mxu0 %vm13094_vm0, %v17418_v22 }
0x54b8   : > { %11936 = vmatprep.subr.bf16.mxu0 %v17418_v22 }
0x54bb   : > { %11937 = vmatpush3.bf16.msra.mxu0 %v16184_v51 }
0x54bc   : > { %11942 = vmatprep.subr.bf16.mxu0 %v17418_v22 }
0x5589   : > { %v7420_v41 = vpop.f32.mrb[180].mxu0 }
0x558a   : > { %v7427_v62 = vmul.f32 -0.023809524, %v7420_v41  ;;  %v11904_v18 = vpop.f32.mrb[181].mxu0  ;;  %v16353_v41 = vld [vmem:[%s17398_s8 + $0x4] ss:$8 sps:$4 sm:$0xff]  }
0x558b   : > { %v7423_v58 = vpop.f32.mrb[182].mxu0  ;;  %v7096_v18 = vpop.permute.xlu1 %7095 }
0x558c   : > { %v7429_v36 = vadd.f32 %v7427_v62, %v7336_v63  ;;  %v7428_v8 = vmul.f32 -0.023809524, %v7423_v58  ;;  %v11905_v61 = vpop.f32.mrb[183].mxu0 }
0x558d   : > { %v7094_v61 = vpop.permute.xlu0 %7093 }
0x558e   : > { %v7430_v34 = vadd.f32 %v7428_v8, %v7337_v53  ;;  %v7431_v23 = vadd.f32 %v7429_v36, %v16190_v14 }
0x5590   : > { %v7432_v42 = vadd.f32 %v7430_v34, %v16190_v14 }
0x5592   : > { %v7433_v27 = vpack.c.bf16 %v7432_v42, %v7431_v23 }
0x5594   : > { %11911 = vmatmul.mubr.msk.bf16.vlgmr.msra.gmra.mrb[232].mxu1 %vm1003_vm1, %v7433_v27  ;;  %v7099_v27 = vmul.f32 %v7094_v61, %v7083_v13  ;;  %v7135_v13 = vmul.f32 %v16140_v20, %v15945_v47 }
0x5595   : > { %11915 = vmatpush3.bf16.msra.mxu1 %v16198_v24  ;;  %11930 = vmatprep.mubr.msk.bf16.mxu1 %vm13094_vm0, %v17418_v22 }
0x5596   : > { %11916 = vmatprep.subr.bf16.mxu1 %v17418_v22 }
0x5599   : > { %11917 = vmatpush3.bf16.msra.mxu1 %v16207_v50 }
0x559a   : > { %11918 = vmatprep.subr.bf16.mxu1 %v17418_v22 }
0x559d   : > { %11919 = vmatpush3.bf16.msra.mxu1 %v16214_v59 }
0x559e   : > { %11920 = vmatprep.subr.bf16.mxu1 %v17418_v22 }
0x55a1   : > { %11921 = vmatpush3.bf16.msra.mxu1 %v16250_v54 }
0x55a2   : > { %11922 = vmatprep.subr.bf16.mxu1 %v17418_v22 }
0x55a5   : > { %11923 = vmatpush3.bf16.msra.mxu1 %v16286_v45 }
0x55a6   : > { %11924 = vmatprep.subr.bf16.mxu1 %v17418_v22 }
0x55a9   : > { %11925 = vmatpush3.bf16.msra.mxu1 %v16293_v17 }
0x55aa   : > { %11926 = vmatprep.subr.bf16.mxu1 %v17418_v22 }
0x55ad   : > { %11927 = vmatpush3.bf16.msra.mxu1 %v16300_v19 }
0x55ae   : > { %11928 = vmatprep.subr.bf16.mxu1 %v17418_v22 }
0x55b1   : > { %11929 = vmatpush3.bf16.msra.mxu1 %v16307_v2 }
0x55b2   : > { %11962 = vmatprep.subr.bf16.mxu1 %v17418_v22 }
0x5667   : > { %v7471_v10 = vpop.f32.mrb[232].mxu1 }
0x5668   : > { %v7472_v38 = vadd.f32 %v16314_v1, %v7471_v10  ;;  %v11912_v60 = vpop.f32.mrb[233].mxu1  ;;  %v7102_v10 = vmul.f32 %v16073_v15, %v15942_v3 }
0x5669   : > { %v7474_v7 = vpop.f32.mrb[234].mxu1 }
0x566a   : > { %v7475_v21 = vadd.f32 %v16314_v1, %v7474_v7  ;;  %v11913_v44 = vpop.f32.mrb[235].mxu1  ;;  %12716 = vtanh.f32 %v7472_v38  ;;  %v7101_v38 = vmul.f32 %v16069_v57, %v15945_v47  ;;  %v16375_v57 = vld [vmem:[%s17398_s8] ss:$8 sps:$4 sm:$0xff]  }
0x566c   : > { %12718 = vtanh.f32 %v7475_v21  ;;  %v7103_v7 = vadd.f32 %v7101_v38, %v7099_v27 }
0x5674   : > { %v12717_v26 = vpop.eup %12716 }
0x5676   : > { %v12719_v52 = vpop.eup %12718 }
0x5677   : > { %v7480_v63 = vpack.c.bf16 %v12719_v52, %v12717_v26  ;;  %v7136_v26 = vmul.f32 %v16142_v49, %v15942_v3  ;;  %v16400_v49 = vld [vmem:[%s17399_s3 + $0x4] ss:$8 sps:$4 sm:$0xff]  }
0x5679   : > { %11931 = vmatmul.mubr.bf16.vlgmr.msra.gmra.mrb[236].mxu1 %v7480_v63 }
0x567a   : > { %11963 = vmatpush3.bf16.msra.mxu1 %v16175_v16  ;;  %11966 = vmatprep.mubr.msk.bf16.mxu1 %vm13094_vm0, %v17418_v22 }
0x567b   : > { %11964 = vmatprep.subr.bf16.mxu1 %v17418_v22 }
0x567e   : > { %11965 = vmatpush3.bf16.msra.mxu1 %v16184_v51 }
0x567f   : > { %11970 = vmatprep.subr.bf16.mxu1 %v17418_v22 }
0x574c   : > { %v7515_v53 = vpop.f32.mrb[236].mxu1 }
0x574d   : > { %v7522_v40 = vmul.f32 -0.023809524, %v7515_v53  ;;  %v11932_v33 = vpop.f32.mrb[237].mxu1 }
0x574e   : > { %v7518_v9 = vpop.f32.mrb[238].mxu1  ;;  %v16414_v33 = vld [vmem:[%s17399_s3 + $0x14] ss:$8 sps:$4 sm:$0xff]  }
0x574f   : > { %v7524_v0 = vadd.f32 %v7522_v40, %v7431_v23  ;;  %v7523_v30 = vmul.f32 -0.023809524, %v7518_v9  ;;  %v11933_v43 = vpop.f32.mrb[239].mxu1  ;;  %v16407_v40 = vld [vmem:[%s17399_s3] ss:$8 sps:$4 sm:$0xff]  }
0x5750   : > { %v16420_v9 = vld [vmem:[%s17399_s3 + $0x10] ss:$8 sps:$4 sm:$0xff]   ;;  %s17163_s3 = sshll.u32 %s17506_s24, 8 }
0x5751   : > { %v7525_v12 = vadd.f32 %v7523_v30, %v7432_v42  ;;  %v16325_v11 = vadd.f32 %v7524_v0, %v16190_v14  ;;  %v7100_v42 = vmul.f32 %v7096_v18, %v7084_v39  ;;  %v7133_v39 = vmul.f32 %v16123_v25, %v7103_v7  ;;  %v16384_v25 = vld [vmem:[%s17398_s8 + $0x14] ss:$8 sps:$4 sm:$0xff]   ;;  %v16426_v0 = vld [vmem:[%s17400_s1 + $0x4] ss:$8 sps:$4 sm:$0xff]  }
0x5753   : > { %v16328_v46 = vadd.f32 %v7525_v12, %v16190_v14  ;;  %v7104_v60 = vadd.f32 %v7102_v10, %v7100_v42  ;;  %v7137_v15 = vadd.f32 %v7135_v13, %v7133_v39 }
0x5755   : > { %v7528_v37 = vpack.c.bf16 %v16328_v46, %v16325_v11  ;;  %v7134_v21 = vmul.f32 %v16125_v29, %v7104_v60  ;;  %v16387_v47 = vand.u32 2147483647, %v7137_v15  ;;  %v16392_v29 = vld [vmem:[%s17398_s8 + $0x10] ss:$8 sps:$4 sm:$0xff]  }
0x5757   : > { %11939 = vmatmul.mubr.msk.bf16.vlgmr.msra.gmra.mrb[184].mxu0 %vm1003_vm1, %v7528_v37  ;;  %v7138_v63 = vadd.f32 %v7136_v26, %v7134_v21  ;;  %v16457_v21 = vld [vmem:[%s17404_s9] sm:$0xff]  }
0x5758   : > { %11943 = vmatpush3.bf16.msra.mxu0 %v16198_v24  ;;  %11958 = vmatprep.mubr.msk.bf16.mxu0 %vm13094_vm0, %v17418_v22 }
0x5759   : > { %11944 = vmatprep.subr.bf16.mxu0 %v17418_v22  ;;  %v16379_v3 = vand.u32 2147483647, %v7138_v63 }
0x575b   : > { %v7725_v20 = vpack.c.bf16 %v16379_v3, %v16387_v47 }
0x575c   : > { %11945 = vmatpush3.bf16.msra.mxu0 %v16207_v50 }
0x575d   : > { %11946 = vmatprep.subr.bf16.mxu0 %v17418_v22 }
0x5760   : > { %11947 = vmatpush3.bf16.msra.mxu0 %v16214_v59 }
0x5761   : > { %11948 = vmatprep.subr.bf16.mxu0 %v17418_v22 }
0x5764   : > { %11949 = vmatpush3.bf16.msra.mxu0 %v16250_v54 }
0x5765   : > { %11950 = vmatprep.subr.bf16.mxu0 %v17418_v22 }
0x5768   : > { %11951 = vmatpush3.bf16.msra.mxu0 %v16286_v45 }
0x5769   : > { %11952 = vmatprep.subr.bf16.mxu0 %v17418_v22 }
0x576c   : > { %11953 = vmatpush3.bf16.msra.mxu0 %v16293_v17 }
0x576d   : > { %11954 = vmatprep.subr.bf16.mxu0 %v17418_v22 }
0x5770   : > { %11955 = vmatpush3.bf16.msra.mxu0 %v16300_v19 }
0x5771   : > { %11956 = vmatprep.subr.bf16.mxu0 %v17418_v22 }
0x5774   : > { %11957 = vmatpush3.bf16.msra.mxu0 %v16307_v2 }
0x5775   : > { %7729 = vmatprep.subr.bf16.mxu0 %v16353_v41 }
0x582a   : > { %v7566_v62 = vpop.f32.mrb[184].mxu0 }
0x582b   : > { %v7567_v58 = vadd.f32 %v16314_v1, %v7566_v62  ;;  %v11940_v36 = vpop.f32.mrb[185].mxu0 }
0x582c   : > { %v7569_v8 = vpop.f32.mrb[186].mxu0 }
0x582d   : > { %v7570_v34 = vadd.f32 %v16314_v1, %v7569_v8  ;;  %v11941_v23 = vpop.f32.mrb[187].mxu0  ;;  %12720 = vtanh.f32 %v7567_v58 }
0x582f   : > { %12722 = vtanh.f32 %v7570_v34 }
0x5837   : > { %v12721_v44 = vpop.eup %12720 }
0x5839   : > { %v12723_v52 = vpop.eup %12722 }
0x583a   : > { %v7575_v53 = vpack.c.bf16 %v12723_v52, %v12721_v44  ;;  %v16466_v44 = vld [vmem:[%s17404_s9 + $0x8] sm:$0xff]  }
0x583c   : > { %11959 = vmatmul.mubr.bf16.vlgmr.msra.gmra.mrb[188].mxu0 %v7575_v53 }
0x583d   : > { %7730 = vmatpush1.bf16.msra.mxu0 %v16375_v57  ;;  %7761 = vmatprep.mubr.bf16.mxu0 %v17422_v5 }
0x583e   : > { %7731 = vmatprep.subr.bf16.mxu0 %v16384_v25 }
0x5841   : > { %7732 = vmatpush1.bf16.msra.mxu0 %v16392_v29 }
0x5842   : > { %7775 = vmatprep.subr.bf16.mxu0 %v16400_v49 }
0x5844   : > { %9805 = vmatmul.mubr.msk.bf16.vlgmr.msra.gmra.mrb[192].mxu0 %vm1003_vm1, %v7725_v20 }
0x5845   : > { %7776 = vmatpush1.bf16.msra.mxu0 %v16407_v40  ;;  %7807 = vmatprep.mubr.bf16.mxu0 %v17422_v5 }
0x5846   : > { %7777 = vmatprep.subr.bf16.mxu0 %v16414_v33 }
0x5849   : > { %7778 = vmatpush1.bf16.msra.mxu0 %v16420_v9 }
0x584a   : > { %7822 = vmatprep.subr.bf16.mxu0 %v16426_v0 }
0x590f   : > { %v7610_v30 = vpop.f32.mrb[188].mxu0 }
0x5910   : > { %v7617_v43 = vmul.f32 -0.023809524, %v7610_v30  ;;  %v11960_v12 = vpop.f32.mrb[189].mxu0 }
0x5911   : > { %v7613_v37 = vpop.f32.mrb[190].mxu0 }
0x5912   : > { %v7619_v62 = vadd.f32 %v7617_v43, %v16325_v11  ;;  %v7618_v18 = vmul.f32 -0.023809524, %v7613_v37  ;;  %v11961_v58 = vpop.f32.mrb[191].mxu0  ;;  %v9801_v37 = vld [vmem:[%s13507_s27 + $0x60] sm:$0xff] }
0x5913   : > { %v16538_v58 = vld [vmem:[%s17402_s0 + $0x30] sm:$0xff]  }
0x5914   : > { %v7620_v36 = vadd.f32 %v7618_v18, %v16328_v46  ;;  %v7621_v8 = vadd.f32 %v7619_v62, %v16190_v14  ;;  %v9802_v62 = vld [vmem:[%s13507_s27 + $0x68] sm:$0xff] }
0x5915   : > { %v16484_v18 = vpack.c.bf16 %v9802_v62, %v9801_v37 }
0x5916   : > { %v7622_v61 = vadd.f32 %v7620_v36, %v16190_v14  ;;  %v16544_v36 = vld [vmem:[%s17402_s0 + $0x78] sm:$0xff]  }
0x5918   : > { %v7623_v34 = vpack.c.bf16 %v7622_v61, %v7621_v8 }
0x591a   : > { %11967 = vmatmul.mubr.msk.bf16.vlgmr.msra.gmra.mrb[240].mxu1 %vm1003_vm1, %v7623_v34 }
0x591b   : > { %11971 = vmatpush3.bf16.msra.mxu1 %v16198_v24  ;;  %11986 = vmatprep.mubr.msk.bf16.mxu1 %vm13094_vm0, %v17418_v22 }
0x591c   : > { %11972 = vmatprep.subr.bf16.mxu1 %v17418_v22 }
0x591f   : > { %11973 = vmatpush3.bf16.msra.mxu1 %v16207_v50 }
0x5920   : > { %11974 = vmatprep.subr.bf16.mxu1 %v17418_v22 }
0x5923   : > { %11975 = vmatpush3.bf16.msra.mxu1 %v16214_v59 }
0x5924   : > { %11976 = vmatprep.subr.bf16.mxu1 %v17418_v22 }
0x5927   : > { %11977 = vmatpush3.bf16.msra.mxu1 %v16250_v54 }
0x5928   : > { %11978 = vmatprep.subr.bf16.mxu1 %v17418_v22 }
0x592b   : > { %11979 = vmatpush3.bf16.msra.mxu1 %v16286_v45 }
0x592c   : > { %11980 = vmatprep.subr.bf16.mxu1 %v17418_v22 }
0x592f   : > { %11981 = vmatpush3.bf16.msra.mxu1 %v16293_v17 }
0x5930   : > { %11982 = vmatprep.subr.bf16.mxu1 %v17418_v22 }
0x5933   : > { %11983 = vmatpush3.bf16.msra.mxu1 %v16300_v19 }
0x5934   : > { %11984 = vmatprep.subr.bf16.mxu1 %v17418_v22 }
0x5937   : > { %11985 = vmatpush3.bf16.msra.mxu1 %v16307_v2 }
0x5938   : > { %11990 = vmatprep.subr.bf16.mxu1 %v17418_v22 }
0x59ed   : > { %v7661_v11 = vpop.f32.mrb[240].mxu1 }
0x59ee   : > { %v7662_v46 = vadd.f32 %v16314_v1, %v7661_v11  ;;  %v11968_v23 = vpop.f32.mrb[241].mxu1 }
0x59ef   : > { %v7664_v42 = vpop.f32.mrb[242].mxu1 }
0x59f0   : > { %v7665_v27 = vadd.f32 %v16314_v1, %v7664_v42  ;;  %v11969_v10 = vpop.f32.mrb[243].mxu1  ;;  %12724 = vtanh.f32 %v7662_v46 }
0x59f2   : > { %12726 = vtanh.f32 %v7665_v27 }
0x59fa   : > { %v12725_v38 = vpop.eup %12724 }
0x59fc   : > { %v12727_v60 = vpop.eup %12726 }
0x59fd   : > { %v7670_v7 = vpack.c.bf16 %v12727_v60, %v12725_v38 }
0x59ff   : > { %11987 = vmatmul.mubr.bf16.vlgmr.msra.gmra.mrb[244].mxu1 %v7670_v7 }
0x5a00   : > { %11991 = vmatpush3.bf16.msra.mxu1 %v16457_v21  ;;  %11994 = vmatprep.mubr.msk.bf16.mxu1 %vm13094_vm0, %v17418_v22 }
0x5a01   : > { %11992 = vmatprep.subr.bf16.mxu1 %v17418_v22 }
0x5a04   : > { %11993 = vmatpush3.bf16.msra.mxu1 %v16466_v44 }
0x5a05   : > { %11998 = vmatprep.subr.bf16.mxu1 %v17418_v22 }
0x5ad2   : > { %v7705_v26 = vpop.f32.mrb[244].mxu1 }
0x5ad3   : > { %v7712_v39 = vmul.f32 -0.023809524, %v7705_v26  ;;  %v11988_v52 = vpop.f32.mrb[245].mxu1 }
0x5ad4   : > { %v7708_v13 = vpop.f32.mrb[246].mxu1 }
0x5ad5   : > { %v7714_v63 = vadd.f32 %v7712_v39, %v7621_v8  ;;  %v7713_v53 = vmul.f32 -0.023809524, %v7708_v13  ;;  %v11989_v15 = vpop.f32.mrb[247].mxu1  ;;  %v16550_v8 = vld [vmem:[%s17402_s0 + $0x38] sm:$0xff]  }
0x5ad7   : > { %v7715_v20 = vadd.f32 %v7713_v53, %v7622_v61  ;;  %v16471_v30 = vadd.f32 %v7714_v63, %v16190_v14 }
0x5ad9   : > { %v16474_v43 = vadd.f32 %v7715_v20, %v16190_v14 }
0x5adb   : > { %v7724_v12 = vpack.c.bf16 %v16474_v43, %v16471_v30 }
0x5add   : > { %9806 = vmatmul.mubr.msk.bf16.vlgmr.msra.gmra.mrb[192].mxu0 %vm1003_vm1, %v7724_v12  ;;  %v16567_v12 = vld [vmem:[%s17405_s30] ss:$0 sm:$0xff] }
0x5ade   : > { %7823 = vmatpush1.bf16.msra.mxu0 %v16000_v28  ;;  %7854 = vmatprep.mubr.bf16.mxu0 %v17422_v5  ;;  %v16496_v28 = vld [vmem:[%s17402_s0 + $0x58] sm:$0xff]  }
0x5adf   : > { %10537 = vmatprep.subr.bf16.mxu0 %v16007_v4  ;;  %v16502_v4 = vld [vmem:[%s17402_s0 + $0x18] sm:$0xff]  }
0x5ae9   : > { %9807 = vmatmul.mubr.msk.bf16.vlgmr.msra.gmra.mrb[192].mxu0 %vm1307_vm2, %v16484_v18 }
0x5aea   : > { %10538 = vmatpush3.bf16.msra.mxu0 %v16019_v6  ;;  %v16508_v6 = vld [vmem:[%s17402_s0 + $0x60] sm:$0xff]  }
0x5aeb   : > { %10539 = vmatprep.subr.bf16.mxu0 %v16025_v48  ;;  %v16514_v48 = vld [vmem:[%s17402_s0 + $0x20] sm:$0xff]  }
0x5aee   : > { %10540 = vmatpush3.bf16.msra.mxu0 %v16031_v35  ;;  %v16520_v35 = vld [vmem:[%s17402_s0 + $0x68] sm:$0xff]  }
0x5aef   : > { %10541 = vmatprep.subr.bf16.mxu0 %v16037_v31  ;;  %v16526_v31 = vld [vmem:[%s17402_s0 + $0x28] sm:$0xff]  }
0x5af2   : > { %10542 = vmatpush3.bf16.msra.mxu0 %v16043_v32  ;;  %v16532_v32 = vld [vmem:[%s17402_s0 + $0x70] sm:$0xff]  }
0x5af3   : > { %10543 = vmatprep.subr.bf16.mxu0 %v16496_v28 }
0x5af6   : > { %10544 = vmatpush3.bf16.msra.mxu0 %v16502_v4 }
0x5af7   : > { %10545 = vmatprep.subr.bf16.mxu0 %v16508_v6 }
0x5afa   : > { %10546 = vmatpush3.bf16.msra.mxu0 %v16514_v48 }
0x5afb   : > { %10547 = vmatprep.subr.bf16.mxu0 %v16520_v35 }
0x5afe   : > { %10548 = vmatpush3.bf16.msra.mxu0 %v16526_v31 }
0x5aff   : > { %10549 = vmatprep.subr.bf16.mxu0 %v16532_v32 }
0x5b02   : > { %10550 = vmatpush3.bf16.msra.mxu0 %v16538_v58 }
0x5b03   : > { %10551 = vmatprep.subr.bf16.mxu0 %v16544_v36 }
0x5b06   : > { %10552 = vmatpush3.bf16.msra.mxu0 %v16550_v8 }
0x5b07   : > { %12032 = vmatprep.subr.bf16.mxu0 %v17418_v22 }
0x5bbc   : > { %v7856_v61 = vpop.f32.mrb[192].mxu0 }
0x5bbd   : > { %v7869_v34 = vadd.f32 %v7856_v61, %v13596_v55  ;;  %v7858_v11 = vpop.f32.mrb[193].mxu0 }
0x5bbe   : > { %v7870_v46 = vadd.f32 %v7858_v11, %v13598_v56  ;;  %v7860_v23 = vpop.f32.mrb[194].mxu0 }
0x5bbf   : > { %12728 = vtanh.f32 %v7869_v34  ;;  %v7871_v42 = vadd.f32 %v7860_v23, %v13596_v55  ;;  %v7862_v27 = vpop.f32.mrb[195].mxu0 }
0x5bc0   : > { %12730 = vtanh.f32 %v7870_v46  ;;  %v7872_v10 = vadd.f32 %v7862_v27, %v13598_v56 }
0x5bc1   : > { %12732 = vtanh.f32 %v7871_v42 }
0x5bc2   : > { %12734 = vtanh.f32 %v7872_v10 }
0x5bc9   : > { %v12729_v38 = vpop.eup %12728 }
0x5bca   : > { %v12731_v60 = vpop.eup %12730 }
0x5bcb   : > { %v12733_v7 = vpop.eup %12732 }
0x5bcc   : > { %v12735_v26 = vpop.eup %12734  ;;  %v7877_v39 = vpack.c.bf16 %v12733_v7, %v12729_v38  ;;  %v9804_v7 = vld [vmem:[%s13645_s5 + $0x68] sm:$0xff] }
0x5bcd   : > { %v7878_v52 = vpack.c.bf16 %v12735_v26, %v12731_v60  ;;  %v9803_v60 = vld [vmem:[%s13645_s5 + $0x60] sm:$0xff] }
0x5bce   : > { %v8159_v26 = vsub.f32 1.0, %v9803_v60 }
0x5bcf   : > { %7911 = vmatprep.mubr.bf16.mxu0 %v7878_v52 }
0x5bd0   : > { %7912 = vmatmul.mubr.bf16.vlgmr.msra.gmra.mrb[196].mxu0 %v7877_v39  ;;  %v8160_v39 = vsub.f32 1.0, %v9804_v7 }
0x5bd1   : > { %12033 = vmatpush3.bf16.msra.mxu0 %v16175_v16  ;;  %12036 = vmatprep.mubr.msk.bf16.mxu0 %vm13094_vm0, %v17418_v22 }
0x5bd2   : > { %12034 = vmatprep.subr.bf16.mxu0 %v17418_v22 }
0x5bd5   : > { %12035 = vmatpush3.bf16.msra.mxu0 %v16184_v51 }
0x5bd6   : > { %12040 = vmatprep.subr.bf16.mxu0 %v17418_v22 }
0x5ca3   : > { %v10553_v13 = vpop.f32.mrb[196].mxu0 }
0x5ca4   : > { %v10554_v63 = vpop.f32.mrb[197].mxu0 }
0x5ca5   : > { %v10555_v53 = vadd.f32 %v10554_v63, %v10553_v13  ;;  %v10556_v15 = vpop.f32.mrb[198].mxu0 }
0x5ca6   : > { %v10557_v20 = vpop.f32.mrb[199].mxu0 }
0x5ca7   : > { %v7914_v37 = vadd.f32 %v16567_v12, %v10555_v53  ;;  %v10558_v62 = vadd.f32 %v10557_v20, %v10556_v15  ;;  %v16587_v20 = vld [vmem:[%s17407_s23] sm:$0xff]  }
0x5ca9   : > { %v9808_v61 = vmul.f32 -1.442695, %v7914_v37  ;;  %v7917_v34 = vadd.f32 %v16567_v12, %v10558_v62 }
0x5cab   : > { %12736 = vpow2.f32 %v9808_v61  ;;  %v9809_v11 = vmul.f32 -1.442695, %v7917_v34  ;;  %v16598_v61 = vld [vmem:[%s17407_s23 + $0x8] sm:$0xff]  }
0x5cad   : > { %12738 = vpow2.f32 %v9809_v11  ;;  %v16606_v11 = vld [vmem:[%s17271_s10] sm:$0xff]  }
0x5cae   : > { %17484 = vst [vmem:[#allocation18_spill] sm:$0xff] %v16606_v11 }
0x5cb5   : > { %v12737_v46 = vpop.eup %12736 }
0x5cb6   : > { %v7926_v23 = vadd.f32 1.0, %v12737_v46  ;;  %v16617_v46 = vld [vmem:[%s17273_s12] sm:$0xff]  }
0x5cb7   : > { %v12739_v42 = vpop.eup %12738  ;;  %17485 = vst [vmem:[#allocation19_spill] sm:$0xff] %v16617_v46 }
0x5cb8   : > { %12740 = vrcp.f32 %v7926_v23  ;;  %v7927_v27 = vadd.f32 1.0, %v12739_v42  ;;  %v16626_v23 = vld [vmem:[%s17273_s12 + $0x8] sm:$0xff]   ;;  %v16640_v42 = vld [vmem:[%s17273_s12 + $0x18] sm:$0xff]  }
0x5cb9   : > { %17486 = vst [vmem:[#allocation20_spill] sm:$0xff] %v16626_v23  ;;  %17488 = vst [vmem:[#allocation22_spill] sm:$0xff] %v16640_v42 }
0x5cba   : > { %12742 = vrcp.f32 %v7927_v27  ;;  %v16647_v27 = vld [vmem:[%s17273_s12 + $0x20] sm:$0xff]  }
0x5cbb   : > { %17489 = vst [vmem:[#allocation23_spill] sm:$0xff] %v16647_v27 }
0x5cc2   : > { %v16571_v10 = vpop.eup %12740 }
0x5cc3   : > { %7934 = vrot.lane.b32.xlu0 %v16571_v10, %s17419_s4 }
0x5cc4   : > { %v16575_v38 = vpop.eup %12742 }
0x5cc5   : > { %7936 = vrot.lane.b32.xlu1 %v16575_v38, %s17419_s4 }
0x5cc7   : > { %8149 = vperm.xlu0 %12393, %v9803_v60   ;;  %v16654_v60 = vld [vmem:[%s17273_s12 + $0x28] sm:$0xff]  }
0x5cc8   : > { %17490 = vst [vmem:[#allocation24_spill] sm:$0xff] %v16654_v60 }
0x5cc9   : > { %8154 = vperm.xlu1 %12392, %v9804_v7   ;;  %v16661_v7 = vld [vmem:[%s17273_s12 + $0x30] sm:$0xff]  }
0x5cca   : > { %17491 = vst [vmem:[#allocation25_spill] sm:$0xff] %v16661_v7 }
0x5ccb   : > { %8163 = vperm.xlu0 %12393, %v8159_v26   ;;  %v16668_v26 = vld [vmem:[%s17273_s12 + $0x38] sm:$0xff]  }
0x5ccc   : > { %17492 = vst [vmem:[#allocation26_spill] sm:$0xff] %v16668_v26 }
0x5ccd   : > { %8168 = vperm.xlu1 %12392, %v8160_v39  }
0x5d35   : > { %v7935_v52 = vpop.permute.xlu0 %7934 }
0x5d36   : > { %v7943_v63 = vmul.f32 %v7935_v52, %v16387_v47  ;;  %v7940_v62 = vmul.f32 %v7935_v52, %v16471_v30 }
0x5d37   : > { %v7937_v13 = vpop.permute.xlu1 %7936 }
0x5d38   : > { %v7944_v53 = vmul.f32 %v7937_v13, %v16379_v3  ;;  %v7941_v37 = vmul.f32 %v7937_v13, %v16474_v43 }
0x5d3a   : > { %v7945_v15 = vpack.c.bf16 %v7944_v53, %v7943_v63  ;;  %v7942_v34 = vpack.c.bf16 %v7941_v37, %v7940_v62 }
0x5d3c   : > { %11995 = vmatmul.mubr.msk.bf16.vlgmr.msra.gmra.mrb[248].mxu1 %vm1003_vm1, %v7945_v15 }
0x5d3d   : > { %11999 = vmatpush3.bf16.msra.mxu1 %v16587_v20  ;;  %12002 = vmatprep.mubr.msk.bf16.mxu1 %vm13094_vm0, %v17418_v22 }
0x5d3e   : > { %12000 = vmatprep.subr.bf16.mxu1 %v17418_v22 }
0x5d41   : > { %12001 = vmatpush3.bf16.msra.mxu1 %v16598_v61 }
0x5d42   : > { %12006 = vmatprep.subr.bf16.mxu1 %v17418_v22 }
0x5d44   : > { %12003 = vmatmul.mubr.msk.bf16.vlgmr.msra.gmra.mrb[252].mxu1 %vm1003_vm1, %v7942_v34 }
0x5d45   : > { %12007 = vmatpush3.bf16.msra.mxu1 %v16606_v11  ;;  %12008 = vmatprep.mubr.msk.bf16.mxu1 %vm13094_vm0, %v17418_v22 }
0x5d46   : > { %12012 = vmatprep.subr.bf16.mxu1 %v17418_v22 }
0x5d4c   : > { %12009 = vmatmul.mubr.msk.bf16.vlgmr.msra.gmra.mrb[0].mxu1 %vm1307_vm2, %v16484_v18  ;;  %v16633_v18 = vld [vmem:[%s17273_s12 + $0x10] sm:$0xff]  }
0x5d4d   : > { %12013 = vmatpush3.bf16.msra.mxu1 %v16617_v46  ;;  %12028 = vmatprep.mubr.msk.bf16.mxu1 %vm13094_vm0, %v17418_v22  ;;  %17487 = vst [vmem:[#allocation21_spill] sm:$0xff] %v16633_v18 }
0x5d4e   : > { %12014 = vmatprep.subr.bf16.mxu1 %v17418_v22 }
0x5d51   : > { %12015 = vmatpush3.bf16.msra.mxu1 %v16626_v23 }
0x5d52   : > { %12016 = vmatprep.subr.bf16.mxu1 %v17418_v22 }
0x5d55   : > { %12017 = vmatpush3.bf16.msra.mxu1 %v16633_v18 }
0x5d56   : > { %12018 = vmatprep.subr.bf16.mxu1 %v17418_v22 }
0x5d59   : > { %12019 = vmatpush3.bf16.msra.mxu1 %v16640_v42 }
0x5d5a   : > { %12020 = vmatprep.subr.bf16.mxu1 %v17418_v22 }
0x5d5d   : > { %12021 = vmatpush3.bf16.msra.mxu1 %v16647_v27 }
0x5d5e   : > { %12022 = vmatprep.subr.bf16.mxu1 %v17418_v22 }
0x5d61   : > { %12023 = vmatpush3.bf16.msra.mxu1 %v16654_v60 }
0x5d62   : > { %12024 = vmatprep.subr.bf16.mxu1 %v17418_v22 }
0x5d65   : > { %12025 = vmatpush3.bf16.msra.mxu1 %v16661_v7 }
0x5d66   : > { %12026 = vmatprep.subr.bf16.mxu1 %v17418_v22 }
0x5d69   : > { %12027 = vmatpush3.bf16.msra.mxu1 %v16668_v26  ;;  %v16675_v26 = vld [vmem:[%s17272_s11] ss:$0 sm:$0xff] }
0x5d6a   : > { %12060 = vmatprep.subr.bf16.mxu1 %v17418_v22  ;;  %17493 = vst [vmem:[#allocation27_spill] sm:$0xff] %v16675_v26 }
0x5e0f   : > { %v7983_v39 = vpop.f32.mrb[248].mxu1 }
0x5e10   : > { %v11996_v52 = vpop.f32.mrb[249].mxu1 }
0x5e11   : > { %v7986_v13 = vpop.f32.mrb[250].mxu1 }
0x5e12   : > { %v11997_v63 = vpop.f32.mrb[251].mxu1 }
0x5e17   : > { %v8027_v53 = vpop.f32.mrb[252].mxu1 }
0x5e18   : > { %v8028_v15 = vadd.f32 %v8027_v53, %v7983_v39  ;;  %v12004_v37 = vpop.f32.mrb[253].mxu1 }
0x5e19   : > { %v8030_v62 = vpop.f32.mrb[254].mxu1 }
0x5e1a   : > { %v8031_v34 = vadd.f32 %v8030_v62, %v7986_v13  ;;  %v12005_v7 = vpop.f32.mrb[255].mxu1 }
0x5e1f   : > { %v8068_v60 = vpop.f32.mrb[0].mxu1 }
0x5e20   : > { %v8075_v27 = vadd.f32 %v8068_v60, %v8028_v15  ;;  %v12010_v42 = vpop.f32.mrb[1].mxu1  ;;  %v17366_v60 = vsub.f32 1.0, %v16571_v10  ;;  %v8129_v15 = vmul.f32 %v16571_v10, %v16471_v30 }
0x5e21   : > { %v8071_v18 = vpop.f32.mrb[2].mxu1  ;;  %v16692_v42 = vld [vmem:[%s17274_s13] ss:$0 sm:$0xff] }
0x5e22   : > { %v8077_v23 = vadd.f32 %v16675_v26, %v8075_v27  ;;  %v8076_v52 = vadd.f32 %v8071_v18, %v8031_v34  ;;  %v12011_v46 = vpop.f32.mrb[3].mxu1  ;;  %v16687_v18 = vpop.permute.xlu1 %8154 }
0x5e23   : > { %v16685_v46 = vpop.permute.xlu0 %8149 }
0x5e24   : > { %v8078_v63 = vadd.f32 %v16675_v26, %v8076_v52  ;;  %12744 = vtanh.f32 %v8077_v23 }
0x5e26   : > { %12746 = vtanh.f32 %v8078_v63  ;;  %v8126_v63 = vsub.f32 1.0, %v16575_v38  ;;  %v16709_v11 = vpop.permute.xlu1 %8168 }
0x5e27   : > { %v16707_v26 = vpop.permute.xlu0 %8163 }
0x5e2e   : > { %v12745_v39 = vpop.eup %12744 }
0x5e30   : > { %v12747_v13 = vpop.eup %12746 }
0x5e31   : > { %v8081_v7 = vpack.c.bf16 %v12747_v13, %v12745_v39 }
0x5e33   : > { %12029 = vmatmul.mubr.bf16.vlgmr.msra.gmra.mrb[4].mxu1 %v8081_v7 }
0x5e34   : > { %12061 = vmatpush3.bf16.msra.mxu1 %v16175_v16  ;;  %12064 = vmatprep.mubr.msk.bf16.mxu1 %vm13094_vm0, %v17418_v22 }
0x5e35   : > { %12062 = vmatprep.subr.bf16.mxu1 %v17418_v22 }
0x5e38   : > { %12063 = vmatpush3.bf16.msra.mxu1 %v16184_v51 }
0x5e39   : > { %12068 = vmatprep.subr.bf16.mxu1 %v17418_v22 }
0x5f06   : > { %v8116_v23 = vpop.f32.mrb[4].mxu1 }
0x5f07   : > { %v8117_v27 = vadd.f32 %v16692_v42, %v8116_v23  ;;  %v12030_v53 = vpop.f32.mrb[5].mxu1 }
0x5f08   : > { %v8119_v37 = vpop.f32.mrb[6].mxu1  ;;  %v8130_v53 = vmul.f32 %v16575_v38, %v16474_v43 }
0x5f09   : > { %v8123_v62 = vand.u32 2147483647, %v8117_v27  ;;  %v8127_v34 = vmul.f32 %v17366_v60, %v8117_v27  ;;  %v8120_v52 = vadd.f32 %v16692_v42, %v8119_v37  ;;  %v12031_v39 = vpop.f32.mrb[7].mxu1 }
0x5f0b   : > { %v8131_v13 = vadd.f32 %v8129_v15, %v8127_v34  ;;  %v8124_v7 = vand.u32 2147483647, %v8120_v52  ;;  %v8128_v23 = vmul.f32 %v8126_v63, %v8120_v52  ;;  %8135 = vrot.lane.b32.xlu0 %v8123_v62, %s17419_s4  ;;  %v8171_v15 = vmul.f32 %v16707_v26, %v16471_v30 }
0x5f0c   : > { %v8172_v34 = vmul.f32 %v16709_v11, %v16474_v43 }
0x5f0d   : > { %v8157_v27 = vmul.f32 %v16685_v46, %v8131_v13  ;;  %v8132_v37 = vadd.f32 %v8130_v53, %v8128_v23  ;;  %8137 = vrot.lane.b32.xlu1 %v8124_v7, %s17419_s4 }
0x5f0f   : > { %v8158_v52 = vmul.f32 %v16687_v18, %v8132_v37  ;;  %v8173_v39 = vadd.f32 %v8171_v15, %v8157_v27 }
0x5f11   : > { %v8174_v60 = vadd.f32 %v8172_v34, %v8158_v52 }
0x5f13   : > { %v8183_v62 = vpack.c.bf16 %v8174_v60, %v8173_v39 }
0x5f15   : > { %12037 = vmatmul.mubr.msk.bf16.vlgmr.msra.gmra.mrb[200].mxu0 %vm1003_vm1, %v8183_v62 }
0x5f16   : > { %12041 = vmatpush3.bf16.msra.mxu0 %v16198_v24  ;;  %12056 = vmatprep.mubr.msk.bf16.mxu0 %vm13094_vm0, %v17418_v22 }
0x5f17   : > { %12042 = vmatprep.subr.bf16.mxu0 %v17418_v22 }
0x5f1a   : > { %12043 = vmatpush3.bf16.msra.mxu0 %v16207_v50 }
0x5f1b   : > { %12044 = vmatprep.subr.bf16.mxu0 %v17418_v22 }
0x5f1e   : > { %12045 = vmatpush3.bf16.msra.mxu0 %v16214_v59 }
0x5f1f   : > { %12046 = vmatprep.subr.bf16.mxu0 %v17418_v22 }
0x5f22   : > { %12047 = vmatpush3.bf16.msra.mxu0 %v16250_v54 }
0x5f23   : > { %12048 = vmatprep.subr.bf16.mxu0 %v17418_v22 }
0x5f26   : > { %12049 = vmatpush3.bf16.msra.mxu0 %v16286_v45 }
0x5f27   : > { %12050 = vmatprep.subr.bf16.mxu0 %v17418_v22 }
0x5f2a   : > { %12051 = vmatpush3.bf16.msra.mxu0 %v16293_v17 }
0x5f2b   : > { %12052 = vmatprep.subr.bf16.mxu0 %v17418_v22 }
0x5f2e   : > { %12053 = vmatpush3.bf16.msra.mxu0 %v16300_v19 }
0x5f2f   : > { %12054 = vmatprep.subr.bf16.mxu0 %v17418_v22 }
0x5f32   : > { %12055 = vmatpush3.bf16.msra.mxu0 %v16307_v2 }
0x5f33   : > { %12088 = vmatprep.subr.bf16.mxu0 %v17418_v22 }
0x5fe8   : > { %v8221_v30 = vpop.f32.mrb[200].mxu0 }
0x5fe9   : > { %v8222_v43 = vadd.f32 %v16314_v1, %v8221_v30  ;;  %v12038_v13 = vpop.f32.mrb[201].mxu0 }
0x5fea   : > { %v8224_v7 = vpop.f32.mrb[202].mxu0 }
0x5feb   : > { %v8225_v23 = vadd.f32 %v16314_v1, %v8224_v7  ;;  %v12039_v53 = vpop.f32.mrb[203].mxu0  ;;  %12748 = vtanh.f32 %v8222_v43 }
0x5fed   : > { %12750 = vtanh.f32 %v8225_v23 }
0x5ff5   : > { %v12749_v27 = vpop.eup %12748 }
0x5ff7   : > { %v12751_v37 = vpop.eup %12750 }
0x5ff8   : > { %v8230_v15 = vpack.c.bf16 %v12751_v37, %v12749_v27 }
0x5ffa   : > { %12057 = vmatmul.mubr.bf16.vlgmr.msra.gmra.mrb[204].mxu0 %v8230_v15 }
0x5ffb   : > { %12089 = vmatpush3.bf16.msra.mxu0 %v16175_v16  ;;  %12092 = vmatprep.mubr.msk.bf16.mxu0 %vm13094_vm0, %v17418_v22 }
0x5ffc   : > { %12090 = vmatprep.subr.bf16.mxu0 %v17418_v22 }
0x5fff   : > { %12091 = vmatpush3.bf16.msra.mxu0 %v16184_v51 }
0x6000   : > { %12096 = vmatprep.subr.bf16.mxu0 %v17418_v22 }
0x60cd   : > { %v8265_v34 = vpop.f32.mrb[204].mxu0 }
0x60ce   : > { %v8272_v52 = vmul.f32 -0.023809524, %v8265_v34  ;;  %v12058_v62 = vpop.f32.mrb[205].mxu0 }
0x60cf   : > { %v8268_v30 = vpop.f32.mrb[206].mxu0  ;;  %v16780_v62 = vld [vmem:[%s17280_s19 + $0x8] sm:$0xff]  }
0x60d0   : > { %v8274_v43 = vadd.f32 %v8272_v52, %v8173_v39  ;;  %v8273_v13 = vmul.f32 -0.023809524, %v8268_v30  ;;  %v12059_v7 = vpop.f32.mrb[207].mxu0  ;;  %v16771_v52 = vld [vmem:[%s17280_s19] sm:$0xff]  }
0x60d2   : > { %v8275_v23 = vadd.f32 %v8273_v13, %v8174_v60  ;;  %v8276_v53 = vadd.f32 %v8274_v43, %v16190_v14 }
0x60d4   : > { %v8277_v16 = vadd.f32 %v8275_v23, %v16190_v14 }
0x60d6   : > { %v8278_v27 = vpack.c.bf16 %v8277_v16, %v8276_v53 }
0x60d8   : > { %12065 = vmatmul.mubr.msk.bf16.vlgmr.msra.gmra.mrb[8].mxu1 %vm1003_vm1, %v8278_v27 }
0x60d9   : > { %12069 = vmatpush3.bf16.msra.mxu1 %v16198_v24  ;;  %12084 = vmatprep.mubr.msk.bf16.mxu1 %vm13094_vm0, %v17418_v22 }
0x60da   : > { %12070 = vmatprep.subr.bf16.mxu1 %v17418_v22 }
0x60dd   : > { %12071 = vmatpush3.bf16.msra.mxu1 %v16207_v50 }
0x60de   : > { %12072 = vmatprep.subr.bf16.mxu1 %v17418_v22 }
0x60e1   : > { %12073 = vmatpush3.bf16.msra.mxu1 %v16214_v59 }
0x60e2   : > { %12074 = vmatprep.subr.bf16.mxu1 %v17418_v22 }
0x60e5   : > { %12075 = vmatpush3.bf16.msra.mxu1 %v16250_v54 }
0x60e6   : > { %12076 = vmatprep.subr.bf16.mxu1 %v17418_v22 }
0x60e9   : > { %12077 = vmatpush3.bf16.msra.mxu1 %v16286_v45 }
0x60ea   : > { %12078 = vmatprep.subr.bf16.mxu1 %v17418_v22 }
0x60ed   : > { %12079 = vmatpush3.bf16.msra.mxu1 %v16293_v17 }
0x60ee   : > { %12080 = vmatprep.subr.bf16.mxu1 %v17418_v22 }
0x60f1   : > { %12081 = vmatpush3.bf16.msra.mxu1 %v16300_v19 }
0x60f2   : > { %12082 = vmatprep.subr.bf16.mxu1 %v17418_v22 }
0x60f5   : > { %12083 = vmatpush3.bf16.msra.mxu1 %v16307_v2 }
0x60f6   : > { %12116 = vmatprep.subr.bf16.mxu1 %v17418_v22 }
0x61ab   : > { %v8316_v51 = vpop.f32.mrb[8].mxu1 }
0x61ac   : > { %v8317_v24 = vadd.f32 %v16314_v1, %v8316_v51  ;;  %v12066_v50 = vpop.f32.mrb[9].mxu1 }
0x61ad   : > { %v8319_v59 = vpop.f32.mrb[10].mxu1 }
0x61ae   : > { %v8320_v60 = vadd.f32 %v16314_v1, %v8319_v59  ;;  %v12067_v39 = vpop.f32.mrb[11].mxu1  ;;  %12752 = vtanh.f32 %v8317_v24 }
0x61af   : > { %v16790_v39 = vld [vmem:[%s17282_s21] sm:$0xff]  }
0x61b0   : > { %12754 = vtanh.f32 %v8320_v60 }
0x61b8   : > { %v12753_v37 = vpop.eup %12752 }
0x61ba   : > { %v12755_v15 = vpop.eup %12754 }
0x61bb   : > { %v8325_v34 = vpack.c.bf16 %v12755_v15, %v12753_v37 }
0x61bd   : > { %12085 = vmatmul.mubr.bf16.vlgmr.msra.gmra.mrb[12].mxu1 %v8325_v34 }
0x61be   : > { %12117 = vmatpush3.bf16.msra.mxu1 %v16771_v52  ;;  %12120 = vmatprep.mubr.msk.bf16.mxu1 %vm13094_vm0, %v17418_v22 }
0x61bf   : > { %12118 = vmatprep.subr.bf16.mxu1 %v17418_v22 }
0x61c2   : > { %12119 = vmatpush3.bf16.msra.mxu1 %v16780_v62 }
0x61c3   : > { %12124 = vmatprep.subr.bf16.mxu1 %v17418_v22 }
0x6290   : > { %v8360_v30 = vpop.f32.mrb[12].mxu1 }
0x6291   : > { %v8367_v43 = vmul.f32 -0.023809524, %v8360_v30  ;;  %v12086_v13 = vpop.f32.mrb[13].mxu1 }
0x6292   : > { %v8363_v7 = vpop.f32.mrb[14].mxu1 }
0x6293   : > { %v8369_v23 = vadd.f32 %v8367_v43, %v8276_v53  ;;  %v8368_v27 = vmul.f32 -0.023809524, %v8363_v7  ;;  %v12087_v51 = vpop.f32.mrb[15].mxu1  ;;  %v16799_v53 = vld [vmem:[%s17282_s21 + $0x8] sm:$0xff]  }
0x6295   : > { %v8370_v24 = vadd.f32 %v8368_v27, %v8277_v16  ;;  %v8371_v50 = vadd.f32 %v8369_v23, %v16190_v14  ;;  %v16806_v16 = vld [vmem:[%s17282_s21 + $0x10] sm:$0xff]  }
0x6297   : > { %v8372_v59 = vadd.f32 %v8370_v24, %v16190_v14 }
0x6299   : > { %v8373_v60 = vpack.c.bf16 %v8372_v59, %v8371_v50 }
0x629b   : > { %12093 = vmatmul.mubr.msk.bf16.vlgmr.msra.gmra.mrb[208].mxu0 %vm1003_vm1, %v8373_v60 }
0x629c   : > { %12097 = vmatpush3.bf16.msra.mxu0 %v16790_v39  ;;  %12112 = vmatprep.mubr.msk.bf16.mxu0 %vm13094_vm0, %v17418_v22 }
0x629d   : > { %12098 = vmatprep.subr.bf16.mxu0 %v17418_v22 }
0x62a0   : > { %12099 = vmatpush3.bf16.msra.mxu0 %v16799_v53 }
0x62a1   : > { %12100 = vmatprep.subr.bf16.mxu0 %v17418_v22 }
0x62a4   : > { %12101 = vmatpush3.bf16.msra.mxu0 %v16806_v16 }
0x62a5   : > { %12102 = vmatprep.subr.bf16.mxu0 %v17418_v22 }
0x62a8   : > { %12103 = vmatpush3.bf16.msra.mxu0 %v16250_v54 }
0x62a9   : > { %12104 = vmatprep.subr.bf16.mxu0 %v17418_v22 }
0x62ac   : > { %12105 = vmatpush3.bf16.msra.mxu0 %v16286_v45 }
0x62ad   : > { %12106 = vmatprep.subr.bf16.mxu0 %v17418_v22 }
0x62b0   : > { %12107 = vmatpush3.bf16.msra.mxu0 %v16293_v17 }
0x62b1   : > { %12108 = vmatprep.subr.bf16.mxu0 %v17418_v22 }
0x62b4   : > { %12109 = vmatpush3.bf16.msra.mxu0 %v16300_v19 }
0x62b5   : > { %12110 = vmatprep.subr.bf16.mxu0 %v17418_v22 }
0x62b8   : > { %12111 = vmatpush3.bf16.msra.mxu0 %v16307_v2 }
0x62b9   : > { %12144 = vmatprep.subr.bf16.mxu0 %v17418_v22 }
0x636e   : > { %v8411_v37 = vpop.f32.mrb[208].mxu0 }
0x636f   : > { %v8412_v54 = vadd.f32 %v16314_v1, %v8411_v37  ;;  %v12094_v15 = vpop.f32.mrb[209].mxu0 }
0x6370   : > { %v8414_v34 = vpop.f32.mrb[210].mxu0 }
0x6371   : > { %v8415_v30 = vadd.f32 %v16314_v1, %v8414_v34  ;;  %v12095_v43 = vpop.f32.mrb[211].mxu0  ;;  %12756 = vtanh.f32 %v8412_v54 }
0x6373   : > { %12758 = vtanh.f32 %v8415_v30 }
0x637b   : > { %v12757_v13 = vpop.eup %12756 }
0x637d   : > { %v12759_v7 = vpop.eup %12758 }
0x637e   : > { %v8420_v23 = vpack.c.bf16 %v12759_v7, %v12757_v13 }
0x6380   : > { %12113 = vmatmul.mubr.bf16.vlgmr.msra.gmra.mrb[212].mxu0 %v8420_v23 }
0x6381   : > { %12145 = vmatpush3.bf16.msra.mxu0 %v16771_v52  ;;  %12148 = vmatprep.mubr.msk.bf16.mxu0 %vm13094_vm0, %v17418_v22 }
0x6382   : > { %12146 = vmatprep.subr.bf16.mxu0 %v17418_v22 }
0x6385   : > { %12147 = vmatpush3.bf16.msra.mxu0 %v16780_v62 }
0x6386   : > { %12152 = vmatprep.subr.bf16.mxu0 %v17418_v22 }
0x6453   : > { %v8455_v27 = vpop.f32.mrb[212].mxu0 }
0x6454   : > { %v8462_v51 = vmul.f32 -0.023809524, %v8455_v27  ;;  %v12114_v24 = vpop.f32.mrb[213].mxu0 }
0x6455   : > { %v8458_v60 = vpop.f32.mrb[214].mxu0 }
0x6456   : > { %v8464_v37 = vadd.f32 %v8462_v51, %v8371_v50  ;;  %v8463_v54 = vmul.f32 -0.023809524, %v8458_v60  ;;  %v12115_v15 = vpop.f32.mrb[215].mxu0  ;;  %v16842_v50 = vld [vmem:[%s17282_s21 + $0x18] sm:$0xff]  }
0x6458   : > { %v8465_v34 = vadd.f32 %v8463_v54, %v8372_v59  ;;  %v8466_v30 = vadd.f32 %v8464_v37, %v16190_v14 }
0x645a   : > { %v8467_v43 = vadd.f32 %v8465_v34, %v16190_v14 }
0x645c   : > { %v8468_v13 = vpack.c.bf16 %v8467_v43, %v8466_v30 }
0x645e   : > { %12121 = vmatmul.mubr.msk.bf16.vlgmr.msra.gmra.mrb[16].mxu1 %vm1003_vm1, %v8468_v13 }
0x645f   : > { %12125 = vmatpush3.bf16.msra.mxu1 %v16790_v39  ;;  %12140 = vmatprep.mubr.msk.bf16.mxu1 %vm13094_vm0, %v17418_v22 }
0x6460   : > { %12126 = vmatprep.subr.bf16.mxu1 %v17418_v22 }
0x6463   : > { %12127 = vmatpush3.bf16.msra.mxu1 %v16799_v53 }
0x6464   : > { %12128 = vmatprep.subr.bf16.mxu1 %v17418_v22 }
0x6467   : > { %12129 = vmatpush3.bf16.msra.mxu1 %v16806_v16 }
0x6468   : > { %12130 = vmatprep.subr.bf16.mxu1 %v17418_v22 }
0x646b   : > { %12131 = vmatpush3.bf16.msra.mxu1 %v16842_v50 }
0x646c   : > { %12132 = vmatprep.subr.bf16.mxu1 %v17418_v22 }
0x646f   : > { %12133 = vmatpush3.bf16.msra.mxu1 %v16286_v45 }
0x6470   : > { %12134 = vmatprep.subr.bf16.mxu1 %v17418_v22 }
0x6473   : > { %12135 = vmatpush3.bf16.msra.mxu1 %v16293_v17 }
0x6474   : > { %12136 = vmatprep.subr.bf16.mxu1 %v17418_v22 }
0x6477   : > { %12137 = vmatpush3.bf16.msra.mxu1 %v16300_v19 }
0x6478   : > { %12138 = vmatprep.subr.bf16.mxu1 %v17418_v22 }
0x647b   : > { %12139 = vmatpush3.bf16.msra.mxu1 %v16307_v2 }
0x647c   : > { %12172 = vmatprep.subr.bf16.mxu1 %v17418_v22 }
0x6531   : > { %v8506_v59 = vpop.f32.mrb[16].mxu1 }
0x6532   : > { %v8507_v7 = vadd.f32 %v16314_v1, %v8506_v59  ;;  %v12122_v23 = vpop.f32.mrb[17].mxu1 }
0x6533   : > { %v8509_v27 = vpop.f32.mrb[18].mxu1  ;;  %v16905_v23 = vld [vmem:[%s17282_s21 + $0x38] sm:$0xff]  }
0x6534   : > { %v8510_v45 = vadd.f32 %v16314_v1, %v8509_v27  ;;  %v12123_v51 = vpop.f32.mrb[19].mxu1  ;;  %12760 = vtanh.f32 %v8507_v7 }
0x6535   : > { %v16912_v51 = vld [vmem:[%s17281_s20] ss:$0 sm:$0xff] }
0x6536   : > { %12762 = vtanh.f32 %v8510_v45  ;;  %v8138_v45 = vpop.permute.xlu1 %8137 }
0x653e   : > { %v12761_v17 = vpop.eup %12760 }
0x6540   : > { %v12763_v24 = vpop.eup %12762 }
0x6541   : > { %v8515_v60 = vpack.c.bf16 %v12763_v24, %v12761_v17 }
0x6543   : > { %12141 = vmatmul.mubr.bf16.vlgmr.msra.gmra.mrb[20].mxu1 %v8515_v60 }
0x6544   : > { %12173 = vmatpush3.bf16.msra.mxu1 %v16771_v52  ;;  %12176 = vmatprep.mubr.msk.bf16.mxu1 %vm13094_vm0, %v17418_v22 }
0x6545   : > { %12174 = vmatprep.subr.bf16.mxu1 %v17418_v22 }
0x6548   : > { %12175 = vmatpush3.bf16.msra.mxu1 %v16780_v62  ;;  %v16884_v62 = vld [vmem:[%s17282_s21 + $0x20] sm:$0xff]  }
0x6549   : > { %12180 = vmatprep.subr.bf16.mxu1 %v17418_v22 }
0x6616   : > { %v8550_v19 = vpop.f32.mrb[20].mxu1 }
0x6617   : > { %v8557_v2 = vmul.f32 -0.023809524, %v8550_v19  ;;  %v12142_v1 = vpop.f32.mrb[21].mxu1  ;;  %v8136_v19 = vpop.permute.xlu0 %8135 }
0x6618   : > { %v8553_v37 = vpop.f32.mrb[22].mxu1 }
0x6619   : > { %v8559_v54 = vadd.f32 %v8557_v2, %v8466_v30  ;;  %v8558_v15 = vmul.f32 -0.023809524, %v8553_v37  ;;  %v12143_v34 = vpop.f32.mrb[23].mxu1  ;;  %v16891_v30 = vld [vmem:[%s17282_s21 + $0x28] sm:$0xff]   ;;  %v8142_v37 = vmul.f32 %v8138_v45, %v8126_v63 }
0x661a   : > { %v8143_v34 = vmul.f32 %v16571_v10, %v16387_v47 }
0x661b   : > { %v8560_v13 = vadd.f32 %v8558_v15, %v8467_v43  ;;  %v16863_v59 = vadd.f32 %v8559_v54, %v16190_v14  ;;  %v16898_v43 = vld [vmem:[%s17282_s21 + $0x30] sm:$0xff]   ;;  %v8144_v15 = vmul.f32 %v16575_v38, %v16379_v3 }
0x661d   : > { %v16866_v52 = vadd.f32 %v8560_v13, %v16190_v14  ;;  %v8146_v13 = vadd.f32 %v8144_v15, %v8142_v37 }
0x661f   : > { %v8563_v7 = vpack.c.bf16 %v16866_v52, %v16863_v59 }
0x6621   : > { %12149 = vmatmul.mubr.msk.bf16.vlgmr.msra.gmra.mrb[216].mxu0 %vm1003_vm1, %v8563_v7 }
0x6622   : > { %12153 = vmatpush3.bf16.msra.mxu0 %v16790_v39  ;;  %12168 = vmatprep.mubr.msk.bf16.mxu0 %vm13094_vm0, %v17418_v22 }
0x6623   : > { %12154 = vmatprep.subr.bf16.mxu0 %v17418_v22 }
0x6626   : > { %12155 = vmatpush3.bf16.msra.mxu0 %v16799_v53 }
0x6627   : > { %12156 = vmatprep.subr.bf16.mxu0 %v17418_v22 }
0x662a   : > { %12157 = vmatpush3.bf16.msra.mxu0 %v16806_v16 }
0x662b   : > { %12158 = vmatprep.subr.bf16.mxu0 %v17418_v22 }
0x662e   : > { %12159 = vmatpush3.bf16.msra.mxu0 %v16842_v50 }
0x662f   : > { %12160 = vmatprep.subr.bf16.mxu0 %v17418_v22 }
0x6632   : > { %12161 = vmatpush3.bf16.msra.mxu0 %v16884_v62 }
0x6633   : > { %12162 = vmatprep.subr.bf16.mxu0 %v17418_v22 }
0x6636   : > { %12163 = vmatpush3.bf16.msra.mxu0 %v16891_v30 }
0x6637   : > { %12164 = vmatprep.subr.bf16.mxu0 %v17418_v22 }
0x663a   : > { %12165 = vmatpush3.bf16.msra.mxu0 %v16898_v43 }
0x663b   : > { %12166 = vmatprep.subr.bf16.mxu0 %v17418_v22 }
0x663e   : > { %12167 = vmatpush3.bf16.msra.mxu0 %v16905_v23 }
0x663f   : > { %8764 = vmatprep.subr.bf16.mxu0 %v16353_v41  ;;  %v17494_v41 = vsub.f32 1.0, %v16571_v10 }
0x6641   : > { %v8141_v54 = vmul.f32 %v8136_v19, %v17494_v41 }
0x6643   : > { %v8145_v7 = vadd.f32 %v8143_v34, %v8141_v54 }
0x6645   : > { %v8175_v63 = vmul.f32 %v16685_v46, %v8145_v7  ;;  %v12991_v7 = vld [vmem:[%s17402_s0 + $0x40] sm:$0xff]  }
0x66f4   : > { %v8601_v27 = vpop.f32.mrb[216].mxu0 }
0x66f5   : > { %v8602_v17 = vadd.f32 %v16912_v51, %v8601_v27  ;;  %v12150_v24 = vpop.f32.mrb[217].mxu0  ;;  %v8176_v27 = vmul.f32 %v16687_v18, %v8146_v13  ;;  %v12990_v13 = vld [vmem:[%s17400_s1] ss:$8 sps:$4 sm:$0xff]  }
0x66f6   : > { %v8604_v60 = vpop.f32.mrb[218].mxu0 }
0x66f7   : > { %v8605_v2 = vadd.f32 %v16912_v51, %v8604_v60  ;;  %v12151_v1 = vpop.f32.mrb[219].mxu0  ;;  %12764 = vtanh.f32 %v8602_v17  ;;  %v8178_v60 = vmul.f32 %v16709_v11, %v16379_v3  ;;  %v8177_v17 = vmul.f32 %v16707_v26, %v16387_v47 }
0x66f9   : > { %12766 = vtanh.f32 %v8605_v2  ;;  %v8180_v19 = vadd.f32 %v8178_v60, %v8176_v27  ;;  %v8179_v38 = vadd.f32 %v8177_v17, %v8175_v63  ;;  %v9819_v27 = vld [vmem:[%s13507_s27 + $0x70] sm:$0xff]  ;;  %v12992_v60 = vld [vmem:[%s17402_s0] sm:$0xff]   ;;  %v12994_v63 = vld [vmem:[%s17402_s0 + $0x8] sm:$0xff]  }
0x66fa   : > { %v12996_v17 = vld [vmem:[%s17402_s0 + $0x10] sm:$0xff]  }
0x66fb   : > { %v16932_v10 = vand.u32 2147483647, %v8180_v19  ;;  %v16935_v18 = vand.u32 2147483647, %v8179_v38 }
0x66fd   : > { %v8760_v3 = vpack.c.bf16 %v16932_v10, %v16935_v18 }
0x6701   : > { %v12765_v24 = vpop.eup %12764 }
0x6703   : > { %v12767_v45 = vpop.eup %12766 }
0x6704   : > { %v8610_v2 = vpack.c.bf16 %v12767_v45, %v12765_v24  ;;  %v12995_v45 = vld [vmem:[%s17402_s0 + $0x50] sm:$0xff]  }
0x6706   : > { %12169 = vmatmul.mubr.bf16.vlgmr.msra.gmra.mrb[220].mxu0 %v8610_v2 }
0x6707   : > { %8765 = vmatpush1.bf16.msra.mxu0 %v16375_v57  ;;  %8796 = vmatprep.mubr.bf16.mxu0 %v17422_v5 }
0x6708   : > { %8766 = vmatprep.subr.bf16.mxu0 %v16384_v25 }
0x670b   : > { %8767 = vmatpush1.bf16.msra.mxu0 %v16392_v29 }
0x670c   : > { %8810 = vmatprep.subr.bf16.mxu0 %v16400_v49 }
0x670e   : > { %9823 = vmatmul.mubr.msk.bf16.vlgmr.msra.gmra.mrb[224].mxu0 %vm1003_vm1, %v8760_v3 }
0x670f   : > { %8811 = vmatpush1.bf16.msra.mxu0 %v16407_v40  ;;  %8842 = vmatprep.mubr.bf16.mxu0 %v17422_v5 }
0x6710   : > { %8812 = vmatprep.subr.bf16.mxu0 %v16414_v33 }
0x6713   : > { %8813 = vmatpush1.bf16.msra.mxu0 %v16420_v9 }
0x6714   : > { %8857 = vmatprep.subr.bf16.mxu0 %v16426_v0 }
0x67d9   : > { %v8645_v57 = vpop.f32.mrb[220].mxu0 }
0x67da   : > { %v8652_v25 = vmul.f32 -0.023809524, %v8645_v57  ;;  %v12170_v47 = vpop.f32.mrb[221].mxu0 }
0x67db   : > { %v8648_v29 = vpop.f32.mrb[222].mxu0 }
0x67dc   : > { %v8654_v11 = vadd.f32 %v8652_v25, %v16863_v59  ;;  %v8653_v26 = vmul.f32 -0.023809524, %v8648_v29  ;;  %v12171_v49 = vpop.f32.mrb[223].mxu0 }
0x67de   : > { %v8655_v46 = vadd.f32 %v8653_v26, %v16866_v52  ;;  %v8656_v40 = vadd.f32 %v8654_v11, %v16190_v14 }
0x67e0   : > { %v8657_v1 = vadd.f32 %v8655_v46, %v16190_v14 }
0x67e2   : > { %v8658_v37 = vpack.c.bf16 %v8657_v1, %v8656_v40 }
0x67e4   : > { %12177 = vmatmul.mubr.msk.bf16.vlgmr.msra.gmra.mrb[24].mxu1 %vm1003_vm1, %v8658_v37 }
0x67e5   : > { %12181 = vmatpush3.bf16.msra.mxu1 %v16790_v39  ;;  %12196 = vmatprep.mubr.msk.bf16.mxu1 %vm13094_vm0, %v17418_v22 }
0x67e6   : > { %12182 = vmatprep.subr.bf16.mxu1 %v17418_v22 }
0x67e9   : > { %12183 = vmatpush3.bf16.msra.mxu1 %v16799_v53 }
0x67ea   : > { %12184 = vmatprep.subr.bf16.mxu1 %v17418_v22 }
0x67ed   : > { %12185 = vmatpush3.bf16.msra.mxu1 %v16806_v16 }
0x67ee   : > { %12186 = vmatprep.subr.bf16.mxu1 %v17418_v22 }
0x67f1   : > { %12187 = vmatpush3.bf16.msra.mxu1 %v16842_v50 }
0x67f2   : > { %12188 = vmatprep.subr.bf16.mxu1 %v17418_v22 }
0x67f5   : > { %12189 = vmatpush3.bf16.msra.mxu1 %v16884_v62 }
0x67f6   : > { %12190 = vmatprep.subr.bf16.mxu1 %v17418_v22 }
0x67f9   : > { %12191 = vmatpush3.bf16.msra.mxu1 %v16891_v30 }
0x67fa   : > { %12192 = vmatprep.subr.bf16.mxu1 %v17418_v22 }
0x67fd   : > { %12193 = vmatpush3.bf16.msra.mxu1 %v16898_v43 }
0x67fe   : > { %12194 = vmatprep.subr.bf16.mxu1 %v17418_v22 }
0x6801   : > { %12195 = vmatpush3.bf16.msra.mxu1 %v16905_v23 }
0x6802   : > { %12200 = vmatprep.subr.bf16.mxu1 %v17418_v22 }
0x68b7   : > { %v8696_v33 = vpop.f32.mrb[24].mxu1 }
0x68b8   : > { %v8697_v9 = vadd.f32 %v16912_v51, %v8696_v33  ;;  %v12178_v0 = vpop.f32.mrb[25].mxu1 }
0x68b9   : > { %v8699_v39 = vpop.f32.mrb[26].mxu1 }
0x68ba   : > { %v8700_v53 = vadd.f32 %v16912_v51, %v8699_v39  ;;  %v12179_v16 = vpop.f32.mrb[27].mxu1  ;;  %12768 = vtanh.f32 %v8697_v9  ;;  %v9821_v39 = vld [vmem:[%s13645_s5 + $0x70] sm:$0xff] }
0x68bc   : > { %12770 = vtanh.f32 %v8700_v53  ;;  %v9194_v53 = vsub.f32 1.0, %v9821_v39 }
0x68c4   : > { %v12769_v50 = vpop.eup %12768 }
0x68c6   : > { %v12771_v59 = vpop.eup %12770 }
0x68c7   : > { %v8705_v52 = vpack.c.bf16 %v12771_v59, %v12769_v50 }
0x68c9   : > { %12197 = vmatmul.mubr.bf16.vlgmr.msra.gmra.mrb[28].mxu1 %v8705_v52 }
0x68ca   : > { %12201 = vmatpush3.bf16.msra.mxu1 %v16457_v21  ;;  %12204 = vmatprep.mubr.msk.bf16.mxu1 %vm13094_vm0, %v17418_v22 }
0x68cb   : > { %12202 = vmatprep.subr.bf16.mxu1 %v17418_v22 }
0x68ce   : > { %12203 = vmatpush3.bf16.msra.mxu1 %v16466_v44 }
0x68cf   : > { %12208 = vmatprep.subr.bf16.mxu1 %v17418_v22 }
0x699c   : > { %v8740_v62 = vpop.f32.mrb[28].mxu1 }
0x699d   : > { %v8747_v30 = vmul.f32 -0.023809524, %v8740_v62  ;;  %v12198_v43 = vpop.f32.mrb[29].mxu1 }
0x699e   : > { %v8743_v23 = vpop.f32.mrb[30].mxu1 }
0x699f   : > { %v8749_v51 = vadd.f32 %v8747_v30, %v8656_v40  ;;  %v8748_v41 = vmul.f32 -0.023809524, %v8743_v23  ;;  %v12199_v54 = vpop.f32.mrb[31].mxu1 }
0x69a0   : > { %v17498_v54 = vld [vmem:[#allocation21_spill] sm:$0xff] }
0x69a1   : > { %v8750_v15 = vadd.f32 %v8748_v41, %v8657_v1  ;;  %v16979_v21 = vadd.f32 %v8749_v51, %v16190_v14  ;;  %v17495_v41 = vld [vmem:[#allocation18_spill] sm:$0xff] }
0x69a3   : > { %v16982_v34 = vadd.f32 %v8750_v15, %v16190_v14  ;;  %v9820_v14 = vld [vmem:[%s13507_s27 + $0x78] sm:$0xff]  ;;  %v17499_v15 = vld [vmem:[#allocation22_spill] sm:$0xff]  ;;  %s9497_s27 = sshll.u32 %s949_s6, 4  ;;  %s17165_s27 = int_to_ptr.vmem [resolvable:$true] %s9497_s27 }
0x69a4   : > { %v16996_v24 = vpack.c.bf16 %v9820_v14, %v9819_v27  ;;  %v17503_v27 = vld [vmem:[#allocation26_spill] sm:$0xff]  ;;  %s12997_s18 = scalar_lea.vmem %s17165_s27, 256 }
0x69a5   : > { %v8759_v44 = vpack.c.bf16 %v16982_v34, %v16979_v21  ;;  %p12998_p13 = scmp.ne.s32.totalorder %s17165_s27, %s12997_s18 }
0x69a7   : > { %9824 = vmatmul.mubr.msk.bf16.vlgmr.msra.gmra.mrb[224].mxu0 %vm1003_vm1, %v8759_v44  ;;  %v17500_v44 = vld [vmem:[#allocation23_spill] sm:$0xff]  ;;  %p12999_p0 = pnand %p12998_p13, %p13268_p6 }
0x69a8   : > { %8858 = vmatpush1.bf16.msra.mxu0 %v12990_v13  ;;  %8889 = vmatprep.mubr.bf16.mxu0 %v17422_v5  ;;  %v12993_v5 = vld [vmem:[%s17402_s0 + $0x48] sm:$0xff]   ;;  %v17501_v13 = vld [vmem:[#allocation24_spill] sm:$0xff] }
0x69a9   : > { %10648 = vmatprep.subr.bf16.mxu0 %v12991_v7  ;;  %v17502_v7 = vld [vmem:[#allocation25_spill] sm:$0xff]  ;;  %p13000_p1 = pneg %p12999_p0 }
0x69b3   : > { %9825 = vmatmul.mubr.msk.bf16.vlgmr.msra.gmra.mrb[224].mxu0 %vm1307_vm2, %v16996_v24 }
0x69b4   : > { %10649 = vmatpush3.bf16.msra.mxu0 %v12992_v60 }
0x69b5   : > { %10650 = vmatprep.subr.bf16.mxu0 %v12993_v5 }
0x69b8   : > { %10651 = vmatpush3.bf16.msra.mxu0 %v12994_v63 }
0x69b9   : > { %10652 = vmatprep.subr.bf16.mxu0 %v12995_v45 }
0x69bc   : > { %10653 = vmatpush3.bf16.msra.mxu0 %v12996_v17 }
0x69bd   : > { %10654 = vmatprep.subr.bf16.mxu0 %v16496_v28 }
0x69c0   : > { %10655 = vmatpush3.bf16.msra.mxu0 %v16502_v4 }
0x69c1   : > { %10656 = vmatprep.subr.bf16.mxu0 %v16508_v6 }
0x69c4   : > { %10657 = vmatpush3.bf16.msra.mxu0 %v16514_v48 }
0x69c5   : > { %10658 = vmatprep.subr.bf16.mxu0 %v16520_v35 }
0x69c8   : > { %10659 = vmatpush3.bf16.msra.mxu0 %v16526_v31 }
0x69c9   : > { %10660 = vmatprep.subr.bf16.mxu0 %v16532_v32 }
0x69cc   : > { %10661 = vmatpush3.bf16.msra.mxu0 %v16538_v58 }
0x69cd   : > { %10662 = vmatprep.subr.bf16.mxu0 %v16544_v36 }
0x69d0   : > { %10663 = vmatpush3.bf16.msra.mxu0 %v16550_v8 }
0x69d1   : > { %12242 = vmatprep.subr.bf16.mxu0 %v17418_v22 }
0x6a86   : > { %v8891_v28 = vpop.f32.mrb[224].mxu0 }
0x6a87   : > { %v8904_v4 = vadd.f32 %v8891_v28, %v13596_v55  ;;  %v8893_v6 = vpop.f32.mrb[225].mxu0 }
0x6a88   : > { %v8905_v48 = vadd.f32 %v8893_v6, %v13598_v56  ;;  %v8895_v19 = vpop.f32.mrb[226].mxu0 }
0x6a89   : > { %12772 = vtanh.f32 %v8904_v4  ;;  %v8906_v35 = vadd.f32 %v8895_v19, %v13596_v55  ;;  %v8897_v31 = vpop.f32.mrb[227].mxu0 }
0x6a8a   : > { %12774 = vtanh.f32 %v8905_v48  ;;  %v8907_v32 = vadd.f32 %v8897_v31, %v13598_v56 }
0x6a8b   : > { %12776 = vtanh.f32 %v8906_v35 }
0x6a8c   : > { %12778 = vtanh.f32 %v8907_v32  ;;  %v17504_v32 = vld [vmem:[#allocation27_spill] sm:$0xff] }
0x6a93   : > { %v12773_v58 = vpop.eup %12772 }
0x6a94   : > { %v12775_v36 = vpop.eup %12774 }
0x6a95   : > { %v12777_v8 = vpop.eup %12776 }
0x6a96   : > { %v12779_v2 = vpop.eup %12778  ;;  %v8912_v38 = vpack.c.bf16 %v12777_v8, %v12773_v58 }
0x6a97   : > { %v8913_v3 = vpack.c.bf16 %v12779_v2, %v12775_v36 }
0x6a99   : > { %8946 = vmatprep.mubr.bf16.mxu0 %v8913_v3 }
0x6a9a   : > { %8947 = vmatmul.mubr.bf16.vlgmr.msra.gmra.mrb[228].mxu0 %v8912_v38 }
0x6a9b   : > { %12246 = vmatprep.mubr.msk.bf16.mxu0 %vm13094_vm0, %v17418_v22 }
0x6b6d   : > { %v10664_v57 = vpop.f32.mrb[228].mxu0 }
0x6b6e   : > { %v10665_v25 = vpop.f32.mrb[229].mxu0 }
0x6b6f   : > { %v10666_v55 = vadd.f32 %v10665_v25, %v10664_v57  ;;  %v10667_v47 = vpop.f32.mrb[230].mxu0  ;;  %v12448_v25 = vld [vmem:[%s17276_s15] sm:$0xff]  }
0x6b70   : > { %v10668_v29 = vpop.f32.mrb[231].mxu0  ;;  %12243 = vmatpush3.bf16.msra.mxu0 %v12448_v25 }
0x6b71   : > { %v8949_v56 = vadd.f32 %v16567_v12, %v10666_v55  ;;  %v10669_v11 = vadd.f32 %v10668_v29, %v10667_v47  ;;  %12244 = vmatprep.subr.bf16.mxu0 %v17418_v22 }
0x6b73   : > { %v9826_v26 = vmul.f32 -1.442695, %v8949_v56  ;;  %v8952_v49 = vadd.f32 %v16567_v12, %v10669_v11  ;;  %v9822_v12 = vld [vmem:[%s13645_s5 + $0x78] sm:$0xff]  ;;  %s13097_s5 = smov [#allocation4]  }
0x6b74   : > { %v9195_v16 = vsub.f32 1.0, %v9822_v12  ;;  %s13001_s25 = sshll.u32 %s13097_s5, 4  ;;  %s13002_s25 = int_to_ptr.vmem [resolvable:$false] %s13001_s25 }
0x6b75   : > { %12780 = vpow2.f32 %v9826_v26  ;;  %v9827_v46 = vmul.f32 -1.442695, %v8952_v49  ;;  %v12449_v49 = vld [vmem:[%s17276_s15 + $0x8] sm:$0xff]   ;;  %p13004_p2 = scmp.lt.s32.totalorder %s17165_s27, %s13002_s25 }
0x6b76   : > { %12245 = vmatpush3.bf16.msra.mxu0 %v12449_v49 }
0x6b77   : > { %12782 = vpow2.f32 %v9827_v46  ;;  %12250 = vmatprep.subr.bf16.mxu0 %v17418_v22 }
0x6b7f   : > { %v12781_v40 = vpop.eup %12780 }
0x6b80   : > { %v8961_v1 = vadd.f32 1.0, %v12781_v40 }
0x6b81   : > { %v12783_v37 = vpop.eup %12782 }
0x6b82   : > { %12784 = vrcp.f32 %v8961_v1  ;;  %v8962_v33 = vadd.f32 1.0, %v12783_v37 }
0x6b84   : > { %12786 = vrcp.f32 %v8962_v33 }
0x6b8c   : > { %v17034_v9 = vpop.eup %12784 }
0x6b8d   : > { %8969 = vrot.lane.b32.xlu0 %v17034_v9, %s17419_s4  ;;  %v9160_v11 = vsub.f32 1.0, %v17034_v9  ;;  %v9164_v46 = vmul.f32 %v17034_v9, %v16979_v21 }
0x6b8e   : > { %v17038_v0 = vpop.eup %12786 }
0x6b8f   : > { %8971 = vrot.lane.b32.xlu1 %v17038_v0, %s17419_s4 }
0x6b91   : > { %9184 = vperm.xlu0 %12393, %v9821_v39   ;;  %v9161_v39 = vsub.f32 1.0, %v17038_v0 }
0x6b93   : > { %9189 = vperm.xlu1 %12392, %v9822_v12  }
0x6b95   : > { %9198 = vperm.xlu0 %12393, %v9194_v53  }
0x6b97   : > { %9203 = vperm.xlu1 %12392, %v9195_v16  }
0x6bff   : > { %v8970_v50 = vpop.permute.xlu0 %8969 }
0x6c00   : > { %v8978_v52 = vmul.f32 %v8970_v50, %v16935_v18  ;;  %v8975_v23 = vmul.f32 %v8970_v50, %v16979_v21 }
0x6c01   : > { %v8972_v59 = vpop.permute.xlu1 %8971 }
0x6c02   : > { %v8979_v62 = vmul.f32 %v8972_v59, %v16932_v10  ;;  %v8976_v43 = vmul.f32 %v8972_v59, %v16982_v34  ;;  %v9165_v59 = vmul.f32 %v17038_v0, %v16982_v34 }
0x6c04   : > { %v8980_v30 = vpack.c.bf16 %v8979_v62, %v8978_v52  ;;  %v8977_v51 = vpack.c.bf16 %v8976_v43, %v8975_v23 }
0x6c06   : > { %12205 = vmatmul.mubr.msk.bf16.vlgmr.msra.gmra.mrb[32].mxu1 %vm1003_vm1, %v8980_v30 }
0x6c07   : > { %12209 = vmatpush3.bf16.msra.mxu1 %v16587_v20  ;;  %12212 = vmatprep.mubr.msk.bf16.mxu1 %vm13094_vm0, %v17418_v22  ;;  %v17496_v20 = vld [vmem:[#allocation19_spill] sm:$0xff] }
0x6c08   : > { %12210 = vmatprep.subr.bf16.mxu1 %v17418_v22 }
0x6c0b   : > { %12211 = vmatpush3.bf16.msra.mxu1 %v16598_v61  ;;  %v17497_v61 = vld [vmem:[#allocation20_spill] sm:$0xff] }
0x6c0c   : > { %12216 = vmatprep.subr.bf16.mxu1 %v17418_v22 }
0x6c0e   : > { %12213 = vmatmul.mubr.msk.bf16.vlgmr.msra.gmra.mrb[36].mxu1 %vm1003_vm1, %v8977_v51 }
0x6c0f   : > { %12217 = vmatpush3.bf16.msra.mxu1 %v17495_v41  ;;  %12218 = vmatprep.mubr.msk.bf16.mxu1 %vm13094_vm0, %v17418_v22 }
0x6c10   : > { %12222 = vmatprep.subr.bf16.mxu1 %v17418_v22  ;;  %v9185_v55 = vpop.permute.xlu0 %9184 }
0x6c12   : > { %v9190_v47 = vpop.permute.xlu1 %9189 }
0x6c14   : > { %v9199_v52 = vpop.permute.xlu0 %9198 }
0x6c16   : > { %12219 = vmatmul.mubr.msk.bf16.vlgmr.msra.gmra.mrb[40].mxu1 %vm1307_vm2, %v16996_v24  ;;  %v9204_v62 = vpop.permute.xlu1 %9203 }
0x6c17   : > { %12223 = vmatpush3.bf16.msra.mxu1 %v17496_v20  ;;  %12238 = vmatprep.mubr.msk.bf16.mxu1 %vm13094_vm0, %v17418_v22  ;;  %v9207_v23 = vmul.f32 %v9204_v62, %v16982_v34  ;;  %v9213_v34 = vmul.f32 %v9204_v62, %v16932_v10 }
0x6c18   : > { %12224 = vmatprep.subr.bf16.mxu1 %v17418_v22 }
0x6c1b   : > { %12225 = vmatpush3.bf16.msra.mxu1 %v17497_v61 }
0x6c1c   : > { %12226 = vmatprep.subr.bf16.mxu1 %v17418_v22 }
0x6c1f   : > { %12227 = vmatpush3.bf16.msra.mxu1 %v17498_v54 }
0x6c20   : > { %12228 = vmatprep.subr.bf16.mxu1 %v17418_v22 }
0x6c23   : > { %12229 = vmatpush3.bf16.msra.mxu1 %v17499_v15 }
0x6c24   : > { %12230 = vmatprep.subr.bf16.mxu1 %v17418_v22 }
0x6c27   : > { %12231 = vmatpush3.bf16.msra.mxu1 %v17500_v44  ;;  %v9178_v44 = vmul.f32 %v17034_v9, %v16935_v18  ;;  %v12450_v9 = vld [vmem:[%s17275_s14] sm:$0xff]  }
0x6c28   : > { %12232 = vmatprep.subr.bf16.mxu1 %v17418_v22 }
0x6c2b   : > { %12233 = vmatpush3.bf16.msra.mxu1 %v17501_v13 }
0x6c2c   : > { %12234 = vmatprep.subr.bf16.mxu1 %v17418_v22 }
0x6c2f   : > { %12235 = vmatpush3.bf16.msra.mxu1 %v17502_v7 }
0x6c30   : > { %12236 = vmatprep.subr.bf16.mxu1 %v17418_v22 }
0x6c33   : > { %12237 = vmatpush3.bf16.msra.mxu1 %v17503_v27  ;;  %v9179_v27 = vmul.f32 %v17038_v0, %v16932_v10  ;;  %v12452_v10 = vld [vmem:[%s17278_s17] sm:$0xff]   ;;  %v12453_v0 = vld [vmem:[%s17278_s17 + $0x8] sm:$0xff]  }
0x6cd9   : > { %v9018_v14 = vpop.f32.mrb[32].mxu1 }
0x6cda   : > { %v12206_v24 = vpop.f32.mrb[33].mxu1 }
0x6cdb   : > { %v9021_v60 = vpop.f32.mrb[34].mxu1  ;;  %v9212_v24 = vmul.f32 %v9199_v52, %v16935_v18  ;;  %v12451_v18 = vld [vmem:[%s17275_s14 + $0x8] sm:$0xff]  }
0x6cdc   : > { %v12207_v5 = vpop.f32.mrb[35].mxu1 }
0x6ce1   : > { %v9062_v63 = vpop.f32.mrb[36].mxu1 }
0x6ce2   : > { %v9063_v45 = vadd.f32 %v9062_v63, %v9018_v14  ;;  %v12214_v17 = vpop.f32.mrb[37].mxu1 }
0x6ce3   : > { %v9065_v28 = vpop.f32.mrb[38].mxu1 }
0x6ce4   : > { %v9066_v4 = vadd.f32 %v9065_v28, %v9021_v60  ;;  %v12215_v6 = vpop.f32.mrb[39].mxu1 }
0x6ce5   : > { %v12454_v6 = vld [vmem:[%s17278_s17 + $0x10] sm:$0xff]  }
0x6ce9   : > { %v9103_v48 = vpop.f32.mrb[40].mxu1 }
0x6cea   : > { %v9110_v19 = vadd.f32 %v9103_v48, %v9063_v45  ;;  %v12220_v35 = vpop.f32.mrb[41].mxu1  ;;  %v12455_v48 = vld [vmem:[%s17278_s17 + $0x18] sm:$0xff]  }
0x6ceb   : > { %v9106_v31 = vpop.f32.mrb[42].mxu1  ;;  %v12457_v35 = vld [vmem:[%s17278_s17 + $0x28] sm:$0xff]  }
0x6cec   : > { %v9112_v58 = vadd.f32 %v17504_v32, %v9110_v19  ;;  %v9111_v36 = vadd.f32 %v9106_v31, %v9066_v4  ;;  %v12221_v8 = vpop.f32.mrb[43].mxu1  ;;  %v12456_v19 = vld [vmem:[%s17278_s17 + $0x20] sm:$0xff]   ;;  %v12458_v31 = vld [vmem:[%s17278_s17 + $0x30] sm:$0xff]  }
0x6cee   : > { %v9113_v2 = vadd.f32 %v17504_v32, %v9111_v36  ;;  %12788 = vtanh.f32 %v9112_v58  ;;  %v12459_v32 = vld [vmem:[%s17278_s17 + $0x38] sm:$0xff]  }
0x6cf0   : > { %12790 = vtanh.f32 %v9113_v2 }
0x6cf8   : > { %v12789_v38 = vpop.eup %12788 }
0x6cfa   : > { %v12791_v3 = vpop.eup %12790 }
0x6cfb   : > { %v9116_v57 = vpack.c.bf16 %v12791_v3, %v12789_v38  ;;  %v9837_v3 = vld [vmem:[%s17277_s16] ss:$0 sm:$0xff] }
0x6cfd   : > { %12239 = vmatmul.mubr.bf16.vlgmr.msra.gmra.mrb[44].mxu1 %v9116_v57 }
0x6dd0   : > { %v9151_v29 = vpop.f32.mrb[44].mxu1 }
0x6dd1   : > { %v9152_v56 = vadd.f32 %v16692_v42, %v9151_v29  ;;  %v12240_v26 = vpop.f32.mrb[45].mxu1 }
0x6dd2   : > { %v9154_v40 = vpop.f32.mrb[46].mxu1 }
0x6dd3   : > { %v9158_v1 = vand.u32 2147483647, %v9152_v56  ;;  %v9162_v37 = vmul.f32 %v9160_v11, %v9152_v56  ;;  %v9155_v33 = vadd.f32 %v16692_v42, %v9154_v40  ;;  %v12241_v12 = vpop.f32.mrb[47].mxu1  ;;  %v9206_v42 = vmul.f32 %v9199_v52, %v16979_v21 }
0x6dd5   : > { %v9166_v53 = vadd.f32 %v9164_v46, %v9162_v37  ;;  %v9159_v16 = vand.u32 2147483647, %v9155_v33  ;;  %v9163_v50 = vmul.f32 %v9161_v39, %v9155_v33  ;;  %9170 = vrot.lane.b32.xlu0 %v9158_v1, %s17419_s4  ;;  %v9838_v46 = vld [vmem:[%s17505_s29] ss:$0 sm:$0xff]  ;;  %s17171_s29 = scalar_lea.hbm %s17508_s26, %s17163_s3  ;;  %s13003_s26 = scalar_lea.vmem %s13002_s25, 512 }
0x6dd6   : > { %p13005_p3 = scmp.lt.s32.totalorder %s13003_s26, %s12997_s18 }
0x6dd7   : > { %v9192_v30 = vmul.f32 %v9185_v55, %v9166_v53  ;;  %v9167_v43 = vadd.f32 %v9165_v59, %v9163_v50  ;;  %9172 = vrot.lane.b32.xlu1 %v9159_v16, %s17419_s4 }
0x6dd8   : > { %p13006_p4 = por %p13005_p3, %p13004_p2 }
0x6dd9   : > { %v9193_v51 = vmul.f32 %v9190_v47, %v9167_v43  ;;  %v9208_v41 = vadd.f32 %v9206_v42, %v9192_v30 }
0x6dda   : > { %p13007_p5 = pnand %p13006_p4, %p13000_p1 }
0x6ddb   : > { %v9209_v20 = vadd.f32 %v9207_v23, %v9193_v51 }
0x6ddd   : > { %v9222_v61 = vpack.c.bf16 %v9209_v20, %v9208_v41 }
0x6e47   : > { %v9171_v54 = vpop.permute.xlu0 %9170 }
0x6e48   : > { %v9176_v15 = vmul.f32 %v9171_v54, %v9160_v11 }
0x6e49   : > { %v9173_v13 = vpop.permute.xlu1 %9172 }
0x6e4a   : > { %v9180_v7 = vadd.f32 %v9178_v44, %v9176_v15  ;;  %v9177_v14 = vmul.f32 %v9173_v13, %v9161_v39 }
0x6e4c   : > { %v9210_v21 = vmul.f32 %v9185_v55, %v9180_v7  ;;  %v9181_v60 = vadd.f32 %v9179_v27, %v9177_v14 }
0x6e4e   : > { %v9214_v5 = vadd.f32 %v9212_v24, %v9210_v21  ;;  %v9211_v63 = vmul.f32 %v9190_v47, %v9181_v60 }
0x6e50   : > { %v9215_v45 = vadd.f32 %v9213_v34, %v9211_v63  ;;  %v9216_v17 = vand.u32 2147483647, %v9214_v5 }
0x6e52   : > { %v9217_v28 = vand.u32 2147483647, %v9215_v45 }
0x6e54   : > { %v9227_v4 = vpack.c.bf16 %v9217_v28, %v9216_v17 }
0x6e56   : > { %12247 = vmatmul.mubr.msk.bf16.vlgmr.msra.gmra.mrb[232].mxu0 %vm1003_vm1, %v9227_v4 }
0x6e57   : > { %12251 = vmatpush3.bf16.msra.mxu0 %v12450_v9  ;;  %12254 = vmatprep.mubr.msk.bf16.mxu0 %vm13094_vm0, %v17418_v22 }
0x6e58   : > { %12252 = vmatprep.subr.bf16.mxu0 %v17418_v22 }
0x6e5b   : > { %12253 = vmatpush3.bf16.msra.mxu0 %v12451_v18 }
0x6e5c   : > { %12258 = vmatprep.subr.bf16.mxu0 %v17418_v22 }
0x6e5e   : > { %12255 = vmatmul.mubr.msk.bf16.vlgmr.msra.gmra.mrb[236].mxu0 %vm1003_vm1, %v9222_v61 }
0x6e5f   : > { %12259 = vmatpush3.bf16.msra.mxu0 %v12452_v10  ;;  %12274 = vmatprep.mubr.msk.bf16.mxu0 %vm13094_vm0, %v17418_v22 }
0x6e60   : > { %12260 = vmatprep.subr.bf16.mxu0 %v17418_v22 }
0x6e63   : > { %12261 = vmatpush3.bf16.msra.mxu0 %v12453_v0 }
0x6e64   : > { %12262 = vmatprep.subr.bf16.mxu0 %v17418_v22 }
0x6e67   : > { %12263 = vmatpush3.bf16.msra.mxu0 %v12454_v6 }
0x6e68   : > { %12264 = vmatprep.subr.bf16.mxu0 %v17418_v22 }
0x6e6b   : > { %12265 = vmatpush3.bf16.msra.mxu0 %v12455_v48 }
0x6e6c   : > { %12266 = vmatprep.subr.bf16.mxu0 %v17418_v22 }
0x6e6f   : > { %12267 = vmatpush3.bf16.msra.mxu0 %v12456_v19 }
0x6e70   : > { %12268 = vmatprep.subr.bf16.mxu0 %v17418_v22 }
0x6e73   : > { %12269 = vmatpush3.bf16.msra.mxu0 %v12457_v35 }
0x6e74   : > { %12270 = vmatprep.subr.bf16.mxu0 %v17418_v22 }
0x6e77   : > { %12271 = vmatpush3.bf16.msra.mxu0 %v12458_v31 }
0x6e78   : > { %12272 = vmatprep.subr.bf16.mxu0 %v17418_v22 }
0x6e7b   : > { %12273 = vmatpush3.bf16.msra.mxu0 %v12459_v32 }
0x6f29   : > { %v9277_v58 = vpop.f32.mrb[232].mxu0 }
0x6f2a   : > { %v12248_v36 = vpop.f32.mrb[233].mxu0 }
0x6f2b   : > { %v9280_v8 = vpop.f32.mrb[234].mxu0 }
0x6f2c   : > { %v12249_v2 = vpop.f32.mrb[235].mxu0 }
0x6f31   : > { %v9333_v38 = vpop.f32.mrb[236].mxu0 }
0x6f32   : > { %v9334_v57 = vadd.f32 %v9333_v38, %v9277_v58  ;;  %v12256_v25 = vpop.f32.mrb[237].mxu0 }
0x6f33   : > { %v9336_v55 = vpop.f32.mrb[238].mxu0 }
0x6f34   : > { %v9347_v47 = vadd.f32 %v9837_v3, %v9334_v57  ;;  %v9337_v29 = vadd.f32 %v9336_v55, %v9280_v8  ;;  %v12257_v56 = vpop.f32.mrb[239].mxu0 }
0x6f36   : > { %v9348_v22 = vadd.f32 %v9837_v3, %v9337_v29  ;;  %12792 = vtanh.f32 %v9347_v47 }
0x6f38   : > { %12794 = vtanh.f32 %v9348_v22 }
0x6f40   : > { %v12793_v11 = vpop.eup %12792 }
0x6f42   : > { %v12795_v26 = vpop.eup %12794 }
0x6f43   : > { %v9367_v49 = vpack.c.bf16 %v12795_v26, %v12793_v11 }
0x6f45   : > { %12275 = vmatmul.mubr.bf16.vlgmr.msra.gmra.mrb[240].mxu0 %v9367_v49 }
0x7018   : > { %v9457_v40 = vpop.f32.mrb[240].mxu0 }
0x7019   : > { %v9458_v1 = vadd.f32 %v9838_v46, %v9457_v40  ;;  %v12276_v37 = vpop.f32.mrb[241].mxu0 }
0x701a   : > { %v9460_v33 = vpop.f32.mrb[242].mxu0 }
0x701b   : > { %9464 = vst.msk [vmem:[%s949_s6] sm:$0xff] %vm1003_vm1, %v9458_v1  ;;  %v9466_v39 = vand.u32 2147483647, %v9458_v1  ;;  %v9461_v12 = vadd.f32 %v9838_v46, %v9460_v33  ;;  %v12277_v53 = vpop.f32.mrb[243].mxu0 }
0x701d   : > { %9465 = vst.msk [vmem:[%s949_s6 + $0x8] sm:$0xff] %vm1003_vm1, %v9461_v12  ;;  %v9467_v16 = vand.u32 2147483647, %v9461_v12  ;;  %9470 = vrot.lane.b32.xlu0 %v9466_v39, %s17419_s4 }
0x701e   : > { %13010 = shalt.err (!%p13007_p5)
}
0x701f   : > { %s13011_s6 = scalar_lea.hbm %s17171_s29, 256  ;;  %s13015_s5 = scalar_lea.hbm %s17509_s7, 512 }
0x7020   : > { %p13012_p7 = scmp.ne.s32.totalorder %s17171_s29, %s13011_s6  ;;  %p13016_p12 = scmp.lt.u32.totalorder %s17171_s29, %s17509_s7 }
0x7021   : > { %p13017_p13 = scmp.lt.u32.totalorder %s13015_s5, %s13011_s6  ;;  %p13019_p1 = scmp.lt.u32.totalorder %s13011_s6, %s17171_s29 }
0x7022   : > { %p13013_p10 = pnand %p13012_p7, %p13268_p6 }
0x7023   : > { %p13018_p0 = por %p13017_p13, %p13016_p12 }
0x7024   : > { %p13014_p11 = pneg %p13013_p10 }
0x7025   : > { %p13020_p2 = por %p13019_p1, %p13018_p0 }
0x7027   : > { %p13021_p3 = pnand %p13020_p2, %p13014_p11 }
0x7029   : > { %13024 = shalt.err (!%p13021_p3)
}
0x702a   : > { %s13098_s18 = smov 128   ;;  %s13099_s0 = smov 8   ;;  %9472 = vrot.lane.b32.xlu1 %v9467_v16, %s17419_s4 }
0x702b   : > { %s17510_s8 = scalar_lea.sflag [#allocation5], %s13492_s2  ;;  %s17511_s24 = sshll.u32 %s13492_s2, 4 }
0x702c   : > { %12342 = dma.vmem_to_hbm [thread:$0]  (%p13268_p6), %s17165_s27, 256, %s17171_s29, %s17510_s8, %s13098_s18, %s13098_s18, %s13099_s0  }
0x702d   : > { %s956_s26 = scalar_lea.vmem [#allocation6], %s17511_s24  ;;  %s17512_s7 = sld [smem:[#allocation42_spill]] }
0x702e   : > { %s9513_s6 = sshll.u32 %s956_s26, 4  ;;  %s9484_s4 = scalar_lea.sflag [#allocation7], %s13492_s2  ;;  %s17206_s6 = int_to_ptr.vmem [resolvable:$true] %s9513_s6 }
0x702f   : > { %s13025_s27 = scalar_lea.vmem %s17206_s6, 256  ;;  %s13100_s29 = smov [#allocation6]  }
0x7030   : > { %p13026_p4 = scmp.ne.s32.totalorder %s17206_s6, %s13025_s27  ;;  %s13029_s8 = sshll.u32 %s13100_s29, 4  ;;  %s13030_s8 = int_to_ptr.vmem [resolvable:$false] %s13029_s8 }
0x7031   : > { %s13031_s24 = scalar_lea.vmem %s13030_s8, 512  ;;  %p13032_p10 = scmp.lt.s32.totalorder %s17206_s6, %s13030_s8 }
0x7032   : > { %p13027_p5 = pnand %p13026_p4, %p13268_p6  ;;  %p13033_p11 = scmp.lt.s32.totalorder %s13031_s24, %s13025_s27 }
0x7033   : > { %s17213_s9 = scalar_lea.hbm %s17512_s7, %s17163_s3 }
0x7034   : > { %p13028_p7 = pneg %p13027_p5  ;;  %p13034_p12 = por %p13033_p11, %p13032_p10 }
0x7036   : > { %p13035_p13 = pnand %p13034_p12, %p13028_p7 }
0x708f   : > { %v9471_v50 = vpop.permute.xlu0 %9470 }
0x7090   : > { %9476 = vst.msk [vmem:[%s956_s26] sm:$0xff] %vm1003_vm1, %v9471_v50 }
0x709c   : > { %v9473_v59 = vpop.permute.xlu1 %9472 }
0x709d   : > { %9477 = vst.msk [vmem:[%s956_s26 + $0x8] sm:$0xff] %vm1003_vm1, %v9473_v59 }
0x709e   : > { %13038 = shalt.err (!%p13035_p13)
}
0x709f   : > { %s13039_s3 = scalar_lea.hbm %s17213_s9, 256  ;;  %s13043_s25 = scalar_lea.hbm %s17512_s7, 512 }
0x70a0   : > { %p13040_p0 = scmp.ne.s32.totalorder %s17213_s9, %s13039_s3  ;;  %p13044_p3 = scmp.lt.u32.totalorder %s17213_s9, %s17512_s7 }
0x70a1   : > { %p13045_p4 = scmp.lt.u32.totalorder %s13043_s25, %s13039_s3  ;;  %p13047_p7 = scmp.lt.u32.totalorder %s13039_s3, %s17213_s9 }
0x70a2   : > { %p13041_p1 = pnand %p13040_p0, %p13268_p6 }
0x70a3   : > { %p13046_p5 = por %p13045_p4, %p13044_p3 }
0x70a4   : > { %p13042_p2 = pneg %p13041_p1 }
0x70a5   : > { %p13048_p10 = por %p13047_p7, %p13046_p5 }
0x70a7   : > { %p13049_p11 = pnand %p13048_p10, %p13042_p2 }
0x70a9   : > { %13052 = shalt.err (!%p13049_p11)
}
0x70aa   : > { %12343 = dma.vmem_to_hbm [thread:$0]  (%p13268_p6), %s17206_s6, 256, %s17213_s9, %s9484_s4, %s13098_s18, %s13098_s18, %s13099_s0  }
0x70ab PF: > { %s17513_s27 = sld [smem:[#allocation10_spill]]  ;;  %p12347_p12 = pnand %p9633_p9, %p13272_p8 }
0x70b1   : > { %s9528_s26 = sand.u32 1, %s17513_s27  }
0x70b2   : > { %s9529_s3 = scalar_lea.sflag [#allocation5], %s9528_s26 }
0x70b3   : > { %13070 = dma.done.wait (!%p12347_p12), %s9529_s3, 256  }
0x70b4   : > { %13072 = vsyncadd (!%p12347_p12), %s9529_s3, 4294967040  ;;  %s9538_s1 = scalar_lea.sflag [#allocation7], %s9528_s26 }
0x70b5   : > { %13074 = dma.done.wait (!%p12347_p12), %s9538_s1, 256  }
0x70b6   : > { %13076 = vsyncadd (!%p12347_p12), %s9538_s1, 4294967040  ;;  %s17515_s28 = sld [smem:[#allocation13_spill]]  ;;  %s17516_s5 = sld [smem:[#allocation11_spill]] }
0x70b7   : > { %s17517_s26 = sld [smem:[#allocation12_spill]]  ;;  %s17518_s27 = sld [smem:[#allocation14_spill]] }
0x70bc   : > { %p38_p6 = scmp.ge.s32.totalorder %s17515_s28, 4  }
0x70be   :  { %40 = sbr.rel (!%p38_p6) target bundleno = 19 (0x13), region = 267 }
0x70c5   :  { %9543 = vsyncpa [#allocation5], 1 }
0x70c6   :  { %9545 = vsyncpa [#allocation5 + $0x1], 1 }
0x70c7   :  { %9546 = vsyncpa [#allocation7], 1 }
0x70c8   :  { %9548 = vsyncpa [#allocation7 + $0x1], 1 }

</bundles_post_ra>
